<compile_context>
chip_gen: v7x
topology: tpu7x:2x2x1
jax: 0.10.0
libtpu: 0.0.40
codegen_flags: <defaults>
</compile_context>

<pallas_src>
import functools

import jax
import jax.numpy as jnp
from jax.experimental import pallas as pl
from jax.experimental.pallas import tpu as pltpu


def _self_attn_kernel(x_ref, gamma_ref, beta_ref, w_ref, b_ref, out_ref, *,
                      n_heads, head_dim, n_t, n_v, eps):
    nb, n_c, tv = x_ref.shape                     # (NB, C, T*V)
    inner = n_heads * head_dim
    vv = n_v * n_v

    # ---- LayerNorm over C, lane-dense (C on sublanes, T*V on 128 lanes) ----
    x = x_ref[...].astype(jnp.float32)                      # (NB, C, T*V)
    mean = jnp.mean(x, axis=1, keepdims=True)               # (NB, 1, T*V)
    var = jnp.mean((x - mean) ** 2, axis=1, keepdims=True)  # biased, eps inside
    xn = (x - mean) * jax.lax.rsqrt(var + eps)
    gamma = gamma_ref[...].astype(jnp.float32)[None]        # (1, C, 1)
    beta = beta_ref[...].astype(jnp.float32)[None]
    y = xn * gamma + beta                                   # (NB, C, T*V)

    # ---- one projection matmul for the whole NB-sample block ----
    # In-VMEM transpose to token-major, then (NB*T*V, C) @ (C, 2*h*d).
    y_tok = jnp.transpose(y, (0, 2, 1)).reshape(nb * tv, n_c)
    proj = jnp.dot(y_tok, w_ref[...].astype(jnp.float32),
                   preferred_element_type=jnp.float32)
    proj = proj + b_ref[...].astype(jnp.float32)            # (NB*T*V, 2*h*d)

    # d**-0.5 is already folded into the q rows of W / bias (param prep).
    q = proj[:, :inner].reshape(nb * n_t, n_v, inner)        # (NB*T, V, h*d)
    k = proj[:, inner:].reshape(nb * n_t, n_v, inner)

    # ---- per-head batched dots + softmax; direct slice-stores (no concat) ----
    for h in range(n_heads):                                 # tiny static loop
        lo = h * head_dim
        dots = jnp.einsum('bid,bjd->bij',
                          q[..., lo:lo + head_dim],
                          k[..., lo:lo + head_dim],
                          preferred_element_type=jnp.float32)  # (NB*T, V, V)
        m = jnp.max(dots, axis=-1, keepdims=True)
        e = jnp.exp(dots - m)
        attn = e * pl.reciprocal(jnp.sum(e, axis=-1, keepdims=True), approx=True)
        # Lane-dense 256-wide static slice: head-major, (i, j) row-major,
        # matching the '(n t) h i j' output layout.
        out_ref[:, :, h * vv:(h + 1) * vv] = (
            attn.reshape(nb, n_t, vv).astype(out_ref.dtype))


def prepare_qk_params(w_qk, b_qk, *, n_heads, hidden_dim):
    """One-time parameter transform: torch-layout (2hd, C) weight -> (C, 2hd),
    with the d**-0.5 softmax scale folded into the q half of weight and bias."""
    inner = n_heads * hidden_dim
    scale = hidden_dim ** (-0.5)
    s = jnp.concatenate([jnp.full((inner,), scale, dtype=w_qk.dtype),
                         jnp.ones((inner,), dtype=w_qk.dtype)])
    w_t = (w_qk * s[:, None]).T          # (C, 2*inner)
    b = b_qk * s                         # (2*inner,)
    return w_t, b


def _pick_sample_block(n, max_block=16):
    """Largest divisor of n that is <= max_block while keeping >= 2 grid steps
    (so both v7x TensorCores get work); on single-TC chips the grid is just a
    serial loop and larger blocks only help, so max_block is tunable upward."""
    cap = max(1, min(max_block, n // 2 if n >= 2 else 1))
    for nb in range(cap, 0, -1):
        if n % nb == 0:
            return nb
    return 1


def self_attention(x, ln_gamma, ln_beta, w_qk_t, b_qk, *, n_heads, hidden_dim,
                   max_sample_block=16):
    """x: (N, C, T, V) f32; w_qk_t/b_qk from prepare_qk_params.
    Returns attn: (N*T, n_heads, V, V) f32."""
    N, C, T, V = x.shape
    inner2 = 2 * n_heads * hidden_dim
    hvv = n_heads * V * V
    nb = _pick_sample_block(N, max_sample_block)

    x2 = x.reshape(N, C, T * V)          # metadata-only reshape

    kernel = functools.partial(
        _self_attn_kernel, n_heads=n_heads, head_dim=hidden_dim,
        n_t=T, n_v=V, eps=1e-5)

    out = pl.pallas_call(
        kernel,
        out_shape=jax.ShapeDtypeStruct((N, T, hvv), jnp.float32),
        grid=(N // nb,),
        in_specs=[
            pl.BlockSpec((nb, C, T * V), lambda i: (i, 0, 0)),   # NB samples
            pl.BlockSpec((C, 1), lambda i: (0, 0)),              # LN gamma (resident)
            pl.BlockSpec((C, 1), lambda i: (0, 0)),              # LN beta  (resident)
            pl.BlockSpec((C, inner2), lambda i: (0, 0)),         # W_qk^T   (resident)
            pl.BlockSpec((1, inner2), lambda i: (0, 0)),         # bias     (resident)
        ],
        out_specs=pl.BlockSpec((nb, T, hvv), lambda i: (i, 0, 0)),  # lane-dense out
        compiler_params=pltpu.CompilerParams(
            dimension_semantics=("parallel",),       # 2-TC split on v7x
            vmem_limit_bytes=32 * 1024 * 1024),      # plenty for nb<=16, v7x-safe
    )(x2, ln_gamma.reshape(C, 1), ln_beta.reshape(C, 1),
      w_qk_t, b_qk.reshape(1, inner2))

    # Free, contiguous reshape back to the PyTorch '(n t) h i j' layout.
    return out.reshape(N * T, n_heads, V, V)


def _reference(x, ln_gamma, ln_beta, w_qk, b_qk, *, n_heads, hidden_dim):
    """Pure-JAX reference mirroring the PyTorch forward (original params)."""
    N, C, T, V = x.shape
    y = jnp.transpose(x, (0, 2, 3, 1))                       # (N, T, V, C)
    mean = jnp.mean(y, axis=-1, keepdims=True)
    var = jnp.mean((y - mean) ** 2, axis=-1, keepdims=True)
    y = (y - mean) / jnp.sqrt(var + 1e-5) * ln_gamma + ln_beta
    proj = y @ w_qk.T + b_qk                                  # (N, T, V, 2*h*d)
    inner = n_heads * hidden_dim
    q, k = proj[..., :inner], proj[..., inner:]

    def split_heads(t):
        t = t.reshape(N * T, V, n_heads, hidden_dim)
        return jnp.transpose(t, (0, 2, 1, 3))                 # (B, h, V, d)

    q, k = split_heads(q), split_heads(k)
    dots = jnp.einsum('bhid,bhjd->bhij', q, k) * (hidden_dim ** -0.5)
    return jax.nn.softmax(dots, axis=-1).astype(jnp.float32)


if __name__ == "__main__":
    # Small shapes consistent with the module; N=8 exercises NB>1 batching
    # (NB=4, grid=2) while staying tiny.
    N, C, T, V = 8, 8, 8, 16
    hidden_dim, n_heads = 16, 2
    inner = hidden_dim * n_heads

    key = jax.random.PRNGKey(0)
    kx, kw, kb = jax.random.split(key, 3)

    x = jax.random.normal(kx, (N, C, T, V), dtype=jnp.float32)

    # Parameter init mirroring the module (nn.init.normal_(weight, 0, 1),
    # default Linear bias U(-1/sqrt(C), 1/sqrt(C)), LayerNorm gamma=1, beta=0).
    w_qk = jax.random.normal(kw, (2 * inner, C), dtype=jnp.float32)   # torch layout
    bound = 1.0 / (C ** 0.5)
    b_qk = jax.random.uniform(kb, (2 * inner,), minval=-bound, maxval=bound,
                              dtype=jnp.float32)
    ln_gamma = jnp.ones((C,), jnp.float32)
    ln_beta = jnp.zeros((C,), jnp.float32)

    # One-time constant transform of the linear params (scale folded into q).
    w_qk_t, b_prep = prepare_qk_params(w_qk, b_qk,
                                       n_heads=n_heads, hidden_dim=hidden_dim)

    attn = self_attention(x, ln_gamma, ln_beta, w_qk_t, b_prep,
                          n_heads=n_heads, hidden_dim=hidden_dim)
    attn = jax.block_until_ready(attn)

    ref = _reference(x, ln_gamma, ln_beta, w_qk, b_qk,
                     n_heads=n_heads, hidden_dim=hidden_dim)
    assert attn.shape == (N * T, n_heads, V, V)
    # Tolerance loosened slightly because the kernel uses the EUP approximate
    # reciprocal for the softmax denominator (rel. err. ~1e-4); matmuls are f32.
    assert jnp.allclose(attn, ref, atol=2e-3, rtol=2e-3), "mismatch vs reference"

    print("KERNEL_OK")
</pallas_src>

<mosaic_0001>
module attributes {stable_mosaic.version = 11 : i64} {
  func.func @_self_attn_kernel(%arg0: i32, %arg1: memref<4x8x128xf32, #tpu.memory_space<vmem>>, %arg2: memref<8x1xf32, #tpu.memory_space<vmem>>, %arg3: memref<8x1xf32, #tpu.memory_space<vmem>>, %arg4: memref<8x64xf32, #tpu.memory_space<vmem>>, %arg5: memref<1x64xf32, #tpu.memory_space<vmem>>, %arg6: memref<4x8x512xf32, #tpu.memory_space<vmem>>) attributes {dimension_semantics = [#tpu.dimension_semantics<parallel>], iteration_bounds = array<i64: 2>, scalar_prefetch = 0 : i64, scratch_operands = 0 : i64, tpu.core_type = #tpu.core_type<tc>, window_params = [{transform_indices = @transform_0, window_bounds = array<i64: 4, 8, 128>}, {pipeline_mode = #tpu.pipeline_mode<synchronous>, transform_indices = @transform_1, window_bounds = array<i64: 8, 1>}, {pipeline_mode = #tpu.pipeline_mode<synchronous>, transform_indices = @transform_2, window_bounds = array<i64: 8, 1>}, {pipeline_mode = #tpu.pipeline_mode<synchronous>, transform_indices = @transform_3, window_bounds = array<i64: 8, 64>}, {pipeline_mode = #tpu.pipeline_mode<synchronous>, transform_indices = @transform_4, window_bounds = array<i64: 1, 64>}, {transform_indices = @transform_5, window_bounds = array<i64: 4, 8, 512>}]} {
    %c0 = arith.constant 0 : index
    %c0_0 = arith.constant 0 : index
    %c0_1 = arith.constant 0 : index
    %0 = vector.load %arg1[%c0, %c0_0, %c0_1] : memref<4x8x128xf32, #tpu.memory_space<vmem>>, vector<4x8x128xf32>
    %cst = arith.constant dense<0.000000e+00> : vector<4x128xf32>
    %1 = vector.multi_reduction <add>, %0, %cst [1] : vector<4x8x128xf32> to vector<4x128xf32>
    %2 = vector.shape_cast %1 : vector<4x128xf32> to vector<4x1x128xf32>
    %cst_2 = arith.constant 8.000000e+00 : f32
    %3 = vector.broadcast %cst_2 : f32 to vector<4x1x128xf32>
    %4 = arith.divf %2, %3 : vector<4x1x128xf32>
    %5 = vector.broadcast %4 : vector<4x1x128xf32> to vector<4x8x128xf32>
    %6 = arith.subf %0, %5 : vector<4x8x128xf32>
    %7 = arith.mulf %6, %6 : vector<4x8x128xf32>
    %cst_3 = arith.constant dense<0.000000e+00> : vector<4x128xf32>
    %8 = vector.multi_reduction <add>, %7, %cst_3 [1] : vector<4x8x128xf32> to vector<4x128xf32>
    %9 = vector.shape_cast %8 : vector<4x128xf32> to vector<4x1x128xf32>
    %cst_4 = arith.constant 8.000000e+00 : f32
    %10 = vector.broadcast %cst_4 : f32 to vector<4x1x128xf32>
    %11 = arith.divf %9, %10 : vector<4x1x128xf32>
    %12 = vector.broadcast %4 : vector<4x1x128xf32> to vector<4x8x128xf32>
    %13 = arith.subf %0, %12 : vector<4x8x128xf32>
    %cst_5 = arith.constant 9.99999974E-6 : f32
    %14 = vector.broadcast %cst_5 : f32 to vector<4x1x128xf32>
    %15 = arith.addf %11, %14 : vector<4x1x128xf32>
    %16 = math.rsqrt %15 : vector<4x1x128xf32>
    %17 = vector.broadcast %16 : vector<4x1x128xf32> to vector<4x8x128xf32>
    %18 = arith.mulf %13, %17 : vector<4x8x128xf32>
    %c0_6 = arith.constant 0 : index
    %c0_7 = arith.constant 0 : index
    %19 = vector.load %arg2[%c0_6, %c0_7] : memref<8x1xf32, #tpu.memory_space<vmem>>, vector<8x1xf32>
    %20 = vector.shape_cast %19 : vector<8x1xf32> to vector<1x8x1xf32>
    %c0_8 = arith.constant 0 : index
    %c0_9 = arith.constant 0 : index
    %21 = vector.load %arg3[%c0_8, %c0_9] : memref<8x1xf32, #tpu.memory_space<vmem>>, vector<8x1xf32>
    %22 = vector.shape_cast %21 : vector<8x1xf32> to vector<1x8x1xf32>
    %23 = vector.broadcast %20 : vector<1x8x1xf32> to vector<4x8x128xf32>
    %24 = arith.mulf %18, %23 : vector<4x8x128xf32>
    %25 = vector.broadcast %22 : vector<1x8x1xf32> to vector<4x8x128xf32>
    %26 = arith.addf %24, %25 : vector<4x8x128xf32>
    %27 = tpu.transpose %26, [0, 2, 1] : vector<4x8x128xf32> -> vector<4x128x8xf32>
    %28 = vector.shape_cast %27 : vector<4x128x8xf32> to vector<512x8xf32>
    %c0_10 = arith.constant 0 : index
    %c0_11 = arith.constant 0 : index
    %29 = vector.load %arg4[%c0_10, %c0_11] : memref<8x64xf32, #tpu.memory_space<vmem>>, vector<8x64xf32>
    %cst_12 = arith.constant dense<0.000000e+00> : vector<512x64xf32>
    %30 = tpu.matmul %28, %29, %cst_12 {dimension_numbers = #tpu.dot_dimension_numbers<[1], [0], [0], [1], [0, 0, 1, 1], [], []>} : vector<512x8xf32>, vector<8x64xf32>, vector<512x64xf32> -> vector<512x64xf32>
    %c0_13 = arith.constant 0 : index
    %c0_14 = arith.constant 0 : index
    %31 = vector.load %arg5[%c0_13, %c0_14] : memref<1x64xf32, #tpu.memory_space<vmem>>, vector<1x64xf32>
    %32 = vector.broadcast %31 : vector<1x64xf32> to vector<512x64xf32>
    %33 = arith.addf %30, %32 : vector<512x64xf32>
    %34 = vector.extract_strided_slice %33 {offsets = [0, 0], sizes = [512, 32], strides = [1, 1]} : vector<512x64xf32> to vector<512x32xf32>
    %35 = vector.shape_cast %34 : vector<512x32xf32> to vector<32x16x32xf32>
    %36 = vector.extract_strided_slice %33 {offsets = [0, 32], sizes = [512, 32], strides = [1, 1]} : vector<512x64xf32> to vector<512x32xf32>
    %37 = vector.shape_cast %36 : vector<512x32xf32> to vector<32x16x32xf32>
    %38 = vector.extract_strided_slice %35 {offsets = [0, 0, 0], sizes = [32, 16, 16], strides = [1, 1, 1]} : vector<32x16x32xf32> to vector<32x16x16xf32>
    %39 = vector.extract_strided_slice %37 {offsets = [0, 0, 0], sizes = [32, 16, 16], strides = [1, 1, 1]} : vector<32x16x32xf32> to vector<32x16x16xf32>
    "tpu.trace_start"() <{level = 10 : i32, message = "bid,bjd->bij"}> : () -> ()
    %cst_15 = arith.constant dense<0.000000e+00> : vector<32x16x16xf32>
    %40 = tpu.matmul %38, %39, %cst_15 {dimension_numbers = #tpu.dot_dimension_numbers<[2], [2], [1], [1], [0, 0, 0, 1, 1, 1], [0], [0]>} : vector<32x16x16xf32>, vector<32x16x16xf32>, vector<32x16x16xf32> -> vector<32x16x16xf32>
    "tpu.trace_stop"() : () -> ()
    %cst_16 = arith.constant dense<0xFF800000> : vector<32x16xf32>
    %41 = vector.multi_reduction <maximumf>, %40, %cst_16 [2] : vector<32x16x16xf32> to vector<32x16xf32>
    %42 = vector.shape_cast %41 : vector<32x16xf32> to vector<32x16x1xf32>
    %43 = vector.broadcast %42 : vector<32x16x1xf32> to vector<32x16x16xf32>
    %44 = arith.subf %40, %43 : vector<32x16x16xf32>
    %45 = math.exp %44 : vector<32x16x16xf32>
    %cst_17 = arith.constant dense<0.000000e+00> : vector<32x16xf32>
    %46 = vector.multi_reduction <add>, %45, %cst_17 [2] : vector<32x16x16xf32> to vector<32x16xf32>
    %47 = vector.shape_cast %46 : vector<32x16xf32> to vector<32x16x1xf32>
    %48 = tpu.reciprocal %47 {approx = true} : vector<32x16x1xf32> -> vector<32x16x1xf32>
    %49 = vector.broadcast %48 : vector<32x16x1xf32> to vector<32x16x16xf32>
    %50 = arith.mulf %45, %49 : vector<32x16x16xf32>
    %51 = vector.shape_cast %50 : vector<32x16x16xf32> to vector<4x8x256xf32>
    %c0_18 = arith.constant 0 : index
    %c0_19 = arith.constant 0 : index
    %c0_20 = arith.constant 0 : index
    %52 = vector.load %arg6[%c0_18, %c0_19, %c0_20] : memref<4x8x512xf32, #tpu.memory_space<vmem>>, vector<4x8x256xf32>
    tpu.vector_store %arg6[%c0_18, %c0_19, %c0_20], %51 {strides = array<i32>} : memref<4x8x512xf32, #tpu.memory_space<vmem>>, vector<4x8x256xf32>,
    %53 = vector.extract_strided_slice %35 {offsets = [0, 0, 16], sizes = [32, 16, 16], strides = [1, 1, 1]} : vector<32x16x32xf32> to vector<32x16x16xf32>
    %54 = vector.extract_strided_slice %37 {offsets = [0, 0, 16], sizes = [32, 16, 16], strides = [1, 1, 1]} : vector<32x16x32xf32> to vector<32x16x16xf32>
    "tpu.trace_start"() <{level = 10 : i32, message = "bid,bjd->bij"}> : () -> ()
    %cst_21 = arith.constant dense<0.000000e+00> : vector<32x16x16xf32>
    %55 = tpu.matmul %53, %54, %cst_21 {dimension_numbers = #tpu.dot_dimension_numbers<[2], [2], [1], [1], [0, 0, 0, 1, 1, 1], [0], [0]>} : vector<32x16x16xf32>, vector<32x16x16xf32>, vector<32x16x16xf32> -> vector<32x16x16xf32>
    "tpu.trace_stop"() : () -> ()
    %cst_22 = arith.constant dense<0xFF800000> : vector<32x16xf32>
    %56 = vector.multi_reduction <maximumf>, %55, %cst_22 [2] : vector<32x16x16xf32> to vector<32x16xf32>
    %57 = vector.shape_cast %56 : vector<32x16xf32> to vector<32x16x1xf32>
    %58 = vector.broadcast %57 : vector<32x16x1xf32> to vector<32x16x16xf32>
    %59 = arith.subf %55, %58 : vector<32x16x16xf32>
    %60 = math.exp %59 : vector<32x16x16xf32>
    %cst_23 = arith.constant dense<0.000000e+00> : vector<32x16xf32>
    %61 = vector.multi_reduction <add>, %60, %cst_23 [2] : vector<32x16x16xf32> to vector<32x16xf32>
    %62 = vector.shape_cast %61 : vector<32x16xf32> to vector<32x16x1xf32>
    %63 = tpu.reciprocal %62 {approx = true} : vector<32x16x1xf32> -> vector<32x16x1xf32>
    %64 = vector.broadcast %63 : vector<32x16x1xf32> to vector<32x16x16xf32>
    %65 = arith.mulf %60, %64 : vector<32x16x16xf32>
    %66 = vector.shape_cast %65 : vector<32x16x16xf32> to vector<4x8x256xf32>
    %c0_24 = arith.constant 0 : index
    %c0_25 = arith.constant 0 : index
    %c256 = arith.constant 256 : index
    %67 = vector.load %arg6[%c0_24, %c0_25, %c256] : memref<4x8x512xf32, #tpu.memory_space<vmem>>, vector<4x8x256xf32>
    tpu.vector_store %arg6[%c0_24, %c0_25, %c256], %66 {strides = array<i32>} : memref<4x8x512xf32, #tpu.memory_space<vmem>>, vector<4x8x256xf32>,
    return
  }
  func.func @transform_0(%arg0: i32) -> (i32, i32, i32) {
    %c0_i32 = arith.constant 0 : i32
    %c0_i32_0 = arith.constant 0 : i32
    %c0_i32_1 = arith.constant 0 : i32
    return %arg0, %c0_i32, %c0_i32_0 : i32, i32, i32
  }
  func.func @transform_1(%arg0: i32) -> (i32, i32) {
    %c0_i32 = arith.constant 0 : i32
    %c0_i32_0 = arith.constant 0 : i32
    %c0_i32_1 = arith.constant 0 : i32
    return %c0_i32, %c0_i32_0 : i32, i32
  }
  func.func @transform_2(%arg0: i32) -> (i32, i32) {
    %c0_i32 = arith.constant 0 : i32
    %c0_i32_0 = arith.constant 0 : i32
    %c0_i32_1 = arith.constant 0 : i32
    return %c0_i32, %c0_i32_0 : i32, i32
  }
  func.func @transform_3(%arg0: i32) -> (i32, i32) {
    %c0_i32 = arith.constant 0 : i32
    %c0_i32_0 = arith.constant 0 : i32
    %c0_i32_1 = arith.constant 0 : i32
    return %c0_i32, %c0_i32_0 : i32, i32
  }
  func.func @transform_4(%arg0: i32) -> (i32, i32) {
    %c0_i32 = arith.constant 0 : i32
    %c0_i32_0 = arith.constant 0 : i32
    %c0_i32_1 = arith.constant 0 : i32
    return %c0_i32, %c0_i32_0 : i32, i32
  }
  func.func @transform_5(%arg0: i32) -> (i32, i32, i32) {
    %c0_i32 = arith.constant 0 : i32
    %c0_i32_0 = arith.constant 0 : i32
    %c0_i32_1 = arith.constant 0 : i32
    return %arg0, %c0_i32, %c0_i32_0 : i32, i32, i32
  }
}

</mosaic_0001>

<bundles_post_ra>
// kernel: tpu_custom_call.1
= control target key start
LH: loop header
LB: loop body
LE: loop exit
PB: predicated region body
PF: predicated region fallthrough
CT: control target
= control target key end

     0   :  { %10 = vsyncpa [#allocation3], 0  ;;  %s18923_s0 = inlined_call_operand.hbm [shape: f32[8,8,128], index: 0, kind: input, shape index: {}]   ;;  %s18924_s1 = inlined_call_operand.vmem [shape: f32[8,1], index: 1, kind: input, shape index: {}]   ;;  %s18925_s2 = inlined_call_operand.vmem [shape: f32[8,1], index: 2, kind: input, shape index: {}]   ;;  %s18926_s3 = inlined_call_operand.vmem [shape: f32[8,64], index: 3, kind: input, shape index: {}]   ;;  %s18927_s4 = inlined_call_operand.vmem [shape: f32[1,64], index: 4, kind: input, shape index: {}]   ;;  %s18928_s5 = inlined_call_operand.hbm [shape: f32[8,8,512], index: 5, kind: output, shape index: {}]  }
   0x1   :  { %12 = vsyncpa [#allocation3 + $0x1], 0 }
   0x2   :  { %13 = vsyncpa [#allocation4], 0 }
   0x3   :  { %15 = vsyncpa [#allocation4 + $0x1], 0  ;;  %s13709_s18 = smov 0   ;;  %s13711_s19 = smov 0  }
   0x4   :  { %s13713_s20 = smov 0   ;;  %s13715_s21 = smov 0  }
   0x5 LB: > { %s13730_s22 = sadd.s32 4294967295, %s13662_s21   ;;  %s11075_s23 = sadd.s32 4294967294, %s13662_s21   ;;  %s13662_s21 = sphi %s13715_s21, %s20307_s21   ;;  %s13658_s20 = sphi %s13713_s20, %s20306_s20   ;;  %s13654_s19 = sphi %s13711_s19, %s20305_s19   ;;  %s13650_s18 = sphi %s13709_s18, %s20304_s18  }
   0x6   : > { %s13734_s24 = sadd.s32 1, %s13662_s21   ;;  %s28_s25 = sadd.s32 1, %s13658_s20 }
   0x7   : > { %s25_s26 = ssub.s32 %s13662_s21, %s13734_s24  ;;  %p35_p0 = scmp.ne.s32.totalorder %s13658_s20, %s13654_s19 }
   0x8   : > { %p26_p1 = scmp.eq.s32.totalorder %s25_s26, 0  ;;  %p36_p2 = scmp.eq.s32.totalorder %s13662_s21, 0 }
   0x9   : > { %p41_p3 = scmp.ne.s32.totalorder %s13654_s19, %s13650_s18  ;;  %p42_p4 = scmp.eq.s32.totalorder %s13730_s22, 0 }
   0xa   : > { %s13746_s27 = scalar_select %p26_p1, %s13658_s20, %s28_s25  }
   0xb   : > { %p13748_p5 = por %p36_p2, %p35_p0  ;;  %p13752_p6 = por %p42_p4, %p41_p3 }
   0xc   : > { %p149_p7 = scmp.eq.s32.totalorder %s13730_s22, 1  ;;  %p155_p8 = scmp.eq.s32.totalorder %s11075_s23, 1 }
   0xd   : > { %p12677_p10 = scmp.lt.s32.totalorder %s13662_s21, 2  ;;  %s187_s7 = sand.u32 1, %s13658_s20  }
   0xe   : > { %p13759_p11 = por %p149_p7, %p35_p0  ;;  %p13763_p12 = por %p155_p8, %p41_p3 }
   0xf   : > { %s11411_s8 = sshll.u32 %s13662_s21, 9  ;;  %s11078_s9 = sshll.u32 %s187_s7, 5 }
  0x10   : > { %s19334_s30 = scalar_select %p13759_p11, 1, 0 }
  0x11   : > { %s19335_s6 = scalar_select %p13763_p12, 1, 0 }
  0x12   : > { %s13772_s12 = scalar_lea.hbm %s18923_s0, %s11411_s8  ;;  %s191_s13 = scalar_lea.vmem [#allocation2], %s11078_s9 }
  0x13   : > { %s198_s14 = sshll.u32 %s191_s13, 4  ;;  %p13776_p13 = pnand %p12677_p10, %p13748_p5  ;;  %s13780_s14 = int_to_ptr.vmem [resolvable:$true] %s198_s14 }
  0x14   : > { %s13782_s16 = scalar_lea.sflag [#allocation3], %s187_s7  ;;  %s13566_s17 = scalar_lea.hbm %s13772_s12, 512 }
  0x15   : > { %p13567_p0 = scmp.ne.s32.totalorder %s13772_s12, %s13566_s17  ;;  %p13568_p1 = pneg %p13776_p13 }
  0x16   : > { %s13571_s26 = scalar_lea.hbm %s18923_s0, 1024  ;;  %p13572_p4 = scmp.lt.u32.totalorder %s13772_s12, %s18923_s0 }
  0x17   : > { %p13569_p2 = pnand %p13568_p1, %p13567_p0  ;;  %p13573_p5 = scmp.lt.u32.totalorder %s13571_s26, %s13566_s17 }
  0x18   : > { %p13575_p8 = scmp.lt.u32.totalorder %s13566_s17, %s13772_s12 }
  0x19   : > { %p13570_p3 = pneg %p13569_p2  ;;  %p13574_p7 = por %p13573_p5, %p13572_p4 }
  0x1b   : > { %p13576_p10 = por %p13575_p8, %p13574_p7 }
  0x1d   : > { %p13577_p9 = pnand %p13576_p10, %p13570_p3 }
  0x1f   : > { %13580 = shalt.err (!%p13577_p9)
}
  0x20   : > { %s13581_s7 = scalar_lea.vmem %s13780_s14, 512  ;;  %s13664_s9 = smov [#allocation2]  }
  0x21   : > { %p13582_p0 = scmp.ne.s32.totalorder %s13780_s14, %s13581_s7  ;;  %s13586_s10 = sshll.u32 %s13664_s9, 4  ;;  %s13587_s10 = int_to_ptr.vmem [resolvable:$false] %s13586_s10 }
  0x22   : > { %s13588_s11 = scalar_lea.vmem %s13587_s10, 1024  ;;  %p13589_p11 = scmp.lt.s32.totalorder %s13780_s14, %s13587_s10 }
  0x23   : > { %p13584_p2 = pnand %p13582_p0, %p13568_p1  ;;  %p13590_p4 = scmp.lt.s32.totalorder %s13588_s11, %s13581_s7 }
  0x25   : > { %p13585_p12 = pneg %p13584_p2  ;;  %p13591_p5 = por %p13590_p4, %p13589_p11 }
  0x27   : > { %p13592_p7 = pnand %p13591_p5, %p13585_p12 }
  0x29   : > { %13595 = shalt.err (!%p13592_p7)
}
  0x2a   : > { %s13665_s13 = smov 128   ;;  %s13666_s17 = smov 8  }
  0x2b   : > { %12672 = dma.hbm_to_vmem [thread:$0]  (!%p13776_p13), %s13772_s12, 512, %s13780_s14, %s13782_s16, %s13665_s13, %s13665_s13, %s13666_s17  }
  0x2c   : > { %p11081_p9 = scmp.ge.s32.totalorder %s13662_s21, 1  ;;  %p206_p1 = scmp.lt.s32.totalorder %s13662_s21, 3 }
  0x2e   : > { %p207_p3 = pnand %p11081_p9, %p206_p1 }
  0x30   : > { %210 = sbr.rel (%p207_p3) target bundleno = 2015 (0x7df), region = 40 }
  0x37   : > { %s13813_s23 = sand.u32 1, %s13654_s19  }
  0x38   : > { %s11082_s25 = sshll.u32 %s13813_s23, 5  ;;  %s213_s26 = scalar_lea.sflag [#allocation3], %s13813_s23 }
  0x39   : > { %s13817_s28 = scalar_lea.vmem [#allocation2], %s11082_s25 }
  0x3a   : > { %13641 = dma.done.wait (%p13752_p6), %s213_s26, 512  }
  0x3b   : > { %13643 = vsyncadd (%p13752_p6), %s213_s26, 4294966784  ;;  %v13667_v0 = vmov 0   ;;  %v326_v1 = vld [vmem:[%s18924_s1] sm:$0xff]  ;;  %v247_v3 = vld [vmem:[%s13817_s28 + $0x10] sm:$0xff]  ;;  %vm482_vm0 = vcmask 64512   ;;  %vm1066_vm1 = vcmask 130048  }
  0x3c   : > { %12725 = vset.pattern.permute.xlu0 %v13667_v0  ;;  %v327_v2 = vld [vmem:[%s18925_s2] sm:$0xff]  ;;  %v261_v5 = vrot.slane %v247_v3, 4  ;;  %v248_v35 = vld [vmem:[%s13817_s28 + $0x18] sm:$0xff]  ;;  %v246_v36 = vld [vmem:[%s13817_s28 + $0x8] sm:$0xff]  ;;  %s13668_s10 = smov 112   ;;  %s13669_s11 = smov 96  }
  0x3d   : > { %330 = vperm.xlu0 %12725, %v326_v1   ;;  %v245_v4 = vld [vmem:[%s13817_s28] sm:$0xff]  ;;  %v267_v39 = vrot.slane %v248_v35, 4  ;;  %v255_v40 = vrot.slane %v246_v36, 4  ;;  %s13670_s13 = smov 80   ;;  %vm14124_vm2 = vmpackc.low %vm1066_vm1, %vm1066_vm1  ;;  %s13673_s17 = smov 16   ;;  %vm5929_vm3 = vcmask 261120  }
  0x3e   : > { %v249_v6 = vrot.slane %v245_v4, 4  ;;  %v262_v7 = vadd.f32 %v261_v5, %v247_v3  ;;  %s13674_s25 = smov 32   ;;  %s13675_s26 = smov 48   ;;  %vm5934_vm4 = vcmask 392192   ;;  %vm5939_vm5 = vcmask 523264  }
  0x3f   : > { %v268_v43 = vadd.f32 %v267_v39, %v248_v35  ;;  %v256_v44 = vadd.f32 %v255_v40, %v246_v36  ;;  %s13676_s28 = smov 64   ;;  %vm5944_vm6 = vcmask 654336   ;;  %s11083_s12 = sshll.u32 %s13813_s23, 7  ;;  %vm5949_vm7 = vcmask 785408  }
  0x40   : > { %v250_v8 = vadd.f32 %v249_v6, %v245_v4  ;;  %v263_v9 = vrot.slane %v262_v7, 2  ;;  %vm5954_vm8 = vcmask 916480   ;;  %s17897_s14 = scalar_lea.vmem [#allocation5], %s11083_s12  ;;  %s11413_s15 = sshll.u32 %s13730_s22, 11 }
  0x41   : > { %339 = vperm.xlu0 %12725, %v327_v2   ;;  %v269_v45 = vrot.slane %v268_v43, 2  ;;  %v257_v46 = vrot.slane %v256_v44, 2  ;;  %s11002_s16 = sshll.u32 %s17897_s14, 4  ;;  %s18873_s7 = scalar_lea.hbm %s18928_s5, %s11413_s15  ;;  %s18876_s16 = int_to_ptr.vmem [resolvable:$true] %s11002_s16 }
  0x42   : > { %v251_v10 = vrot.slane %v250_v8, 2  ;;  %v264_v11 = vadd.f32 %v263_v9, %v262_v7  ;;  %s10988_s22 = scalar_lea.sflag [#allocation4], %s13813_s23  ;;  %s13596_s9 = scalar_lea.vmem %s18876_s16, 2048 }
  0x43   : > { %v270_v47 = vadd.f32 %v269_v45, %v268_v43  ;;  %v258_v48 = vadd.f32 %v257_v46, %v256_v44  ;;  %p13597_p6 = scmp.ne.s32.totalorder %s18876_s16, %s13596_s9  ;;  %p20301_p11 = scmp.ne.s32.totalorder %s19334_s30, 0 }
  0x44   : > { %v252_v12 = vadd.f32 %v251_v10, %v250_v8  ;;  %v265_v13 = vrot.slane %v264_v11, 1 }
  0x45   : > { %v271_v49 = vrot.slane %v270_v47, 1  ;;  %v259_v51 = vrot.slane %v258_v48, 1  ;;  %p13598_p12 = pnand %p13597_p6, %p20301_p11 }
  0x46   : > { %v253_v14 = vrot.slane %v252_v12, 1  ;;  %v266_v15 = vadd.f32 %v265_v13, %v264_v11 }
  0x47   : > { %v272_v53 = vadd.f32 %v271_v49, %v270_v47  ;;  %v260_v56 = vadd.f32 %v259_v51, %v258_v48  ;;  %p13599_p13 = pneg %p13598_p12 }
  0x48   : > { %v254_v16 = vadd.f32 %v253_v14, %v252_v12  ;;  %v276_v17 = vmul.f32 0.125, %v266_v15 }
  0x49   : > { %v277_v58 = vmul.f32 0.125, %v272_v53  ;;  %v275_v61 = vmul.f32 0.125, %v260_v56 }
  0x4a   : > { %v274_v18 = vmul.f32 0.125, %v254_v16  ;;  %v280_v19 = vsub.f32 %v247_v3, %v276_v17  ;;  %v474_v3 = vld [vmem:[%s18926_s3] sm:$0xff] }
  0x4b   : > { %v281_v1 = vsub.f32 %v248_v35, %v277_v58  ;;  %v279_v2 = vsub.f32 %v246_v36, %v275_v61  ;;  %11735 = vmatprep.subr.mxu0 %v474_v3 }
  0x4c   : > { %v278_v20 = vsub.f32 %v245_v4, %v274_v18  ;;  %v284_v21 = vmul.f32 %v280_v19, %v280_v19  ;;  %11736 = vmatpush3.msra.mxu0 %v474_v3 }
  0x4d   : > { %v285_v4 = vmul.f32 %v281_v1, %v281_v1  ;;  %v283_v5 = vmul.f32 %v279_v2, %v279_v2 }
  0x4e   : > { %v282_v22 = vmul.f32 %v278_v20, %v278_v20  ;;  %v298_v23 = vrot.slane %v284_v21, 4 }
  0x4f   : > { %v304_v6 = vrot.slane %v285_v4, 4  ;;  %v292_v7 = vrot.slane %v283_v5, 4 }
  0x50   : > { %v286_v24 = vrot.slane %v282_v22, 4  ;;  %v299_v25 = vadd.f32 %v298_v23, %v284_v21 }
  0x51   : > { %v305_v8 = vadd.f32 %v304_v6, %v285_v4  ;;  %v293_v9 = vadd.f32 %v292_v7, %v283_v5 }
  0x52   : > { %v287_v26 = vadd.f32 %v286_v24, %v282_v22  ;;  %v300_v27 = vrot.slane %v299_v25, 2 }
  0x53   : > { %v306_v10 = vrot.slane %v305_v8, 2  ;;  %v294_v11 = vrot.slane %v293_v9, 2 }
  0x54   : > { %v288_v28 = vrot.slane %v287_v26, 2  ;;  %v301_v29 = vadd.f32 %v300_v27, %v299_v25 }
  0x55   : > { %v307_v12 = vadd.f32 %v306_v10, %v305_v8  ;;  %v295_v13 = vadd.f32 %v294_v11, %v293_v9 }
  0x56   : > { %v289_v30 = vadd.f32 %v288_v28, %v287_v26  ;;  %v302_v31 = vrot.slane %v301_v29, 1 }
  0x57   : > { %v308_v14 = vrot.slane %v307_v12, 1  ;;  %v296_v15 = vrot.slane %v295_v13, 1 }
  0x58   : > { %v290_v32 = vrot.slane %v289_v30, 1  ;;  %v303_v33 = vadd.f32 %v302_v31, %v301_v29 }
  0x59   : > { %v309_v16 = vadd.f32 %v308_v14, %v307_v12  ;;  %v297_v17 = vadd.f32 %v296_v15, %v295_v13 }
  0x5a   : > { %v291_v34 = vadd.f32 %v290_v32, %v289_v30  ;;  %v312_v37 = vmul.f32 0.125, %v303_v33 }
  0x5b   : > { %v313_v18 = vmul.f32 0.125, %v309_v16 }
  0x5c   : > { %v310_v38 = vmul.f32 0.125, %v291_v34  ;;  %v316_v41 = vadd.f32 1e-05, %v312_v37 }
  0x5e   : > { %v314_v42 = vadd.f32 1e-05, %v310_v38  ;;  %13046 = vrsqrt.f32 %v316_v41 }
  0x60   : > { %13048 = vrsqrt.f32 %v314_v42 }
  0x68   : > { %v13047_v50 = vpop.eup %13046 }
  0x69   : > { %v324_v54 = vmul.f32 %v13047_v50, %v280_v19  ;;  %v311_v19 = vmul.f32 0.125, %v297_v17 }
  0x6a   : > { %v13049_v52 = vpop.eup %13048 }
  0x6b   : > { %v322_v55 = vmul.f32 %v13049_v52, %v278_v20  ;;  %v317_v20 = vadd.f32 1e-05, %v313_v18  ;;  %v315_v21 = vadd.f32 1e-05, %v311_v19 }
  0x6d   : > { %13050 = vrsqrt.f32 %v317_v20 }
  0x6e   : > { %13052 = vrsqrt.f32 %v315_v21 }
  0x77   : > { %v13051_v22 = vpop.eup %13050 }
  0x78   : > { %v13053_v23 = vpop.eup %13052  ;;  %v325_v24 = vmul.f32 %v13051_v22, %v281_v1 }
  0x79   : > { %v323_v25 = vmul.f32 %v13053_v23, %v279_v2 }
  0xbc   : > { %v331_v57 = vpop.permute.xlu0 %330 }
  0xbd   : > { %v335_v59 = vmul.f32 %v331_v57, %v324_v54  ;;  %v333_v60 = vmul.f32 %v331_v57, %v322_v55  ;;  %v336_v26 = vmul.f32 %v331_v57, %v325_v24  ;;  %v334_v27 = vmul.f32 %v331_v57, %v323_v25 }
  0xc0   : > { %v340_v62 = vpop.permute.xlu0 %339 }
  0xc1   : > { %v344_v63 = vadd.f32 %v340_v62, %v335_v59  ;;  %v342_v0 = vadd.f32 %v340_v62, %v333_v60  ;;  %v345_v28 = vadd.f32 %v340_v62, %v336_v26  ;;  %v343_v29 = vadd.f32 %v340_v62, %v334_v27 }
  0xc3   : > { %410 = vxpose.xlu0.b32.start.end [1/1] (short) %v344_v63, 128  ;;  %346 = vxpose.xlu1.b32.start.end [1/1] (short) %v342_v0, 128 }
 0x100   : > { %442 = vxpose.xlu0.b32.start.end [1/1] (short) %v345_v28, 128  ;;  %378 = vxpose.xlu1.b32.start.end [1/1] (short) %v343_v29, 128 }
 0x143   : > { %v362_v30 = vpop.trf.xlu1  ;;  %v13837_v31 = vpop.trf.xlu0 }
 0x144   : > { %11737 = vmatprep.mubr.msk.f32.mxu0 %vm482_vm0, %v362_v30  ;;  %v13927_v30 = vld [vmem:[%s18927_s4] ss:$0 sm:$0xff] }
 0x147   : > { %v363_v32 = vpop.trf.xlu1  ;;  %v13840_v34 = vpop.trf.xlu0 }
 0x148   : > { %11738 = vmatmul.mubr.msk.f32.vlgmr.msra.gmra.mrb[0].mxu0 %vm482_vm0, %v363_v32 }
 0x14b   : > { %v364_v33 = vpop.trf.xlu1  ;;  %v13844_v36 = vpop.trf.xlu0 }
 0x14c   : > { %11740 = vmatprep.mubr.msk.f32.mxu0 %vm482_vm0, %v364_v33 }
 0x14f   : > { %v365_v35 = vpop.trf.xlu1  ;;  %v13847_v39 = vpop.trf.xlu0 }
 0x150   : > { %11741 = vmatmul.mubr.msk.f32.gmra.mrb[2].mxu0 %vm482_vm0, %v365_v35 }
 0x153   : > { %v366_v37 = vpop.trf.xlu1  ;;  %v13851_v41 = vpop.trf.xlu0 }
 0x154   : > { %11743 = vmatprep.mubr.msk.f32.mxu0 %vm482_vm0, %v366_v37 }
 0x157   : > { %v367_v38 = vpop.trf.xlu1  ;;  %v13854_v44 = vpop.trf.xlu0 }
 0x158   : > { %11744 = vmatmul.mubr.msk.f32.gmra.mrb[4].mxu0 %vm482_vm0, %v367_v38 }
 0x15b   : > { %v368_v40 = vpop.trf.xlu1  ;;  %v13858_v46 = vpop.trf.xlu0 }
 0x15c   : > { %11746 = vmatprep.mubr.msk.f32.mxu0 %vm482_vm0, %v368_v40 }
 0x15f   : > { %v369_v42 = vpop.trf.xlu1  ;;  %v13861_v49 = vpop.trf.xlu0 }
 0x160   : > { %11747 = vmatmul.mubr.msk.f32.gmra.mrb[6].mxu0 %vm482_vm0, %v369_v42 }
 0x163   : > { %v370_v43 = vpop.trf.xlu1  ;;  %v434_v51 = vpop.trf.xlu0 }
 0x164   : > { %11749 = vmatprep.mubr.msk.f32.mxu0 %vm482_vm0, %v370_v43 }
 0x167   : > { %v371_v45 = vpop.trf.xlu1  ;;  %v435_v54 = vpop.trf.xlu0 }
 0x168   : > { %11750 = vmatmul.mubr.msk.f32.gmra.mrb[8].mxu0 %vm482_vm0, %v371_v45 }
 0x16b   : > { %v372_v47 = vpop.trf.xlu1  ;;  %v436_v56 = vpop.trf.xlu0 }
 0x16c   : > { %11752 = vmatprep.mubr.msk.f32.mxu0 %vm482_vm0, %v372_v47 }
 0x16f   : > { %v373_v48 = vpop.trf.xlu1  ;;  %v437_v59 = vpop.trf.xlu0 }
 0x170   : > { %11753 = vmatmul.mubr.msk.f32.gmra.mrb[10].mxu0 %vm482_vm0, %v373_v48 }
 0x173   : > { %v374_v50 = vpop.trf.xlu1  ;;  %v438_v61 = vpop.trf.xlu0 }
 0x174   : > { %11755 = vmatprep.mubr.msk.f32.mxu0 %vm482_vm0, %v374_v50 }
 0x177   : > { %v375_v52 = vpop.trf.xlu1  ;;  %v439_v0 = vpop.trf.xlu0 }
 0x178   : > { %11756 = vmatmul.mubr.msk.f32.gmra.mrb[12].mxu0 %vm482_vm0, %v375_v52 }
 0x17b   : > { %v376_v53 = vpop.trf.xlu1  ;;  %v440_v2 = vpop.trf.xlu0 }
 0x17c   : > { %11758 = vmatprep.mubr.msk.f32.mxu0 %vm482_vm0, %v376_v53 }
 0x17f   : > { %v377_v55 = vpop.trf.xlu1  ;;  %v441_v5 = vpop.trf.xlu0 }
 0x180   : > { %11759 = vmatmul.mubr.msk.f32.gmra.mrb[14].mxu0 %vm482_vm0, %v377_v55 }
 0x183   : > { %v394_v57 = vpop.trf.xlu1  ;;  %v458_v7 = vpop.trf.xlu0 }
 0x184   : > { %11761 = vmatprep.mubr.msk.f32.mxu0 %vm482_vm0, %v394_v57 }
 0x187   : > { %v395_v58 = vpop.trf.xlu1  ;;  %v459_v10 = vpop.trf.xlu0 }
 0x188   : > { %11762 = vmatmul.mubr.msk.f32.gmra.mrb[16].mxu0 %vm482_vm0, %v395_v58 }
 0x18b   : > { %v396_v60 = vpop.trf.xlu1  ;;  %v460_v12 = vpop.trf.xlu0 }
 0x18c   : > { %11764 = vmatprep.mubr.msk.f32.mxu0 %vm482_vm0, %v396_v60 }
 0x18f   : > { %v397_v62 = vpop.trf.xlu1  ;;  %v461_v15 = vpop.trf.xlu0 }
 0x190   : > { %11765 = vmatmul.mubr.msk.f32.gmra.mrb[18].mxu0 %vm482_vm0, %v397_v62 }
 0x193   : > { %v398_v63 = vpop.trf.xlu1  ;;  %v462_v17 = vpop.trf.xlu0 }
 0x194   : > { %11767 = vmatprep.mubr.msk.f32.mxu0 %vm482_vm0, %v398_v63 }
 0x197   : > { %v399_v1 = vpop.trf.xlu1  ;;  %v463_v19 = vpop.trf.xlu0 }
 0x198   : > { %11768 = vmatmul.mubr.msk.f32.gmra.mrb[20].mxu0 %vm482_vm0, %v399_v1 }
 0x19b   : > { %v400_v3 = vpop.trf.xlu1  ;;  %v464_v20 = vpop.trf.xlu0 }
 0x19c   : > { %11770 = vmatprep.mubr.msk.f32.mxu0 %vm482_vm0, %v400_v3 }
 0x19f   : > { %v401_v4 = vpop.trf.xlu1  ;;  %v465_v21 = vpop.trf.xlu0 }
 0x1a0   : > { %11771 = vmatmul.mubr.msk.f32.gmra.mrb[22].mxu0 %vm482_vm0, %v401_v4 }
 0x1a3   : > { %v402_v6 = vpop.trf.xlu1  ;;  %v466_v22 = vpop.trf.xlu0 }
 0x1a4   : > { %11773 = vmatprep.mubr.msk.f32.mxu0 %vm482_vm0, %v402_v6 }
 0x1a7   : > { %v403_v8 = vpop.trf.xlu1  ;;  %v467_v23 = vpop.trf.xlu0 }
 0x1a8   : > { %11774 = vmatmul.mubr.msk.f32.gmra.mrb[24].mxu0 %vm482_vm0, %v403_v8 }
 0x1ab   : > { %v404_v9 = vpop.trf.xlu1  ;;  %v468_v24 = vpop.trf.xlu0 }
 0x1ac   : > { %11776 = vmatprep.mubr.msk.f32.mxu0 %vm482_vm0, %v404_v9 }
 0x1af   : > { %v405_v11 = vpop.trf.xlu1  ;;  %v469_v25 = vpop.trf.xlu0 }
 0x1b0   : > { %11777 = vmatmul.mubr.msk.f32.gmra.mrb[26].mxu0 %vm482_vm0, %v405_v11 }
 0x1b3   : > { %v406_v13 = vpop.trf.xlu1  ;;  %v470_v26 = vpop.trf.xlu0 }
 0x1b4   : > { %11779 = vmatprep.mubr.msk.f32.mxu0 %vm482_vm0, %v406_v13 }
 0x1b7   : > { %v407_v14 = vpop.trf.xlu1  ;;  %v471_v27 = vpop.trf.xlu0 }
 0x1b8   : > { %11780 = vmatmul.mubr.msk.f32.gmra.mrb[28].mxu0 %vm482_vm0, %v407_v14 }
 0x1bb   : > { %v408_v16 = vpop.trf.xlu1  ;;  %v472_v28 = vpop.trf.xlu0 }
 0x1bc   : > { %11782 = vmatprep.mubr.msk.f32.mxu0 %vm482_vm0, %v408_v16 }
 0x1bf   : > { %v409_v18 = vpop.trf.xlu1  ;;  %v473_v29 = vpop.trf.xlu0 }
 0x1c0   : > { %11783 = vmatmul.mubr.msk.f32.gmra.mrb[30].mxu0 %vm482_vm0, %v409_v18 }
 0x1c1   : > { %11785 = vmatprep.mubr.msk.f32.mxu0 %vm482_vm0, %v13837_v31 }
 0x1c4   : > { %11786 = vmatmul.mubr.msk.f32.gmra.mrb[32].mxu0 %vm482_vm0, %v13840_v34 }
 0x1c5   : > { %11788 = vmatprep.mubr.msk.f32.mxu0 %vm482_vm0, %v13844_v36 }
 0x1c8   : > { %11789 = vmatmul.mubr.msk.f32.gmra.mrb[34].mxu0 %vm482_vm0, %v13847_v39 }
 0x1c9   : > { %11791 = vmatprep.mubr.msk.f32.mxu0 %vm482_vm0, %v13851_v41 }
 0x1cc   : > { %11792 = vmatmul.mubr.msk.f32.gmra.mrb[36].mxu0 %vm482_vm0, %v13854_v44 }
 0x1cd   : > { %11794 = vmatprep.mubr.msk.f32.mxu0 %vm482_vm0, %v13858_v46 }
 0x1d0   : > { %11795 = vmatmul.mubr.msk.f32.gmra.mrb[38].mxu0 %vm482_vm0, %v13861_v49 }
 0x1d1   : > { %11797 = vmatprep.mubr.msk.f32.mxu0 %vm482_vm0, %v434_v51 }
 0x1d4   : > { %11798 = vmatmul.mubr.msk.f32.gmra.mrb[40].mxu0 %vm482_vm0, %v435_v54 }
 0x1d5   : > { %11800 = vmatprep.mubr.msk.f32.mxu0 %vm482_vm0, %v436_v56 }
 0x1d8   : > { %11801 = vmatmul.mubr.msk.f32.gmra.mrb[42].mxu0 %vm482_vm0, %v437_v59 }
 0x1d9   : > { %11803 = vmatprep.mubr.msk.f32.mxu0 %vm482_vm0, %v438_v61 }
 0x1dc   : > { %11804 = vmatmul.mubr.msk.f32.gmra.mrb[44].mxu0 %vm482_vm0, %v439_v0 }
 0x1dd   : > { %11806 = vmatprep.mubr.msk.f32.mxu0 %vm482_vm0, %v440_v2 }
 0x1e0   : > { %11807 = vmatmul.mubr.msk.f32.gmra.mrb[46].mxu0 %vm482_vm0, %v441_v5 }
 0x1e1   : > { %11809 = vmatprep.mubr.msk.f32.mxu0 %vm482_vm0, %v458_v7 }
 0x1e4   : > { %11810 = vmatmul.mubr.msk.f32.gmra.mrb[48].mxu0 %vm482_vm0, %v459_v10 }
 0x1e5   : > { %11812 = vmatprep.mubr.msk.f32.mxu0 %vm482_vm0, %v460_v12 }
 0x1e8   : > { %11813 = vmatmul.mubr.msk.f32.gmra.mrb[50].mxu0 %vm482_vm0, %v461_v15 }
 0x1e9   : > { %11815 = vmatprep.mubr.msk.f32.mxu0 %vm482_vm0, %v462_v17 }
 0x1ec   : > { %11816 = vmatmul.mubr.msk.f32.gmra.mrb[52].mxu0 %vm482_vm0, %v463_v19 }
 0x1ed   : > { %11818 = vmatprep.mubr.msk.f32.mxu0 %vm482_vm0, %v464_v20 }
 0x1f0   : > { %11819 = vmatmul.mubr.msk.f32.gmra.mrb[54].mxu0 %vm482_vm0, %v465_v21 }
 0x1f1   : > { %11821 = vmatprep.mubr.msk.f32.mxu0 %vm482_vm0, %v466_v22 }
 0x1f4   : > { %11822 = vmatmul.mubr.msk.f32.gmra.mrb[56].mxu0 %vm482_vm0, %v467_v23 }
 0x1f5   : > { %11824 = vmatprep.mubr.msk.f32.mxu0 %vm482_vm0, %v468_v24 }
 0x1f8   : > { %11825 = vmatmul.mubr.msk.f32.gmra.mrb[58].mxu0 %vm482_vm0, %v469_v25 }
 0x1f9   : > { %11827 = vmatprep.mubr.msk.f32.mxu0 %vm482_vm0, %v470_v26 }
 0x1fc   : > { %11828 = vmatmul.mubr.msk.f32.gmra.mrb[60].mxu0 %vm482_vm0, %v471_v27 }
 0x1fd   : > { %11830 = vmatprep.mubr.msk.f32.mxu0 %vm482_vm0, %v472_v28 }
 0x200   : > { %11831 = vmatmul.mubr.msk.f32.gmra.mrb[62].mxu0 %vm482_vm0, %v473_v29 }
 0x21b   : > { %v11739_v31 = vpop.f32.mrb[0].mxu0 }
 0x21c   : > { %v13930_v32 = vadd.f32 %v11739_v31, %v13927_v30  ;;  %v741_v33 = vpop.f32.mrb[1].mxu0 }
 0x21d   : > { %v742_v34 = vadd.f32 %v13927_v30, %v741_v33 }
 0x21e   : > { %5997 = vrot.lane.b32.xlu0 %v13930_v32, %s13668_s10 }
 0x21f   : > { %11837 = vmatprep.mubr.msk.f32.mxu1 %vm1066_vm1, %v742_v34  ;;  %v12726_v35 = vpack.i.bf16 %v13930_v32, %v742_v34 }
 0x221   : > { %12727 = vrot.lane.b32.xlu1 %v12726_v35, %s13669_s11 }
 0x222   : > { %12732 = vrot.lane.b32.xlu0 %v12726_v35, %s13670_s13 }
 0x223   : > { %v11742_v36 = vpop.f32.mrb[2].mxu0 }
 0x224   : > { %v13940_v37 = vadd.f32 %v11742_v36, %v13927_v30  ;;  %v751_v38 = vpop.f32.mrb[3].mxu0 }
 0x225   : > { %v13943_v39 = vadd.f32 %v13927_v30, %v751_v38 }
 0x226   : > { %5995 = vrot.lane.b32.xlu0 %v742_v34, %s13668_s10  ;;  %6088 = vrot.lane.b32.xlu1 %v13940_v37, %s13668_s10 }
 0x227   : > { %v12741_v40 = vpack.i.bf16 %v13940_v37, %v13943_v39 }
 0x22a   : > { %12742 = vrot.lane.b32.xlu1 %v12741_v40, %s13670_s13  ;;  %12737 = vrot.lane.b32.xlu0 %v12741_v40, %s13669_s11 }
 0x22b   : > { %v11745_v41 = vpop.f32.mrb[4].mxu0 }
 0x22c   : > { %v13953_v42 = vadd.f32 %v11745_v41, %v13927_v30  ;;  %v761_v43 = vpop.f32.mrb[5].mxu0 }
 0x22d   : > { %v13956_v44 = vadd.f32 %v13927_v30, %v761_v43 }
 0x22e   : > { %6086 = vrot.lane.b32.xlu1 %v13943_v39, %s13668_s10  ;;  %6179 = vrot.lane.b32.xlu0 %v13953_v42, %s13668_s10 }
 0x22f   : > { %v12751_v45 = vpack.i.bf16 %v13953_v42, %v13956_v44 }
 0x232   : > { %12752 = vrot.lane.b32.xlu0 %v12751_v45, %s13670_s13  ;;  %12747 = vrot.lane.b32.xlu1 %v12751_v45, %s13669_s11 }
 0x233   : > { %v11748_v46 = vpop.f32.mrb[6].mxu0 }
 0x234   : > { %v13967_v47 = vadd.f32 %v11748_v46, %v13927_v30  ;;  %v771_v48 = vpop.f32.mrb[7].mxu0 }
 0x235   : > { %v13970_v49 = vadd.f32 %v13927_v30, %v771_v48 }
 0x236   : > { %6177 = vrot.lane.b32.xlu0 %v13956_v44, %s13668_s10  ;;  %6270 = vrot.lane.b32.xlu1 %v13967_v47, %s13668_s10 }
 0x237   : > { %v12756_v50 = vpack.i.bf16 %v13967_v47, %v13970_v49 }
 0x23a   : > { %12757 = vrot.lane.b32.xlu1 %v12756_v50, %s13669_s11 }
 0x23b   : > { %v11751_v51 = vpop.f32.mrb[8].mxu0 }
 0x23c   : > { %v13980_v52 = vadd.f32 %v11751_v51, %v13927_v30  ;;  %v781_v53 = vpop.f32.mrb[9].mxu0 }
 0x23d   : > { %v13983_v54 = vadd.f32 %v13927_v30, %v781_v53 }
 0x23e   : > { %12762 = vrot.lane.b32.xlu1 %v12756_v50, %s13670_s13  ;;  %6361 = vrot.lane.b32.xlu0 %v13980_v52, %s13668_s10 }
 0x23f   : > { %v12771_v55 = vpack.i.bf16 %v13980_v52, %v13983_v54 }
 0x242   : > { %6268 = vrot.lane.b32.xlu1 %v13970_v49, %s13668_s10  ;;  %12772 = vrot.lane.b32.xlu0 %v12771_v55, %s13670_s13 }
 0x243   : > { %v11754_v56 = vpop.f32.mrb[10].mxu0 }
 0x244   : > { %v791_v57 = vpop.f32.mrb[11].mxu0  ;;  %v13997_v58 = vadd.f32 %v11754_v56, %v13927_v30 }
 0x245   : > { %v14000_v59 = vadd.f32 %v13927_v30, %v791_v57 }
 0x246   : > { %6359 = vrot.lane.b32.xlu0 %v13983_v54, %s13668_s10  ;;  %12767 = vrot.lane.b32.xlu1 %v12771_v55, %s13669_s11 }
 0x247   : > { %v12776_v63 = vpack.i.bf16 %v13997_v58, %v14000_v59 }
 0x24a   : > { %6452 = vrot.lane.b32.xlu1 %v13997_v58, %s13668_s10 }
 0x24b   : > { %v11757_v60 = vpop.f32.mrb[12].mxu0 }
 0x24c   : > { %v14005_v61 = vadd.f32 %v11757_v60, %v13927_v30  ;;  %v801_v62 = vpop.f32.mrb[13].mxu0 }
 0x24d   : > { %v14010_v0 = vadd.f32 %v13927_v30, %v801_v62 }
 0x24e   : > { %12777 = vrot.lane.b32.xlu1 %v12776_v63, %s13669_s11  ;;  %6543 = vrot.lane.b32.xlu0 %v14005_v61, %s13668_s10 }
 0x24f   : > { %v12791_v1 = vpack.i.bf16 %v14005_v61, %v14010_v0 }
 0x252   : > { %12782 = vrot.lane.b32.xlu1 %v12776_v63, %s13670_s13  ;;  %12792 = vrot.lane.b32.xlu0 %v12791_v1, %s13670_s13 }
 0x253   : > { %v11760_v2 = vpop.f32.mrb[14].mxu0 }
 0x254   : > { %v811_v3 = vpop.f32.mrb[15].mxu0  ;;  %v14025_v5 = vadd.f32 %v11760_v2, %v13927_v30 }
 0x255   : > { %v14028_v6 = vadd.f32 %v13927_v30, %v811_v3 }
 0x256   : > { %6450 = vrot.lane.b32.xlu1 %v14000_v59, %s13668_s10  ;;  %6541 = vrot.lane.b32.xlu0 %v14010_v0, %s13668_s10 }
 0x257   : > { %v12796_v11 = vpack.i.bf16 %v14025_v5, %v14028_v6 }
 0x25a   : > { %12787 = vrot.lane.b32.xlu1 %v12791_v1, %s13669_s11 }
 0x25b   : > { %v11763_v4 = vpop.f32.mrb[16].mxu0 }
 0x25c   : > { %v14031_v7 = vadd.f32 %v11763_v4, %v13927_v30  ;;  %v821_v8 = vpop.f32.mrb[17].mxu0 }
 0x25d   : > { %v14034_v9 = vadd.f32 %v13927_v30, %v821_v8 }
 0x25e   : > { %6634 = vrot.lane.b32.xlu1 %v14025_v5, %s13668_s10  ;;  %6725 = vrot.lane.b32.xlu0 %v14031_v7, %s13668_s10 }
 0x25f   : > { %v12811_v10 = vpack.i.bf16 %v14031_v7, %v14034_v9 }
 0x262   : > { %12797 = vrot.lane.b32.xlu1 %v12796_v11, %s13669_s11  ;;  %12812 = vrot.lane.b32.xlu0 %v12811_v10, %s13670_s13 }
 0x263   : > { %v11766_v12 = vpop.f32.mrb[18].mxu0 }
 0x264   : > { %v831_v13 = vpop.f32.mrb[19].mxu0  ;;  %v14063_v19 = vadd.f32 %v11766_v12, %v13927_v30 }
 0x265   : > { %v14066_v20 = vadd.f32 %v13927_v30, %v831_v13 }
 0x266   : > { %12802 = vrot.lane.b32.xlu1 %v12796_v11, %s13670_s13  ;;  %6723 = vrot.lane.b32.xlu0 %v14034_v9, %s13668_s10 }
 0x267   : > { %v12816_v23 = vpack.i.bf16 %v14063_v19, %v14066_v20 }
 0x26a   : > { %6632 = vrot.lane.b32.xlu1 %v14028_v6, %s13668_s10 }
 0x26b   : > { %v11769_v14 = vpop.f32.mrb[20].mxu0 }
 0x26c   : > { %v14052_v15 = vadd.f32 %v11769_v14, %v13927_v30  ;;  %v841_v16 = vpop.f32.mrb[21].mxu0 }
 0x26d   : > { %v14055_v17 = vadd.f32 %v13927_v30, %v841_v16 }
 0x26e   : > { %12807 = vrot.lane.b32.xlu1 %v12811_v10, %s13669_s11  ;;  %6907 = vrot.lane.b32.xlu0 %v14052_v15, %s13668_s10 }
 0x26f   : > { %v12831_v18 = vpack.i.bf16 %v14052_v15, %v14055_v17 }
 0x272   : > { %6816 = vrot.lane.b32.xlu1 %v14063_v19, %s13668_s10  ;;  %12832 = vrot.lane.b32.xlu0 %v12831_v18, %s13670_s13 }
 0x273   : > { %v11772_v21 = vpop.f32.mrb[22].mxu0 }
 0x274   : > { %v851_v22 = vpop.f32.mrb[23].mxu0  ;;  %v14092_v31 = vadd.f32 %v11772_v21, %v13927_v30 }
 0x275   : > { %v14095_v33 = vadd.f32 %v13927_v30, %v851_v22 }
 0x276   : > { %12817 = vrot.lane.b32.xlu1 %v12816_v23, %s13669_s11  ;;  %6905 = vrot.lane.b32.xlu0 %v14055_v17, %s13668_s10 }
 0x277   : > { %v12836_v35 = vpack.i.bf16 %v14092_v31, %v14095_v33 }
 0x27a   : > { %12822 = vrot.lane.b32.xlu1 %v12816_v23, %s13670_s13 }
 0x27b   : > { %v11775_v24 = vpop.f32.mrb[24].mxu0 }
 0x27c   : > { %v14078_v25 = vadd.f32 %v11775_v24, %v13927_v30  ;;  %v861_v26 = vpop.f32.mrb[25].mxu0 }
 0x27d   : > { %v14081_v27 = vadd.f32 %v13927_v30, %v861_v26 }
 0x27e   : > { %6814 = vrot.lane.b32.xlu1 %v14066_v20, %s13668_s10  ;;  %7089 = vrot.lane.b32.xlu0 %v14078_v25, %s13668_s10 }
 0x27f   : > { %v12851_v28 = vpack.i.bf16 %v14078_v25, %v14081_v27 }
 0x282   : > { %12827 = vrot.lane.b32.xlu1 %v12831_v18, %s13669_s11  ;;  %12852 = vrot.lane.b32.xlu0 %v12851_v28, %s13670_s13 }
 0x283   : > { %v11778_v29 = vpop.f32.mrb[26].mxu0 }
 0x284   : > { %v871_v34 = vpop.f32.mrb[27].mxu0  ;;  %v14131_v62 = vadd.f32 %v11778_v29, %v13927_v30 }
 0x285   : > { %v14134_v63 = vadd.f32 %v13927_v30, %v871_v34 }
 0x286   : > { %6998 = vrot.lane.b32.xlu1 %v14092_v31, %s13668_s10  ;;  %7087 = vrot.lane.b32.xlu0 %v14081_v27, %s13668_s10 }
 0x287   : > { %v12856_v13 = vpack.i.bf16 %v14131_v62, %v14134_v63 }
 0x28a   : > { %12837 = vrot.lane.b32.xlu1 %v12836_v35, %s13669_s11 }
 0x28b   : > { %v11781_v36 = vpop.f32.mrb[28].mxu0 }
 0x28c   : > { %v14105_v38 = vadd.f32 %v11781_v36, %v13927_v30  ;;  %v881_v40 = vpop.f32.mrb[29].mxu0 }
 0x28d   : > { %v14108_v41 = vadd.f32 %v13927_v30, %v881_v40 }
 0x28e   : > { %12842 = vrot.lane.b32.xlu1 %v12836_v35, %s13670_s13  ;;  %7271 = vrot.lane.b32.xlu0 %v14105_v38, %s13668_s10 }
 0x28f   : > { %v12866_v43 = vpack.i.bf16 %v14105_v38, %v14108_v41 }
 0x290   : > { %v14115_v45 = vpop.permute.xlu0 %5997 }
 0x291   : > { %19337 = vst [vmem:[#allocation8_spill] sm:$0xff] %v14115_v45 }
 0x292   : > { %6996 = vrot.lane.b32.xlu1 %v14095_v33, %s13668_s10  ;;  %12867 = vrot.lane.b32.xlu0 %v12866_v43, %s13669_s11 }
 0x293   : > { %v12728_v46 = vpop.permute.xlu1 %12727  ;;  %v11784_v48 = vpop.f32.mrb[30].mxu0 }
 0x294   : > { %v14120_v50 = vpop.permute.xlu0 %12732  ;;  %v891_v51 = vpop.f32.mrb[31].mxu0  ;;  %v12730_v53 = vunpack.i.h.bf16 %v12728_v46  ;;  %v12729_v55 = vunpack.i.l.bf16 %v12728_v46  ;;  %v14189_v46 = vadd.f32 %v11784_v48, %v13927_v30 }
 0x296   : > { %12847 = vrot.lane.b32.xlu1 %v12851_v28, %s13669_s11  ;;  %12872 = vrot.lane.b32.xlu0 %v12866_v43, %s13670_s13  ;;  %v12281_v57 = vpack.c.bf16 %v12730_v53, %v12729_v55  ;;  %v14192_v53 = vadd.f32 %v13927_v30, %v891_v51 }
 0x297   : > { %v11787_v60 = vpop.f32.mrb[32].mxu0 }
 0x298   : > { %v14136_v1 = vpop.permute.xlu0 %5995  ;;  %v14138_v2 = vpop.permute.xlu1 %6088  ;;  %12283 = vmatprep.subr.msk.bf16.mxu1 %vm14124_vm2, %v12281_v57  ;;  %v14149_v4 = vadd.f32 %v11787_v60, %v13927_v30 }
 0x299   : > { %19340 = vst [vmem:[#allocation9_spill] sm:$0xff] %v14138_v2  ;;  %12286 = vmatpush3.bf16.xpose.msk.msra.mxu1 %vm14124_vm2, %v12281_v57  ;;  %v901_v3 = vpop.f32.mrb[33].mxu0 }
 0x29a   : > { %7180 = vrot.lane.b32.xlu1 %v14131_v62, %s13668_s10  ;;  %7269 = vrot.lane.b32.xlu0 %v14108_v41, %s13668_s10  ;;  %v902_v8 = vadd.f32 %v13927_v30, %v901_v3 }
 0x29b   : > { %v14152_v10 = vpop.f32.mrb[34].mxu0 }
 0x29c   : > { %v12738_v11 = vpop.permute.xlu0 %12737  ;;  %v14154_v12 = vpop.permute.xlu1 %12742  ;;  %11949 = vmatprep.mubr.msk.f32.mxu0 %vm1066_vm1, %v902_v8  ;;  %v12886_v26 = vpack.i.bf16 %v14149_v4, %v902_v8 }
 0x29d   : > { %19341 = vst [vmem:[#allocation10_spill] sm:$0xff] %v14154_v12  ;;  %v12740_v14 = vunpack.i.h.bf16 %v12738_v11  ;;  %v12739_v16 = vunpack.i.l.bf16 %v12738_v11  ;;  %v14159_v18 = vpop.f32.mrb[35].mxu0 }
 0x29e   : > { %12857 = vrot.lane.b32.xlu1 %v12856_v13, %s13669_s11  ;;  %7453 = vrot.lane.b32.xlu0 %v14149_v4, %s13668_s10 }
 0x29f   : > { %v12287_v21 = vpack.c.bf16 %v12740_v14, %v12739_v16  ;;  %v11793_v22 = vpop.f32.mrb[36].mxu0 }
 0x2a0   : > { %v14164_v23 = vpop.permute.xlu0 %6179  ;;  %v14166_v24 = vpop.permute.xlu1 %6086  ;;  %11838 = vmatmul.mubr.msk.f32.vlgmr.msra.gmra.mrb[0].mxu1 %vm1066_vm1, %v13930_v32  ;;  %v14208_v48 = vadd.f32 %v11793_v22, %v13927_v30 }
 0x2a1   : > { %19342 = vst [vmem:[#allocation11_spill] sm:$0xff] %v14164_v23  ;;  %19343 = vst [vmem:[#allocation12_spill] sm:$0xff] %v14166_v24  ;;  %12289 = vmatprep.subr.msk.bf16.mxu1 %vm14124_vm2, %v12287_v21  ;;  %11844 = vmatprep.mubr.msk.f32.mxu1 %vm1066_vm1, %v13943_v39  ;;  %v921_v28 = vpop.f32.mrb[37].mxu0 }
 0x2a2   : > { %12862 = vrot.lane.b32.xlu1 %v12856_v13, %s13670_s13  ;;  %12887 = vrot.lane.b32.xlu0 %v12886_v26, %s13669_s11 }
 0x2a3   : > { %12292 = vmatpush3.bf16.xpose.msk.msra.mxu1 %vm14124_vm2, %v12287_v21  ;;  %v14179_v29 = vpop.f32.mrb[38].mxu0 }
 0x2a4   : > { %v12748_v34 = vpop.permute.xlu1 %12747  ;;  %v14181_v32 = vpop.permute.xlu0 %12752 }
 0x2a5   : > { %v12750_v35 = vunpack.i.h.bf16 %v12748_v34  ;;  %v12749_v36 = vunpack.i.l.bf16 %v12748_v34  ;;  %v14183_v40 = vpop.f32.mrb[39].mxu0 }
 0x2a6   : > { %7178 = vrot.lane.b32.xlu1 %v14134_v63, %s13668_s10  ;;  %12892 = vrot.lane.b32.xlu0 %v12886_v26, %s13670_s13 }
 0x2a7   : > { %v12293_v39 = vpack.c.bf16 %v12750_v35, %v12749_v36  ;;  %v11799_v43 = vpop.f32.mrb[40].mxu0 }
 0x2a8   : > { %v14194_v55 = vpop.permute.xlu1 %6270  ;;  %v941_v57 = vpop.f32.mrb[41].mxu0 }
 0x2a9   : > { %19344 = vst [vmem:[#allocation13_spill] sm:$0xff] %v14194_v55  ;;  %12295 = vmatprep.subr.msk.bf16.mxu1 %vm14124_vm2, %v12293_v39  ;;  %v14202_v60 = vpop.permute.xlu0 %6177 }
 0x2aa   : > { %11845 = vmatmul.mubr.msk.f32.vlgmr.msra.gmra.mrb[2].mxu1 %vm1066_vm1, %v13940_v37  ;;  %7362 = vrot.lane.b32.xlu1 %v14189_v46, %s13668_s10  ;;  %19345 = vst [vmem:[#allocation14_spill] sm:$0xff] %v14202_v60  ;;  %v12876_v37 = vpack.i.bf16 %v14189_v46, %v14192_v53 }
 0x2ab   : > { %7451 = vrot.lane.b32.xlu0 %v902_v8, %s13668_s10  ;;  %12298 = vmatpush3.bf16.xpose.msk.msra.mxu1 %vm14124_vm2, %v12293_v39  ;;  %v14210_v51 = vpop.f32.mrb[42].mxu0  ;;  %v14219_v8 = vadd.f32 %v13927_v30, %v921_v28 }
 0x2ac   : > { %11851 = vmatprep.mubr.msk.f32.mxu1 %vm1066_vm1, %v13956_v44  ;;  %v12758_v3 = vpop.permute.xlu1 %12757  ;;  %v14216_v11 = vpop.f32.mrb[43].mxu0 }
 0x2ad   : > { %v12760_v13 = vunpack.i.h.bf16 %v12758_v3  ;;  %v12759_v14 = vunpack.i.l.bf16 %v12758_v3  ;;  %v12906_v26 = vpack.i.bf16 %v14208_v48, %v14219_v8  ;;  %v14259_v3 = vadd.f32 %v14152_v10, %v13927_v30 }
 0x2ae   : > { %12877 = vrot.lane.b32.xlu1 %v12876_v37, %s13669_s11  ;;  %v14278_v10 = vadd.f32 %v11799_v43, %v13927_v30 }
 0x2af   : > { %v12299_v16 = vpack.c.bf16 %v12760_v13, %v12759_v14  ;;  %7635 = vrot.lane.b32.xlu0 %v14208_v48, %s13668_s10  ;;  %v14224_v21 = vpop.f32.mrb[44].mxu0 }
 0x2b0   : > { %v14226_v44 = vpop.permute.xlu0 %6361  ;;  %v14228_v22 = vpop.permute.xlu1 %12762 }
 0x2b1   : > { %19346 = vst [vmem:[#allocation15_spill] sm:$0xff] %v14226_v44  ;;  %19347 = vst [vmem:[#allocation16_spill] sm:$0xff] %v14228_v22  ;;  %12301 = vmatprep.subr.msk.bf16.mxu1 %vm14124_vm2, %v12299_v16  ;;  %v14234_v28 = vpop.f32.mrb[45].mxu0 }
 0x2b2   : > { %11852 = vmatmul.mubr.msk.f32.vlgmr.msra.gmra.mrb[4].mxu1 %vm1066_vm1, %v13953_v42  ;;  %12882 = vrot.lane.b32.xlu1 %v12876_v37, %s13670_s13 }
 0x2b3   : > { %12907 = vrot.lane.b32.xlu0 %v12906_v26, %s13669_s11  ;;  %12304 = vmatpush3.bf16.xpose.msk.msra.mxu1 %vm14124_vm2, %v12299_v16  ;;  %v14242_v34 = vpop.f32.mrb[46].mxu0 }
 0x2b4   : > { %11858 = vmatprep.mubr.msk.f32.mxu1 %vm1066_vm1, %v13970_v49  ;;  %v14246_v35 = vpop.permute.xlu1 %6268  ;;  %v14248_v36 = vpop.permute.xlu0 %12772  ;;  %v14263_v49 = vadd.f32 %v13927_v30, %v14159_v18 }
 0x2b5   : > { %19348 = vst [vmem:[#allocation17_spill] sm:$0xff] %v14246_v35  ;;  %19349 = vst [vmem:[#allocation18_spill] sm:$0xff] %v14248_v36  ;;  %v14250_v39 = vpop.f32.mrb[47].mxu0 }
 0x2b6   : > { %7360 = vrot.lane.b32.xlu1 %v14192_v53, %s13668_s10 }
 0x2b7   : > { %12912 = vrot.lane.b32.xlu0 %v12906_v26, %s13670_s13  ;;  %v14255_v42 = vpop.f32.mrb[48].mxu0 }
 0x2b8   : > { %v12768_v37 = vpop.permute.xlu1 %12767  ;;  %v14265_v16 = vpop.f32.mrb[49].mxu0 }
 0x2b9   : > { %v12770_v13 = vunpack.i.h.bf16 %v12768_v37  ;;  %v12769_v14 = vunpack.i.l.bf16 %v12768_v37  ;;  %v14271_v26 = vpop.permute.xlu0 %6359 }
 0x2ba   : > { %11859 = vmatmul.mubr.msk.f32.vlgmr.msra.gmra.mrb[6].mxu1 %vm1066_vm1, %v13967_v47  ;;  %7544 = vrot.lane.b32.xlu1 %v14259_v3, %s13668_s10  ;;  %19350 = vst [vmem:[#allocation19_spill] sm:$0xff] %v14271_v26  ;;  %v12896_v47 = vpack.i.bf16 %v14259_v3, %v14263_v49 }
 0x2bb   : > { %v12305_v55 = vpack.c.bf16 %v12770_v13, %v12769_v14  ;;  %7633 = vrot.lane.b32.xlu0 %v14219_v8, %s13668_s10  ;;  %11865 = vmatprep.mubr.msk.f32.mxu1 %vm1066_vm1, %v13983_v54  ;;  %v14280_v18 = vpop.f32.mrb[50].mxu0  ;;  %v14289_v13 = vadd.f32 %v13927_v30, %v941_v57 }
 0x2bc   : > { %v14282_v37 = vpop.permute.xlu1 %6452  ;;  %v14286_v35 = vpop.f32.mrb[51].mxu0 }
 0x2bd   : > { %19351 = vst [vmem:[#allocation20_spill] sm:$0xff] %v14282_v37  ;;  %12307 = vmatprep.subr.msk.bf16.mxu1 %vm14124_vm2, %v12305_v55  ;;  %v12926_v57 = vpack.i.bf16 %v14278_v10, %v14289_v13 }
 0x2be   : > { %12897 = vrot.lane.b32.xlu1 %v12896_v47, %s13669_s11  ;;  %12310 = vmatpush3.bf16.xpose.msk.msra.mxu1 %vm14124_vm2, %v12305_v55 }
 0x2bf   : > { %7817 = vrot.lane.b32.xlu0 %v14278_v10, %s13668_s10  ;;  %v14298_v54 = vpop.f32.mrb[52].mxu0 }
 0x2c0   : > { %v14300_v43 = vpop.permute.xlu0 %6543  ;;  %v12778_v14 = vpop.permute.xlu1 %12777 }
 0x2c1   : > { %19352 = vst [vmem:[#allocation21_spill] sm:$0xff] %v14300_v43  ;;  %v12780_v37 = vunpack.i.h.bf16 %v12778_v14  ;;  %v12779_v2 = vunpack.i.l.bf16 %v12778_v14  ;;  %v14304_v24 = vpop.f32.mrb[53].mxu0 }
 0x2c2   : > { %12902 = vrot.lane.b32.xlu1 %v12896_v47, %s13670_s13 }
 0x2c3   : > { %v12311_v44 = vpack.c.bf16 %v12780_v37, %v12779_v2  ;;  %12927 = vrot.lane.b32.xlu0 %v12926_v57, %s13669_s11  ;;  %v14308_v55 = vpop.f32.mrb[54].mxu0  ;;  %v14335_v37 = vadd.f32 %v13927_v30, %v14183_v40 }
 0x2c4   : > { %v14310_v22 = vpop.permute.xlu1 %12782  ;;  %v14312_v26 = vpop.permute.xlu0 %12792 }
 0x2c5   : > { %19353 = vst [vmem:[#allocation22_spill] sm:$0xff] %v14310_v22  ;;  %19354 = vst [vmem:[#allocation23_spill] sm:$0xff] %v14312_v26  ;;  %11866 = vmatmul.mubr.msk.f32.vlgmr.msra.gmra.mrb[8].mxu1 %vm1066_vm1, %v13980_v52  ;;  %12313 = vmatprep.subr.msk.bf16.mxu1 %vm14124_vm2, %v12311_v44  ;;  %v14318_v14 = vpop.f32.mrb[55].mxu0  ;;  %v14331_v52 = vadd.f32 %v14179_v29, %v13927_v30 }
 0x2c6   : > { %7542 = vrot.lane.b32.xlu1 %v14263_v49, %s13668_s10  ;;  %12316 = vmatpush3.bf16.xpose.msk.msra.mxu1 %vm14124_vm2, %v12311_v44 }
 0x2c7   : > { %12932 = vrot.lane.b32.xlu0 %v12926_v57, %s13670_s13  ;;  %11872 = vmatprep.mubr.msk.f32.mxu1 %vm1066_vm1, %v14000_v59  ;;  %v14327_v2 = vpop.f32.mrb[56].mxu0  ;;  %v14349_v59 = vadd.f32 %v14224_v21, %v13927_v30  ;;  %v12916_v57 = vpack.i.bf16 %v14331_v52, %v14335_v37 }
 0x2c8   : > { %v14337_v47 = vpop.permute.xlu1 %6450  ;;  %v14339_v43 = vpop.f32.mrb[57].mxu0 }
 0x2c9   : > { %19355 = vst [vmem:[#allocation24_spill] sm:$0xff] %v14337_v47  ;;  %v14343_v44 = vpop.permute.xlu0 %6541 }
 0x2ca   : > { %7726 = vrot.lane.b32.xlu1 %v14331_v52, %s13668_s10  ;;  %19356 = vst [vmem:[#allocation25_spill] sm:$0xff] %v14343_v44  ;;  %v14359_v44 = vadd.f32 %v13927_v30, %v14234_v28 }
 0x2cb   : > { %7815 = vrot.lane.b32.xlu0 %v14289_v13, %s13668_s10  ;;  %v14351_v29 = vpop.f32.mrb[58].mxu0 }
 0x2cc   : > { %v12788_v40 = vpop.permute.xlu1 %12787  ;;  %v14355_v47 = vpop.f32.mrb[59].mxu0 }
 0x2cd   : > { %v12790_v22 = vunpack.i.h.bf16 %v12788_v40  ;;  %v12789_v23 = vunpack.i.l.bf16 %v12788_v40  ;;  %11873 = vmatmul.mubr.msk.f32.vlgmr.msra.gmra.mrb[10].mxu1 %vm1066_vm1, %v13997_v58  ;;  %v12946_v58 = vpack.i.bf16 %v14349_v59, %v14359_v44 }
 0x2ce   : > { %12917 = vrot.lane.b32.xlu1 %v12916_v57, %s13669_s11  ;;  %11879 = vmatprep.mubr.msk.f32.mxu1 %vm1066_vm1, %v14010_v0 }
 0x2cf   : > { %v12317_v21 = vpack.c.bf16 %v12790_v22, %v12789_v23  ;;  %7999 = vrot.lane.b32.xlu0 %v14349_v59, %s13668_s10  ;;  %v14368_v12 = vpop.f32.mrb[60].mxu0 }
 0x2d0   : > { %v14370_v26 = vpop.permute.xlu0 %6725  ;;  %v14372_v40 = vpop.permute.xlu1 %6634 }
 0x2d1   : > { %19357 = vst [vmem:[#allocation26_spill] sm:$0xff] %v14370_v26  ;;  %19358 = vst [vmem:[#allocation27_spill] sm:$0xff] %v14372_v40  ;;  %12319 = vmatprep.subr.msk.bf16.mxu1 %vm14124_vm2, %v12317_v21  ;;  %v14378_v28 = vpop.f32.mrb[61].mxu0 }
 0x2d2   : > { %12922 = vrot.lane.b32.xlu1 %v12916_v57, %s13670_s13  ;;  %12322 = vmatpush3.bf16.xpose.msk.msra.mxu1 %vm14124_vm2, %v12317_v21  ;;  %v14395_v57 = vadd.f32 %v14210_v51, %v13927_v30  ;;  %v14399_v21 = vadd.f32 %v13927_v30, %v14216_v11  ;;  %v14417_v51 = vadd.f32 %v14255_v42, %v13927_v30 }
 0x2d3   : > { %12947 = vrot.lane.b32.xlu0 %v12946_v58, %s13669_s11  ;;  %v14384_v0 = vpop.f32.mrb[62].mxu0 }
 0x2d4   : > { %v12798_v23 = vpop.permute.xlu1 %12797  ;;  %v14386_v26 = vpop.f32.mrb[63].mxu0 }
 0x2d5   : > { %v12800_v22 = vunpack.i.h.bf16 %v12798_v23  ;;  %v12799_v40 = vunpack.i.l.bf16 %v12798_v23  ;;  %v14388_v60 = vpop.permute.xlu0 %12812 }
 0x2d6   : > { %7724 = vrot.lane.b32.xlu1 %v14335_v37, %s13668_s10 }
 0x2d7   : > { %v12323_v45 = vpack.c.bf16 %v12800_v22, %v12799_v40  ;;  %12952 = vrot.lane.b32.xlu0 %v12946_v58, %s13670_s13  ;;  %v12936_v40 = vpack.i.bf16 %v14395_v57, %v14399_v21 }
 0x2d8   : > { %v14401_v36 = vpop.permute.xlu1 %12802 }
 0x2d9   : > { %11880 = vmatmul.mubr.msk.f32.vlgmr.msra.gmra.mrb[12].mxu1 %vm1066_vm1, %v14005_v61  ;;  %12325 = vmatprep.subr.msk.bf16.mxu1 %vm14124_vm2, %v12323_v45  ;;  %v14419_v61 = vpop.permute.xlu0 %6723 }
 0x2da   : > { %7908 = vrot.lane.b32.xlu1 %v14395_v57, %s13668_s10  ;;  %12328 = vmatpush3.bf16.xpose.msk.msra.mxu1 %vm14124_vm2, %v12323_v45  ;;  %v14427_v45 = vadd.f32 %v13927_v30, %v14265_v16 }
 0x2db   : > { %7997 = vrot.lane.b32.xlu0 %v14359_v44, %s13668_s10  ;;  %11886 = vmatprep.mubr.msk.f32.mxu1 %vm1066_vm1, %v14028_v6 }
 0x2dc   : > { %v14421_v11 = vpop.permute.xlu1 %6632  ;;  %v12966_v22 = vpack.i.bf16 %v14417_v51, %v14427_v45 }
 0x2dd   : > { %19359 = vst [vmem:[#allocation28_spill] sm:$0xff] %v14421_v11 }
 0x2de   : > { %12937 = vrot.lane.b32.xlu1 %v12936_v40, %s13669_s11 }
 0x2df   : > { %8181 = vrot.lane.b32.xlu0 %v14417_v51, %s13668_s10 }
 0x2e0   : > { %v14432_v6 = vpop.permute.xlu0 %6907  ;;  %v12808_v42 = vpop.permute.xlu1 %12807 }
 0x2e1   : > { %19360 = vst [vmem:[#allocation29_spill] sm:$0xff] %v14432_v6  ;;  %v12810_v58 = vunpack.i.h.bf16 %v12808_v42  ;;  %v12809_v23 = vunpack.i.l.bf16 %v12808_v42  ;;  %11887 = vmatmul.mubr.msk.f32.vlgmr.msra.gmra.mrb[14].mxu1 %vm1066_vm1, %v14025_v5  ;;  %v14455_v5 = vadd.f32 %v14242_v34, %v13927_v30 }
 0x2e2   : > { %12942 = vrot.lane.b32.xlu1 %v12936_v40, %s13670_s13  ;;  %11893 = vmatprep.mubr.msk.f32.mxu1 %vm1066_vm1, %v14034_v9  ;;  %v14459_v9 = vadd.f32 %v13927_v30, %v14250_v39 }
 0x2e3   : > { %v12329_v16 = vpack.c.bf16 %v12810_v58, %v12809_v23  ;;  %12967 = vrot.lane.b32.xlu0 %v12966_v22, %s13669_s11 }
 0x2e4   : > { %v14442_v11 = vpop.permute.xlu1 %6816  ;;  %v14446_v42 = vpop.permute.xlu0 %12832  ;;  %v12956_v39 = vpack.i.bf16 %v14455_v5, %v14459_v9 }
 0x2e5   : > { %19361 = vst [vmem:[#allocation30_spill] sm:$0xff] %v14442_v11  ;;  %12331 = vmatprep.subr.msk.bf16.mxu1 %vm14124_vm2, %v12329_v16 }
 0x2e6   : > { %7906 = vrot.lane.b32.xlu1 %v14399_v21, %s13668_s10  ;;  %12334 = vmatpush3.bf16.xpose.msk.msra.mxu1 %vm14124_vm2, %v12329_v16 }
 0x2e7   : > { %12972 = vrot.lane.b32.xlu0 %v12966_v22, %s13670_s13  ;;  %v14467_v22 = vadd.f32 %v14298_v54, %v13927_v30 }
 0x2e8   : > { %v12818_v40 = vpop.permute.xlu1 %12817  ;;  %v14469_v34 = vpop.permute.xlu0 %6905 }
 0x2e9   : > { %v12820_v58 = vunpack.i.h.bf16 %v12818_v40  ;;  %v12819_v23 = vunpack.i.l.bf16 %v12818_v40  ;;  %v14477_v40 = vadd.f32 %v13927_v30, %v14304_v24 }
 0x2ea   : > { %8090 = vrot.lane.b32.xlu1 %v14455_v5, %s13668_s10 }
 0x2eb   : > { %v12335_v11 = vpack.c.bf16 %v12820_v58, %v12819_v23  ;;  %8179 = vrot.lane.b32.xlu0 %v14427_v45, %s13668_s10 }
 0x2ec   : > { %v14471_v16 = vpop.permute.xlu1 %12822 }
 0x2ed   : > { %19362 = vst [vmem:[#allocation31_spill] sm:$0xff] %v14471_v16  ;;  %11894 = vmatmul.mubr.msk.f32.vlgmr.msra.gmra.mrb[16].mxu1 %vm1066_vm1, %v14031_v7  ;;  %12337 = vmatprep.subr.msk.bf16.mxu1 %vm14124_vm2, %v12335_v11  ;;  %v12986_v7 = vpack.i.bf16 %v14467_v22, %v14477_v40 }
 0x2ee   : > { %12957 = vrot.lane.b32.xlu1 %v12956_v39, %s13669_s11  ;;  %12340 = vmatpush3.bf16.xpose.msk.msra.mxu1 %vm14124_vm2, %v12335_v11 }
 0x2ef   : > { %8363 = vrot.lane.b32.xlu0 %v14467_v22, %s13668_s10  ;;  %11900 = vmatprep.mubr.msk.f32.mxu1 %vm1066_vm1, %v14066_v20 }
 0x2f0   : > { %v14490_v54 = vpop.permute.xlu0 %7089  ;;  %v14492_v24 = vpop.permute.xlu1 %6814 }
 0x2f1   : > { %19363 = vst [vmem:[#allocation32_spill] sm:$0xff] %v14490_v54  ;;  %19364 = vst [vmem:[#allocation33_spill] sm:$0xff] %v14492_v24 }
 0x2f2   : > { %12962 = vrot.lane.b32.xlu1 %v12956_v39, %s13670_s13  ;;  %v14509_v39 = vadd.f32 %v14280_v18, %v13927_v30 }
 0x2f3   : > { %12987 = vrot.lane.b32.xlu0 %v12986_v7, %s13669_s11 }
 0x2f4   : > { %v12828_v58 = vpop.permute.xlu1 %12827  ;;  %v14500_v6 = vpop.permute.xlu0 %12852 }
 0x2f5   : > { %v12830_v23 = vunpack.i.h.bf16 %v12828_v58  ;;  %v12829_v11 = vunpack.i.l.bf16 %v12828_v58  ;;  %11901 = vmatmul.mubr.msk.f32.vlgmr.msra.gmra.mrb[18].mxu1 %vm1066_vm1, %v14063_v19  ;;  %v14513_v58 = vadd.f32 %v13927_v30, %v14286_v35 }
 0x2f6   : > { %8088 = vrot.lane.b32.xlu1 %v14459_v9, %s13668_s10  ;;  %11907 = vmatprep.mubr.msk.f32.mxu1 %vm1066_vm1, %v14055_v17  ;;  %v14527_v17 = vadd.f32 %v14327_v2, %v13927_v30 }
 0x2f7   : > { %v12341_v20 = vpack.c.bf16 %v12830_v23, %v12829_v11  ;;  %12992 = vrot.lane.b32.xlu0 %v12986_v7, %s13670_s13  ;;  %v12976_v7 = vpack.i.bf16 %v14509_v39, %v14513_v58 }
 0x2f8   : > { %v14515_v19 = vpop.permute.xlu1 %6998  ;;  %v14529_v35 = vpop.permute.xlu0 %7087 }
 0x2f9   : > { %19365 = vst [vmem:[#allocation34_spill] sm:$0xff] %v14515_v19  ;;  %12343 = vmatprep.subr.msk.bf16.mxu1 %vm14124_vm2, %v12341_v20  ;;  %19366 = vst [vmem:[#allocation35_spill] sm:$0xff] %v14529_v35  ;;  %v14535_v19 = vadd.f32 %v13927_v30, %v14339_v43 }
 0x2fa   : > { %8272 = vrot.lane.b32.xlu1 %v14509_v39, %s13668_s10  ;;  %12346 = vmatpush3.bf16.xpose.msk.msra.mxu1 %vm14124_vm2, %v12341_v20 }
 0x2fb   : > { %8361 = vrot.lane.b32.xlu0 %v14477_v40, %s13668_s10  ;;  %v13006_v43 = vpack.i.bf16 %v14527_v17, %v14535_v19 }
 0x2fc   : > { %v12838_v18 = vpop.permute.xlu1 %12837 }
 0x2fd   : > { %v12840_v23 = vunpack.i.h.bf16 %v12838_v18  ;;  %v12839_v11 = vunpack.i.l.bf16 %v12838_v18 }
 0x2fe   : > { %12977 = vrot.lane.b32.xlu1 %v12976_v7, %s13669_s11 }
 0x2ff   : > { %v12347_v20 = vpack.c.bf16 %v12840_v23, %v12839_v11  ;;  %8545 = vrot.lane.b32.xlu0 %v14527_v17, %s13668_s10 }
 0x300   : > { %v14540_v2 = vpop.permute.xlu0 %7271  ;;  %v14542_v24 = vpop.permute.xlu1 %12842 }
 0x301   : > { %19367 = vst [vmem:[#allocation36_spill] sm:$0xff] %v14540_v2  ;;  %19368 = vst [vmem:[#allocation37_spill] sm:$0xff] %v14542_v24  ;;  %11908 = vmatmul.mubr.msk.f32.vlgmr.msra.gmra.mrb[20].mxu1 %vm1066_vm1, %v14052_v15  ;;  %12349 = vmatprep.subr.msk.bf16.mxu1 %vm14124_vm2, %v12347_v20  ;;  %v14563_v15 = vadd.f32 %v14308_v55, %v13927_v30 }
 0x302   : > { %12982 = vrot.lane.b32.xlu1 %v12976_v7, %s13670_s13  ;;  %12352 = vmatpush3.bf16.xpose.msk.msra.mxu1 %vm14124_vm2, %v12347_v20  ;;  %v14567_v7 = vadd.f32 %v13927_v30, %v14318_v14  ;;  %v14581_v14 = vadd.f32 %v14368_v12, %v13927_v30 }
 0x303   : > { %13007 = vrot.lane.b32.xlu0 %v13006_v43, %s13669_s11  ;;  %11914 = vmatprep.mubr.msk.f32.mxu1 %vm1066_vm1, %v14095_v33 }
 0x304   : > { %v12868_v18 = vpop.permute.xlu0 %12867  ;;  %v14556_v23 = vpop.permute.xlu1 %6996 }
 0x305   : > { %19369 = vst [vmem:[#allocation38_spill] sm:$0xff] %v14556_v23  ;;  %v12996_v23 = vpack.i.bf16 %v14563_v15, %v14567_v7 }
 0x306   : > { %8270 = vrot.lane.b32.xlu1 %v14513_v58, %s13668_s10 }
 0x307   : > { %13012 = vrot.lane.b32.xlu0 %v13006_v43, %s13670_s13 }
 0x308   : > { %v14569_v11 = vpop.permute.xlu0 %12872  ;;  %v12848_v20 = vpop.permute.xlu1 %12847 }
 0x309   : > { %19370 = vst [vmem:[#allocation39_spill] sm:$0xff] %v14569_v11  ;;  %v12850_v33 = vunpack.i.h.bf16 %v12848_v20  ;;  %v12849_v2 = vunpack.i.l.bf16 %v12848_v20  ;;  %11915 = vmatmul.mubr.msk.f32.vlgmr.msra.gmra.mrb[22].mxu1 %vm1066_vm1, %v14092_v31  ;;  %v14589_v31 = vadd.f32 %v13927_v30, %v14378_v28 }
 0x30a   : > { %8454 = vrot.lane.b32.xlu1 %v14563_v15, %s13668_s10  ;;  %11921 = vmatprep.mubr.msk.f32.mxu1 %vm1066_vm1, %v14081_v27 }
 0x30b   : > { %v12353_v55 = vpack.c.bf16 %v12850_v33, %v12849_v2  ;;  %8543 = vrot.lane.b32.xlu0 %v14535_v19, %s13668_s10  ;;  %v13026_v28 = vpack.i.bf16 %v14581_v14, %v14589_v31  ;;  %v12870_v2 = vunpack.i.h.bf16 %v12868_v18  ;;  %v12869_v33 = vunpack.i.l.bf16 %v12868_v18 }
 0x30c   : > { %v14583_v43 = vpop.permute.xlu0 %7269  ;;  %v14585_v20 = vpop.permute.xlu1 %7180 }
 0x30d   : > { %19371 = vst [vmem:[#allocation40_spill] sm:$0xff] %v14583_v43  ;;  %19372 = vst [vmem:[#allocation41_spill] sm:$0xff] %v14585_v20  ;;  %12355 = vmatprep.subr.msk.bf16.mxu1 %vm14124_vm2, %v12353_v55  ;;  %v12365_v35 = vpack.c.bf16 %v12870_v2, %v12869_v33 }
 0x30e   : > { %12997 = vrot.lane.b32.xlu1 %v12996_v23, %s13669_s11  ;;  %12358 = vmatpush3.bf16.xpose.msk.msra.mxu1 %vm14124_vm2, %v12353_v55 }
 0x30f   : > { %8727 = vrot.lane.b32.xlu0 %v14581_v14, %s13668_s10 }
 0x310   : > { %v14600_v27 = vpop.permute.xlu0 %7453  ;;  %v12858_v12 = vpop.permute.xlu1 %12857 }
 0x311   : > { %v12860_v20 = vunpack.i.h.bf16 %v12858_v12  ;;  %v12859_v43 = vunpack.i.l.bf16 %v12858_v12 }
 0x312   : > { %13002 = vrot.lane.b32.xlu1 %v12996_v23, %s13670_s13 }
 0x313   : > { %v12359_v54 = vpack.c.bf16 %v12860_v20, %v12859_v43  ;;  %13027 = vrot.lane.b32.xlu0 %v13026_v28, %s13669_s11 }
 0x314   : > { %v12888_v24 = vpop.permute.xlu0 %12887  ;;  %v14606_v55 = vpop.permute.xlu1 %12862 }
 0x315   : > { %v12890_v16 = vunpack.i.h.bf16 %v12888_v24  ;;  %v12889_v11 = vunpack.i.l.bf16 %v12888_v24  ;;  %11922 = vmatmul.mubr.msk.f32.vlgmr.msra.gmra.mrb[24].mxu1 %vm1066_vm1, %v14078_v25  ;;  %12361 = vmatprep.subr.msk.bf16.mxu1 %vm14124_vm2, %v12359_v54  ;;  %v14622_v24 = vadd.f32 %v14351_v29, %v13927_v30  ;;  %v14626_v25 = vadd.f32 %v13927_v30, %v14355_v47 }
 0x316   : > { %8452 = vrot.lane.b32.xlu1 %v14567_v7, %s13668_s10  ;;  %12364 = vmatpush3.bf16.xpose.msk.msra.mxu1 %vm14124_vm2, %v12359_v54 }
 0x317   : > { %v12377_v18 = vpack.c.bf16 %v12890_v16, %v12889_v11  ;;  %11928 = vmatprep.mubr.msk.f32.mxu1 %vm1066_vm1, %v14134_v63  ;;  %12367 = vmatprep.subr.msk.bf16.mxu1 %vm14124_vm2, %v12365_v35  ;;  %v13016_v47 = vpack.i.bf16 %v14622_v24, %v14626_v25 }
 0x318   : > { %v14628_v23 = vpop.permute.xlu0 %12892  ;;  %v14630_v43 = vpop.permute.xlu1 %7178  ;;  %13032 = vrot.lane.b32.xlu0 %v13026_v28, %s13670_s13 }
 0x319   : > { %12379 = vmatprep.subr.msk.bf16.mxu0 %vm14124_vm2, %v12377_v18 }
 0x31a   : > { %12382 = vmatpush3.bf16.xpose.msk.msra.mxu0 %vm14124_vm2, %v12377_v18  ;;  %8636 = vrot.lane.b32.xlu1 %v14622_v24, %s13668_s10 }
 0x31c   : > { %v14639_v63 = vpop.permute.xlu1 %7362  ;;  %8725 = vrot.lane.b32.xlu0 %v14589_v31, %s13668_s10 }
 0x31d   : > { %v14645_v29 = vpop.permute.xlu0 %7451  ;;  %11929 = vmatmul.mubr.msk.f32.vlgmr.msra.gmra.mrb[26].mxu1 %vm1066_vm1, %v14131_v62 }
 0x31e   : > { %13017 = vrot.lane.b32.xlu1 %v13016_v47, %s13669_s11  ;;  %12370 = vmatpush3.bf16.xpose.msk.msra.mxu1 %vm14124_vm2, %v12365_v35 }
 0x31f   : > { %11935 = vmatprep.mubr.msk.f32.mxu1 %vm1066_vm1, %v14108_v41 }
 0x320   : > { %v12878_v16 = vpop.permute.xlu1 %12877 }
 0x321   : > { %v14654_v54 = vpop.permute.xlu0 %7635  ;;  %v12880_v11 = vunpack.i.h.bf16 %v12878_v16  ;;  %v12879_v20 = vunpack.i.l.bf16 %v12878_v16  ;;  %11950 = vmatmul.mubr.msk.f32.vlgmr.msra.gmra.mrb[64].mxu0 %vm1066_vm1, %v14149_v4  ;;  %v14673_v4 = vadd.f32 %v14384_v0, %v13927_v30 }
 0x322   : > { %11963 = vmatprep.mubr.msk.f32.mxu0 %vm1066_vm1, %v14219_v8  ;;  %13022 = vrot.lane.b32.xlu1 %v13016_v47, %s13670_s13  ;;  %v14677_v8 = vadd.f32 %v13927_v30, %v14386_v26 }
 0x323   : > { %v12371_v62 = vpack.c.bf16 %v12880_v11, %v12879_v20 }
 0x324   : > { %v14661_v12 = vpop.permute.xlu1 %12882  ;;  %v13036_v0 = vpack.i.bf16 %v14673_v4, %v14677_v8 }
 0x325   : > { %v12908_v35 = vpop.permute.xlu0 %12907  ;;  %11936 = vmatmul.mubr.msk.f32.vlgmr.msra.gmra.mrb[28].mxu1 %vm1066_vm1, %v14105_v38  ;;  %12373 = vmatprep.subr.msk.bf16.mxu1 %vm14124_vm2, %v12371_v62 }
 0x326   : > { %v12910_v41 = vunpack.i.h.bf16 %v12908_v35  ;;  %v12909_v28 = vunpack.i.l.bf16 %v12908_v35  ;;  %8634 = vrot.lane.b32.xlu1 %v14626_v25, %s13668_s10  ;;  %12376 = vmatpush3.bf16.xpose.msk.msra.mxu1 %vm14124_vm2, %v12371_v62 }
 0x327   : > { %11942 = vmatprep.mubr.msk.f32.mxu1 %vm1066_vm1, %v14192_v53 }
 0x328   : > { %v12389_v38 = vpack.c.bf16 %v12910_v41, %v12909_v28  ;;  %v14681_v2 = vpop.permute.xlu1 %7360 }
 0x329   : > { %v14683_v33 = vpop.permute.xlu0 %12912 }
 0x32a   : > { %12391 = vmatprep.subr.msk.bf16.mxu0 %vm14124_vm2, %v12389_v38  ;;  %8818 = vrot.lane.b32.xlu1 %v14673_v4, %s13668_s10 }
 0x32b   : > { %12394 = vmatpush3.bf16.xpose.msk.msra.mxu0 %vm14124_vm2, %v12389_v38 }
 0x32c   : > { %v14693_v30 = vpop.permute.xlu1 %7544 }
 0x32d   : > { %v14695_v53 = vpop.permute.xlu0 %7633  ;;  %11943 = vmatmul.mubr.msk.f32.vlgmr.msra.gmra.mrb[30].mxu1 %vm1066_vm1, %v14189_v46 }
 0x32e   : > { %13037 = vrot.lane.b32.xlu1 %v13036_v0, %s13669_s11  ;;  %11956 = vmatprep.mubr.msk.f32.mxu1 %vm1066_vm1, %v14263_v49 }
 0x330   : > { %v12898_v26 = vpop.permute.xlu1 %12897 }
 0x331   : > { %v14702_v18 = vpop.permute.xlu0 %7817  ;;  %v12900_v47 = vunpack.i.h.bf16 %v12898_v26  ;;  %v12899_v16 = vunpack.i.l.bf16 %v12898_v26 }
 0x332   : > { %11964 = vmatmul.mubr.msk.f32.vlgmr.msra.gmra.mrb[66].mxu0 %vm1066_vm1, %v14208_v48  ;;  %13042 = vrot.lane.b32.xlu1 %v13036_v0, %s13670_s13 }
 0x333   : > { %v12383_v11 = vpack.c.bf16 %v12900_v47, %v12899_v16  ;;  %11977 = vmatprep.mubr.msk.f32.mxu0 %vm1066_vm1, %v14289_v13 }
 0x334   : > { %v14709_v46 = vpop.permute.xlu1 %12902 }
 0x335   : > { %v12928_v20 = vpop.permute.xlu0 %12927  ;;  %12385 = vmatprep.subr.msk.bf16.mxu1 %vm14124_vm2, %v12383_v11 }
 0x336   : > { %v12930_v49 = vunpack.i.h.bf16 %v12928_v20  ;;  %v12929_v62 = vunpack.i.l.bf16 %v12928_v20  ;;  %12388 = vmatpush3.bf16.xpose.msk.msra.mxu1 %vm14124_vm2, %v12383_v11  ;;  %8816 = vrot.lane.b32.xlu1 %v14677_v8, %s13668_s10 }
 0x338   : > { %v12401_v48 = vpack.c.bf16 %v12930_v49, %v12929_v62  ;;  %v14717_v35 = vpop.permute.xlu1 %7542 }
 0x339   : > { %v14719_v41 = vpop.permute.xlu0 %12932 }
 0x33a   : > { %12403 = vmatprep.subr.msk.bf16.mxu0 %vm14124_vm2, %v12401_v48 }
 0x33b   : > { %12406 = vmatpush3.bf16.xpose.msk.msra.mxu0 %vm14124_vm2, %v12401_v48 }
 0x33c   : > { %v14725_v13 = vpop.permute.xlu1 %7726 }
 0x33d   : > { %v14727_v28 = vpop.permute.xlu0 %7815  ;;  %11957 = vmatmul.mubr.msk.f32.vlgmr.msra.gmra.mrb[32].mxu1 %vm1066_vm1, %v14259_v3 }
 0x33e   : > { %11970 = vmatprep.mubr.msk.f32.mxu1 %vm1066_vm1, %v14335_v37 }
 0x340   : > { %v12918_v38 = vpop.permute.xlu1 %12917 }
 0x341   : > { %v14733_v0 = vpop.permute.xlu0 %7999  ;;  %v12920_v26 = vunpack.i.h.bf16 %v12918_v38  ;;  %v12919_v47 = vunpack.i.l.bf16 %v12918_v38 }
 0x342   : > { %11978 = vmatmul.mubr.msk.f32.vlgmr.msra.gmra.mrb[68].mxu0 %vm1066_vm1, %v14278_v10 }
 0x343   : > { %v12395_v16 = vpack.c.bf16 %v12920_v26, %v12919_v47  ;;  %11991 = vmatprep.mubr.msk.f32.mxu0 %vm1066_vm1, %v14359_v44 }
 0x344   : > { %v14739_v11 = vpop.permute.xlu1 %12922 }
 0x345   : > { %v12948_v20 = vpop.permute.xlu0 %12947  ;;  %12397 = vmatprep.subr.msk.bf16.mxu1 %vm14124_vm2, %v12395_v16 }
 0x346   : > { %v12950_v3 = vunpack.i.h.bf16 %v12948_v20  ;;  %v12949_v37 = vunpack.i.l.bf16 %v12948_v20  ;;  %12400 = vmatpush3.bf16.xpose.msk.msra.mxu1 %vm14124_vm2, %v12395_v16 }
 0x348   : > { %v12413_v49 = vpack.c.bf16 %v12950_v3, %v12949_v37  ;;  %v14745_v62 = vpop.permute.xlu1 %7724 }
 0x349   : > { %v14747_v48 = vpop.permute.xlu0 %12952 }
 0x34a   : > { %12415 = vmatprep.subr.msk.bf16.mxu0 %vm14124_vm2, %v12413_v49 }
 0x34b   : > { %12418 = vmatpush3.bf16.xpose.msk.msra.mxu0 %vm14124_vm2, %v12413_v49 }
 0x34c   : > { %v14753_v10 = vpop.permute.xlu1 %7908 }
 0x34d   : > { %19373 = vst [vmem:[#allocation42_spill] sm:$0xff] %v14753_v10  ;;  %v14755_v44 = vpop.permute.xlu0 %7997  ;;  %11971 = vmatmul.mubr.msk.f32.vlgmr.msra.gmra.mrb[34].mxu1 %vm1066_vm1, %v14331_v52 }
 0x34e   : > { %11984 = vmatprep.mubr.msk.f32.mxu1 %vm1066_vm1, %v14399_v21 }
 0x350   : > { %v12938_v38 = vpop.permute.xlu1 %12937 }
 0x351   : > { %v14761_v26 = vpop.permute.xlu0 %8181  ;;  %v12940_v47 = vunpack.i.h.bf16 %v12938_v38  ;;  %v12939_v16 = vunpack.i.l.bf16 %v12938_v38 }
 0x352   : > { %11992 = vmatmul.mubr.msk.f32.vlgmr.msra.gmra.mrb[70].mxu0 %vm1066_vm1, %v14349_v59 }
 0x353   : > { %v12407_v20 = vpack.c.bf16 %v12940_v47, %v12939_v16  ;;  %12005 = vmatprep.mubr.msk.f32.mxu0 %vm1066_vm1, %v14427_v45 }
 0x354   : > { %v14767_v3 = vpop.permute.xlu1 %12942 }
 0x355   : > { %v12968_v37 = vpop.permute.xlu0 %12967  ;;  %12409 = vmatprep.subr.msk.bf16.mxu1 %vm14124_vm2, %v12407_v20 }
 0x356   : > { %v12970_v52 = vunpack.i.h.bf16 %v12968_v37  ;;  %v12969_v21 = vunpack.i.l.bf16 %v12968_v37  ;;  %12412 = vmatpush3.bf16.xpose.msk.msra.mxu1 %vm14124_vm2, %v12407_v20 }
 0x358   : > { %v12425_v49 = vpack.c.bf16 %v12970_v52, %v12969_v21  ;;  %v14773_v38 = vpop.permute.xlu1 %7906 }
 0x359   : > { %v14775_v10 = vpop.permute.xlu0 %12972 }
 0x35a   : > { %12427 = vmatprep.subr.msk.bf16.mxu0 %vm14124_vm2, %v12425_v49 }
 0x35b   : > { %12430 = vmatpush3.bf16.xpose.msk.msra.mxu0 %vm14124_vm2, %v12425_v49 }
 0x35c   : > { %v14781_v59 = vpop.permute.xlu1 %8090 }
 0x35d   : > { %19374 = vst [vmem:[#allocation43_spill] sm:$0xff] %v14781_v59  ;;  %v14783_v45 = vpop.permute.xlu0 %8179  ;;  %11985 = vmatmul.mubr.msk.f32.vlgmr.msra.gmra.mrb[36].mxu1 %vm1066_vm1, %v14395_v57 }
 0x35e   : > { %11998 = vmatprep.mubr.msk.f32.mxu1 %vm1066_vm1, %v14459_v9 }
 0x360   : > { %v12958_v47 = vpop.permute.xlu1 %12957 }
 0x361   : > { %v14789_v16 = vpop.permute.xlu0 %8363  ;;  %v12960_v20 = vunpack.i.h.bf16 %v12958_v47  ;;  %v12959_v37 = vunpack.i.l.bf16 %v12958_v47 }
 0x362   : > { %19375 = vst [vmem:[#allocation44_spill] sm:$0xff] %v14789_v16  ;;  %12006 = vmatmul.mubr.msk.f32.vlgmr.msra.gmra.mrb[72].mxu0 %vm1066_vm1, %v14417_v51 }
 0x363   : > { %v12419_v52 = vpack.c.bf16 %v12960_v20, %v12959_v37  ;;  %12019 = vmatprep.mubr.msk.f32.mxu0 %vm1066_vm1, %v14477_v40 }
 0x364   : > { %v14795_v21 = vpop.permute.xlu1 %12962 }
 0x365   : > { %v12988_v49 = vpop.permute.xlu0 %12987  ;;  %12421 = vmatprep.subr.msk.bf16.mxu1 %vm14124_vm2, %v12419_v52 }
 0x366   : > { %v12990_v57 = vunpack.i.h.bf16 %v12988_v49  ;;  %v12989_v9 = vunpack.i.l.bf16 %v12988_v49  ;;  %12424 = vmatpush3.bf16.xpose.msk.msra.mxu1 %vm14124_vm2, %v12419_v52 }
 0x368   : > { %v12437_v59 = vpack.c.bf16 %v12990_v57, %v12989_v9  ;;  %v14801_v47 = vpop.permute.xlu1 %8088 }
 0x369   : > { %v14803_v16 = vpop.permute.xlu0 %12992 }
 0x36a   : > { %12439 = vmatprep.subr.msk.bf16.mxu0 %vm14124_vm2, %v12437_v59 }
 0x36b   : > { %12442 = vmatpush3.bf16.xpose.msk.msra.mxu0 %vm14124_vm2, %v12437_v59 }
 0x36c   : > { %v14809_v51 = vpop.permute.xlu1 %8272 }
 0x36d   : > { %19376 = vst [vmem:[#allocation45_spill] sm:$0xff] %v14809_v51  ;;  %v14811_v40 = vpop.permute.xlu0 %8361  ;;  %11999 = vmatmul.mubr.msk.f32.vlgmr.msra.gmra.mrb[38].mxu1 %vm1066_vm1, %v14455_v5 }
 0x36e   : > { %12012 = vmatprep.mubr.msk.f32.mxu1 %vm1066_vm1, %v14513_v58 }
 0x370   : > { %v12978_v20 = vpop.permute.xlu1 %12977 }
 0x371   : > { %v14817_v37 = vpop.permute.xlu0 %8545  ;;  %v12980_v52 = vunpack.i.h.bf16 %v12978_v20  ;;  %v12979_v49 = vunpack.i.l.bf16 %v12978_v20 }
 0x372   : > { %19377 = vst [vmem:[#allocation46_spill] sm:$0xff] %v14817_v37  ;;  %12020 = vmatmul.mubr.msk.f32.vlgmr.msra.gmra.mrb[74].mxu0 %vm1066_vm1, %v14467_v22 }
 0x373   : > { %v12431_v57 = vpack.c.bf16 %v12980_v52, %v12979_v49  ;;  %12033 = vmatprep.mubr.msk.f32.mxu0 %vm1066_vm1, %v14535_v19  ;;  %v14823_v59 = vpop.f32.mrb[0].mxu1 }
 0x374   : > { %19378 = vst [vmem:[#allocation47_spill] sm:$0xff] %v14823_v59  ;;  %v14825_v9 = vpop.permute.xlu1 %12982  ;;  %v14827_v5 = vpop.f32.mrb[1].mxu1  ;;  %v3912_v58 = vsel %vm1066_vm1, %v14823_v59, -inf }
 0x375   : > { %19379 = vst [vmem:[#allocation48_spill] sm:$0xff] %v14827_v5  ;;  %v13008_v51 = vpop.permute.xlu0 %13007  ;;  %12433 = vmatprep.subr.msk.bf16.mxu1 %vm14124_vm2, %v12431_v57  ;;  %3913 = vmax.xlane.f32.xlu1 %v3912_v58  ;;  %v3909_v22 = vsel %vm1066_vm1, %v14827_v5, -inf }
 0x376   : > { %v13010_v20 = vunpack.i.h.bf16 %v13008_v51  ;;  %v13009_v52 = vunpack.i.l.bf16 %v13008_v51  ;;  %12436 = vmatpush3.bf16.xpose.msk.msra.mxu1 %vm14124_vm2, %v12431_v57  ;;  %3910 = vmax.xlane.f32.xlu0 %v3909_v22 }
 0x378   : > { %v12449_v19 = vpack.c.bf16 %v13010_v20, %v13009_v52  ;;  %v14837_v49 = vpop.permute.xlu1 %8270 }
 0x379   : > { %19380 = vst [vmem:[#allocation49_spill] sm:$0xff] %v14837_v49  ;;  %v14839_v37 = vpop.permute.xlu0 %13012 }
 0x37a   : > { %12451 = vmatprep.subr.msk.bf16.mxu0 %vm14124_vm2, %v12449_v19 }
 0x37b   : > { %12454 = vmatpush3.bf16.xpose.msk.msra.mxu0 %vm14124_vm2, %v12449_v19 }
 0x37c   : > { %v14845_v58 = vpop.permute.xlu1 %8454 }
 0x37d   : > { %19381 = vst [vmem:[#allocation50_spill] sm:$0xff] %v14845_v58  ;;  %v14847_v5 = vpop.permute.xlu0 %8543  ;;  %v14849_v51 = vpop.f32.mrb[2].mxu1  ;;  %12013 = vmatmul.mubr.msk.f32.vlgmr.msra.gmra.mrb[40].mxu1 %vm1066_vm1, %v14509_v39 }
 0x37e   : > { %19382 = vst [vmem:[#allocation51_spill] sm:$0xff] %v14849_v51  ;;  %v14853_v57 = vpop.f32.mrb[3].mxu1  ;;  %12026 = vmatprep.mubr.msk.f32.mxu1 %vm1066_vm1, %v14567_v7  ;;  %v3918_v22 = vsel %vm1066_vm1, %v14849_v51, -inf }
 0x37f   : > { %19383 = vst [vmem:[#allocation52_spill] sm:$0xff] %v14853_v57  ;;  %3919 = vmax.xlane.f32.xlu0 %v3918_v22  ;;  %v3915_v39 = vsel %vm1066_vm1, %v14853_v57, -inf  ;;  %v12735_v22 = vunpack.i.h.bf16 %v14120_v50 }
 0x380   : > { %v12998_v20 = vpop.permute.xlu1 %12997 }
 0x381   : > { %v14859_v52 = vpop.permute.xlu0 %8727  ;;  %v13000_v19 = vunpack.i.h.bf16 %v12998_v20  ;;  %v12999_v59 = vunpack.i.l.bf16 %v12998_v20 }
 0x382   : > { %19384 = vst [vmem:[#allocation53_spill] sm:$0xff] %v14859_v52  ;;  %12034 = vmatmul.mubr.msk.f32.vlgmr.msra.gmra.mrb[76].mxu0 %vm1066_vm1, %v14527_v17  ;;  %v12734_v17 = vunpack.i.l.bf16 %v14120_v50 }
 0x383   : > { %v12443_v58 = vpack.c.bf16 %v13000_v19, %v12999_v59  ;;  %12047 = vmatprep.mubr.msk.f32.mxu0 %vm1066_vm1, %v14589_v31  ;;  %3916 = vmax.xlane.f32.xlu0 %v3915_v39 }
 0x384   : > { %v14867_v7 = vpop.permute.xlu1 %13002 }
 0x385   : > { %19385 = vst [vmem:[#allocation54_spill] sm:$0xff] %v14867_v7  ;;  %v13028_v51 = vpop.permute.xlu0 %13027  ;;  %v14870_v49 = vpop.f32.mrb[4].mxu1  ;;  %12445 = vmatprep.subr.msk.bf16.mxu1 %vm14124_vm2, %v12443_v58  ;;  %v12473_v7 = vpack.c.bf16 %v12735_v22, %v12734_v17 }
 0x386   : > { %19386 = vst [vmem:[#allocation55_spill] sm:$0xff] %v14870_v49  ;;  %v13030_v20 = vunpack.i.h.bf16 %v13028_v51  ;;  %v13029_v52 = vunpack.i.l.bf16 %v13028_v51  ;;  %v14875_v57 = vpop.f32.mrb[5].mxu1  ;;  %12448 = vmatpush3.bf16.xpose.msk.msra.mxu1 %vm14124_vm2, %v12443_v58  ;;  %v3924_v31 = vsel %vm1066_vm1, %v14870_v49, -inf  ;;  %v12755_v51 = vunpack.i.h.bf16 %v14181_v32  ;;  %v19397_v49 = vld [vmem:[#allocation11_spill] sm:$0xff] }
 0x387   : > { %19387 = vst [vmem:[#allocation56_spill] sm:$0xff] %v14875_v57  ;;  %3925 = vmax.xlane.f32.xlu1 %v3924_v31  ;;  %v3921_v59 = vsel %vm1066_vm1, %v14875_v57, -inf }
 0x388   : > { %v12461_v19 = vpack.c.bf16 %v13030_v20, %v13029_v52  ;;  %3922 = vmax.xlane.f32.xlu0 %v3921_v59  ;;  %v14883_v39 = vpop.permute.xlu1 %8452  ;;  %v12754_v52 = vunpack.i.l.bf16 %v14181_v32 }
 0x38a   : > { %12463 = vmatprep.subr.msk.bf16.mxu0 %vm14124_vm2, %v12461_v19 }
 0x38b   : > { %12466 = vmatpush3.bf16.xpose.msk.msra.mxu0 %vm14124_vm2, %v12461_v19  ;;  %v12485_v19 = vpack.c.bf16 %v12755_v51, %v12754_v52 }
 0x38c   : > { %12475 = vmatprep.subr.msk.bf16.mxu0 %vm14124_vm2, %v12473_v7  ;;  %v14891_v50 = vpop.permute.xlu1 %8636 }
 0x38d   : > { %v14893_v58 = vpop.f32.mrb[6].mxu1  ;;  %12027 = vmatmul.mubr.msk.f32.vlgmr.msra.gmra.mrb[42].mxu1 %vm1066_vm1, %v14563_v15 }
 0x38e   : > { %19388 = vst [vmem:[#allocation57_spill] sm:$0xff] %v14893_v58  ;;  %v14899_v22 = vpop.f32.mrb[7].mxu1  ;;  %12040 = vmatprep.mubr.msk.f32.mxu1 %vm1066_vm1, %v14626_v25  ;;  %v3930_v17 = vsel %vm1066_vm1, %v14893_v58, -inf }
 0x38f   : > { %19389 = vst [vmem:[#allocation58_spill] sm:$0xff] %v14899_v22  ;;  %3931 = vmax.xlane.f32.xlu1 %v3930_v17  ;;  %v3927_v20 = vsel %vm1066_vm1, %v14899_v22, -inf  ;;  %v19390_v17 = vld [vmem:[#allocation18_spill] sm:$0xff] }
 0x390   : > { %3928 = vmax.xlane.f32.xlu0 %v3927_v20  ;;  %v13018_v31 = vpop.permute.xlu1 %13017  ;;  %v12775_v51 = vunpack.i.h.bf16 %v19390_v17  ;;  %v12774_v52 = vunpack.i.l.bf16 %v19390_v17 }
 0x391   : > { %v13020_v59 = vunpack.i.h.bf16 %v13018_v31  ;;  %v13019_v15 = vunpack.i.l.bf16 %v13018_v31 }
 0x392   : > { %12048 = vmatmul.mubr.msk.f32.vlgmr.msra.gmra.mrb[78].mxu0 %vm1066_vm1, %v14581_v14  ;;  %v12497_v31 = vpack.c.bf16 %v12775_v51, %v12774_v52  ;;  %v19395_v51 = vld [vmem:[#allocation23_spill] sm:$0xff] }
 0x393   : > { %v12455_v32 = vpack.c.bf16 %v13020_v59, %v13019_v15  ;;  %12478 = vmatpush3.bf16.xpose.msk.msra.mxu0 %vm14124_vm2, %v12473_v7  ;;  %12061 = vmatprep.mubr.msk.f32.mxu0 %vm1066_vm1, %v14136_v1  ;;  %v19393_v59 = vld [vmem:[#allocation8_spill] sm:$0xff]  ;;  %v12795_v52 = vunpack.i.h.bf16 %v19395_v51 }
 0x394   : > { %12487 = vmatprep.subr.msk.bf16.mxu0 %vm14124_vm2, %v12485_v19  ;;  %v14915_v25 = vpop.permute.xlu1 %13022 }
 0x395   : > { %12457 = vmatprep.subr.msk.bf16.mxu1 %vm14124_vm2, %v12455_v32 }
 0x396   : > { %12460 = vmatpush3.bf16.xpose.msk.msra.mxu1 %vm14124_vm2, %v12455_v32  ;;  %v19394_v32 = vld [vmem:[#allocation14_spill] sm:$0xff] }
 0x398   : > { %v14923_v14 = vpop.permute.xlu1 %8634  ;;  %v14925_v7 = vpop.f32.mrb[8].mxu1 }
 0x399   : > { %19391 = vst [vmem:[#allocation18_spill] sm:$0xff] %v14925_v7  ;;  %v14927_v1 = vpop.f32.mrb[9].mxu1  ;;  %v3936_v20 = vsel %vm1066_vm1, %v14925_v7, -inf }
 0x39a   : > { %19392 = vst [vmem:[#allocation59_spill] sm:$0xff] %v14927_v1  ;;  %12062 = vmatmul.mubr.msk.f32.vlgmr.msra.gmra.mrb[80].mxu0 %vm1066_vm1, %v19393_v59  ;;  %3937 = vmax.xlane.f32.xlu1 %v3936_v20  ;;  %v3933_v15 = vsel %vm1066_vm1, %v14927_v1, -inf  ;;  %v12794_v20 = vunpack.i.l.bf16 %v19395_v51 }
 0x39b   : > { %12490 = vmatpush3.bf16.xpose.msk.msra.mxu0 %vm14124_vm2, %v12485_v19  ;;  %12075 = vmatprep.mubr.msk.f32.mxu0 %vm1066_vm1, %v19394_v32  ;;  %v19396_v19 = vld [vmem:[#allocation10_spill] sm:$0xff] }
 0x39c   : > { %12499 = vmatprep.subr.msk.bf16.mxu0 %vm14124_vm2, %v12497_v31  ;;  %3934 = vmax.xlane.f32.xlu0 %v3933_v15  ;;  %v14941_v17 = vpop.permute.xlu1 %8818  ;;  %v12745_v59 = vunpack.i.h.bf16 %v19396_v19  ;;  %v12744_v7 = vunpack.i.l.bf16 %v19396_v19  ;;  %v12509_v57 = vpack.c.bf16 %v12795_v52, %v12794_v20  ;;  %v19398_v19 = vld [vmem:[#allocation19_spill] sm:$0xff]  ;;  %v12814_v52 = vunpack.i.l.bf16 %v14388_v60 }
 0x39d   : > { %12041 = vmatmul.mubr.msk.f32.vlgmr.msra.gmra.mrb[44].mxu1 %vm1066_vm1, %v14622_v24 }
 0x39e   : > { %12054 = vmatprep.mubr.msk.f32.mxu1 %vm1066_vm1, %v14677_v8 }
 0x3a0   : > { %v13038_v1 = vpop.permute.xlu1 %13037  ;;  %v14950_v32 = vpop.f32.mrb[10].mxu1 }
 0x3a1   : > { %v13040_v15 = vunpack.i.h.bf16 %v13038_v1  ;;  %v13039_v22 = vunpack.i.l.bf16 %v13038_v1  ;;  %v14953_v58 = vpop.f32.mrb[11].mxu1  ;;  %v3942_v24 = vsel %vm1066_vm1, %v14950_v32, -inf  ;;  %v12479_v1 = vpack.c.bf16 %v12745_v59, %v12744_v7  ;;  %v19401_v7 = vld [vmem:[#allocation25_spill] sm:$0xff] }
 0x3a2   : > { %12076 = vmatmul.mubr.msk.f32.vlgmr.msra.gmra.mrb[82].mxu0 %vm1066_vm1, %v19397_v49  ;;  %3943 = vmax.xlane.f32.xlu1 %v3942_v24  ;;  %v3939_v8 = vsel %vm1066_vm1, %v14953_v58, -inf  ;;  %v12815_v49 = vunpack.i.h.bf16 %v14388_v60  ;;  %v19400_v24 = vld [vmem:[#allocation15_spill] sm:$0xff] }
 0x3a3   : > { %v12467_v51 = vpack.c.bf16 %v13040_v15, %v13039_v22  ;;  %12502 = vmatpush3.bf16.xpose.msk.msra.mxu0 %vm14124_vm2, %v12497_v31  ;;  %12089 = vmatprep.mubr.msk.f32.mxu0 %vm1066_vm1, %v19398_v19  ;;  %v19399_v22 = vld [vmem:[#allocation16_spill] sm:$0xff]  ;;  %v12835_v19 = vunpack.i.h.bf16 %v14446_v42 }
 0x3a4   : > { %12511 = vmatprep.subr.msk.bf16.mxu0 %vm14124_vm2, %v12509_v57  ;;  %3940 = vmax.xlane.f32.xlu0 %v3939_v8  ;;  %v12765_v31 = vunpack.i.h.bf16 %v19399_v22  ;;  %v12764_v20 = vunpack.i.l.bf16 %v19399_v22  ;;  %v12521_v15 = vpack.c.bf16 %v12815_v49, %v12814_v52  ;;  %v19402_v49 = vld [vmem:[#allocation12_spill] sm:$0xff] }
 0x3a5   : > { %12469 = vmatprep.subr.msk.bf16.mxu1 %vm14124_vm2, %v12467_v51 }
 0x3a6   : > { %12472 = vmatpush3.bf16.xpose.msk.msra.mxu1 %vm14124_vm2, %v12467_v51  ;;  %v12491_v59 = vpack.c.bf16 %v12765_v31, %v12764_v20 }
 0x3a7   : > { %12481 = vmatprep.subr.msk.bf16.mxu1 %vm14124_vm2, %v12479_v1 }
 0x3aa   : > { %12090 = vmatmul.mubr.msk.f32.vlgmr.msra.gmra.mrb[84].mxu0 %vm1066_vm1, %v19400_v24 }
 0x3ab   : > { %12514 = vmatpush3.bf16.xpose.msk.msra.mxu0 %vm14124_vm2, %v12509_v57  ;;  %12103 = vmatprep.mubr.msk.f32.mxu0 %vm1066_vm1, %v19401_v7  ;;  %v12834_v57 = vunpack.i.l.bf16 %v14446_v42  ;;  %v19404_v42 = vld [vmem:[#allocation21_spill] sm:$0xff] }
 0x3ac   : > { %12523 = vmatprep.subr.msk.bf16.mxu0 %vm14124_vm2, %v12521_v15  ;;  %v14985_v60 = vpop.f32.mrb[12].mxu1 }
 0x3ad   : > { %v14987_v8 = vpop.f32.mrb[13].mxu1  ;;  %12055 = vmatmul.mubr.msk.f32.vlgmr.msra.gmra.mrb[46].mxu1 %vm1066_vm1, %v14673_v4  ;;  %v3948_v51 = vsel %vm1066_vm1, %v14985_v60, -inf  ;;  %v19403_v4 = vld [vmem:[#allocation22_spill] sm:$0xff]  ;;  %v12533_v20 = vpack.c.bf16 %v12835_v19, %v12834_v57  ;;  %v12855_v57 = vunpack.i.h.bf16 %v14500_v6 }
 0x3ae   : > { %12484 = vmatpush3.bf16.xpose.msk.msra.mxu1 %vm14124_vm2, %v12479_v1  ;;  %12068 = vmatprep.mubr.msk.f32.mxu1 %vm1066_vm1, %v19402_v49  ;;  %v3945_v52 = vsel %vm1066_vm1, %v14987_v8, -inf  ;;  %v12785_v22 = vunpack.i.h.bf16 %v19403_v4  ;;  %v12784_v31 = vunpack.i.l.bf16 %v19403_v4  ;;  %v12804_v4 = vunpack.i.l.bf16 %v14401_v36 }
 0x3af   : > { %3949 = vmax.xlane.f32.xlu1 %v3948_v51  ;;  %12493 = vmatprep.subr.msk.bf16.mxu1 %vm14124_vm2, %v12491_v59  ;;  %v19405_v51 = vld [vmem:[#allocation9_spill] sm:$0xff] }
 0x3b0   : > { %3946 = vmax.xlane.f32.xlu0 %v3945_v52  ;;  %v12503_v24 = vpack.c.bf16 %v12785_v22, %v12784_v31  ;;  %v12805_v52 = vunpack.i.h.bf16 %v14401_v36  ;;  %v19408_v31 = vld [vmem:[#allocation13_spill] sm:$0xff] }
 0x3b2   : > { %12104 = vmatmul.mubr.msk.f32.vlgmr.msra.gmra.mrb[86].mxu0 %vm1066_vm1, %v19404_v42  ;;  %v19409_v42 = vld [vmem:[#allocation39_spill] sm:$0xff] }
 0x3b3   : > { %12526 = vmatpush3.bf16.xpose.msk.msra.mxu0 %vm14124_vm2, %v12521_v15  ;;  %12117 = vmatprep.mubr.msk.f32.mxu0 %vm1066_vm1, %v14419_v61  ;;  %v12854_v15 = vunpack.i.l.bf16 %v14500_v6  ;;  %v19406_v61 = vld [vmem:[#allocation17_spill] sm:$0xff]  ;;  %v19407_v6 = vld [vmem:[#allocation26_spill] sm:$0xff]  ;;  %v12874_v36 = vunpack.i.l.bf16 %v19409_v42 }
 0x3b4   : > { %12535 = vmatprep.subr.msk.bf16.mxu0 %vm14124_vm2, %v12533_v20  ;;  %v15013_v1 = vpop.f32.mrb[14].mxu1 }
 0x3b5   : > { %v15015_v7 = vpop.f32.mrb[15].mxu1  ;;  %12069 = vmatmul.mubr.msk.f32.vlgmr.msra.gmra.mrb[48].mxu1 %vm1066_vm1, %v19405_v51  ;;  %v3954_v19 = vsel %vm1066_vm1, %v15013_v1, -inf  ;;  %v12545_v22 = vpack.c.bf16 %v12855_v57, %v12854_v15  ;;  %v12875_v51 = vunpack.i.h.bf16 %v19409_v42  ;;  %v19414_v42 = vld [vmem:[#allocation20_spill] sm:$0xff] }
 0x3b6   : > { %12496 = vmatpush3.bf16.xpose.msk.msra.mxu1 %vm14124_vm2, %v12491_v59  ;;  %12082 = vmatprep.mubr.msk.f32.mxu1 %vm1066_vm1, %v19406_v61  ;;  %v3951_v49 = vsel %vm1066_vm1, %v15015_v7, -inf  ;;  %v12515_v59 = vpack.c.bf16 %v12805_v52, %v12804_v4  ;;  %v19412_v4 = vld [vmem:[#allocation29_spill] sm:$0xff] }
 0x3b7   : > { %3955 = vmax.xlane.f32.xlu1 %v3954_v19  ;;  %12505 = vmatprep.subr.msk.bf16.mxu1 %vm14124_vm2, %v12503_v24  ;;  %v19410_v19 = vld [vmem:[#allocation24_spill] sm:$0xff]  ;;  %v12557_v52 = vpack.c.bf16 %v12875_v51, %v12874_v36  ;;  %v12895_v51 = vunpack.i.h.bf16 %v14628_v23  ;;  %v12894_v36 = vunpack.i.l.bf16 %v14628_v23 }
 0x3b8   : > { %3952 = vmax.xlane.f32.xlu0 %v3951_v49 }
 0x3ba   : > { %12118 = vmatmul.mubr.msk.f32.vlgmr.msra.gmra.mrb[88].mxu0 %vm1066_vm1, %v19407_v6  ;;  %v19413_v6 = vld [vmem:[#allocation35_spill] sm:$0xff] }
 0x3bb   : > { %12538 = vmatpush3.bf16.xpose.msk.msra.mxu0 %vm14124_vm2, %v12533_v20  ;;  %12131 = vmatprep.mubr.msk.f32.mxu0 %vm1066_vm1, %v14469_v34  ;;  %v19411_v20 = vld [vmem:[#allocation31_spill] sm:$0xff] }
 0x3bc   : > { %12547 = vmatprep.subr.msk.bf16.mxu0 %vm14124_vm2, %v12545_v22  ;;  %v12825_v57 = vunpack.i.h.bf16 %v19411_v20  ;;  %v12824_v15 = vunpack.i.l.bf16 %v19411_v20  ;;  %v19416_v20 = vld [vmem:[#allocation37_spill] sm:$0xff] }
 0x3bd   : > { %12083 = vmatmul.mubr.msk.f32.vlgmr.msra.gmra.mrb[50].mxu1 %vm1066_vm1, %v19408_v31 }
 0x3be   : > { %12508 = vmatpush3.bf16.xpose.msk.msra.mxu1 %vm14124_vm2, %v12503_v24  ;;  %12096 = vmatprep.mubr.msk.f32.mxu1 %vm1066_vm1, %v19410_v19  ;;  %v12527_v31 = vpack.c.bf16 %v12825_v57, %v12824_v15  ;;  %v19415_v19 = vld [vmem:[#allocation28_spill] sm:$0xff]  ;;  %v12845_v57 = vunpack.i.h.bf16 %v19416_v20  ;;  %v12844_v15 = vunpack.i.l.bf16 %v19416_v20  ;;  %v19420_v20 = vld [vmem:[#allocation33_spill] sm:$0xff] }
 0x3bf   : > { %12517 = vmatprep.subr.msk.bf16.mxu1 %vm14124_vm2, %v12515_v59 }
 0x3c0   : > { %v15051_v34 = vpop.f32.mrb[16].mxu1 }
 0x3c1   : > { %v15055_v61 = vpop.f32.mrb[17].mxu1  ;;  %v3960_v49 = vsel %vm1066_vm1, %v15051_v34, -inf }
 0x3c2   : > { %12132 = vmatmul.mubr.msk.f32.vlgmr.msra.gmra.mrb[90].mxu0 %vm1066_vm1, %v19412_v4  ;;  %3961 = vmax.xlane.f32.xlu1 %v3960_v49  ;;  %v3957_v24 = vsel %vm1066_vm1, %v15055_v61, -inf  ;;  %v12569_v4 = vpack.c.bf16 %v12895_v51, %v12894_v36  ;;  %v12915_v51 = vunpack.i.h.bf16 %v14683_v33  ;;  %v12914_v36 = vunpack.i.l.bf16 %v14683_v33 }
 0x3c3   : > { %12550 = vmatpush3.bf16.xpose.msk.msra.mxu0 %vm14124_vm2, %v12545_v22  ;;  %12145 = vmatprep.mubr.msk.f32.mxu0 %vm1066_vm1, %v19413_v6  ;;  %v19418_v6 = vld [vmem:[#allocation40_spill] sm:$0xff] }
 0x3c4   : > { %12559 = vmatprep.subr.msk.bf16.mxu0 %vm14124_vm2, %v12557_v52  ;;  %3958 = vmax.xlane.f32.xlu0 %v3957_v24  ;;  %v19417_v24 = vld [vmem:[#allocation32_spill] sm:$0xff] }
 0x3c5   : > { %12097 = vmatmul.mubr.msk.f32.vlgmr.msra.gmra.mrb[52].mxu1 %vm1066_vm1, %v19414_v42  ;;  %v12539_v42 = vpack.c.bf16 %v12845_v57, %v12844_v15  ;;  %v12864_v57 = vunpack.i.l.bf16 %v14606_v55  ;;  %v12581_v15 = vpack.c.bf16 %v12915_v51, %v12914_v36  ;;  %v12885_v51 = vunpack.i.h.bf16 %v14661_v12 }
 0x3c6   : > { %12520 = vmatpush3.bf16.xpose.msk.msra.mxu1 %vm14124_vm2, %v12515_v59  ;;  %12110 = vmatprep.mubr.msk.f32.mxu1 %vm1066_vm1, %v19415_v19  ;;  %v19419_v19 = vld [vmem:[#allocation27_spill] sm:$0xff]  ;;  %v12884_v36 = vunpack.i.l.bf16 %v14661_v12  ;;  %v12955_v12 = vunpack.i.h.bf16 %v14747_v48 }
 0x3c7   : > { %12529 = vmatprep.subr.msk.bf16.mxu1 %vm14124_vm2, %v12527_v31 }
 0x3c8   : > { %v15079_v22 = vpop.f32.mrb[18].mxu1 }
 0x3c9   : > { %v15083_v49 = vpop.f32.mrb[19].mxu1  ;;  %v3966_v23 = vsel %vm1066_vm1, %v15079_v22, -inf }
 0x3ca   : > { %12146 = vmatmul.mubr.msk.f32.vlgmr.msra.gmra.mrb[92].mxu0 %vm1066_vm1, %v19417_v24  ;;  %3967 = vmax.xlane.f32.xlu1 %v3966_v23  ;;  %v3963_v59 = vsel %vm1066_vm1, %v15083_v49, -inf  ;;  %v19421_v23 = vld [vmem:[#allocation36_spill] sm:$0xff] }
 0x3cb   : > { %12562 = vmatpush3.bf16.xpose.msk.msra.mxu0 %vm14124_vm2, %v12557_v52  ;;  %12159 = vmatprep.mubr.msk.f32.mxu0 %vm1066_vm1, %v19418_v6  ;;  %v12865_v52 = vunpack.i.h.bf16 %v14606_v55  ;;  %v12935_v6 = vunpack.i.h.bf16 %v14719_v41 }
 0x3cc   : > { %12571 = vmatprep.subr.msk.bf16.mxu0 %vm14124_vm2, %v12569_v4  ;;  %3964 = vmax.xlane.f32.xlu0 %v3963_v59  ;;  %v19422_v59 = vld [vmem:[#allocation30_spill] sm:$0xff] }
 0x3cd   : > { %12111 = vmatmul.mubr.msk.f32.vlgmr.msra.gmra.mrb[54].mxu1 %vm1066_vm1, %v19419_v19 }
 0x3ce   : > { %12532 = vmatpush3.bf16.xpose.msk.msra.mxu1 %vm14124_vm2, %v12527_v31  ;;  %12124 = vmatprep.mubr.msk.f32.mxu1 %vm1066_vm1, %v19420_v20  ;;  %v12551_v31 = vpack.c.bf16 %v12865_v52, %v12864_v57  ;;  %v19424_v57 = vld [vmem:[#allocation34_spill] sm:$0xff] }
 0x3cf   : > { %12541 = vmatprep.subr.msk.bf16.mxu1 %vm14124_vm2, %v12539_v42 }
 0x3d2   : > { %12160 = vmatmul.mubr.msk.f32.vlgmr.msra.gmra.mrb[94].mxu0 %vm1066_vm1, %v19421_v23  ;;  %v12905_v23 = vunpack.i.h.bf16 %v14709_v46 }
 0x3d3   : > { %12574 = vmatpush3.bf16.xpose.msk.msra.mxu0 %vm14124_vm2, %v12569_v4  ;;  %12173 = vmatprep.mubr.msk.f32.mxu0 %vm1066_vm1, %v14645_v29  ;;  %v12934_v4 = vunpack.i.l.bf16 %v14719_v41  ;;  %v19423_v29 = vld [vmem:[#allocation38_spill] sm:$0xff] }
 0x3d4   : > { %12583 = vmatprep.subr.msk.bf16.mxu0 %vm14124_vm2, %v12581_v15  ;;  %v15117_v33 = vpop.f32.mrb[20].mxu1 }
 0x3d5   : > { %v15119_v24 = vpop.f32.mrb[21].mxu1  ;;  %12125 = vmatmul.mubr.msk.f32.vlgmr.msra.gmra.mrb[56].mxu1 %vm1066_vm1, %v19422_v59  ;;  %v3972_v55 = vsel %vm1066_vm1, %v15117_v33, -inf  ;;  %v12593_v20 = vpack.c.bf16 %v12935_v6, %v12934_v4  ;;  %v12904_v59 = vunpack.i.l.bf16 %v14709_v46  ;;  %v12974_v46 = vunpack.i.l.bf16 %v14775_v10 }
 0x3d6   : > { %12544 = vmatpush3.bf16.xpose.msk.msra.mxu1 %vm14124_vm2, %v12539_v42  ;;  %12138 = vmatprep.mubr.msk.f32.mxu1 %vm1066_vm1, %v19423_v29  ;;  %v3969_v19 = vsel %vm1066_vm1, %v15119_v24, -inf  ;;  %v12563_v42 = vpack.c.bf16 %v12885_v51, %v12884_v36  ;;  %v12924_v6 = vunpack.i.l.bf16 %v14739_v11 }
 0x3d7   : > { %3973 = vmax.xlane.f32.xlu1 %v3972_v55  ;;  %12553 = vmatprep.subr.msk.bf16.mxu1 %vm14124_vm2, %v12551_v31 }
 0x3d8   : > { %3970 = vmax.xlane.f32.xlu0 %v3969_v19  ;;  %v12944_v19 = vunpack.i.l.bf16 %v14767_v3 }
 0x3da   : > { %12174 = vmatmul.mubr.msk.f32.vlgmr.msra.gmra.mrb[96].mxu0 %vm1066_vm1, %v14600_v27 }
 0x3db   : > { %12586 = vmatpush3.bf16.xpose.msk.msra.mxu0 %vm14124_vm2, %v12581_v15  ;;  %12187 = vmatprep.mubr.msk.f32.mxu0 %vm1066_vm1, %v14695_v53  ;;  %v12954_v15 = vunpack.i.l.bf16 %v14747_v48  ;;  %v19425_v48 = vld [vmem:[#allocation41_spill] sm:$0xff] }
 0x3dc   : > { %12595 = vmatprep.subr.msk.bf16.mxu0 %vm14124_vm2, %v12593_v20  ;;  %v15145_v41 = vpop.f32.mrb[22].mxu1 }
 0x3dd   : > { %v15147_v52 = vpop.f32.mrb[23].mxu1  ;;  %12139 = vmatmul.mubr.msk.f32.vlgmr.msra.gmra.mrb[58].mxu1 %vm1066_vm1, %v19424_v57  ;;  %v3978_v27 = vsel %vm1066_vm1, %v15145_v41, -inf  ;;  %v12605_v55 = vpack.c.bf16 %v12955_v12, %v12954_v15 }
 0x3de   : > { %12556 = vmatpush3.bf16.xpose.msk.msra.mxu1 %vm14124_vm2, %v12551_v31  ;;  %12152 = vmatprep.mubr.msk.f32.mxu1 %vm1066_vm1, %v14630_v43  ;;  %v3975_v53 = vsel %vm1066_vm1, %v15147_v52, -inf  ;;  %v12575_v43 = vpack.c.bf16 %v12905_v23, %v12904_v59  ;;  %v12975_v31 = vunpack.i.h.bf16 %v14775_v10  ;;  %v12994_v10 = vunpack.i.l.bf16 %v14803_v16 }
 0x3df   : > { %3979 = vmax.xlane.f32.xlu1 %v3978_v27  ;;  %12565 = vmatprep.subr.msk.bf16.mxu1 %vm14124_vm2, %v12563_v42  ;;  %v12985_v23 = vunpack.i.h.bf16 %v14825_v9  ;;  %v12984_v59 = vunpack.i.l.bf16 %v14825_v9 }
 0x3e0   : > { %3976 = vmax.xlane.f32.xlu0 %v3975_v53  ;;  %v12617_v29 = vpack.c.bf16 %v12975_v31, %v12974_v46  ;;  %v19432_v31 = vld [vmem:[#allocation42_spill] sm:$0xff] }
 0x3e2   : > { %12188 = vmatmul.mubr.msk.f32.vlgmr.msra.gmra.mrb[98].mxu0 %vm1066_vm1, %v14654_v54 }
 0x3e3   : > { %12598 = vmatpush3.bf16.xpose.msk.msra.mxu0 %vm14124_vm2, %v12593_v20  ;;  %12201 = vmatprep.mubr.msk.f32.mxu0 %vm1066_vm1, %v14727_v28  ;;  %v12925_v28 = vunpack.i.h.bf16 %v14739_v11  ;;  %v12995_v11 = vunpack.i.h.bf16 %v14803_v16  ;;  %v13014_v20 = vunpack.i.l.bf16 %v14839_v37 }
 0x3e4   : > { %12607 = vmatprep.subr.msk.bf16.mxu0 %vm14124_vm2, %v12605_v55 }
 0x3e5   : > { %12153 = vmatmul.mubr.msk.f32.vlgmr.msra.gmra.mrb[60].mxu1 %vm1066_vm1, %v19425_v48  ;;  %v12629_v51 = vpack.c.bf16 %v12995_v11, %v12994_v10  ;;  %v19435_v11 = vld [vmem:[#allocation46_spill] sm:$0xff] }
 0x3e6   : > { %12568 = vmatpush3.bf16.xpose.msk.msra.mxu1 %vm14124_vm2, %v12563_v42  ;;  %12166 = vmatprep.mubr.msk.f32.mxu1 %vm1066_vm1, %v14681_v2  ;;  %v12587_v2 = vpack.c.bf16 %v12925_v28, %v12924_v6  ;;  %v12965_v42 = vunpack.i.h.bf16 %v14795_v21  ;;  %v19434_v28 = vld [vmem:[#allocation54_spill] sm:$0xff] }
 0x3e7   : > { %12577 = vmatprep.subr.msk.bf16.mxu1 %vm14124_vm2, %v12575_v43  ;;  %v13005_v6 = vunpack.i.h.bf16 %v19434_v28 }
 0x3e8   : > { %v15183_v54 = vpop.f32.mrb[24].mxu1 }
 0x3e9   : > { %v15187_v4 = vpop.f32.mrb[25].mxu1  ;;  %v3984_v12 = vsel %vm1066_vm1, %v15183_v54, -inf }
 0x3ea   : > { %12202 = vmatmul.mubr.msk.f32.vlgmr.msra.gmra.mrb[100].mxu0 %vm1066_vm1, %v14702_v18 }
 0x3eb   : > { %12610 = vmatpush3.bf16.xpose.msk.msra.mxu0 %vm14124_vm2, %v12605_v55  ;;  %12215 = vmatprep.mubr.msk.f32.mxu0 %vm1066_vm1, %v14755_v44  ;;  %v12945_v44 = vunpack.i.h.bf16 %v14767_v3  ;;  %v13015_v3 = vunpack.i.h.bf16 %v14839_v37  ;;  %v12964_v37 = vunpack.i.l.bf16 %v14795_v21  ;;  %v3981_v21 = vsel %vm1066_vm1, %v15187_v4, -inf }
 0x3ec   : > { %12619 = vmatprep.subr.msk.bf16.mxu0 %vm14124_vm2, %v12617_v29 }
 0x3ed   : > { %12167 = vmatmul.mubr.msk.f32.vlgmr.msra.gmra.mrb[62].mxu1 %vm1066_vm1, %v14639_v63  ;;  %v12599_v16 = vpack.c.bf16 %v12945_v44, %v12944_v19  ;;  %v12641_v27 = vpack.c.bf16 %v13015_v3, %v13014_v20  ;;  %v12611_v15 = vpack.c.bf16 %v12965_v42, %v12964_v37  ;;  %v19436_v19 = vld [vmem:[#allocation43_spill] sm:$0xff]  ;;  %v13024_v3 = vunpack.i.l.bf16 %v14915_v25 }
 0x3ee   : > { %12580 = vmatpush3.bf16.xpose.msk.msra.mxu1 %vm14124_vm2, %v12575_v43  ;;  %12180 = vmatprep.mubr.msk.f32.mxu1 %vm1066_vm1, %v14717_v35  ;;  %v19431_v43 = vld [vmem:[#allocation44_spill] sm:$0xff] }
 0x3ef   : > { %12589 = vmatprep.subr.msk.bf16.mxu1 %vm14124_vm2, %v12587_v2 }
 0x3f0   : > { %v15207_v18 = vpop.f32.mrb[26].mxu1 }
 0x3f1   : > { %19426 = vst [vmem:[#allocation8_spill] sm:$0xff] %v15207_v18  ;;  %v15211_v63 = vpop.f32.mrb[27].mxu1 }
 0x3f2   : > { %19427 = vst [vmem:[#allocation14_spill] sm:$0xff] %v15211_v63  ;;  %12216 = vmatmul.mubr.msk.f32.vlgmr.msra.gmra.mrb[102].mxu0 %vm1066_vm1, %v14733_v0  ;;  %v3987_v10 = vsel %vm1066_vm1, %v15211_v63, -inf }
 0x3f3   : > { %12622 = vmatpush3.bf16.xpose.msk.msra.mxu0 %vm14124_vm2, %v12617_v29  ;;  %12229 = vmatprep.mubr.msk.f32.mxu0 %vm1066_vm1, %v14783_v45  ;;  %v13004_v29 = vunpack.i.l.bf16 %v19434_v28 }
 0x3f4   : > { %12631 = vmatprep.subr.msk.bf16.mxu0 %vm14124_vm2, %v12629_v51  ;;  %v15221_v35 = vpop.f32.mrb[64].mxu0 }
 0x3f5   : > { %v15223_v36 = vpop.f32.mrb[65].mxu0  ;;  %12181 = vmatmul.mubr.msk.f32.vlgmr.msra.gmra.mrb[64].mxu1 %vm1066_vm1, %v14693_v30  ;;  %v4008_v0 = vsel %vm1066_vm1, %v15221_v35, -inf  ;;  %v12635_v44 = vpack.c.bf16 %v13005_v6, %v13004_v29 }
 0x3f6   : > { %12592 = vmatpush3.bf16.xpose.msk.msra.mxu1 %vm14124_vm2, %v12587_v2  ;;  %12194 = vmatprep.mubr.msk.f32.mxu1 %vm1066_vm1, %v14745_v62  ;;  %v4005_v45 = vsel %vm1066_vm1, %v15223_v36, -inf  ;;  %v13033_v62 = vpop.permute.xlu0 %13032 }
 0x3f7   : > { %4009 = vmax.xlane.f32.xlu1 %v4008_v0  ;;  %12601 = vmatprep.subr.msk.bf16.mxu1 %vm14124_vm2, %v12599_v16  ;;  %v13034_v53 = vunpack.i.l.bf16 %v13033_v62  ;;  %v13025_v0 = vunpack.i.h.bf16 %v14915_v25 }
 0x3f8   : > { %4006 = vmax.xlane.f32.xlu0 %v4005_v45  ;;  %v15239_v30 = vpop.f32.mrb[28].mxu1  ;;  %v19440_v45 = vld [vmem:[#allocation53_spill] sm:$0xff] }
 0x3f9   : > { %v15243_v57 = vpop.f32.mrb[29].mxu1  ;;  %v12647_v42 = vpack.c.bf16 %v13025_v0, %v13024_v3 }
 0x3fa   : > { %19428 = vst [vmem:[#allocation23_spill] sm:$0xff] %v15243_v57  ;;  %12230 = vmatmul.mubr.msk.f32.vlgmr.msra.gmra.mrb[104].mxu0 %vm1066_vm1, %v14761_v26  ;;  %v13035_v26 = vunpack.i.h.bf16 %v13033_v62  ;;  %v8726_v2 = vpop.permute.xlu0 %8725 }
 0x3fb   : > { %12634 = vmatpush3.bf16.xpose.msk.msra.mxu0 %vm14124_vm2, %v12629_v51  ;;  %12243 = vmatprep.mubr.msk.f32.mxu0 %vm1066_vm1, %v14811_v40  ;;  %v19437_v51 = vld [vmem:[#allocation49_spill] sm:$0xff] }
 0x3fc   : > { %3985 = vmax.xlane.f32.xlu1 %v3984_v12  ;;  %12643 = vmatprep.subr.msk.bf16.mxu0 %vm14124_vm2, %v12641_v27 }
 0x3fd   : > { %3982 = vmax.xlane.f32.xlu0 %v3981_v21  ;;  %12195 = vmatmul.mubr.msk.f32.vlgmr.msra.gmra.mrb[66].mxu1 %vm1066_vm1, %v14725_v13  ;;  %v12653_v13 = vpack.c.bf16 %v13035_v26, %v13034_v53  ;;  %v13043_v21 = vpop.permute.xlu1 %13042  ;;  %v3996_v53 = vsel %vm1066_vm1, %v15239_v30, -inf }
 0x3fe   : > { %12604 = vmatpush3.bf16.xpose.msk.msra.mxu1 %vm14124_vm2, %v12599_v16  ;;  %12208 = vmatprep.mubr.msk.f32.mxu1 %vm1066_vm1, %v14773_v38  ;;  %v12623_v38 = vpack.c.bf16 %v12985_v23, %v12984_v59  ;;  %v13044_v26 = vunpack.i.l.bf16 %v13043_v21  ;;  %v19444_v59 = vld [vmem:[#allocation50_spill] sm:$0xff] }
 0x3ff   : > { %12613 = vmatprep.subr.msk.bf16.mxu1 %vm14124_vm2, %v12611_v15 }
 0x400   : > { %v15265_v40 = vpop.f32.mrb[30].mxu1 }
 0x401   : > { %19429 = vst [vmem:[#allocation10_spill] sm:$0xff] %v15265_v40  ;;  %v15269_v55 = vpop.f32.mrb[31].mxu1  ;;  %v4002_v28 = vsel %vm1066_vm1, %v15265_v40, -inf }
 0x402   : > { %19430 = vst [vmem:[#allocation11_spill] sm:$0xff] %v15269_v55  ;;  %12244 = vmatmul.mubr.msk.f32.vlgmr.msra.gmra.mrb[106].mxu0 %vm1066_vm1, %v19431_v43 }
 0x403   : > { %12646 = vmatpush3.bf16.xpose.msk.msra.mxu0 %vm14124_vm2, %v12641_v27  ;;  %12257 = vmatprep.mubr.msk.f32.mxu0 %vm1066_vm1, %v14847_v5  ;;  %v19442_v27 = vld [vmem:[#allocation45_spill] sm:$0xff] }
 0x404   : > { %12655 = vmatprep.subr.msk.bf16.mxu0 %vm14124_vm2, %v12653_v13 }
 0x405   : > { %v15279_v48 = vpop.f32.mrb[66].mxu0  ;;  %12209 = vmatmul.mubr.msk.f32.vlgmr.msra.gmra.mrb[68].mxu1 %vm1066_vm1, %v19432_v31 }
 0x406   : > { %v15283_v9 = vpop.f32.mrb[67].mxu0  ;;  %12616 = vmatpush3.bf16.xpose.msk.msra.mxu1 %vm14124_vm2, %v12611_v15  ;;  %12222 = vmatprep.mubr.msk.f32.mxu1 %vm1066_vm1, %v14801_v47  ;;  %v4020_v5 = vsel %vm1066_vm1, %v15279_v48, -inf  ;;  %v3990_v47 = vsel %vm1066_vm1, %v15207_v18, -inf  ;;  %v13045_v15 = vunpack.i.h.bf16 %v13043_v21  ;;  %v3911_v21 = vpop.xlane.xlu0 %3910 }
 0x407   : > { %19433 = vst [vmem:[#allocation19_spill] sm:$0xff] %v15283_v9  ;;  %4021 = vmax.xlane.f32.xlu1 %v4020_v5  ;;  %12625 = vmatprep.subr.msk.bf16.mxu1 %vm14124_vm2, %v12623_v38  ;;  %v4017_v46 = vsel %vm1066_vm1, %v15283_v9, -inf }
 0x408   : > { %4018 = vmax.xlane.f32.xlu0 %v4017_v46  ;;  %v12659_v23 = vpack.c.bf16 %v13045_v15, %v13044_v26 }
 0x40a   : > { %12258 = vmatmul.mubr.msk.f32.vlgmr.msra.gmra.mrb[108].mxu0 %vm1066_vm1, %v19435_v11 }
 0x40b   : > { %12658 = vmatpush3.bf16.xpose.msk.msra.mxu0 %vm14124_vm2, %v12653_v13  ;;  %12271 = vmatprep.mubr.msk.f32.mxu0 %vm1066_vm1, %v8726_v2 }
 0x40c   : > { %3991 = vmax.xlane.f32.xlu1 %v3990_v47  ;;  %3988 = vmax.xlane.f32.xlu0 %v3987_v10 }
 0x40d   : > { %12223 = vmatmul.mubr.msk.f32.vlgmr.msra.gmra.mrb[70].mxu1 %vm1066_vm1, %v19436_v19 }
 0x40e   : > { %12628 = vmatpush3.bf16.xpose.msk.msra.mxu1 %vm14124_vm2, %v12623_v38  ;;  %12236 = vmatprep.mubr.msk.f32.mxu1 %vm1066_vm1, %v19437_v51  ;;  %v8817_v38 = vpop.permute.xlu1 %8816 }
 0x40f   : > { %12637 = vmatprep.subr.msk.bf16.mxu1 %vm14124_vm2, %v12635_v44 }
 0x410   : > { %v15314_v16 = vpop.f32.mrb[32].mxu1 }
 0x411   : > { %19438 = vst [vmem:[#allocation16_spill] sm:$0xff] %v15314_v16  ;;  %v15318_v20 = vpop.f32.mrb[33].mxu1  ;;  %v4014_v10 = vsel %vm1066_vm1, %v15314_v16, -inf  ;;  %v19469_v16 = vld [vmem:[#allocation55_spill] sm:$0xff] }
 0x412   : > { %19439 = vst [vmem:[#allocation15_spill] sm:$0xff] %v15318_v20  ;;  %12272 = vmatmul.mubr.msk.f32.vlgmr.msra.gmra.mrb[110].mxu0 %vm1066_vm1, %v19440_v45 }
 0x415   : > { %v15322_v37 = vpop.f32.mrb[68].mxu0  ;;  %12237 = vmatmul.mubr.msk.f32.vlgmr.msra.gmra.mrb[72].mxu1 %vm1066_vm1, %v19442_v27 }
 0x416   : > { %19441 = vst [vmem:[#allocation25_spill] sm:$0xff] %v15322_v37  ;;  %v15326_v62 = vpop.f32.mrb[69].mxu0  ;;  %12640 = vmatpush3.bf16.xpose.msk.msra.mxu1 %vm14124_vm2, %v12635_v44  ;;  %12250 = vmatprep.mubr.msk.f32.mxu1 %vm1066_vm1, %v14883_v39  ;;  %v4032_v25 = vsel %vm1066_vm1, %v15322_v37, -inf  ;;  %v3993_v39 = vsel %vm1066_vm1, %v15243_v57, -inf }
 0x417   : > { %19443 = vst [vmem:[#allocation12_spill] sm:$0xff] %v15326_v62  ;;  %4033 = vmax.xlane.f32.xlu1 %v4032_v25  ;;  %12649 = vmatprep.subr.msk.bf16.mxu1 %vm14124_vm2, %v12647_v42  ;;  %v4029_v12 = vsel %vm1066_vm1, %v15326_v62, -inf }
 0x418   : > { %4030 = vmax.xlane.f32.xlu0 %v4029_v12 }
 0x41b   : > { %3997 = vmax.xlane.f32.xlu1 %v3996_v53 }
 0x41c   : > { %3994 = vmax.xlane.f32.xlu0 %v3993_v39  ;;  %v3920_v39 = vpop.xlane.xlu0 %3919 }
 0x41d   : > { %12251 = vmatmul.mubr.msk.f32.vlgmr.msra.gmra.mrb[74].mxu1 %vm1066_vm1, %v19444_v59  ;;  %v3914_v59 = vpop.xlane.xlu1 %3913 }
 0x41e   : > { %12652 = vmatpush3.bf16.xpose.msk.msra.mxu1 %vm14124_vm2, %v12647_v42  ;;  %12264 = vmatprep.mubr.msk.f32.mxu1 %vm1066_vm1, %v14923_v14 }
 0x41f   : > { %12661 = vmatprep.subr.msk.bf16.mxu1 %vm14124_vm2, %v12659_v23 }
 0x420   : > { %v15350_v13 = vpop.f32.mrb[34].mxu1 }
 0x421   : > { %19445 = vst [vmem:[#allocation22_spill] sm:$0xff] %v15350_v13  ;;  %v15352_v43 = vpop.f32.mrb[35].mxu1  ;;  %v4026_v42 = vsel %vm1066_vm1, %v15350_v13, -inf }
 0x422   : > { %19446 = vst [vmem:[#allocation21_spill] sm:$0xff] %v15352_v43  ;;  %v4023_v27 = vsel %vm1066_vm1, %v15352_v43, -inf }
 0x425   : > { %v15354_v31 = vpop.f32.mrb[70].mxu0  ;;  %12265 = vmatmul.mubr.msk.f32.vlgmr.msra.gmra.mrb[76].mxu1 %vm1066_vm1, %v14891_v50  ;;  %v3999_v50 = vsel %vm1066_vm1, %v15269_v55, -inf }
 0x426   : > { %19447 = vst [vmem:[#allocation9_spill] sm:$0xff] %v15354_v31  ;;  %v15358_v5 = vpop.f32.mrb[71].mxu0  ;;  %12664 = vmatpush3.bf16.xpose.msk.msra.mxu1 %vm14124_vm2, %v12659_v23  ;;  %12278 = vmatprep.mubr.msk.f32.mxu1 %vm1066_vm1, %v8817_v38  ;;  %v4044_v14 = vsel %vm1066_vm1, %v15354_v31, -inf }
 0x427   : > { %19448 = vst [vmem:[#allocation17_spill] sm:$0xff] %v15358_v5  ;;  %4045 = vmax.xlane.f32.xlu1 %v4044_v14  ;;  %v4041_v46 = vsel %vm1066_vm1, %v15358_v5, -inf }
 0x428   : > { %4042 = vmax.xlane.f32.xlu0 %v4041_v46  ;;  %v19457_v46 = vld [vmem:[#allocation47_spill] sm:$0xff] }
 0x42b   : > { %4003 = vmax.xlane.f32.xlu1 %v4002_v28  ;;  %v4102_v28 = vsub.f32 %v19457_v46, %v3914_v59 }
 0x42c   : > { %4000 = vmax.xlane.f32.xlu0 %v3999_v50  ;;  %v3917_v50 = vpop.xlane.xlu0 %3916 }
 0x42d   : > { %12279 = vmatmul.mubr.msk.f32.vlgmr.msra.gmra.mrb[78].mxu1 %vm1066_vm1, %v14941_v17  ;;  %v4011_v17 = vsel %vm1066_vm1, %v15318_v20, -inf }
 0x430   : > { %v15373_v56 = vpop.f32.mrb[36].mxu1 }
 0x431   : > { %v15375_v6 = vpop.f32.mrb[37].mxu1  ;;  %v4038_v38 = vsel %vm1066_vm1, %v15373_v56, -inf }
 0x432   : > { %v4035_v14 = vsel %vm1066_vm1, %v15375_v6, -inf }
 0x435   : > { %v15377_v29 = vpop.f32.mrb[72].mxu0 }
 0x436   : > { %19449 = vst [vmem:[#allocation26_spill] sm:$0xff] %v15377_v29  ;;  %v15379_v2 = vpop.f32.mrb[73].mxu0  ;;  %v4056_v11 = vsel %vm1066_vm1, %v15377_v29, -inf }
 0x437   : > { %19450 = vst [vmem:[#allocation13_spill] sm:$0xff] %v15379_v2  ;;  %4057 = vmax.xlane.f32.xlu1 %v4056_v11  ;;  %v4053_v47 = vsel %vm1066_vm1, %v15379_v2, -inf  ;;  %v19458_v11 = vld [vmem:[#allocation48_spill] sm:$0xff] }
 0x438   : > { %4054 = vmax.xlane.f32.xlu0 %v4053_v47  ;;  %v4101_v47 = vsub.f32 %v19458_v11, %v3911_v21 }
 0x43b   : > { %4015 = vmax.xlane.f32.xlu1 %v4014_v10 }
 0x43c   : > { %4012 = vmax.xlane.f32.xlu0 %v4011_v17  ;;  %v4167_v17 = vmul.f32 1.442695, %v4102_v28  ;;  %v19462_v28 = vld [vmem:[#allocation52_spill] sm:$0xff] }
 0x43d   : > { %v4103_v11 = vsub.f32 %v19462_v28, %v3917_v50 }
 0x43e   : > { %13054 = vpow2.f32 %v4167_v17 }
 0x440   : > { %v15389_v44 = vpop.f32.mrb[38].mxu1 }
 0x441   : > { %19451 = vst [vmem:[#allocation39_spill] sm:$0xff] %v15389_v44  ;;  %v15391_v19 = vpop.f32.mrb[39].mxu1 }
 0x442   : > { %19452 = vst [vmem:[#allocation24_spill] sm:$0xff] %v15391_v19 }
 0x445   : > { %v15393_v51 = vpop.f32.mrb[74].mxu0 }
 0x446   : > { %19453 = vst [vmem:[#allocation31_spill] sm:$0xff] %v15393_v51  ;;  %v15395_v0 = vpop.f32.mrb[75].mxu0  ;;  %v4068_v3 = vsel %vm1066_vm1, %v15393_v51, -inf }
 0x447   : > { %19454 = vst [vmem:[#allocation29_spill] sm:$0xff] %v15395_v0  ;;  %4069 = vmax.xlane.f32.xlu1 %v4068_v3  ;;  %v4065_v45 = vsel %vm1066_vm1, %v15395_v0, -inf }
 0x448   : > { %4066 = vmax.xlane.f32.xlu0 %v4065_v45  ;;  %v4165_v45 = vmul.f32 1.442695, %v4101_v47  ;;  %v4050_v47 = vsel %vm1066_vm1, %v15389_v44, -inf  ;;  %v15453_v50 = vpop.eup %13054 }
 0x449   : > { %19465 = vst [vmem:[#allocation27_spill] sm:$0xff] %v15453_v50  ;;  %v4296_v51 = vsel %vm1066_vm1, %v15453_v50, 0.0 }
 0x44a   : > { %13056 = vpow2.f32 %v4165_v45  ;;  %v4047_v45 = vsel %vm1066_vm1, %v15391_v19, -inf }
 0x44b   : > { %4027 = vmax.xlane.f32.xlu1 %v4026_v42  ;;  %v3923_v42 = vpop.xlane.xlu0 %3922 }
 0x44c   : > { %4024 = vmax.xlane.f32.xlu0 %v4023_v27 }
 0x44f   : > { %v15433_v59 = vpop.xlane.xlu0 %3928 }
 0x450   : > { %v15405_v25 = vpop.f32.mrb[40].mxu1 }
 0x451   : > { %19455 = vst [vmem:[#allocation35_spill] sm:$0xff] %v15405_v25  ;;  %v15407_v12 = vpop.f32.mrb[41].mxu1 }
 0x452   : > { %19456 = vst [vmem:[#allocation20_spill] sm:$0xff] %v15407_v12 }
 0x453   : > { %v15441_v17 = vpop.xlane.xlu0 %3934 }
 0x455   : > { %v15409_v15 = vpop.f32.mrb[76].mxu0 }
 0x456   : > { %v15411_v26 = vpop.f32.mrb[77].mxu0  ;;  %v4080_v53 = vsel %vm1066_vm1, %v15409_v15, -inf }
 0x457   : > { %4081 = vmax.xlane.f32.xlu1 %v4080_v53  ;;  %v4077_v23 = vsel %vm1066_vm1, %v15411_v26, -inf }
 0x458   : > { %4078 = vmax.xlane.f32.xlu0 %v4077_v23 }
 0x45b   : > { %4039 = vmax.xlane.f32.xlu1 %v4038_v38  ;;  %v3926_v38 = vpop.xlane.xlu1 %3925 }
 0x45c   : > { %4036 = vmax.xlane.f32.xlu0 %v4035_v14  ;;  %v19461_v14 = vld [vmem:[#allocation51_spill] sm:$0xff] }
 0x45d   : > { %v4104_v46 = vsub.f32 %v19461_v14, %v3920_v39  ;;  %v15455_v14 = vpop.xlane.xlu0 %3940 }
 0x45f   : > { %v15445_v43 = vpop.xlane.xlu1 %3931 }
 0x460   : > { %v15423_v10 = vpop.f32.mrb[42].mxu1 }
 0x461   : > { %19459 = vst [vmem:[#allocation28_spill] sm:$0xff] %v15423_v10  ;;  %v15425_v3 = vpop.f32.mrb[43].mxu1  ;;  %v15469_v20 = vpop.xlane.xlu0 %3946 }
 0x462   : > { %19460 = vst [vmem:[#allocation37_spill] sm:$0xff] %v15425_v3 }
 0x465   : > { %v15427_v27 = vpop.f32.mrb[78].mxu0  ;;  %v15483_v50 = vpop.xlane.xlu0 %3952 }
 0x466   : > { %v15429_v53 = vpop.f32.mrb[79].mxu0  ;;  %v4092_v23 = vsel %vm1066_vm1, %v15427_v27, -inf }
 0x467   : > { %4093 = vmax.xlane.f32.xlu1 %v4092_v23  ;;  %v4089_v21 = vsel %vm1066_vm1, %v15429_v53, -inf  ;;  %v4171_v23 = vmul.f32 1.442695, %v4104_v46 }
 0x468   : > { %4090 = vmax.xlane.f32.xlu0 %v4089_v21  ;;  %v4169_v21 = vmul.f32 1.442695, %v4103_v11 }
 0x469   : > { %13058 = vpow2.f32 %v4171_v23  ;;  %v19471_v23 = vld [vmem:[#allocation56_spill] sm:$0xff] }
 0x46a   : > { %13060 = vpow2.f32 %v4169_v21  ;;  %v4105_v29 = vsub.f32 %v19471_v23, %v3923_v42  ;;  %v4062_v21 = vsel %vm1066_vm1, %v15405_v25, -inf  ;;  %v15493_v23 = vpop.xlane.xlu0 %3958 }
 0x46b   : > { %4051 = vmax.xlane.f32.xlu1 %v4050_v47  ;;  %v15459_v47 = vpop.eup %13056 }
 0x46c   : > { %4048 = vmax.xlane.f32.xlu0 %v4047_v45  ;;  %19466 = vst [vmem:[#allocation33_spill] sm:$0xff] %v15459_v47  ;;  %v15461_v45 = vpop.xlane.xlu1 %3937 }
 0x46d   : > { %v15447_v0 = vpop.f32.mrb[80].mxu0 }
 0x46e   : > { %19463 = vst [vmem:[#allocation32_spill] sm:$0xff] %v15447_v0  ;;  %v15449_v13 = vpop.f32.mrb[81].mxu0  ;;  %v8910_v39 = vsel %vm1066_vm1, %v15447_v0, -inf  ;;  %v15507_v31 = vpop.xlane.xlu0 %3964 }
 0x46f   : > { %19464 = vst [vmem:[#allocation40_spill] sm:$0xff] %v15449_v13  ;;  %8911 = vmax.xlane.f32.xlu1 %v8910_v39  ;;  %v8907_v28 = vsel %vm1066_vm1, %v15449_v13, -inf  ;;  %v4293_v39 = vsel %vm1066_vm1, %v15459_v47, 0.0 }
 0x470   : > { %8908 = vmax.xlane.f32.xlu0 %v8907_v28  ;;  %v15463_v46 = vpop.f32.mrb[44].mxu1  ;;  %v15473_v2 = vpop.xlane.xlu1 %3943  ;;  %v4106_v28 = vsub.f32 %v19469_v16, %v3926_v38  ;;  %v4173_v16 = vmul.f32 1.442695, %v4105_v29 }
 0x471   : > { %19467 = vst [vmem:[#allocation36_spill] sm:$0xff] %v15463_v46  ;;  %v15465_v11 = vpop.f32.mrb[45].mxu1 }
 0x472   : > { %19468 = vst [vmem:[#allocation30_spill] sm:$0xff] %v15465_v11 }
 0x473   : > { %4297 = vadd.xlane.f32.xlu1 %v4296_v51  ;;  %v4059_v51 = vsel %vm1066_vm1, %v15407_v12, -inf  ;;  %v15491_v42 = vpop.eup %13058 }
 0x474   : > { %4294 = vadd.xlane.f32.xlu0 %v4293_v39  ;;  %v15487_v47 = vpop.xlane.xlu1 %3949  ;;  %v4175_v39 = vmul.f32 1.442695, %v4106_v28  ;;  %19473 = vst [vmem:[#allocation41_spill] sm:$0xff] %v15491_v42  ;;  %v4302_v28 = vsel %vm1066_vm1, %v15491_v42, 0.0  ;;  %v4074_v42 = vsel %vm1066_vm1, %v15423_v10, -inf }
 0x475   : > { %v15476_v55 = vpop.f32.mrb[82].mxu0 }
 0x476   : > { %19470 = vst [vmem:[#allocation38_spill] sm:$0xff] %v15476_v55  ;;  %v15479_v40 = vpop.f32.mrb[83].mxu0  ;;  %v8922_v38 = vsel %vm1066_vm1, %v15476_v55, -inf  ;;  %13062 = vpow2.f32 %v4175_v39  ;;  %v19480_v55 = vld [vmem:[#allocation58_spill] sm:$0xff] }
 0x477   : > { %19472 = vst [vmem:[#allocation34_spill] sm:$0xff] %v15479_v40  ;;  %4063 = vmax.xlane.f32.xlu1 %v4062_v21  ;;  %v8919_v5 = vsel %vm1066_vm1, %v15479_v40, -inf  ;;  %v15497_v21 = vpop.eup %13060  ;;  %13064 = vpow2.f32 %v4173_v16  ;;  %v4107_v12 = vsub.f32 %v19480_v55, %v15433_v59 }
 0x478   : > { %4060 = vmax.xlane.f32.xlu0 %v4059_v51  ;;  %19474 = vst [vmem:[#allocation44_spill] sm:$0xff] %v15497_v21  ;;  %v15499_v57 = vpop.xlane.xlu1 %3955 }
 0x47b   : > { %8923 = vmax.xlane.f32.xlu1 %v8922_v38  ;;  %v4299_v38 = vsel %vm1066_vm1, %v15497_v21, 0.0  ;;  %v4071_v21 = vsel %vm1066_vm1, %v15425_v3, -inf }
 0x47c   : > { %8920 = vmax.xlane.f32.xlu0 %v8919_v5  ;;  %v15511_v62 = vpop.xlane.xlu1 %3961  ;;  %v19478_v5 = vld [vmem:[#allocation57_spill] sm:$0xff] }
 0x47d   : > { %v15501_v51 = vpop.f32.mrb[84].mxu0  ;;  %v4108_v39 = vsub.f32 %v19478_v5, %v15445_v43  ;;  %v4177_v43 = vmul.f32 1.442695, %v4107_v12 }
 0x47e   : > { %19475 = vst [vmem:[#allocation42_spill] sm:$0xff] %v15501_v51  ;;  %v15503_v29 = vpop.f32.mrb[85].mxu0  ;;  %v8934_v55 = vsel %vm1066_vm1, %v15501_v51, -inf }
 0x47f   : > { %19476 = vst [vmem:[#allocation54_spill] sm:$0xff] %v15503_v29  ;;  %4303 = vadd.xlane.f32.xlu1 %v4302_v28  ;;  %v15523_v28 = vpop.xlane.xlu0 %3970  ;;  %v4179_v25 = vmul.f32 1.442695, %v4108_v39 }
 0x480   : > { %4300 = vadd.xlane.f32.xlu0 %v4299_v38  ;;  %v15513_v40 = vpop.f32.mrb[46].mxu1  ;;  %v15527_v38 = vpop.xlane.xlu1 %3967 }
 0x481   : > { %19477 = vst [vmem:[#allocation46_spill] sm:$0xff] %v15513_v40  ;;  %v15517_v16 = vpop.f32.mrb[47].mxu1  ;;  %v15535_v59 = vpop.eup %13062  ;;  %13066 = vpow2.f32 %v4179_v25  ;;  %v19489_v25 = vld [vmem:[#allocation59_spill] sm:$0xff] }
 0x482   : > { %19479 = vst [vmem:[#allocation43_spill] sm:$0xff] %v15517_v16  ;;  %19483 = vst [vmem:[#allocation45_spill] sm:$0xff] %v15535_v59  ;;  %v15541_v3 = vpop.eup %13064  ;;  %13068 = vpow2.f32 %v4177_v43  ;;  %v4308_v51 = vsel %vm1066_vm1, %v15535_v59, 0.0  ;;  %v4109_v43 = vsub.f32 %v19489_v25, %v15441_v17  ;;  %v4086_v59 = vsel %vm1066_vm1, %v15463_v46, -inf }
 0x483   : > { %4075 = vmax.xlane.f32.xlu1 %v4074_v42  ;;  %v15537_v10 = vpop.xlane.xlu0 %3976  ;;  %v8931_v42 = vsel %vm1066_vm1, %v15503_v29, -inf  ;;  %19484 = vst [vmem:[#allocation50_spill] sm:$0xff] %v15541_v3 }
 0x484   : > { %4072 = vmax.xlane.f32.xlu0 %v4071_v21  ;;  %v15543_v21 = vpop.xlane.xlu1 %3973  ;;  %v4181_v17 = vmul.f32 1.442695, %v4109_v43 }
 0x485   : > { %v15529_v37 = vpop.f32.mrb[86].mxu0 }
 0x486   : > { %19481 = vst [vmem:[#allocation49_spill] sm:$0xff] %v15529_v37  ;;  %v15531_v5 = vpop.f32.mrb[87].mxu0  ;;  %v8946_v25 = vsel %vm1066_vm1, %v15529_v37, -inf }
 0x487   : > { %19482 = vst [vmem:[#allocation53_spill] sm:$0xff] %v15531_v5  ;;  %8935 = vmax.xlane.f32.xlu1 %v8934_v55  ;;  %v15551_v13 = vpop.xlane.xlu0 %4006  ;;  %v4305_v55 = vsel %vm1066_vm1, %v15541_v3, 0.0 }
 0x488   : > { %8932 = vmax.xlane.f32.xlu0 %v8931_v42  ;;  %v15545_v39 = vpop.f32.mrb[48].mxu1  ;;  %v15555_v29 = vpop.xlane.xlu1 %3979  ;;  %v19487_v42 = vld [vmem:[#allocation18_spill] sm:$0xff] }
 0x489   : > { %19485 = vst [vmem:[#allocation47_spill] sm:$0xff] %v15545_v39  ;;  %v15547_v12 = vpop.f32.mrb[49].mxu1  ;;  %v4110_v9 = vsub.f32 %v19487_v42, %v15461_v45 }
 0x48a   : > { %19486 = vst [vmem:[#allocation48_spill] sm:$0xff] %v15547_v12 }
 0x48b   : > { %4309 = vadd.xlane.f32.xlu1 %v4308_v51  ;;  %v4083_v51 = vsel %vm1066_vm1, %v15465_v11, -inf  ;;  %v4183_v45 = vmul.f32 1.442695, %v4110_v9  ;;  %v15573_v42 = vpop.xlane.xlu0 %3982  ;;  %v15579_v44 = vpop.eup %13066  ;;  %v4112_v9 = vsub.f32 %v14950_v32, %v15473_v2 }
 0x48c   : > { %4306 = vadd.xlane.f32.xlu0 %v4305_v55  ;;  %v15569_v3 = vpop.xlane.xlu1 %4009  ;;  %19493 = vst [vmem:[#allocation57_spill] sm:$0xff] %v15579_v44  ;;  %v15583_v11 = vpop.eup %13068 }
 0x48d   : > { %v15559_v0 = vpop.f32.mrb[88].mxu0  ;;  %19494 = vst [vmem:[#allocation58_spill] sm:$0xff] %v15583_v11  ;;  %13070 = vpow2.f32 %v4183_v45  ;;  %v4187_v32 = vmul.f32 1.442695, %v4112_v9  ;;  %v4111_v9 = vsub.f32 %v14953_v58, %v15455_v14  ;;  %v4114_v58 = vsub.f32 %v14985_v60, %v15487_v47 }
 0x48e   : > { %19488 = vst [vmem:[#allocation51_spill] sm:$0xff] %v15559_v0  ;;  %v15563_v18 = vpop.f32.mrb[89].mxu0  ;;  %13072 = vpow2.f32 %v4181_v17  ;;  %v8958_v17 = vsel %vm1066_vm1, %v15559_v0, -inf }
 0x48f   : > { %19490 = vst [vmem:[#allocation52_spill] sm:$0xff] %v15563_v18  ;;  %4087 = vmax.xlane.f32.xlu1 %v4086_v59  ;;  %v8943_v59 = vsel %vm1066_vm1, %v15531_v5, -inf  ;;  %13074 = vpow2.f32 %v4187_v32  ;;  %v4191_v63 = vmul.f32 1.442695, %v4114_v58 }
 0x490   : > { %4084 = vmax.xlane.f32.xlu0 %v4083_v51  ;;  %v15571_v55 = vpop.f32.mrb[50].mxu1  ;;  %v15591_v43 = vpop.xlane.xlu1 %3985 }
 0x491   : > { %19491 = vst [vmem:[#allocation55_spill] sm:$0xff] %v15571_v55  ;;  %v15575_v19 = vpop.f32.mrb[51].mxu1 }
 0x492   : > { %19492 = vst [vmem:[#allocation56_spill] sm:$0xff] %v15575_v19 }
 0x493   : > { %8947 = vmax.xlane.f32.xlu1 %v8946_v25  ;;  %v4314_v25 = vsel %vm1066_vm1, %v15579_v44, 0.0  ;;  %v4098_v44 = vsel %vm1066_vm1, %v15513_v40, -inf }
 0x494   : > { %8944 = vmax.xlane.f32.xlu0 %v8943_v59  ;;  %v4311_v59 = vsel %vm1066_vm1, %v15583_v11, 0.0  ;;  %v15603_v5 = vpop.xlane.xlu1 %4021 }
 0x495   : > { %v15587_v51 = vpop.f32.mrb[90].mxu0  ;;  %v15589_v46 = vpop.xlane.xlu0 %4018 }
 0x496   : > { %19495 = vst [vmem:[#allocation18_spill] sm:$0xff] %v15587_v51  ;;  %19496 = vst [vmem:[#allocation59_spill] sm:$0xff] %v15589_v46  ;;  %v15593_v37 = vpop.f32.mrb[91].mxu0  ;;  %v8970_v60 = vsel %vm1066_vm1, %v15587_v51, -inf  ;;  %v8928_v51 = vsel %vm1066_vm1, %v15571_v55, -inf }
 0x497   : > { %19497 = vst [vmem:[#allocation60_spill] sm:$0xff] %v15593_v37  ;;  %4315 = vadd.xlane.f32.xlu1 %v4314_v25  ;;  %v4095_v25 = vsel %vm1066_vm1, %v15517_v16, -inf  ;;  %v4185_v16 = vmul.f32 1.442695, %v4111_v9 }
 0x498   : > { %4312 = vadd.xlane.f32.xlu0 %v4311_v59  ;;  %v15599_v45 = vpop.f32.mrb[52].mxu1 }
 0x499   : > { %19498 = vst [vmem:[#allocation61_spill] sm:$0xff] %v15599_v45  ;;  %v15601_v2 = vpop.xlane.xlu0 %3988  ;;  %v15607_v46 = vpop.f32.mrb[53].mxu1  ;;  %13076 = vpow2.f32 %v4185_v16 }
 0x49a   : > { %19499 = vst [vmem:[#allocation62_spill] sm:$0xff] %v15601_v2  ;;  %19500 = vst [vmem:[#allocation63_spill] sm:$0xff] %v15607_v46  ;;  %v15621_v2 = vpop.eup %13070  ;;  %13078 = vpow2.f32 %v4191_v63 }
 0x49b   : > { %4099 = vmax.xlane.f32.xlu1 %v4098_v44  ;;  %19503 = vst [vmem:[#allocation66_spill] sm:$0xff] %v15621_v2  ;;  %v8955_v44 = vsel %vm1066_vm1, %v15563_v18, -inf  ;;  %v15625_v40 = vpop.eup %13072  ;;  %v4320_v0 = vsel %vm1066_vm1, %v15621_v2, 0.0  ;;  %v8913_v2 = vsel %vm1066_vm1, %v15547_v12, -inf }
 0x49c   : > { %4096 = vmax.xlane.f32.xlu0 %v4095_v25  ;;  %19504 = vst [vmem:[#allocation67_spill] sm:$0xff] %v15625_v40  ;;  %v15627_v25 = vpop.xlane.xlu1 %3991  ;;  %v15647_v47 = vpop.eup %13074 }
 0x49d   : > { %v15613_v59 = vpop.f32.mrb[92].mxu0  ;;  %19505 = vst [vmem:[#allocation68_spill] sm:$0xff] %v15627_v25  ;;  %19510 = vst [vmem:[#allocation73_spill] sm:$0xff] %v15647_v47 }
 0x49e   : > { %19501 = vst [vmem:[#allocation64_spill] sm:$0xff] %v15613_v59  ;;  %v15617_v11 = vpop.f32.mrb[93].mxu0 }
 0x49f   : > { %19502 = vst [vmem:[#allocation65_spill] sm:$0xff] %v15617_v11  ;;  %8959 = vmax.xlane.f32.xlu1 %v8958_v17  ;;  %v4317_v17 = vsel %vm1066_vm1, %v15625_v40, 0.0 }
 0x4a0   : > { %8956 = vmax.xlane.f32.xlu0 %v8955_v44  ;;  %v15629_v32 = vpop.f32.mrb[54].mxu1 }
 0x4a1   : > { %19506 = vst [vmem:[#allocation69_spill] sm:$0xff] %v15629_v32  ;;  %v15633_v14 = vpop.f32.mrb[55].mxu1 }
 0x4a2   : > { %19507 = vst [vmem:[#allocation70_spill] sm:$0xff] %v15633_v14 }
 0x4a3   : > { %4321 = vadd.xlane.f32.xlu1 %v4320_v0  ;;  %v8916_v0 = vsel %vm1066_vm1, %v15545_v39, -inf }
 0x4a4   : > { %v15639_v18 = vpop.xlane.xlu1 %4033  ;;  %4318 = vadd.xlane.f32.xlu0 %v4317_v17  ;;  %v4113_v17 = vsub.f32 %v14987_v8, %v15469_v20  ;;  %v8967_v8 = vsel %vm1066_vm1, %v15593_v37, -inf  ;;  %v15675_v20 = vpop.eup %13076 }
 0x4a5   : > { %v15641_v44 = vpop.f32.mrb[94].mxu0  ;;  %19515 = vst [vmem:[#allocation78_spill] sm:$0xff] %v15675_v20 }
 0x4a6   : > { %19508 = vst [vmem:[#allocation71_spill] sm:$0xff] %v15641_v44  ;;  %v15643_v25 = vpop.f32.mrb[95].mxu0  ;;  %v4189_v39 = vmul.f32 1.442695, %v4113_v17 }
 0x4a7   : > { %19509 = vst [vmem:[#allocation72_spill] sm:$0xff] %v15643_v25  ;;  %8971 = vmax.xlane.f32.xlu1 %v8970_v60  ;;  %v4326_v60 = vsel %vm1066_vm1, %v15647_v47, 0.0 }
 0x4a8   : > { %v15651_v9 = vpop.xlane.xlu1 %3997  ;;  %8917 = vmax.xlane.f32.xlu0 %v8916_v0  ;;  %v15653_v40 = vpop.f32.mrb[56].mxu1  ;;  %v4116_v0 = vsub.f32 %v15013_v1, %v15499_v57  ;;  %13080 = vpow2.f32 %v4189_v39  ;;  %v8982_v1 = vsel %vm1066_vm1, %v15613_v59, -inf  ;;  %v8925_v59 = vsel %vm1066_vm1, %v15575_v19, -inf }
 0x4a9   : > { %19511 = vst [vmem:[#allocation74_spill] sm:$0xff] %v15653_v40  ;;  %v15657_v58 = vpop.f32.mrb[57].mxu1  ;;  %v15683_v57 = vpop.eup %13078 }
 0x4aa   : > { %19512 = vst [vmem:[#allocation75_spill] sm:$0xff] %v15657_v58  ;;  %19518 = vst [vmem:[#allocation81_spill] sm:$0xff] %v15683_v57  ;;  %v4332_v39 = vsel %vm1066_vm1, %v15683_v57, 0.0 }
 0x4ab   : > { %4327 = vadd.xlane.f32.xlu1 %v4326_v60 }
 0x4ac   : > { %8914 = vmax.xlane.f32.xlu0 %v8913_v2  ;;  %v4195_v2 = vmul.f32 1.442695, %v4116_v0 }
 0x4ad   : > { %v15667_v63 = vpop.f32.mrb[96].mxu0 }
 0x4ae   : > { %19513 = vst [vmem:[#allocation76_spill] sm:$0xff] %v15667_v63  ;;  %v15669_v16 = vpop.f32.mrb[97].mxu0  ;;  %13082 = vpow2.f32 %v4195_v2  ;;  %v4118_v2 = vsub.f32 %v15051_v34, %v15511_v62  ;;  %v8994_v62 = vsel %vm1066_vm1, %v15641_v44, -inf }
 0x4af   : > { %19514 = vst [vmem:[#allocation77_spill] sm:$0xff] %v15669_v16  ;;  %8929 = vmax.xlane.f32.xlu1 %v8928_v51  ;;  %v4323_v51 = vsel %vm1066_vm1, %v15675_v20, 0.0 }
 0x4b0   : > { %8968 = vmax.xlane.f32.xlu0 %v8967_v8  ;;  %v15677_v60 = vpop.f32.mrb[58].mxu1  ;;  %v4115_v8 = vsub.f32 %v15015_v7, %v15483_v50  ;;  %v8940_v7 = vsel %vm1066_vm1, %v15599_v45, -inf  ;;  %v8979_v50 = vsel %vm1066_vm1, %v15617_v11, -inf  ;;  %v4199_v57 = vmul.f32 1.442695, %v4118_v2 }
 0x4b1   : > { %19516 = vst [vmem:[#allocation79_spill] sm:$0xff] %v15677_v60  ;;  %v15679_v47 = vpop.f32.mrb[59].mxu1 }
 0x4b2   : > { %19517 = vst [vmem:[#allocation80_spill] sm:$0xff] %v15679_v47  ;;  %v4193_v20 = vmul.f32 1.442695, %v4115_v8 }
 0x4b3   : > { %8983 = vmax.xlane.f32.xlu1 %v8982_v1 }
 0x4b4   : > { %4324 = vadd.xlane.f32.xlu0 %v4323_v51  ;;  %13084 = vpow2.f32 %v4193_v20  ;;  %v4117_v20 = vsub.f32 %v15055_v61, %v15493_v23  ;;  %v15737_v44 = vpop.xlane.xlu1 %4045  ;;  %v8952_v61 = vsel %vm1066_vm1, %v15629_v32, -inf }
 0x4b5   : > { %v15687_v17 = vpop.f32.mrb[98].mxu0  ;;  %13086 = vpow2.f32 %v4199_v57 }
 0x4b6   : > { %19519 = vst [vmem:[#allocation82_spill] sm:$0xff] %v15687_v17  ;;  %v15691_v0 = vpop.f32.mrb[99].mxu0  ;;  %v4197_v57 = vmul.f32 1.442695, %v4117_v20 }
 0x4b7   : > { %19520 = vst [vmem:[#allocation83_spill] sm:$0xff] %v15691_v0  ;;  %4333 = vadd.xlane.f32.xlu1 %v4332_v39  ;;  %v15707_v39 = vpop.eup %13080 }
 0x4b8   : > { %8926 = vmax.xlane.f32.xlu0 %v8925_v59  ;;  %v15697_v1 = vpop.f32.mrb[60].mxu1  ;;  %19523 = vst [vmem:[#allocation86_spill] sm:$0xff] %v15707_v39  ;;  %v15709_v59 = vpop.xlane.xlu0 %4030  ;;  %13088 = vpow2.f32 %v4197_v57 }
 0x4b9   : > { %19521 = vst [vmem:[#allocation84_spill] sm:$0xff] %v15697_v1  ;;  %v15701_v51 = vpop.f32.mrb[61].mxu1  ;;  %v15717_v8 = vpop.eup %13082 }
 0x4ba   : > { %19522 = vst [vmem:[#allocation85_spill] sm:$0xff] %v15701_v51  ;;  %19526 = vst [vmem:[#allocation89_spill] sm:$0xff] %v15717_v8  ;;  %v15759_v32 = vpop.xlane.xlu1 %4003 }
 0x4bb   : > { %8941 = vmax.xlane.f32.xlu1 %v8940_v7  ;;  %v4329_v7 = vsel %vm1066_vm1, %v15707_v39, 0.0 }
 0x4bc   : > { %8980 = vmax.xlane.f32.xlu0 %v8979_v50  ;;  %v4338_v50 = vsel %vm1066_vm1, %v15717_v8, 0.0  ;;  %v15729_v45 = vpop.xlane.xlu0 %3994  ;;  %v9006_v8 = vsel %vm1066_vm1, %v15667_v63, -inf }
 0x4bd   : > { %v15711_v19 = vpop.f32.mrb[100].mxu0 }
 0x4be   : > { %19524 = vst [vmem:[#allocation87_spill] sm:$0xff] %v15711_v19  ;;  %v15713_v34 = vpop.f32.mrb[101].mxu0 }
 0x4bf   : > { %19525 = vst [vmem:[#allocation88_spill] sm:$0xff] %v15713_v34  ;;  %8995 = vmax.xlane.f32.xlu1 %v8994_v62  ;;  %v8937_v62 = vsel %vm1066_vm1, %v15607_v46, -inf }
 0x4c0   : > { %4330 = vadd.xlane.f32.xlu0 %v4329_v7  ;;  %v15721_v11 = vpop.f32.mrb[62].mxu1  ;;  %v4120_v7 = vsub.f32 %v15079_v22, %v15527_v38  ;;  %v15743_v23 = vpop.xlane.xlu0 %4042 }
 0x4c1   : > { %19527 = vst [vmem:[#allocation90_spill] sm:$0xff] %v15721_v11  ;;  %v15723_v2 = vpop.f32.mrb[63].mxu1 }
 0x4c2   : > { %19528 = vst [vmem:[#allocation91_spill] sm:$0xff] %v15723_v2  ;;  %v4203_v38 = vmul.f32 1.442695, %v4120_v7  ;;  %v4119_v7 = vsub.f32 %v15083_v49, %v15507_v31 }
 0x4c3   : > { %4339 = vadd.xlane.f32.xlu1 %v4338_v50  ;;  %v8991_v50 = vsel %vm1066_vm1, %v15643_v25, -inf }
 0x4c4   : > { %8938 = vmax.xlane.f32.xlu0 %v8937_v62  ;;  %v15747_v62 = vpop.eup %13084  ;;  %13090 = vpow2.f32 %v4203_v38  ;;  %v4201_v31 = vmul.f32 1.442695, %v4119_v7  ;;  %v9018_v7 = vsel %vm1066_vm1, %v15687_v17, -inf }
 0x4c5   : > { %v15735_v39 = vpop.f32.mrb[102].mxu0  ;;  %19531 = vst [vmem:[#allocation94_spill] sm:$0xff] %v15747_v62  ;;  %v15755_v46 = vpop.eup %13086 }
 0x4c6   : > { %19529 = vst [vmem:[#allocation92_spill] sm:$0xff] %v15735_v39  ;;  %v15739_v37 = vpop.f32.mrb[103].mxu0  ;;  %19534 = vst [vmem:[#allocation97_spill] sm:$0xff] %v15755_v46  ;;  %v4344_v63 = vsel %vm1066_vm1, %v15755_v46, 0.0  ;;  %v8964_v46 = vsel %vm1066_vm1, %v15653_v40, -inf  ;;  %13092 = vpow2.f32 %v4201_v31 }
 0x4c7   : > { %19530 = vst [vmem:[#allocation93_spill] sm:$0xff] %v15739_v37  ;;  %8953 = vmax.xlane.f32.xlu1 %v8952_v61  ;;  %v4335_v61 = vsel %vm1066_vm1, %v15747_v62, 0.0  ;;  %v15773_v62 = vpop.xlane.xlu1 %4057 }
 0x4c8   : > { %8992 = vmax.xlane.f32.xlu0 %v8991_v50  ;;  %v15749_v22 = vpop.f32.mrb[64].mxu1  ;;  %v15761_v50 = vpop.xlane.xlu0 %4000 }
 0x4c9   : > { %19532 = vst [vmem:[#allocation95_spill] sm:$0xff] %v15749_v22  ;;  %v15751_v20 = vpop.f32.mrb[65].mxu1 }
 0x4ca   : > { %19533 = vst [vmem:[#allocation96_spill] sm:$0xff] %v15751_v20 }
 0x4cb   : > { %9007 = vmax.xlane.f32.xlu1 %v9006_v8  ;;  %v8949_v8 = vsel %vm1066_vm1, %v15633_v14, -inf  ;;  %v15787_v14 = vpop.eup %13088 }
 0x4cc   : > { %4336 = vadd.xlane.f32.xlu0 %v4335_v61  ;;  %v4122_v61 = vsub.f32 %v15117_v33, %v15543_v21  ;;  %v15779_v55 = vpop.xlane.xlu0 %4054  ;;  %19540 = vst [vmem:[#allocation103_spill] sm:$0xff] %v15787_v14  ;;  %v15791_v33 = vpop.xlane.xlu1 %4015  ;;  %v4341_v40 = vsel %vm1066_vm1, %v15787_v14, 0.0 }
 0x4cd   : > { %v15763_v25 = vpop.f32.mrb[104].mxu0  ;;  %19538 = vst [vmem:[#allocation101_spill] sm:$0xff] %v15779_v55  ;;  %19542 = vst [vmem:[#allocation105_spill] sm:$0xff] %v15791_v33 }
 0x4ce   : > { %19535 = vst [vmem:[#allocation98_spill] sm:$0xff] %v15763_v25  ;;  %v15767_v57 = vpop.f32.mrb[105].mxu0  ;;  %v15797_v55 = vpop.eup %13090 }
 0x4cf   : > { %19536 = vst [vmem:[#allocation99_spill] sm:$0xff] %v15767_v57  ;;  %4345 = vadd.xlane.f32.xlu1 %v4344_v63  ;;  %v9003_v63 = vsel %vm1066_vm1, %v15669_v16, -inf  ;;  %19544 = vst [vmem:[#allocation107_spill] sm:$0xff] %v15797_v55  ;;  %v4350_v17 = vsel %vm1066_vm1, %v15797_v55, 0.0 }
 0x4d0   : > { %8950 = vmax.xlane.f32.xlu0 %v8949_v8  ;;  %v15775_v38 = vpop.f32.mrb[66].mxu1  ;;  %v4207_v8 = vmul.f32 1.442695, %v4122_v61 }
 0x4d1   : > { %19537 = vst [vmem:[#allocation100_spill] sm:$0xff] %v15775_v38  ;;  %v15781_v49 = vpop.f32.mrb[67].mxu1 }
 0x4d2   : > { %19539 = vst [vmem:[#allocation102_spill] sm:$0xff] %v15781_v49  ;;  %13094 = vpow2.f32 %v4207_v8 }
 0x4d3   : > { %8965 = vmax.xlane.f32.xlu1 %v8964_v46  ;;  %v15799_v46 = vpop.xlane.xlu0 %4012 }
 0x4d4   : > { %9004 = vmax.xlane.f32.xlu0 %v9003_v63  ;;  %v4121_v63 = vsub.f32 %v15119_v24, %v15523_v28  ;;  %v15809_v16 = vpop.xlane.xlu1 %4069  ;;  %v8976_v24 = vsel %vm1066_vm1, %v15677_v60, -inf  ;;  %v9015_v28 = vsel %vm1066_vm1, %v15691_v0, -inf  ;;  %v9030_v60 = vsel %vm1066_vm1, %v15711_v19, -inf }
 0x4d5   : > { %v15789_v12 = vpop.f32.mrb[106].mxu0 }
 0x4d6   : > { %19541 = vst [vmem:[#allocation104_spill] sm:$0xff] %v15789_v12  ;;  %v15793_v21 = vpop.f32.mrb[107].mxu0  ;;  %v4205_v14 = vmul.f32 1.442695, %v4121_v63 }
 0x4d7   : > { %19543 = vst [vmem:[#allocation106_spill] sm:$0xff] %v15793_v21  ;;  %9019 = vmax.xlane.f32.xlu1 %v9018_v7  ;;  %v15813_v33 = vpop.xlane.xlu0 %4066  ;;  %v8961_v7 = vsel %vm1066_vm1, %v15657_v58, -inf }
 0x4d8   : > { %4342 = vadd.xlane.f32.xlu0 %v4341_v40  ;;  %v15803_v61 = vpop.f32.mrb[68].mxu1  ;;  %v4124_v40 = vsub.f32 %v15145_v41, %v15555_v29  ;;  %v15829_v55 = vpop.xlane.xlu1 %4027  ;;  %13096 = vpow2.f32 %v4205_v14 }
 0x4d9   : > { %19545 = vst [vmem:[#allocation108_spill] sm:$0xff] %v15803_v61  ;;  %v15805_v31 = vpop.f32.mrb[69].mxu1 }
 0x4da   : > { %19546 = vst [vmem:[#allocation109_spill] sm:$0xff] %v15805_v31  ;;  %v4211_v41 = vmul.f32 1.442695, %v4124_v40  ;;  %v4134_v40 = vsub.f32 %v15221_v35, %v15569_v3  ;;  %v8973_v35 = vsel %vm1066_vm1, %v15679_v47, -inf }
 0x4db   : > { %4351 = vadd.xlane.f32.xlu1 %v4350_v17  ;;  %v15827_v17 = vpop.eup %13092  ;;  %v15833_v29 = vpop.xlane.xlu0 %4024 }
 0x4dc   : > { %8962 = vmax.xlane.f32.xlu0 %v8961_v7  ;;  %19549 = vst [vmem:[#allocation112_spill] sm:$0xff] %v15827_v17  ;;  %v4347_v0 = vsel %vm1066_vm1, %v15827_v17, 0.0  ;;  %13098 = vpow2.f32 %v4211_v41 }
 0x4dd   : > { %v15819_v8 = vpop.f32.mrb[108].mxu0 }
 0x4de   : > { %19547 = vst [vmem:[#allocation110_spill] sm:$0xff] %v15819_v8  ;;  %v15821_v31 = vpop.f32.mrb[109].mxu0 }
 0x4df   : > { %19548 = vst [vmem:[#allocation111_spill] sm:$0xff] %v15821_v31  ;;  %8977 = vmax.xlane.f32.xlu1 %v8976_v24  ;;  %v15839_v24 = vpop.eup %13094 }
 0x4e0   : > { %9016 = vmax.xlane.f32.xlu0 %v9015_v28  ;;  %v15831_v7 = vpop.f32.mrb[70].mxu1  ;;  %19552 = vst [vmem:[#allocation115_spill] sm:$0xff] %v15839_v24  ;;  %v4231_v28 = vmul.f32 1.442695, %v4134_v40  ;;  %v4126_v40 = vsub.f32 %v15183_v54, %v15591_v43 }
 0x4e1   : > { %19550 = vst [vmem:[#allocation113_spill] sm:$0xff] %v15831_v7  ;;  %v15835_v63 = vpop.f32.mrb[71].mxu1 }
 0x4e2   : > { %19551 = vst [vmem:[#allocation114_spill] sm:$0xff] %v15835_v63  ;;  %v15879_v47 = vpop.eup %13096  ;;  %13100 = vpow2.f32 %v4231_v28  ;;  %v4215_v28 = vmul.f32 1.442695, %v4126_v40 }
 0x4e3   : > { %9031 = vmax.xlane.f32.xlu1 %v9030_v60  ;;  %v4123_v60 = vsub.f32 %v15147_v52, %v15537_v10  ;;  %19558 = vst [vmem:[#allocation121_spill] sm:$0xff] %v15879_v47 }
 0x4e4   : > { %v15843_v58 = vpop.xlane.xlu1 %4081  ;;  %4348 = vadd.xlane.f32.xlu0 %v4347_v0  ;;  %v4356_v0 = vsel %vm1066_vm1, %v15839_v24, 0.0  ;;  %v8988_v24 = vsel %vm1066_vm1, %v15697_v1, -inf }
 0x4e5   : > { %v15849_v14 = vpop.f32.mrb[110].mxu0  ;;  %v15851_v63 = vpop.xlane.xlu0 %4078 }
 0x4e6   : > { %19553 = vst [vmem:[#allocation116_spill] sm:$0xff] %v15849_v14  ;;  %19554 = vst [vmem:[#allocation117_spill] sm:$0xff] %v15851_v63  ;;  %v15857_v17 = vpop.f32.mrb[111].mxu0  ;;  %v4209_v63 = vmul.f32 1.442695, %v4123_v60  ;;  %v4133_v60 = vsub.f32 %v15223_v36, %v15551_v13  ;;  %v15887_v52 = vpop.eup %13098  ;;  %v8985_v36 = vsel %vm1066_vm1, %v15701_v51, -inf }
 0x4e7   : > { %19555 = vst [vmem:[#allocation118_spill] sm:$0xff] %v15857_v17  ;;  %4357 = vadd.xlane.f32.xlu1 %v4356_v0  ;;  %v9042_v0 = vsel %vm1066_vm1, %v15735_v39, -inf  ;;  %19559 = vst [vmem:[#allocation122_spill] sm:$0xff] %v15887_v52  ;;  %v4362_v43 = vsel %vm1066_vm1, %v15887_v52, 0.0  ;;  %v19572_v39 = vld [vmem:[#allocation59_spill] sm:$0xff] }
 0x4e8   : > { %v15863_v3 = vpop.xlane.xlu1 %4039  ;;  %8974 = vmax.xlane.f32.xlu0 %v8973_v35  ;;  %v15865_v41 = vpop.f32.mrb[72].mxu1  ;;  %v9027_v35 = vsel %vm1066_vm1, %v15713_v34, -inf  ;;  %13102 = vpow2.f32 %v4209_v63  ;;  %v4229_v54 = vmul.f32 1.442695, %v4133_v60  ;;  %v4138_v63 = vsub.f32 %v15279_v48, %v15603_v5  ;;  %v19570_v34 = vld [vmem:[#allocation32_spill] sm:$0xff] }
 0x4e9   : > { %19556 = vst [vmem:[#allocation119_spill] sm:$0xff] %v15865_v41  ;;  %v15869_v10 = vpop.xlane.xlu0 %4036  ;;  %v15871_v19 = vpop.f32.mrb[73].mxu1  ;;  %13104 = vpow2.f32 %v4215_v28  ;;  %v4125_v60 = vsub.f32 %v15187_v4, %v15573_v42  ;;  %v9039_v48 = vsel %vm1066_vm1, %v15739_v37, -inf  ;;  %v19565_v42 = vld [vmem:[#allocation39_spill] sm:$0xff] }
 0x4ea   : > { %19557 = vst [vmem:[#allocation120_spill] sm:$0xff] %v15871_v19  ;;  %13106 = vpow2.f32 %v4229_v54  ;;  %v4239_v4 = vmul.f32 1.442695, %v4138_v63  ;;  %v19568_v63 = vld [vmem:[#allocation68_spill] sm:$0xff] }
 0x4eb   : > { %8989 = vmax.xlane.f32.xlu1 %v8988_v24  ;;  %v4353_v24 = vsel %vm1066_vm1, %v15879_v47, 0.0 }
 0x4ec   : > { %9028 = vmax.xlane.f32.xlu0 %v9027_v35  ;;  %13108 = vpow2.f32 %v4239_v4 }
 0x4ef   : > { %9043 = vmax.xlane.f32.xlu1 %v9042_v0 }
 0x4f0   : > { %4354 = vadd.xlane.f32.xlu0 %v4353_v24  ;;  %v15891_v1 = vpop.f32.mrb[74].mxu1  ;;  %v19569_v24 = vld [vmem:[#allocation8_spill] sm:$0xff] }
 0x4f1   : > { %19560 = vst [vmem:[#allocation123_spill] sm:$0xff] %v15891_v1  ;;  %v15893_v35 = vpop.f32.mrb[75].mxu1  ;;  %v4128_v52 = vsub.f32 %v19569_v24, %v19568_v63  ;;  %v8997_v24 = vsel %vm1066_vm1, %v15723_v2, -inf }
 0x4f2   : > { %19561 = vst [vmem:[#allocation124_spill] sm:$0xff] %v15893_v35 }
 0x4f3   : > { %4363 = vadd.xlane.f32.xlu1 %v4362_v43  ;;  %v9000_v43 = vsel %vm1066_vm1, %v15721_v11, -inf  ;;  %v4213_v11 = vmul.f32 1.442695, %v4125_v60 }
 0x4f4   : > { %v15899_v13 = vpop.xlane.xlu1 %4093  ;;  %8986 = vmax.xlane.f32.xlu0 %v8985_v36  ;;  %v15913_v36 = vpop.eup %13100 }
 0x4f5   : > { %v15905_v40 = vpop.xlane.xlu0 %4090  ;;  %19562 = vst [vmem:[#allocation125_spill] sm:$0xff] %v15913_v36  ;;  %v15917_v5 = vpop.eup %13102  ;;  %v4392_v37 = vsel %vm1066_vm1, %v15913_v36, 0.0  ;;  %13110 = vpow2.f32 %v4213_v11 }
 0x4f6   : > { %19563 = vst [vmem:[#allocation126_spill] sm:$0xff] %v15917_v5 }
 0x4f7   : > { %9001 = vmax.xlane.f32.xlu1 %v9000_v43  ;;  %v19567_v43 = vld [vmem:[#allocation24_spill] sm:$0xff] }
 0x4f8   : > { %v15919_v28 = vpop.xlane.xlu1 %4051  ;;  %9040 = vmax.xlane.f32.xlu0 %v9039_v48  ;;  %v15921_v54 = vpop.f32.mrb[76].mxu1  ;;  %v4359_v48 = vsel %vm1066_vm1, %v15917_v5, 0.0  ;;  %v9054_v5 = vsel %vm1066_vm1, %v15763_v25, -inf }
 0x4f9   : > { %19564 = vst [vmem:[#allocation127_spill] sm:$0xff] %v15921_v54  ;;  %v15925_v0 = vpop.xlane.xlu0 %4048  ;;  %v15927_v51 = vpop.f32.mrb[77].mxu1  ;;  %v19573_v54 = vld [vmem:[#allocation19_spill] sm:$0xff] }
 0x4fa   : > { %19566 = vst [vmem:[#allocation39_spill] sm:$0xff] %v15927_v51  ;;  %v4137_v36 = vsub.f32 %v19573_v54, %v19572_v39  ;;  %v4219_v39 = vmul.f32 1.442695, %v4128_v52  ;;  %v19581_v52 = vld [vmem:[#allocation35_spill] sm:$0xff] }
 0x4fb   : > { %4393 = vadd.xlane.f32.xlu1 %v4392_v37 }
 0x4fc   : > { %v15935_v47 = vpop.xlane.xlu1 %8911  ;;  %4360 = vadd.xlane.f32.xlu0 %v4359_v48  ;;  %v15949_v48 = vpop.eup %13104  ;;  %v4237_v60 = vmul.f32 1.442695, %v4137_v36  ;;  %13112 = vpow2.f32 %v4219_v39  ;;  %v9051_v39 = vsel %vm1066_vm1, %v15767_v57, -inf }
 0x4fd   : > { %v15941_v51 = vpop.xlane.xlu0 %8908  ;;  %19575 = vst [vmem:[#allocation68_spill] sm:$0xff] %v15949_v48  ;;  %v15953_v4 = vpop.eup %13106  ;;  %v4368_v25 = vsel %vm1066_vm1, %v15949_v48, 0.0  ;;  %v19588_v48 = vld [vmem:[#allocation14_spill] sm:$0xff] }
 0x4fe   : > { %19571 = vst [vmem:[#allocation24_spill] sm:$0xff] %v15941_v51  ;;  %19576 = vst [vmem:[#allocation8_spill] sm:$0xff] %v15953_v4  ;;  %13114 = vpow2.f32 %v4237_v60  ;;  %v19586_v60 = vld [vmem:[#allocation38_spill] sm:$0xff] }
 0x4ff   : > { %9055 = vmax.xlane.f32.xlu1 %v9054_v5  ;;  %v4389_v5 = vsel %vm1066_vm1, %v15953_v4, 0.0  ;;  %v15979_v4 = vpop.eup %13108 }
 0x500   : > { %v15955_v63 = vpop.xlane.xlu1 %4297  ;;  %8998 = vmax.xlane.f32.xlu0 %v8997_v24  ;;  %v15957_v11 = vpop.f32.mrb[78].mxu1  ;;  %v19580_v24 = vld [vmem:[#allocation25_spill] sm:$0xff]  ;;  %19584 = vst [vmem:[#allocation35_spill] sm:$0xff] %v15979_v4  ;;  %v4404_v57 = vsel %vm1066_vm1, %v15979_v4, 0.0 }
 0x501   : > { %19577 = vst [vmem:[#allocation32_spill] sm:$0xff] %v15957_v11  ;;  %v15959_v54 = vpop.xlane.xlu0 %4294  ;;  %v15961_v35 = vpop.f32.mrb[79].mxu1  ;;  %v4142_v11 = vsub.f32 %v19580_v24, %v15639_v18 }
 0x502   : > { %19578 = vst [vmem:[#allocation59_spill] sm:$0xff] %v15961_v35 }
 0x503   : > { %4369 = vadd.xlane.f32.xlu1 %v4368_v25  ;;  %v9012_v25 = vsel %vm1066_vm1, %v15749_v22, -inf  ;;  %v4247_v24 = vmul.f32 1.442695, %v4142_v11 }
 0x504   : > { %v15967_v2 = vpop.xlane.xlu1 %4063  ;;  %4390 = vadd.xlane.f32.xlu0 %v4389_v5  ;;  %v15983_v5 = vpop.eup %13110 }
 0x505   : > { %19579 = vst [vmem:[#allocation19_spill] sm:$0xff] %v15967_v2  ;;  %v15973_v37 = vpop.xlane.xlu0 %4060  ;;  %19585 = vst [vmem:[#allocation128_spill] sm:$0xff] %v15983_v5  ;;  %13116 = vpow2.f32 %v4247_v24 }
 0x506   : > { %19582 = vst [vmem:[#allocation25_spill] sm:$0xff] %v15973_v37  ;;  %v19589_v37 = vld [vmem:[#allocation62_spill] sm:$0xff]  ;;  %v16008_v2 = vpop.eup %13112 }
 0x507   : > { %9013 = vmax.xlane.f32.xlu1 %v9012_v25  ;;  %v19590_v22 = vsub.f32 %v19588_v48, %v19589_v37  ;;  %v19592_v37 = vld [vmem:[#allocation12_spill] sm:$0xff]  ;;  %v9066_v48 = vsel %vm1066_vm1, %v15789_v12, -inf  ;;  %19593 = vst [vmem:[#allocation14_spill] sm:$0xff] %v16008_v2 }
 0x508   : > { %v15985_v18 = vpop.xlane.xlu1 %8923  ;;  %9052 = vmax.xlane.f32.xlu0 %v9051_v39  ;;  %v4365_v39 = vsel %vm1066_vm1, %v15983_v5, 0.0  ;;  %v16012_v5 = vpop.eup %13114 }
 0x509   : > { %v15989_v35 = vpop.xlane.xlu0 %8920  ;;  %v4217_v36 = vmul.f32 1.442695, %v19590_v22  ;;  %v4141_v22 = vsub.f32 %v19592_v37, %v15709_v59  ;;  %19594 = vst [vmem:[#allocation62_spill] sm:$0xff] %v16012_v5  ;;  %v19596_v59 = vld [vmem:[#allocation28_spill] sm:$0xff] }
 0x50a   : > { %19587 = vst [vmem:[#allocation38_spill] sm:$0xff] %v15989_v35  ;;  %v19602_v35 = vld [vmem:[#allocation23_spill] sm:$0xff] }
 0x50b   : > { %4405 = vadd.xlane.f32.xlu1 %v4404_v57  ;;  %13118 = vpow2.f32 %v4217_v36  ;;  %v9009_v57 = vsel %vm1066_vm1, %v15751_v20, -inf  ;;  %v19595_v36 = vsub.f32 %v15239_v30, %v15651_v9  ;;  %v4245_v12 = vmul.f32 1.442695, %v4141_v22  ;;  %v19599_v30 = vld [vmem:[#allocation9_spill] sm:$0xff] }
 0x50c   : > { %v16000_v11 = vpop.xlane.xlu1 %4303  ;;  %4366 = vadd.xlane.f32.xlu0 %v4365_v39  ;;  %v4374_v20 = vsel %vm1066_vm1, %v16008_v2, 0.0  ;;  %v4146_v9 = vsub.f32 %v19599_v30, %v15737_v44  ;;  %v4129_v2 = vsub.f32 %v19602_v35, %v15729_v45  ;;  %v9063_v44 = vsel %vm1066_vm1, %v15793_v21, -inf  ;;  %v19606_v22 = vld [vmem:[#allocation17_spill] sm:$0xff] }
 0x50d   : > { %v16002_v51 = vpop.xlane.xlu0 %4300  ;;  %v4223_v24 = vmul.f32 1.442695, %v19595_v36  ;;  %v19600_v36 = vld [vmem:[#allocation42_spill] sm:$0xff] }
 0x50e   : > { %v4221_v35 = vmul.f32 1.442695, %v4129_v2 }
 0x50f   : > { %9067 = vmax.xlane.f32.xlu1 %v9066_v48  ;;  %v19598_v48 = vld [vmem:[#allocation37_spill] sm:$0xff]  ;;  %13120 = vpow2.f32 %v4223_v24 }
 0x510   : > { %v16014_v4 = vpop.xlane.xlu1 %4075  ;;  %9010 = vmax.xlane.f32.xlu0 %v9009_v57  ;;  %v4401_v57 = vsel %vm1066_vm1, %v16012_v5, 0.0  ;;  %13122 = vpow2.f32 %v4245_v12  ;;  %v9024_v5 = vsel %vm1066_vm1, %v15775_v38, -inf  ;;  %v4255_v12 = vmul.f32 1.442695, %v4146_v9 }
 0x511   : > { %v16021_v37 = vpop.xlane.xlu0 %4072  ;;  %13124 = vrcp.f32 %v15955_v63 }
 0x512   : > { %19597 = vst [vmem:[#allocation12_spill] sm:$0xff] %v16021_v37  ;;  %13126 = vrcp.f32 %v15959_v54 }
 0x513   : > { %4375 = vadd.xlane.f32.xlu1 %v4374_v20 }
 0x514   : > { %v16029_v25 = vpop.xlane.xlu1 %8935  ;;  %4402 = vadd.xlane.f32.xlu0 %v4401_v57  ;;  %v16043_v57 = vpop.eup %13116 }
 0x515   : > { %v16035_v39 = vpop.xlane.xlu0 %8932  ;;  %19604 = vst [vmem:[#allocation37_spill] sm:$0xff] %v16043_v57  ;;  %v16047_v24 = vpop.eup %13118  ;;  %v4416_v37 = vsel %vm1066_vm1, %v16043_v57, 0.0 }
 0x516   : > { %19601 = vst [vmem:[#allocation28_spill] sm:$0xff] %v16035_v39  ;;  %19605 = vst [vmem:[#allocation9_spill] sm:$0xff] %v16047_v24  ;;  %v4371_v21 = vsel %vm1066_vm1, %v16047_v24, 0.0  ;;  %v19646_v39 = vld [vmem:[#allocation58_spill] sm:$0xff] }
 0x517   : > { %9025 = vmax.xlane.f32.xlu1 %v9024_v5  ;;  %v4145_v5 = vsub.f32 %v19606_v22, %v15743_v23  ;;  %v9078_v22 = vsel %vm1066_vm1, %v15819_v8, -inf  ;;  %v19619_v23 = vld [vmem:[#allocation11_spill] sm:$0xff] }
 0x518   : > { %v4310_v30 = vpop.xlane.xlu1 %4309  ;;  %9064 = vmax.xlane.f32.xlu0 %v9063_v44  ;;  %v19607_v44 = vld [vmem:[#allocation10_spill] sm:$0xff]  ;;  %v4131_v8 = vsub.f32 %v19619_v23, %v15761_v50  ;;  %v19623_v50 = vld [vmem:[#allocation33_spill] sm:$0xff] }
 0x519   : > { %v4307_v45 = vpop.xlane.xlu0 %4306  ;;  %13128 = vrcp.f32 %v4310_v30  ;;  %v4132_v9 = vsub.f32 %v19607_v44, %v15759_v32  ;;  %v16069_v30 = vpop.eup %13120  ;;  %v4253_v32 = vmul.f32 1.442695, %v4145_v5  ;;  %v19624_v23 = vld [vmem:[#allocation50_spill] sm:$0xff] }
 0x51a   : > { %13130 = vrcp.f32 %v4307_v45  ;;  %19612 = vst [vmem:[#allocation17_spill] sm:$0xff] %v16069_v30  ;;  %v4380_v5 = vsel %vm1066_vm1, %v16069_v30, 0.0 }
 0x51b   : > { %4417 = vadd.xlane.f32.xlu1 %v4416_v37  ;;  %13132 = vpow2.f32 %v4255_v12  ;;  %v16073_v12 = vpop.eup %13122  ;;  %v4227_v45 = vmul.f32 1.442695, %v4132_v9 }
 0x51c   : > { %v16059_v63 = vpop.xlane.xlu1 %4087  ;;  %4372 = vadd.xlane.f32.xlu0 %v4371_v21  ;;  %13134 = vpow2.f32 %v4221_v35  ;;  %v9021_v21 = vsel %vm1066_vm1, %v15781_v49, -inf  ;;  %19613 = vst [vmem:[#allocation10_spill] sm:$0xff] %v16073_v12  ;;  %v4413_v9 = vsel %vm1066_vm1, %v16073_v12, 0.0  ;;  %v19632_v35 = vld [vmem:[#allocation101_spill] sm:$0xff] }
 0x51d   : > { %19608 = vst [vmem:[#allocation42_spill] sm:$0xff] %v16059_v63  ;;  %v16063_v57 = vpop.xlane.xlu0 %4084  ;;  %13136 = vpow2.f32 %v4253_v32  ;;  %v19647_v63 = vld [vmem:[#allocation22_spill] sm:$0xff] }
 0x51e   : > { %19610 = vst [vmem:[#allocation23_spill] sm:$0xff] %v16063_v57  ;;  %13138 = vpow2.f32 %v4227_v45  ;;  %v19621_v45 = vld [vmem:[#allocation45_spill] sm:$0xff]  ;;  %v4140_v2 = vsub.f32 %v19647_v63, %v15829_v55 }
 0x51f   : > { %9079 = vmax.xlane.f32.xlu1 %v9078_v22  ;;  %v13125_v22 = vpop.eup %13124  ;;  %13140 = vrcp.f32 %v16000_v11 }
 0x520   : > { %v16075_v44 = vpop.xlane.xlu1 %8947  ;;  %9022 = vmax.xlane.f32.xlu0 %v9021_v21  ;;  %v13127_v49 = vpop.eup %13126  ;;  %v19618_v21 = vld [vmem:[#allocation26_spill] sm:$0xff]  ;;  %13142 = vrcp.f32 %v16002_v51 }
 0x521   : > { %19614 = vst [vmem:[#allocation129_spill] sm:$0xff] %v16075_v44  ;;  %v16079_v37 = vpop.xlane.xlu0 %8944  ;;  %v4150_v38 = vsub.f32 %v19618_v21, %v15773_v62  ;;  %v19620_v44 = vld [vmem:[#allocation27_spill] sm:$0xff]  ;;  %v16104_v11 = vmul.f32 %v13127_v49, %v19623_v50  ;;  %v19628_v50 = vld [vmem:[#allocation16_spill] sm:$0xff] }
 0x522   : > { %19616 = vst [vmem:[#allocation130_spill] sm:$0xff] %v16079_v37  ;;  %v13671_v37 = vmov 1983009808   ;;  %v16093_v12 = vmul.f32 %v13125_v22, %v19620_v44  ;;  %v9075_v44 = vsel %vm1066_vm1, %v15821_v31, -inf }
 0x523   : > { %4381 = vadd.xlane.f32.xlu1 %v4380_v5  ;;  %v13129_v57 = vpop.eup %13128  ;;  %v4616_v32 = vunpack.c.l.s4 %v13671_v37  ;;  %v4618_v5 = vlaneseq }
 0x524   : > { %v4316_v54 = vpop.xlane.xlu1 %4315  ;;  %4414 = vadd.xlane.f32.xlu0 %v4413_v9  ;;  %v13131_v24 = vpop.eup %13130  ;;  %v16097_v62 = vmul.f32 %v13129_v57, %v19621_v45  ;;  %v9036_v9 = vsel %vm1066_vm1, %v15803_v61, -inf  ;;  %v4263_v57 = vmul.f32 1.442695, %v4150_v38  ;;  %v4225_v61 = vmul.f32 1.442695, %v4131_v8  ;;  %v19642_v45 = vld [vmem:[#allocation31_spill] sm:$0xff] }
 0x525   : > { %v4313_v30 = vpop.xlane.xlu0 %4312  ;;  %v16101_v21 = vpop.eup %13132  ;;  %v16107_v37 = vmul.f32 %v13131_v24, %v19624_v23  ;;  %13144 = vrcp.f32 %v4316_v54  ;;  %v19627_v24 = vld [vmem:[#allocation105_spill] sm:$0xff]  ;;  %v4617_v31 = vunpack.c.0.s8 %v4616_v32  ;;  %v9090_v32 = vsel %vm1066_vm1, %v15849_v14, -inf }
 0x526   : > { %19622 = vst [vmem:[#allocation26_spill] sm:$0xff] %v16101_v21  ;;  %v16111_v51 = vpop.eup %13134  ;;  %13146 = vrcp.f32 %v4313_v30  ;;  %v4136_v54 = vsub.f32 %v19628_v50, %v19627_v24  ;;  %v19633_v24 = vld [vmem:[#allocation13_spill] sm:$0xff]  ;;  %v4154_v38 = vsub.f32 %v19642_v45, %v15809_v16  ;;  %v19650_v55 = vcombine.low %v16093_v12, %v16097_v62 }
 0x527   : > { %9037 = vmax.xlane.f32.xlu1 %v9036_v9  ;;  %19625 = vst [vmem:[#allocation11_spill] sm:$0xff] %v16111_v51  ;;  %v4149_v50 = vsub.f32 %v19633_v24, %v19632_v35  ;;  %v4377_v9 = vsel %vm1066_vm1, %v16111_v51, 0.0  ;;  %13148 = vpow2.f32 %v4263_v57  ;;  %v19640_v57 = vld [vmem:[#allocation15_spill] sm:$0xff] }
 0x528   : > { %v16117_v49 = vpop.xlane.xlu1 %4099  ;;  %9076 = vmax.xlane.f32.xlu0 %v9075_v44  ;;  %v4428_v44 = vsel %vm1066_vm1, %v16101_v21, 0.0  ;;  %v4235_v8 = vmul.f32 1.442695, %v4136_v54  ;;  %v16145_v21 = vshrl.u32 %v4618_v5, 7  ;;  %13150 = vpow2.f32 %v4225_v61 }
 0x529   : > { %19626 = vst [vmem:[#allocation27_spill] sm:$0xff] %v16117_v49  ;;  %v16127_v22 = vpop.xlane.xlu0 %4096  ;;  %v16139_v49 = vpop.eup %13136  ;;  %v4261_v51 = vmul.f32 1.442695, %v4149_v50  ;;  %v4135_v54 = vsub.f32 %v19640_v57, %v15799_v46  ;;  %v19643_v46 = vld [vmem:[#allocation41_spill] sm:$0xff] }
 0x52a   : > { %19630 = vst [vmem:[#allocation45_spill] sm:$0xff] %v16127_v22  ;;  %19635 = vst [vmem:[#allocation50_spill] sm:$0xff] %v16139_v49  ;;  %v16147_v35 = vpop.eup %13138  ;;  %v19641_v22 = vld [vmem:[#allocation109_spill] sm:$0xff]  ;;  %13152 = vpow2.f32 %v4235_v8  ;;  %v16164_v50 = vsub.s32 %v4617_v31, %v16145_v21  ;;  %v4425_v16 = vsel %vm1066_vm1, %v16139_v49, 0.0  ;;  %v4271_v31 = vmul.f32 1.442695, %v4154_v38 }
 0x52b   : > { %4429 = vadd.xlane.f32.xlu1 %v4428_v44  ;;  %19638 = vst [vmem:[#allocation16_spill] sm:$0xff] %v16147_v35  ;;  %v19644_v57 = vld [vmem:[#allocation57_spill] sm:$0xff]  ;;  %13154 = vpow2.f32 %v4261_v51  ;;  %v4233_v45 = vmul.f32 1.442695, %v4135_v54  ;;  %v19648_v49 = vld [vmem:[#allocation18_spill] sm:$0xff] }
 0x52c   : > { %v16137_v23 = vpop.xlane.xlu1 %8959  ;;  %4378 = vadd.xlane.f32.xlu0 %v4377_v9  ;;  %v13141_v9 = vpop.eup %13140  ;;  %v16190_v63 = vrot.slane %v19650_v55, %v16164_v50  ;;  %v19654_v55 = vcombine.low %v16104_v11, %v16107_v37 }
 0x52d   : > { %19634 = vst [vmem:[#allocation33_spill] sm:$0xff] %v16137_v23  ;;  %v16143_v30 = vpop.xlane.xlu0 %8956  ;;  %v9033_v23 = vsel %vm1066_vm1, %v19641_v22, -inf  ;;  %v13143_v5 = vpop.eup %13142  ;;  %v4386_v22 = vsel %vm1066_vm1, %v16147_v35, 0.0  ;;  %13156 = vpow2.f32 %v4233_v45 }
 0x52e   : > { %19637 = vst [vmem:[#allocation105_spill] sm:$0xff] %v16143_v30  ;;  %13158 = vpow2.f32 %v4271_v31 }
 0x52f   : > { %9091 = vmax.xlane.f32.xlu1 %v9090_v32  ;;  %v13145_v24 = vpop.eup %13144  ;;  %v4552_v32 = vmul.f32 %v13141_v9, %v19643_v46 }
 0x530   : > { %v16159_v61 = vpop.xlane.xlu1 %4321  ;;  %9034 = vmax.xlane.f32.xlu0 %v9033_v23  ;;  %v13147_v14 = vpop.eup %13146  ;;  %v4556_v44 = vmul.f32 %v13145_v24, %v19644_v57  ;;  %v19645_v23 = vld [vmem:[#allocation44_spill] sm:$0xff] }
 0x531   : > { %v16161_v30 = vpop.xlane.xlu0 %4318  ;;  %v4551_v8 = vmul.f32 %v13143_v5, %v19645_v23  ;;  %v4555_v20 = vmul.f32 %v13147_v14, %v19646_v39  ;;  %v9048_v14 = vsel %vm1066_vm1, %v15831_v7, -inf  ;;  %v19649_v39 = vld [vmem:[#allocation47_spill] sm:$0xff]  ;;  %v9087_v5 = vsel %vm1066_vm1, %v15857_v17, -inf }
 0x532   : > { %v4765_v9 = vcombine.low %v4552_v32, %v4556_v44  ;;  %v4766_v46 = vcombine.high %v4552_v32, %v4556_v44  ;;  %v16198_v44 = vpop.eup %13148  ;;  %v19652_v32 = vcombine.high %v16093_v12, %v16097_v62  ;;  %v4243_v12 = vmul.f32 1.442695, %v4140_v2 }
 0x533   : > { %4387 = vadd.xlane.f32.xlu1 %v4386_v22  ;;  %v4629_v57 = vcombine.low %v4551_v8, %v4555_v20  ;;  %v4630_v35 = vcombine.high %v4551_v8, %v4555_v20  ;;  %19651 = vst [vmem:[#allocation101_spill] sm:$0xff] %v16198_v44  ;;  %v16211_v8 = vpop.eup %13150  ;;  %v4440_v22 = vsel %vm1066_vm1, %v16198_v44, 0.0 }
 0x534   : > { %v16176_v24 = vpop.xlane.xlu1 %8971  ;;  %4426 = vadd.xlane.f32.xlu0 %v4425_v16  ;;  %v16193_v38 = vrot.slane %v4765_v9, %v16164_v50  ;;  %v16196_v20 = vrot.slane %v4766_v46, %v16164_v50  ;;  %v16206_v16 = vrot.slane %v19652_v32, %v16164_v50  ;;  %19653 = vst [vmem:[#allocation13_spill] sm:$0xff] %v16211_v8  ;;  %v19655_v32 = vld [vmem:[#allocation29_spill] sm:$0xff]  ;;  %v16246_v46 = vpop.eup %13152  ;;  %13160 = vpow2.f32 %v4243_v12 }
 0x535   : > { %v16180_v54 = vpop.xlane.xlu0 %8917  ;;  %v16209_v23 = vrot.slane %v4629_v57, %v16164_v50  ;;  %v4153_v51 = vsub.f32 %v19655_v32, %v15813_v33  ;;  %v19657_v57 = vcombine.high %v16104_v11, %v16107_v37  ;;  %19658 = vst [vmem:[#allocation15_spill] sm:$0xff] %v16246_v46  ;;  %v4383_v33 = vsel %vm1066_vm1, %v16211_v8, 0.0  ;;  %v19665_v37 = vld [vmem:[#allocation114_spill] sm:$0xff] }
 0x536   : > { %v4398_v11 = vsel %vm1066_vm1, %v16246_v46, 0.0  ;;  %v9045_v12 = vsel %vm1066_vm1, %v19665_v37, -inf  ;;  %v19667_v32 = vsub.f32 %v15409_v15, %v15843_v58  ;;  %v19670_v58 = vsub.f32 %v15373_v56, %v15863_v3 }
 0x537   : > { %9049 = vmax.xlane.f32.xlu1 %v9048_v14  ;;  %v16220_v14 = vrot.slane %v4630_v35, %v16164_v50  ;;  %v19656_v35 = vld [vmem:[#allocation48_spill] sm:$0xff]  ;;  %v16244_v31 = vrot.slane %v19657_v57, %v16164_v50  ;;  %v16260_v57 = vpop.eup %13154  ;;  %v4269_v17 = vmul.f32 1.442695, %v4153_v51  ;;  %v19676_v37 = vsub.f32 %v15375_v6, %v15869_v10 }
 0x538   : > { %v16213_v9 = vpop.xlane.xlu1 %4327  ;;  %9088 = vmax.xlane.f32.xlu0 %v9087_v5  ;;  %v16232_v5 = vrot.slane %v19654_v55, %v16164_v50  ;;  %v19659_v55 = vld [vmem:[#allocation21_spill] sm:$0xff]  ;;  %19661 = vst [vmem:[#allocation41_spill] sm:$0xff] %v16260_v57  ;;  %v4279_v51 = vmul.f32 1.442695, %v19667_v32  ;;  %v4251_v32 = vmul.f32 1.442695, %v19670_v58  ;;  %v19680_v6 = vsub.f32 %v15427_v27, %v15899_v13 }
 0x539   : > { %v16222_v62 = vpop.xlane.xlu0 %8914  ;;  %v4139_v45 = vsub.f32 %v19659_v55, %v15833_v29  ;;  %v19662_v29 = vld [vmem:[#allocation55_spill] sm:$0xff]  ;;  %13162 = vpow2.f32 %v4269_v17  ;;  %v19671_v17 = vld [vmem:[#allocation56_spill] sm:$0xff]  ;;  %v19683_v13 = vsub.f32 %v15429_v53, %v15905_v40 }
 0x53a   : > { %v4287_v10 = vmul.f32 1.442695, %v19680_v6 }
 0x53b   : > { %4441 = vadd.xlane.f32.xlu1 %v4440_v22  ;;  %v4241_v8 = vmul.f32 1.442695, %v4139_v45  ;;  %v16276_v22 = vpop.eup %13156  ;;  %v9060_v45 = vsel %vm1066_vm1, %v15865_v41, -inf  ;;  %v19677_v41 = vld [vmem:[#allocation65_spill] sm:$0xff] }
 0x53c   : > { %v16254_v2 = vpop.xlane.xlu1 %8929  ;;  %4384 = vadd.xlane.f32.xlu0 %v4383_v33  ;;  %v19664_v33 = vld [vmem:[#allocation60_spill] sm:$0xff]  ;;  %19666 = vst [vmem:[#allocation44_spill] sm:$0xff] %v16276_v22  ;;  %v16285_v46 = vpop.eup %13158 }
 0x53d   : > { %19660 = vst [vmem:[#allocation31_spill] sm:$0xff] %v16254_v2  ;;  %v16264_v55 = vpop.xlane.xlu0 %8968  ;;  %v19668_v2 = vld [vmem:[#allocation64_spill] sm:$0xff]  ;;  %19669 = vst [vmem:[#allocation58_spill] sm:$0xff] %v16285_v46  ;;  %13164 = vpow2.f32 %v4241_v8  ;;  %v4452_v8 = vsel %vm1066_vm1, %v16285_v46, 0.0 }
 0x53e   : > { %19663 = vst [vmem:[#allocation57_spill] sm:$0xff] %v16264_v55  ;;  %13166 = vrcp.f32 %v16159_v61  ;;  %v4395_v61 = vsel %vm1066_vm1, %v16276_v22, 0.0 }
 0x53f   : > { %4399 = vadd.xlane.f32.xlu1 %v4398_v11  ;;  %v4437_v11 = vsel %vm1066_vm1, %v16260_v57, 0.0  ;;  %13168 = vpow2.f32 %v4279_v51  ;;  %v19673_v51 = vld [vmem:[#allocation117_spill] sm:$0xff] }
 0x540   : > { %v16274_v7 = vpop.xlane.xlu1 %8983  ;;  %9046 = vmax.xlane.f32.xlu0 %v9045_v12 }
 0x541   : > { %v16283_v55 = vpop.xlane.xlu0 %4324 }
 0x543   : > { %9061 = vmax.xlane.f32.xlu1 %v9060_v45  ;;  %v16301_v45 = vpop.eup %13160 }
 0x544   : > { %v4334_v15 = vpop.xlane.xlu1 %4333  ;;  %4438 = vadd.xlane.f32.xlu0 %v4437_v11  ;;  %19672 = vst [vmem:[#allocation22_spill] sm:$0xff] %v16301_v45  ;;  %v19674_v11 = vsub.f32 %v15411_v26, %v19673_v51  ;;  %v4410_v26 = vsel %vm1066_vm1, %v16301_v45, 0.0  ;;  %v19702_v45 = vld [vmem:[#allocation86_spill] sm:$0xff] }
 0x545   : > { %v16295_v12 = vpop.xlane.xlu0 %8926  ;;  %13170 = vrcp.f32 %v4334_v15  ;;  %v19675_v15 = vld [vmem:[#allocation61_spill] sm:$0xff] }
 0x546   : > { %v4277_v56 = vmul.f32 1.442695, %v19674_v11  ;;  %13172 = vpow2.f32 %v4251_v32  ;;  %v16323_v32 = vpop.eup %13162 }
 0x547   : > { %4453 = vadd.xlane.f32.xlu1 %v4452_v8  ;;  %v4249_v8 = vmul.f32 1.442695, %v19676_v37  ;;  %19678 = vst [vmem:[#allocation18_spill] sm:$0xff] %v16323_v32  ;;  %v16327_v11 = vpop.eup %13164  ;;  %v19681_v37 = vld [vmem:[#allocation71_spill] sm:$0xff] }
 0x548   : > { %v16308_v3 = vpop.xlane.xlu1 %8941  ;;  %4396 = vadd.xlane.f32.xlu0 %v4395_v61  ;;  %v9057_v61 = vsel %vm1066_vm1, %v15871_v19, -inf  ;;  %13174 = vpow2.f32 %v4277_v56  ;;  %19679 = vst [vmem:[#allocation47_spill] sm:$0xff] %v16327_v11  ;;  %v13167_v58 = vpop.eup %13166  ;;  %v9072_v56 = vsel %vm1066_vm1, %v15891_v1, -inf  ;;  %v19685_v1 = vld [vmem:[#allocation66_spill] sm:$0xff] }
 0x549   : > { %v16312_v44 = vpop.xlane.xlu0 %8980  ;;  %13176 = vrcp.f32 %v16161_v30  ;;  %v16337_v19 = vpop.eup %13168  ;;  %v4285_v30 = vmul.f32 1.442695, %v19683_v13  ;;  %v19692_v13 = vld [vmem:[#allocation69_spill] sm:$0xff] }
 0x54a   : > { %13178 = vpow2.f32 %v4249_v8  ;;  %19682 = vst [vmem:[#allocation29_spill] sm:$0xff] %v16337_v19  ;;  %v19684_v8 = vsub.f32 %v19565_v42, %v15919_v28  ;;  %v19690_v28 = vsub.f32 %v19567_v43, %v15925_v0  ;;  %v13672_v43 = vmov 1934713408  }
 0x54b   : > { %4411 = vadd.xlane.f32.xlu1 %v4410_v26 }
 0x54c   : > { %v16325_v51 = vpop.xlane.xlu1 %8995  ;;  %9058 = vmax.xlane.f32.xlu0 %v9057_v61  ;;  %v4449_v61 = vsel %vm1066_vm1, %v16323_v32, 0.0  ;;  %v4259_v26 = vmul.f32 1.442695, %v19684_v8  ;;  %v4257_v42 = vmul.f32 1.442695, %v19690_v28  ;;  %v4680_v8 = vunpack.c.l.s4 %v13672_v43 }
 0x54d   : > { %v4331_v57 = vpop.xlane.xlu0 %4330 }
 0x54e   : > { %13180 = vrcp.f32 %v4331_v57  ;;  %v16349_v57 = vmul.f32 %v13167_v58, %v19685_v1 }
 0x54f   : > { %9073 = vmax.xlane.f32.xlu1 %v9072_v56  ;;  %v13171_v27 = vpop.eup %13170  ;;  %13182 = vrcp.f32 %v16213_v9  ;;  %v19686_v56 = vld [vmem:[#allocation81_spill] sm:$0xff]  ;;  %v4464_v9 = vsel %vm1066_vm1, %v16337_v19, 0.0 }
 0x550   : > { %v4340_v6 = vpop.xlane.xlu1 %4339  ;;  %4450 = vadd.xlane.f32.xlu0 %v4449_v61  ;;  %13184 = vpow2.f32 %v4287_v10  ;;  %v16352_v46 = vmul.f32 %v13171_v27, %v19686_v56  ;;  %v16360_v10 = vpop.eup %13172  ;;  %v4407_v61 = vsel %vm1066_vm1, %v16327_v11, 0.0  ;;  %v19703_v11 = vld [vmem:[#allocation127_spill] sm:$0xff] }
 0x551   : > { %v16354_v32 = vpop.xlane.xlu0 %8938  ;;  %13186 = vrcp.f32 %v4340_v6  ;;  %19689 = vst [vmem:[#allocation21_spill] sm:$0xff] %v16360_v10  ;;  %v19697_v6 = vld [vmem:[#allocation124_spill] sm:$0xff]  ;;  %v9084_v22 = vsel %vm1066_vm1, %v19703_v11, -inf }
 0x552   : > { %19687 = vst [vmem:[#allocation48_spill] sm:$0xff] %v16354_v32  ;;  %13188 = vpow2.f32 %v4285_v30  ;;  %v16377_v56 = vpop.eup %13174  ;;  %v9069_v58 = vsel %vm1066_vm1, %v19697_v6, -inf  ;;  %v4681_v30 = vunpack.c.0.s8 %v4680_v8  ;;  %v19705_v8 = vld [vmem:[#allocation19_spill] sm:$0xff] }
 0x553   : > { %4465 = vadd.xlane.f32.xlu1 %v4464_v9  ;;  %13190 = vpow2.f32 %v4259_v26  ;;  %19694 = vst [vmem:[#allocation64_spill] sm:$0xff] %v16377_v56  ;;  %v19695_v9 = vsub.f32 %v19570_v34, %v15935_v47  ;;  %v13177_v26 = vpop.eup %13176 }
 0x554   : > { %v16371_v27 = vpop.xlane.xlu1 %8953  ;;  %4408 = vadd.xlane.f32.xlu0 %v4407_v61  ;;  %v4422_v61 = vsel %vm1066_vm1, %v16360_v10, 0.0  ;;  %13192 = vpow2.f32 %v4257_v42  ;;  %v16388_v1 = vpop.eup %13178  ;;  %v19701_v42 = vld [vmem:[#allocation67_spill] sm:$0xff] }
 0x555   : > { %19691 = vst [vmem:[#allocation55_spill] sm:$0xff] %v16371_v27  ;;  %v16375_v0 = vpop.xlane.xlu0 %8992  ;;  %v9165_v28 = vmul.f32 1.442695, %v19695_v9  ;;  %19698 = vst [vmem:[#allocation56_spill] sm:$0xff] %v16388_v1  ;;  %13194 = vrcp.f32 %v16283_v55  ;;  %v4461_v55 = vsel %vm1066_vm1, %v16377_v56, 0.0 }
 0x556   : > { %19693 = vst [vmem:[#allocation60_spill] sm:$0xff] %v16375_v0 }
 0x557   : > { %4423 = vadd.xlane.f32.xlu1 %v4422_v61  ;;  %13196 = vpow2.f32 %v9165_v28  ;;  %v16396_v61 = vmul.f32 %v13177_v26, %v19701_v42  ;;  %v19706_v28 = vsub.f32 %v19581_v52, %v19705_v8  ;;  %v19707_v42 = vld [vmem:[#allocation73_spill] sm:$0xff]  ;;  %v19712_v52 = vld [vmem:[#allocation24_spill] sm:$0xff]  ;;  %v19714_v26 = vld [vmem:[#allocation70_spill] sm:$0xff] }
 0x558   : > { %v16390_v43 = vpop.xlane.xlu1 %9007  ;;  %9070 = vmax.xlane.f32.xlu0 %v9069_v58  ;;  %v13181_v19 = vpop.eup %13180 }
 0x559   : > { %19699 = vst [vmem:[#allocation117_spill] sm:$0xff] %v16390_v43  ;;  %v4337_v9 = vpop.xlane.xlu0 %4336  ;;  %v13183_v10 = vpop.eup %13182  ;;  %v16399_v6 = vmul.f32 %v13181_v19, %v19702_v45  ;;  %v4267_v0 = vmul.f32 1.442695, %v19706_v28  ;;  %v19711_v43 = vld [vmem:[#allocation40_spill] sm:$0xff] }
 0x55a   : > { %v16403_v58 = vpop.eup %13184  ;;  %13198 = vrcp.f32 %v4337_v9  ;;  %v4560_v9 = vmul.f32 %v13183_v10, %v19707_v42  ;;  %v19713_v8 = vsub.f32 %v19711_v43, %v19712_v52  ;;  %v19717_v42 = vld [vmem:[#allocation25_spill] sm:$0xff]  ;;  %v4419_v43 = vsel %vm1066_vm1, %v16388_v1, 0.0 }
 0x55b   : > { %19704 = vst [vmem:[#allocation61_spill] sm:$0xff] %v16403_v58  ;;  %9085 = vmax.xlane.f32.xlu1 %v9084_v22  ;;  %v13187_v34 = vpop.eup %13186  ;;  %v19708_v22 = vld [vmem:[#allocation89_spill] sm:$0xff]  ;;  %v4476_v19 = vsel %vm1066_vm1, %v16403_v58, 0.0  ;;  %13200 = vpow2.f32 %v4267_v0  ;;  %v19719_v52 = vsub.f32 %v19586_v60, %v15985_v18  ;;  %v19721_v58 = vld [vmem:[#allocation32_spill] sm:$0xff]  ;;  %v19724_v0 = vcombine.low %v16349_v57, %v16352_v46 }
 0x55c   : > { %v16414_v45 = vpop.xlane.xlu1 %4345  ;;  %4462 = vadd.xlane.f32.xlu0 %v4461_v55  ;;  %v4564_v11 = vmul.f32 %v13187_v34, %v19708_v22  ;;  %v16420_v56 = vpop.eup %13188  ;;  %v9163_v28 = vmul.f32 1.442695, %v19713_v8  ;;  %v16430_v55 = vsub.s32 %v4681_v30, %v16145_v21  ;;  %v19716_v34 = vld [vmem:[#allocation20_spill] sm:$0xff]  ;;  %v19720_v21 = vld [vmem:[#allocation39_spill] sm:$0xff]  ;;  %v19725_v60 = vcombine.high %v16349_v57, %v16352_v46  ;;  %v19728_v57 = vld [vmem:[#allocation34_spill] sm:$0xff] }
 0x55d   : > { %v16418_v40 = vpop.xlane.xlu0 %8950  ;;  %19710 = vst [vmem:[#allocation71_spill] sm:$0xff] %v16420_v56  ;;  %v16432_v10 = vpop.eup %13190  ;;  %v19718_v22 = vsub.f32 %v19716_v34, %v19717_v42  ;;  %v9173_v8 = vmul.f32 1.442695, %v19719_v52  ;;  %v9081_v30 = vsel %vm1066_vm1, %v19720_v21, -inf  ;;  %v9096_v34 = vsel %vm1066_vm1, %v19721_v58, -inf }
 0x55e   : > { %19709 = vst [vmem:[#allocation65_spill] sm:$0xff] %v16418_v40  ;;  %19715 = vst [vmem:[#allocation66_spill] sm:$0xff] %v16432_v10  ;;  %v4797_v53 = vcombine.low %v4560_v9, %v4564_v11  ;;  %v4798_v27 = vcombine.high %v4560_v9, %v4564_v11  ;;  %v16448_v42 = vpop.eup %13192  ;;  %v4796_v9 = vrot.slane %v19725_v60, %v16164_v50  ;;  %13202 = vpow2.f32 %v9163_v28 }
 0x55f   : > { %v4265_v32 = vmul.f32 1.442695, %v19718_v22  ;;  %4477 = vadd.xlane.f32.xlu1 %v4476_v19  ;;  %19722 = vst [vmem:[#allocation81_spill] sm:$0xff] %v16448_v42  ;;  %v4789_v19 = vrot.slane %v19724_v0, %v16164_v50  ;;  %v4434_v21 = vsel %vm1066_vm1, %v16432_v10, 0.0  ;;  %v4473_v58 = vsel %vm1066_vm1, %v16420_v56, 0.0  ;;  %v13195_v0 = vpop.eup %13194 }
 0x560   : > { %v16442_v47 = vpop.xlane.xlu1 %8965  ;;  %4420 = vadd.xlane.f32.xlu0 %v4419_v43  ;;  %v4805_v18 = vrot.slane %v4797_v53, %v16164_v50  ;;  %v4812_v22 = vrot.slane %v4798_v27, %v16164_v50  ;;  %v19729_v27 = vld [vmem:[#allocation38_spill] sm:$0xff]  ;;  %v4431_v10 = vsel %vm1066_vm1, %v16448_v42, 0.0 }
 0x561   : > { %v16450_v11 = vpop.xlane.xlu0 %9004  ;;  %13204 = vpow2.f32 %v4265_v32  ;;  %v16468_v46 = vpop.eup %13196  ;;  %v19730_v28 = vsub.f32 %v19728_v57, %v19729_v27  ;;  %v19731_v32 = vsub.f32 %v19596_v59, %v16014_v4  ;;  %v19737_v59 = vld [vmem:[#allocation94_spill] sm:$0xff] }
 0x562   : > { %19723 = vst [vmem:[#allocation69_spill] sm:$0xff] %v16450_v11  ;;  %v4845_v53 = vcombine.low %v4789_v19, %v4805_v18  ;;  %v4846_v1 = vcombine.high %v4789_v19, %v4805_v18  ;;  %v4861_v40 = vcombine.low %v4796_v9, %v4812_v22  ;;  %19727 = vst [vmem:[#allocation67_spill] sm:$0xff] %v16468_v46  ;;  %13206 = vpow2.f32 %v9173_v8  ;;  %v19759_v43 = vld [vmem:[#allocation54_spill] sm:$0xff] }
 0x563   : > { %4435 = vadd.xlane.f32.xlu1 %v4434_v21  ;;  %v9171_v60 = vmul.f32 1.442695, %v19730_v28  ;;  %v4862_v56 = vcombine.high %v4796_v9, %v4812_v22  ;;  %v4275_v21 = vmul.f32 1.442695, %v19731_v32  ;;  %v19732_v8 = vcombine.low %v16190_v63, %v16193_v38  ;;  %v19736_v22 = vld [vmem:[#allocation78_spill] sm:$0xff] }
 0x564   : > { %v16473_v52 = vpop.xlane.xlu1 %9019  ;;  %9082 = vmax.xlane.f32.xlu0 %v9081_v30  ;;  %v13199_v11 = vpop.eup %13198  ;;  %v16489_v57 = vrot.slane %v4845_v53, %v16430_v55  ;;  %v19735_v30 = vcombine.high %v16190_v63, %v16193_v38  ;;  %v4559_v4 = vmul.f32 %v13195_v0, %v19736_v22  ;;  %v16500_v28 = vrot.slane %v4846_v1, %v16430_v55 }
 0x565   : > { %v16480_v19 = vpop.xlane.xlu0 %4342  ;;  %v16486_v18 = vrot.slane %v19732_v8, %v16430_v55  ;;  %v4563_v27 = vmul.f32 %v13199_v11, %v19737_v59  ;;  %v16503_v32 = vrot.slane %v4861_v40, %v16430_v55  ;;  %v9294_v53 = vsel %vm1066_vm1, %v16468_v46, 0.0  ;;  %v19749_v8 = vld [vmem:[#allocation12_spill] sm:$0xff] }
 0x566   : > { %19734 = vst [vmem:[#allocation19_spill] sm:$0xff] %v16489_v57  ;;  %v16495_v9 = vrot.slane %v19735_v30, %v16430_v55  ;;  %v19738_v63 = vcombine.low %v16206_v16, %v16196_v20  ;;  %v16516_v11 = vrot.slane %v4862_v56, %v16430_v55  ;;  %v19740_v30 = vcombine.high %v16206_v16, %v16196_v20  ;;  %v19753_v20 = vld [vmem:[#allocation36_spill] sm:$0xff] }
 0x567   : > { %19733 = vst [vmem:[#allocation86_spill] sm:$0xff] %v16486_v18  ;;  %9097 = vmax.xlane.f32.xlu1 %v9096_v34  ;;  %v4661_v1 = vcombine.low %v4559_v4, %v4563_v27  ;;  %v4662_v0 = vcombine.high %v4559_v4, %v4563_v27  ;;  %13208 = vpow2.f32 %v4275_v21  ;;  %v19742_v59 = vsub.f32 %v19600_v36, %v16029_v25  ;;  %v16537_v27 = vpop.eup %13200  ;;  %v19748_v4 = vld [vmem:[#allocation59_spill] sm:$0xff] }
 0x568   : > { %v16513_v38 = vrot.slane %v19738_v63, %v16430_v55  ;;  %19739 = vst [vmem:[#allocation73_spill] sm:$0xff] %v16516_v11  ;;  %v16518_v40 = vpop.xlane.xlu1 %4351  ;;  %4474 = vadd.xlane.f32.xlu0 %v4473_v58  ;;  %v16526_v22 = vrot.slane %v19740_v30, %v16430_v55  ;;  %19744 = vst [vmem:[#allocation24_spill] sm:$0xff] %v16537_v27  ;;  %v19746_v36 = vcombine.low %v16396_v61, %v16399_v6  ;;  %v16555_v16 = vpop.eup %13202 }
 0x569   : > { %v9181_v56 = vmul.f32 1.442695, %v19742_v59  ;;  %v16531_v63 = vpop.xlane.xlu0 %8962  ;;  %v4669_v59 = vrot.slane %v4661_v1, %v16164_v50  ;;  %v4676_v58 = vrot.slane %v4662_v0, %v16164_v50  ;;  %19747 = vst [vmem:[#allocation70_spill] sm:$0xff] %v16555_v16  ;;  %v9093_v25 = vsel %vm1066_vm1, %v19748_v4, -inf }
 0x56a   : > { %19741 = vst [vmem:[#allocation89_spill] sm:$0xff] %v16526_v22  ;;  %19743 = vst [vmem:[#allocation40_spill] sm:$0xff] %v16531_v63  ;;  %v4653_v21 = vrot.slane %v19746_v36, %v16164_v50  ;;  %13210 = vpow2.f32 %v9171_v60  ;;  %v19750_v36 = vsub.f32 %v19598_v48, %v19749_v8  ;;  %v19751_v1 = vcombine.high %v16396_v61, %v16399_v6  ;;  %v19754_v63 = vld [vmem:[#allocation42_spill] sm:$0xff] }
 0x56b   : > { %9295 = vadd.xlane.f32.xlu1 %v9294_v53  ;;  %v16568_v30 = vpop.eup %13204  ;;  %13212 = vpow2.f32 %v9181_v56  ;;  %v19755_v34 = vsub.f32 %v19753_v20, %v19754_v63  ;;  %v4446_v6 = vsel %vm1066_vm1, %v16537_v27, 0.0  ;;  %v19760_v56 = vld [vmem:[#allocation28_spill] sm:$0xff] }
 0x56c   : > { %v4273_v53 = vmul.f32 1.442695, %v19750_v36  ;;  %v16562_v46 = vpop.xlane.xlu1 %8977  ;;  %4432 = vadd.xlane.f32.xlu0 %v4431_v10  ;;  %v4660_v0 = vrot.slane %v19751_v1, %v16164_v50  ;;  %19752 = vst [vmem:[#allocation20_spill] sm:$0xff] %v16568_v30  ;;  %v4709_v42 = vcombine.low %v4653_v21, %v4669_v59  ;;  %v4710_v48 = vcombine.high %v4653_v21, %v4669_v59  ;;  %v16575_v8 = vpop.eup %13206 }
 0x56d   : > { %v4283_v4 = vmul.f32 1.442695, %v19755_v34  ;;  %v16573_v60 = vpop.xlane.xlu0 %9016  ;;  %19757 = vst [vmem:[#allocation34_spill] sm:$0xff] %v16575_v8  ;;  %v19761_v11 = vsub.f32 %v19759_v43, %v19760_v56  ;;  %v19762_v34 = vcombine.low %v16232_v5, %v16209_v23  ;;  %v19765_v43 = vcombine.high %v16232_v5, %v16209_v23 }
 0x56e   : > { %19756 = vst [vmem:[#allocation25_spill] sm:$0xff] %v16573_v60  ;;  %v4725_v61 = vcombine.low %v4660_v0, %v4676_v58  ;;  %v4726_v1 = vcombine.high %v4660_v0, %v4676_v58  ;;  %v16591_v20 = vrot.slane %v4709_v42, %v16430_v55  ;;  %v16594_v21 = vrot.slane %v4710_v48, %v16430_v55  ;;  %v19768_v42 = vld [vmem:[#allocation49_spill] sm:$0xff] }
 0x56f   : > { %v9179_v22 = vmul.f32 1.442695, %v19761_v11  ;;  %4447 = vadd.xlane.f32.xlu1 %v4446_v6  ;;  %v16588_v63 = vrot.slane %v19762_v34, %v16430_v55  ;;  %13214 = vpow2.f32 %v4273_v53  ;;  %v16602_v11 = vrot.slane %v19765_v43, %v16430_v55  ;;  %v19769_v48 = vld [vmem:[#allocation129_spill] sm:$0xff] }
 0x570   : > { %19764 = vst [vmem:[#allocation78_spill] sm:$0xff] %v16591_v20  ;;  %v16596_v59 = vpop.xlane.xlu1 %9031  ;;  %9094 = vmax.xlane.f32.xlu0 %v9093_v25  ;;  %v16605_v58 = vrot.slane %v4725_v61, %v16430_v55  ;;  %v16608_v0 = vrot.slane %v4726_v1, %v16430_v55  ;;  %13216 = vpow2.f32 %v4283_v4  ;;  %v19770_v6 = vsub.f32 %v19768_v42, %v19769_v48 }
 0x571   : > { %19763 = vst [vmem:[#allocation38_spill] sm:$0xff] %v16588_v63  ;;  %v16613_v56 = vpop.xlane.xlu0 %4348  ;;  %v19771_v23 = vcombine.low %v16244_v31, %v16220_v14  ;;  %v9306_v61 = vsel %vm1066_vm1, %v16575_v8, 0.0  ;;  %v19773_v34 = vcombine.high %v16244_v31, %v16220_v14  ;;  %v16635_v42 = vpop.eup %13208  ;;  %13218 = vpow2.f32 %v9179_v22  ;;  %v19790_v8 = vld [vmem:[#allocation53_spill] sm:$0xff] }
 0x572   : > { %19766 = vst [vmem:[#allocation94_spill] sm:$0xff] %v16605_v58  ;;  %19767 = vst [vmem:[#allocation12_spill] sm:$0xff] %v16608_v0  ;;  %v9189_v53 = vmul.f32 1.442695, %v19770_v6  ;;  %v9291_v48 = vsel %vm1066_vm1, %v16555_v16, 0.0  ;;  %13220 = vrcp.f32 %v16414_v45  ;;  %v19780_v45 = vld [vmem:[#allocation30_spill] sm:$0xff] }
 0x573   : > { %v16621_v5 = vrot.slane %v19771_v23, %v16430_v55  ;;  %v16633_v43 = vrot.slane %v19773_v34, %v16430_v55  ;;  %9307 = vadd.xlane.f32.xlu1 %v9306_v61  ;;  %v19775_v61 = vld [vmem:[#allocation46_spill] sm:$0xff]  ;;  %v19776_v34 = vld [vmem:[#allocation27_spill] sm:$0xff]  ;;  %v4458_v22 = vsel %vm1066_vm1, %v16635_v42, 0.0 }
 0x574   : > { %v4358_v36 = vpop.xlane.xlu1 %4357  ;;  %9292 = vadd.xlane.f32.xlu0 %v9291_v48  ;;  %13222 = vpow2.f32 %v9189_v53  ;;  %v19777_v6 = vsub.f32 %v19775_v61, %v19776_v34  ;;  %v16655_v23 = vpop.eup %13210  ;;  %v19781_v48 = vld [vmem:[#allocation23_spill] sm:$0xff] }
 0x575   : > { %19772 = vst [vmem:[#allocation36_spill] sm:$0xff] %v16621_v5  ;;  %19774 = vst [vmem:[#allocation42_spill] sm:$0xff] %v16633_v43  ;;  %v16653_v4 = vpop.xlane.xlu0 %8974  ;;  %v19782_v25 = vsub.f32 %v19780_v45, %v19781_v48  ;;  %13224 = vrcp.f32 %v4358_v36  ;;  %v16664_v53 = vpop.eup %13212  ;;  %v19785_v34 = vld [vmem:[#allocation51_spill] sm:$0xff]  ;;  %v19786_v45 = vld [vmem:[#allocation33_spill] sm:$0xff] }
 0x576   : > { %v4291_v1 = vmul.f32 1.442695, %v19777_v6  ;;  %19778 = vst [vmem:[#allocation54_spill] sm:$0xff] %v16653_v4  ;;  %19779 = vst [vmem:[#allocation28_spill] sm:$0xff] %v16655_v23  ;;  %v4443_v6 = vsel %vm1066_vm1, %v16568_v30, 0.0  ;;  %v19791_v4 = vld [vmem:[#allocation130_spill] sm:$0xff] }
 0x577   : > { %v4281_v16 = vmul.f32 1.442695, %v19782_v25  ;;  %19784 = vst [vmem:[#allocation49_spill] sm:$0xff] %v16664_v53  ;;  %4459 = vadd.xlane.f32.xlu1 %v4458_v22  ;;  %v19787_v25 = vsub.f32 %v19785_v34, %v19786_v45  ;;  %v19792_v14 = vsub.f32 %v19790_v8, %v19791_v4  ;;  %v19795_v0 = vld [vmem:[#allocation43_spill] sm:$0xff]  ;;  %v19796_v34 = vld [vmem:[#allocation45_spill] sm:$0xff]  ;;  %v19799_v4 = vsub.f32 %v19649_v39, %v16180_v54 }
 0x578   : > { %v16668_v61 = vpop.xlane.xlu1 %8989  ;;  %4444 = vadd.xlane.f32.xlu0 %v4443_v6  ;;  %13226 = vpow2.f32 %v4291_v1  ;;  %v9318_v6 = vsel %vm1066_vm1, %v16664_v53, 0.0  ;;  %v19797_v45 = vsub.f32 %v19795_v0, %v19796_v34  ;;  %v19802_v39 = vld [vmem:[#allocation97_spill] sm:$0xff] }
 0x579   : > { %v9197_v36 = vmul.f32 1.442695, %v19787_v25  ;;  %v16673_v48 = vpop.xlane.xlu0 %9028  ;;  %v16675_v31 = vpop.eup %13214  ;;  %13228 = vpow2.f32 %v4281_v16  ;;  %v9187_v22 = vmul.f32 1.442695, %v19792_v14  ;;  %v9303_v16 = vsel %vm1066_vm1, %v16655_v23, 0.0 }
 0x57a   : > { %19788 = vst [vmem:[#allocation129_spill] sm:$0xff] %v16673_v48  ;;  %19789 = vst [vmem:[#allocation46_spill] sm:$0xff] %v16675_v31  ;;  %v16684_v1 = vpop.eup %13216  ;;  %v4289_v25 = vmul.f32 1.442695, %v19797_v45  ;;  %v9169_v14 = vmul.f32 1.442695, %v19799_v4 }
 0x57b   : > { %19794 = vst [vmem:[#allocation27_spill] sm:$0xff] %v16684_v1  ;;  %9319 = vadd.xlane.f32.xlu1 %v9318_v6  ;;  %v16693_v8 = vpop.eup %13218  ;;  %13230 = vpow2.f32 %v9197_v36  ;;  %v4470_v0 = vsel %vm1066_vm1, %v16684_v1, 0.0  ;;  %v4455_v34 = vsel %vm1066_vm1, %v16675_v31, 0.0  ;;  %v19801_v36 = vsub.f32 %v19648_v49, %v16176_v24  ;;  %v19803_v4 = vld [vmem:[#allocation115_spill] sm:$0xff]  ;;  %v19806_v48 = vld [vmem:[#allocation105_spill] sm:$0xff] }
 0x57c   : > { %v16691_v43 = vpop.xlane.xlu1 %9043  ;;  %9304 = vadd.xlane.f32.xlu0 %v9303_v16  ;;  %19798 = vst [vmem:[#allocation30_spill] sm:$0xff] %v16693_v8  ;;  %v13221_v53 = vpop.eup %13220  ;;  %13232 = vpow2.f32 %v9187_v22 }
 0x57d   : > { %v4355_v10 = vpop.xlane.xlu0 %4354  ;;  %13234 = vpow2.f32 %v4289_v25  ;;  %v9205_v16 = vmul.f32 1.442695, %v19801_v36  ;;  %v16709_v22 = vmul.f32 %v13221_v53, %v19802_v39  ;;  %v19811_v36 = vld [vmem:[#allocation31_spill] sm:$0xff] }
 0x57e   : > { %v16700_v6 = vpop.eup %13222  ;;  %13236 = vrcp.f32 %v16518_v40 }
 0x57f   : > { %19800 = vst [vmem:[#allocation23_spill] sm:$0xff] %v16700_v6  ;;  %4471 = vadd.xlane.f32.xlu1 %v4470_v0  ;;  %v13225_v45 = vpop.eup %13224  ;;  %13238 = vpow2.f32 %v9169_v14  ;;  %v19805_v0 = vld [vmem:[#allocation52_spill] sm:$0xff]  ;;  %v9330_v49 = vsel %vm1066_vm1, %v16700_v6, 0.0  ;;  %v9315_v14 = vsel %vm1066_vm1, %v16693_v8, 0.0 }
 0x580   : > { %v4364_v54 = vpop.xlane.xlu1 %4363  ;;  %4456 = vadd.xlane.f32.xlu0 %v4455_v34  ;;  %v16712_v23 = vmul.f32 %v13225_v45, %v19803_v4  ;;  %v19807_v60 = vsub.f32 %v19805_v0, %v19806_v48 }
 0x581   : > { %v16714_v25 = vpop.xlane.xlu0 %8986  ;;  %13240 = vrcp.f32 %v4364_v54  ;;  %v19812_v54 = vsub.f32 %v19662_v29, %v19811_v36 }
 0x582   : > { %19804 = vst [vmem:[#allocation51_spill] sm:$0xff] %v16714_v25  ;;  %v9195_v30 = vmul.f32 1.442695, %v19807_v60  ;;  %v16721_v24 = vpop.eup %13226  ;;  %v5021_v40 = vcombine.low %v16709_v22, %v16712_v23  ;;  %v5022_v53 = vcombine.high %v16709_v22, %v16712_v23  ;;  %13242 = vpow2.f32 %v9205_v16  ;;  %v19815_v16 = vld [vmem:[#allocation57_spill] sm:$0xff] }
 0x583   : > { %19808 = vst [vmem:[#allocation33_spill] sm:$0xff] %v16721_v24  ;;  %9331 = vadd.xlane.f32.xlu1 %v9330_v49  ;;  %v16729_v34 = vpop.eup %13228  ;;  %v19810_v60 = vsub.f32 %v19656_v35, %v16222_v62  ;;  %v9177_v39 = vmul.f32 1.442695, %v19812_v54  ;;  %13244 = vrcp.f32 %v4355_v10  ;;  %v4482_v22 = vsel %vm1066_vm1, %v16721_v24, 0.0 }
 0x584   : > { %19809 = vst [vmem:[#allocation53_spill] sm:$0xff] %v16729_v34  ;;  %v16734_v45 = vpop.xlane.xlu1 %9001  ;;  %9316 = vadd.xlane.f32.xlu0 %v9315_v14  ;;  %13246 = vpow2.f32 %v9195_v30  ;;  %v19816_v62 = vsub.f32 %v19664_v33, %v19815_v16  ;;  %v4467_v29 = vsel %vm1066_vm1, %v16729_v34, 0.0  ;;  %v19819_v49 = vsub.f32 %v19668_v2, %v16274_v7  ;;  %v19823_v16 = vld [vmem:[#allocation122_spill] sm:$0xff] }
 0x585   : > { %v9167_v48 = vmul.f32 1.442695, %v19810_v60  ;;  %v16739_v23 = vpop.xlane.xlu0 %9040  ;;  %v16743_v4 = vpop.eup %13230  ;;  %13248 = vrcp.f32 %v16480_v19 }
 0x586   : > { %19813 = vst [vmem:[#allocation130_spill] sm:$0xff] %v16739_v23  ;;  %19814 = vst [vmem:[#allocation43_spill] sm:$0xff] %v16743_v4  ;;  %v9203_v35 = vmul.f32 1.442695, %v19816_v62  ;;  %v16751_v0 = vpop.eup %13232  ;;  %v9213_v33 = vmul.f32 1.442695, %v19819_v49  ;;  %v19826_v49 = vsub.f32 %v19671_v17, %v16295_v12 }
 0x587   : > { %4483 = vadd.xlane.f32.xlu1 %v4482_v22  ;;  %19817 = vst [vmem:[#allocation45_spill] sm:$0xff] %v16751_v0  ;;  %13250 = vpow2.f32 %v9167_v48  ;;  %v16755_v30 = vpop.eup %13234  ;;  %v9342_v19 = vsel %vm1066_vm1, %v16743_v4, 0.0  ;;  %v9327_v48 = vsel %vm1066_vm1, %v16751_v0, 0.0  ;;  %v19839_v0 = vld [vmem:[#allocation48_spill] sm:$0xff] }
 0x588   : > { %v16753_v10 = vpop.xlane.xlu1 %4393  ;;  %4468 = vadd.xlane.f32.xlu0 %v4467_v29  ;;  %19818 = vst [vmem:[#allocation97_spill] sm:$0xff] %v16755_v30  ;;  %13252 = vpow2.f32 %v9177_v39  ;;  %v13237_v60 = vpop.eup %13236  ;;  %v19821_v39 = vsub.f32 %v19675_v15, %v16308_v3 }
 0x589   : > { %v4361_v14 = vpop.xlane.xlu0 %4360  ;;  %13254 = vrcp.f32 %v16613_v56  ;;  %v16763_v36 = vpop.eup %13238  ;;  %v19822_v56 = vld [vmem:[#allocation107_spill] sm:$0xff] }
 0x58a   : > { %19820 = vst [vmem:[#allocation115_spill] sm:$0xff] %v16763_v36  ;;  %13256 = vpow2.f32 %v9203_v35  ;;  %v9185_v7 = vmul.f32 1.442695, %v19821_v39  ;;  %v4568_v22 = vmul.f32 %v13237_v60, %v19822_v56  ;;  %v9300_v3 = vsel %vm1066_vm1, %v16763_v36, 0.0  ;;  %v19843_v36 = vld [vmem:[#allocation126_spill] sm:$0xff] }
 0x58b   : > { %9343 = vadd.xlane.f32.xlu1 %v9342_v19  ;;  %v13241_v54 = vpop.eup %13240  ;;  %13258 = vrcp.f32 %v4361_v14  ;;  %v9175_v19 = vmul.f32 1.442695, %v19826_v49 }
 0x58c   : > { %v16770_v2 = vpop.xlane.xlu1 %9055  ;;  %9328 = vadd.xlane.f32.xlu0 %v9327_v48  ;;  %13260 = vpow2.f32 %v9213_v33  ;;  %v4572_v62 = vmul.f32 %v13241_v54, %v19823_v16  ;;  %v16776_v35 = vpop.eup %13242  ;;  %v4479_v33 = vsel %vm1066_vm1, %v16755_v30, 0.0  ;;  %v19828_v48 = vsub.f32 %v19681_v37, %v16325_v51  ;;  %v19945_v30 = vld [vmem:[#allocation26_spill] sm:$0xff] }
 0x58d   : > { %v16774_v29 = vpop.xlane.xlu0 %8998  ;;  %19825 = vst [vmem:[#allocation105_spill] sm:$0xff] %v16776_v35  ;;  %v13245_v15 = vpop.eup %13244  ;;  %13262 = vpow2.f32 %v9185_v7  ;;  %v16795_v16 = vrot.slane %v5021_v40, %v16164_v50  ;;  %v19830_v37 = vsub.f32 %v19677_v41, %v16312_v44  ;;  %v9354_v40 = vsel %vm1066_vm1, %v16776_v35, 0.0  ;;  %v19838_v41 = vld [vmem:[#allocation63_spill] sm:$0xff] }
 0x58e   : > { %19824 = vst [vmem:[#allocation52_spill] sm:$0xff] %v16774_v29  ;;  %v5037_v14 = vcombine.low %v4568_v22, %v4572_v62  ;;  %v5038_v39 = vcombine.high %v4568_v22, %v4572_v62  ;;  %v16785_v60 = vpop.eup %13246  ;;  %v9221_v54 = vmul.f32 1.442695, %v19828_v48  ;;  %v16801_v62 = vrot.slane %v5022_v53, %v16164_v50 }
 0x58f   : > { %9301 = vadd.xlane.f32.xlu1 %v9300_v3  ;;  %19827 = vst [vmem:[#allocation31_spill] sm:$0xff] %v16785_v60  ;;  %v13249_v12 = vpop.eup %13248  ;;  %13264 = vpow2.f32 %v9175_v19  ;;  %v9211_v49 = vmul.f32 1.442695, %v19830_v37  ;;  %v19831_v3 = vld [vmem:[#allocation121_spill] sm:$0xff]  ;;  %v9339_v53 = vsel %vm1066_vm1, %v16785_v60, 0.0  ;;  %v19840_v23 = vsub.f32 %v19838_v41, %v19839_v0  ;;  %v19847_v41 = vld [vmem:[#allocation74_spill] sm:$0xff] }
 0x590   : > { %v16790_v56 = vpop.xlane.xlu1 %4369  ;;  %4480 = vadd.xlane.f32.xlu0 %v4479_v33  ;;  %v16798_v22 = vrot.slane %v5037_v14, %v16164_v50  ;;  %v16804_v7 = vrot.slane %v5038_v39, %v16164_v50  ;;  %v4569_v33 = vmul.f32 %v13245_v15, %v19831_v3  ;;  %v19833_v15 = vld [vmem:[#allocation55_spill] sm:$0xff]  ;;  %13266 = vpow2.f32 %v9221_v54 }
 0x591   : > { %v16792_v17 = vpop.xlane.xlu0 %4390  ;;  %v16806_v51 = vpop.eup %13250  ;;  %v19834_v48 = vsub.f32 %v19692_v13, %v19833_v15  ;;  %v19835_v3 = vld [vmem:[#allocation103_spill] sm:$0xff]  ;;  %13268 = vpow2.f32 %v9211_v49  ;;  %v9183_v13 = vmul.f32 1.442695, %v19840_v23  ;;  %v19844_v49 = vld [vmem:[#allocation76_spill] sm:$0xff]  ;;  %v9118_v6 = vsub.f32 %v19847_v41, %v16442_v47 }
 0x592   : > { %19829 = vst [vmem:[#allocation57_spill] sm:$0xff] %v16806_v51  ;;  %v16814_v14 = vpop.eup %13252  ;;  %v4565_v8 = vmul.f32 %v13249_v12, %v19835_v3  ;;  %v9297_v54 = vsel %vm1066_vm1, %v16806_v51, 0.0 }
 0x593   : > { %19832 = vst [vmem:[#allocation107_spill] sm:$0xff] %v16814_v14  ;;  %9355 = vadd.xlane.f32.xlu1 %v9354_v40  ;;  %v13255_v44 = vpop.eup %13254  ;;  %v9193_v37 = vmul.f32 1.442695, %v19834_v48  ;;  %v9312_v12 = vsel %vm1066_vm1, %v16814_v14, 0.0 }
 0x594   : > { %v16828_v40 = vpop.xlane.xlu1 %9013  ;;  %9340 = vadd.xlane.f32.xlu0 %v9339_v53  ;;  %v16832_v39 = vpop.eup %13256  ;;  %v4885_v15 = vcombine.low %v4565_v8, %v4569_v33  ;;  %v19842_v53 = vld [vmem:[#allocation112_spill] sm:$0xff]  ;;  %v4886_v60 = vcombine.high %v4565_v8, %v4569_v33 }
 0x595   : > { %19836 = vst [vmem:[#allocation122_spill] sm:$0xff] %v16832_v39  ;;  %v16834_v19 = vpop.xlane.xlu0 %9052  ;;  %v13259_v29 = vpop.eup %13258  ;;  %v4567_v3 = vmul.f32 %v13255_v44, %v19842_v53  ;;  %13270 = vpow2.f32 %v9193_v37  ;;  %v19849_v37 = vld [vmem:[#allocation72_spill] sm:$0xff] }
 0x596   : > { %19837 = vst [vmem:[#allocation121_spill] sm:$0xff] %v16834_v19  ;;  %v16841_v48 = vpop.eup %13260  ;;  %v4571_v25 = vmul.f32 %v13259_v29, %v19843_v36  ;;  %v19845_v19 = vld [vmem:[#allocation117_spill] sm:$0xff]  ;;  %13272 = vrcp.f32 %v16753_v10  ;;  %v9351_v36 = vsel %vm1066_vm1, %v16832_v39, 0.0  ;;  %v16871_v10 = vrot.slane %v4886_v60, %v16164_v50 }
 0x597   : > { %19841 = vst [vmem:[#allocation55_spill] sm:$0xff] %v16841_v48  ;;  %9313 = vadd.xlane.f32.xlu1 %v9312_v12  ;;  %v19846_v0 = vsub.f32 %v19844_v49, %v19845_v19  ;;  %v16857_v29 = vpop.eup %13262  ;;  %13274 = vpow2.f32 %v9183_v13  ;;  %v19850_v19 = vld [vmem:[#allocation60_spill] sm:$0xff]  ;;  %v9366_v47 = vsel %vm1066_vm1, %v16841_v48, 0.0  ;;  %v19853_v49 = vld [vmem:[#allocation65_spill] sm:$0xff] }
 0x598   : > { %v4406_v14 = vpop.xlane.xlu1 %4405  ;;  %9298 = vadd.xlane.f32.xlu0 %v9297_v54  ;;  %v4901_v44 = vcombine.low %v4567_v3, %v4571_v25  ;;  %v4902_v8 = vcombine.high %v4567_v3, %v4571_v25  ;;  %19848 = vst [vmem:[#allocation103_spill] sm:$0xff] %v16857_v29  ;;  %v19851_v12 = vsub.f32 %v19849_v37, %v19850_v19  ;;  %v19935_v48 = vld [vmem:[#allocation77_spill] sm:$0xff] }
 0x599   : > { %v9229_v23 = vmul.f32 1.442695, %v19846_v0  ;;  %v16853_v33 = vpop.xlane.xlu0 %4366  ;;  %v16865_v54 = vrot.slane %v4885_v15, %v16164_v50  ;;  %13276 = vrcp.f32 %v4406_v14  ;;  %v16876_v3 = vpop.eup %13264  ;;  %v19854_v0 = vsub.f32 %v19714_v26, %v19853_v49  ;;  %v19855_v14 = vld [vmem:[#allocation82_spill] sm:$0xff]  ;;  %v19859_v49 = vld [vmem:[#allocation79_spill] sm:$0xff] }
 0x59a   : > { %v9219_v53 = vmul.f32 1.442695, %v19851_v12  ;;  %v16868_v25 = vrot.slane %v4901_v44, %v16164_v50  ;;  %v16874_v13 = vrot.slane %v4902_v8, %v16164_v50  ;;  %19852 = vst [vmem:[#allocation63_spill] sm:$0xff] %v16876_v3  ;;  %v9201_v15 = vmul.f32 1.442695, %v9118_v6 }
 0x59b   : > { %9367 = vadd.xlane.f32.xlu1 %v9366_v47  ;;  %13278 = vpow2.f32 %v9229_v23  ;;  %v9191_v41 = vmul.f32 1.442695, %v19854_v0  ;;  %v9136_v44 = vsub.f32 %v19855_v14, %v16473_v52  ;;  %v9324_v26 = vsel %vm1066_vm1, %v16857_v29, 0.0 }
 0x59c   : > { %v16881_v37 = vpop.xlane.xlu1 %9067  ;;  %9352 = vadd.xlane.f32.xlu0 %v9351_v36  ;;  %13280 = vpow2.f32 %v9219_v53  ;;  %v16897_v36 = vpop.eup %13266  ;;  %v9309_v52 = vsel %vm1066_vm1, %v16876_v3, 0.0  ;;  %v9122_v0 = vsub.f32 %v19859_v49, %v16562_v46 }
 0x59d   : > { %v16885_v19 = vpop.xlane.xlu0 %9010  ;;  %19857 = vst [vmem:[#allocation112_spill] sm:$0xff] %v16897_v36  ;;  %v16901_v12 = vpop.eup %13268  ;;  %13282 = vpow2.f32 %v9191_v41  ;;  %v9237_v53 = vmul.f32 1.442695, %v9136_v44 }
 0x59e   : > { %19856 = vst [vmem:[#allocation48_spill] sm:$0xff] %v16885_v19  ;;  %19858 = vst [vmem:[#allocation126_spill] sm:$0xff] %v16901_v12  ;;  %13284 = vpow2.f32 %v9201_v15  ;;  %v9363_v41 = vsel %vm1066_vm1, %v16901_v12, 0.0  ;;  %v9209_v44 = vmul.f32 1.442695, %v9122_v0  ;;  %v19866_v12 = vld [vmem:[#allocation35_spill] sm:$0xff] }
 0x59f   : > { %9325 = vadd.xlane.f32.xlu1 %v9324_v26  ;;  %v16907_v23 = vpop.eup %13270  ;;  %13286 = vrcp.f32 %v16792_v17  ;;  %v9378_v26 = vsel %vm1066_vm1, %v16897_v36, 0.0 }
 0x5a0   : > { %v16903_v47 = vpop.xlane.xlu1 %4375  ;;  %9310 = vadd.xlane.f32.xlu0 %v9309_v52  ;;  %19860 = vst [vmem:[#allocation76_spill] sm:$0xff] %v16907_v23  ;;  %v13273_v6 = vpop.eup %13272  ;;  %v19862_v52 = vld [vmem:[#allocation87_spill] sm:$0xff] }
 0x5a1   : > { %v4403_v14 = vpop.xlane.xlu0 %4402  ;;  %v16914_v8 = vpop.eup %13274  ;;  %v9140_v17 = vsub.f32 %v19862_v52, %v16596_v59 }
 0x5a2   : > { %19861 = vst [vmem:[#allocation117_spill] sm:$0xff] %v16914_v8  ;;  %13288 = vrcp.f32 %v4403_v14  ;;  %v9336_v14 = vsel %vm1066_vm1, %v16907_v23, 0.0 }
 0x5a3   : > { %9379 = vadd.xlane.f32.xlu1 %v9378_v26  ;;  %v13277_v46 = vpop.eup %13276  ;;  %13290 = vpow2.f32 %v9237_v53  ;;  %v19865_v26 = vld [vmem:[#allocation125_spill] sm:$0xff]  ;;  %v9321_v53 = vsel %vm1066_vm1, %v16914_v8, 0.0 }
 0x5a4   : > { %v16916_v15 = vpop.xlane.xlu1 %9025  ;;  %9364 = vadd.xlane.f32.xlu0 %v9363_v41  ;;  %v16925_v39 = vmul.f32 %v13273_v6, %v19865_v26  ;;  %v16928_v19 = vmul.f32 %v13277_v46, %v19866_v12  ;;  %13292 = vpow2.f32 %v9209_v44  ;;  %v9245_v12 = vmul.f32 1.442695, %v9140_v17  ;;  %v19868_v46 = vld [vmem:[#allocation84_spill] sm:$0xff] }
 0x5a5   : > { %v16920_v49 = vpop.xlane.xlu0 %9064  ;;  %v16922_v60 = vpop.eup %13278  ;;  %v9126_v52 = vsub.f32 %v19868_v46, %v16668_v61  ;;  %v19871_v61 = vld [vmem:[#allocation92_spill] sm:$0xff] }
 0x5a6   : > { %19863 = vst [vmem:[#allocation74_spill] sm:$0xff] %v16920_v49  ;;  %19864 = vst [vmem:[#allocation72_spill] sm:$0xff] %v16922_v60  ;;  %v16934_v0 = vpop.eup %13280  ;;  %v9390_v49 = vsel %vm1066_vm1, %v16922_v60, 0.0  ;;  %13294 = vpow2.f32 %v9245_v12  ;;  %v9144_v17 = vsub.f32 %v19871_v61, %v16691_v43 }
 0x5a7   : > { %9337 = vadd.xlane.f32.xlu1 %v9336_v14  ;;  %19867 = vst [vmem:[#allocation60_spill] sm:$0xff] %v16934_v0  ;;  %v16946_v14 = vpop.eup %13282  ;;  %v9375_v41 = vsel %vm1066_vm1, %v16934_v0, 0.0  ;;  %v9217_v44 = vmul.f32 1.442695, %v9126_v52  ;;  %v19875_v0 = vld [vmem:[#allocation62_spill] sm:$0xff] }
 0x5a8   : > { %v16940_v6 = vpop.xlane.xlu1 %4417  ;;  %9322 = vadd.xlane.f32.xlu0 %v9321_v53  ;;  %19869 = vst [vmem:[#allocation65_spill] sm:$0xff] %v16946_v14  ;;  %v16950_v8 = vpop.eup %13284  ;;  %v9253_v43 = vmul.f32 1.442695, %v9144_v17  ;;  %v19876_v52 = vld [vmem:[#allocation90_spill] sm:$0xff] }
 0x5a9   : > { %v16944_v26 = vpop.xlane.xlu0 %4372  ;;  %19870 = vst [vmem:[#allocation82_spill] sm:$0xff] %v16950_v8  ;;  %v13287_v59 = vpop.eup %13286  ;;  %v9348_v60 = vsel %vm1066_vm1, %v16950_v8, 0.0  ;;  %13296 = vpow2.f32 %v9217_v44  ;;  %v9130_v61 = vsub.f32 %v19876_v52, %v16734_v45  ;;  %v19881_v52 = vld [vmem:[#allocation95_spill] sm:$0xff] }
 0x5aa   : > { %13298 = vpow2.f32 %v9253_v43 }
 0x5ab   : > { %9391 = vadd.xlane.f32.xlu1 %v9390_v49  ;;  %v19874_v49 = vld [vmem:[#allocation8_spill] sm:$0xff]  ;;  %v9225_v44 = vmul.f32 1.442695, %v9130_v61 }
 0x5ac   : > { %v16954_v53 = vpop.xlane.xlu1 %9079  ;;  %9376 = vadd.xlane.f32.xlu0 %v9375_v41  ;;  %v13289_v51 = vpop.eup %13288  ;;  %v16965_v23 = vmul.f32 %v13287_v59, %v19874_v49  ;;  %v9333_v41 = vsel %vm1066_vm1, %v16946_v14, 0.0 }
 0x5ad   : > { %v16958_v46 = vpop.xlane.xlu0 %9022  ;;  %v16962_v3 = vpop.eup %13290  ;;  %v16968_v29 = vmul.f32 %v13289_v51, %v19875_v0  ;;  %13300 = vpow2.f32 %v9225_v44 }
 0x5ae   : > { %19872 = vst [vmem:[#allocation79_spill] sm:$0xff] %v16958_v46  ;;  %19873 = vst [vmem:[#allocation87_spill] sm:$0xff] %v16962_v3  ;;  %v9402_v59 = vsel %vm1066_vm1, %v16962_v3, 0.0  ;;  %v16978_v51 = vpop.eup %13292  ;;  %v9134_v46 = vsub.f32 %v19881_v52, %v16828_v40 }
 0x5af   : > { %9349 = vadd.xlane.f32.xlu1 %v9348_v60  ;;  %19877 = vst [vmem:[#allocation125_spill] sm:$0xff] %v16978_v51  ;;  %v19878_v60 = vld [vmem:[#allocation98_spill] sm:$0xff]  ;;  %v9360_v45 = vsel %vm1066_vm1, %v16978_v51, 0.0 }
 0x5b0   : > { %v4382_v12 = vpop.xlane.xlu1 %4381  ;;  %9334 = vadd.xlane.f32.xlu0 %v9333_v41  ;;  %v9148_v0 = vsub.f32 %v19878_v60, %v16770_v2  ;;  %v16988_v41 = vpop.eup %13294 }
 0x5b1   : > { %v4415_v8 = vpop.xlane.xlu0 %4414  ;;  %19880 = vst [vmem:[#allocation84_spill] sm:$0xff] %v16988_v41  ;;  %v9414_v61 = vsel %vm1066_vm1, %v16988_v41, 0.0 }
 0x5b2   : > { %v9261_v3 = vmul.f32 1.442695, %v9148_v0 }
 0x5b3   : > { %9403 = vadd.xlane.f32.xlu1 %v9402_v59  ;;  %v19882_v59 = vld [vmem:[#allocation104_spill] sm:$0xff]  ;;  %v16998_v60 = vpop.eup %13296 }
 0x5b4   : > { %v16982_v49 = vpop.xlane.xlu1 %9037  ;;  %v9152_v14 = vsub.f32 %v19882_v59, %v16881_v37  ;;  %19883 = vst [vmem:[#allocation92_spill] sm:$0xff] %v16998_v60  ;;  %13302 = vpow2.f32 %v9261_v3  ;;  %v9372_v37 = vsel %vm1066_vm1, %v16998_v60, 0.0  ;;  %v17007_v0 = vpop.eup %13298 }
 0x5b5   : > { %v16984_v17 = vpop.xlane.xlu0 %9076  ;;  %13304 = vrcp.f32 %v4382_v12  ;;  %19885 = vst [vmem:[#allocation62_spill] sm:$0xff] %v17007_v0  ;;  %v9426_v12 = vsel %vm1066_vm1, %v17007_v0, 0.0 }
 0x5b6   : > { %19879 = vst [vmem:[#allocation35_spill] sm:$0xff] %v16984_v17  ;;  %v9233_v17 = vmul.f32 1.442695, %v9134_v46  ;;  %v9269_v51 = vmul.f32 1.442695, %v9152_v14  ;;  %13306 = vrcp.f32 %v16790_v56  ;;  %v19886_v46 = vld [vmem:[#allocation100_spill] sm:$0xff] }
 0x5b7   : > { %9361 = vadd.xlane.f32.xlu1 %v9360_v45  ;;  %v9138_v44 = vsub.f32 %v19886_v46, %v16916_v15  ;;  %v17014_v56 = vpop.eup %13300 }
 0x5b8   : > { %v16994_v2 = vpop.xlane.xlu1 %4429  ;;  %13308 = vpow2.f32 %v9233_v17  ;;  %19887 = vst [vmem:[#allocation90_spill] sm:$0xff] %v17014_v56 }
 0x5b9   : > { %v4379_v43 = vpop.xlane.xlu0 %4378  ;;  %13310 = vpow2.f32 %v9269_v51  ;;  %v9241_v45 = vmul.f32 1.442695, %v9138_v44  ;;  %v19888_v51 = vld [vmem:[#allocation110_spill] sm:$0xff]  ;;  %v19893_v44 = vld [vmem:[#allocation108_spill] sm:$0xff] }
 0x5ba   : > { %13312 = vrcp.f32 %v16903_v47  ;;  %v9156_v52 = vsub.f32 %v19888_v51, %v16954_v53  ;;  %v9384_v47 = vsel %vm1066_vm1, %v17014_v56, 0.0  ;;  %v19895_v51 = vld [vmem:[#allocation17_spill] sm:$0xff]  ;;  %v19900_v56 = vld [vmem:[#allocation14_spill] sm:$0xff] }
 0x5bb   : > { %9415 = vadd.xlane.f32.xlu1 %v9414_v61  ;;  %13314 = vrcp.f32 %v4415_v8  ;;  %v19891_v8 = vcombine.high %v16486_v18, %v16489_v57 }
 0x5bc   : > { %v17000_v36 = vpop.xlane.xlu1 %9091 }
 0x5bd   : > { %v17002_v40 = vpop.xlane.xlu0 %9034 }
 0x5be   : > { %19884 = vst [vmem:[#allocation8_spill] sm:$0xff] %v17002_v40  ;;  %v17022_v59 = vpop.eup %13302 }
 0x5bf   : > { %9373 = vadd.xlane.f32.xlu1 %v9372_v37  ;;  %19890 = vst [vmem:[#allocation95_spill] sm:$0xff] %v17022_v59  ;;  %v13305_v61 = vpop.eup %13304 }
 0x5c0   : > { %v4388_v3 = vpop.xlane.xlu1 %4387  ;;  %v13307_v37 = vpop.eup %13306 }
 0x5c1   : > { %v4427_v14 = vpop.xlane.xlu0 %4426  ;;  %13316 = vrcp.f32 %v4388_v3  ;;  %v9142_v3 = vsub.f32 %v19893_v44, %v16982_v49 }
 0x5c2   : > { %13318 = vrcp.f32 %v4427_v14  ;;  %v17033_v46 = vpop.eup %13308 }
 0x5c3   : > { %9427 = vadd.xlane.f32.xlu1 %v9426_v12  ;;  %13320 = vrcp.f32 %v4379_v43  ;;  %19892 = vst [vmem:[#allocation104_spill] sm:$0xff] %v17033_v46  ;;  %v9277_v43 = vmul.f32 1.442695, %v9156_v52  ;;  %v17038_v12 = vpop.eup %13310  ;;  %v19897_v52 = vld [vmem:[#allocation68_spill] sm:$0xff] }
 0x5c4   : > { %v17016_v17 = vpop.xlane.xlu1 %9049  ;;  %13322 = vrcp.f32 %v16853_v33  ;;  %19894 = vst [vmem:[#allocation100_spill] sm:$0xff] %v17038_v12  ;;  %v19896_v33 = vcombine.low %v16495_v9, %v16500_v28  ;;  %v4574_v41 = vmul.f32 %v13307_v37, %v19897_v52  ;;  %v19901_v37 = vld [vmem:[#allocation16_spill] sm:$0xff]  ;;  %v19904_v52 = vld [vmem:[#allocation50_spill] sm:$0xff] }
 0x5c5   : > { %v17020_v15 = vpop.xlane.xlu0 %9088  ;;  %13324 = vpow2.f32 %v9241_v45  ;;  %v9438_v45 = vsel %vm1066_vm1, %v17022_v59, 0.0 }
 0x5c6   : > { %19889 = vst [vmem:[#allocation98_spill] sm:$0xff] %v17020_v15  ;;  %5817 = vrot.lane.b32.xlu0 %v19891_v8, %s13673_s17  ;;  %13326 = vrcp.f32 %v16944_v26  ;;  %v4578_v8 = vmul.f32 %v13305_v61, %v19895_v51  ;;  %v9249_v61 = vmul.f32 1.442695, %v9142_v3  ;;  %v19898_v51 = vld [vmem:[#allocation116_spill] sm:$0xff]  ;;  %v19903_v3 = vld [vmem:[#allocation10_spill] sm:$0xff] }
 0x5c7   : > { %9385 = vadd.xlane.f32.xlu1 %v9384_v47  ;;  %v13313_v47 = vpop.eup %13312  ;;  %v9160_v0 = vsub.f32 %v19898_v51, %v17000_v36 }
 0x5c8   : > { %v17031_v53 = vpop.xlane.xlu1 %4441  ;;  %v13315_v26 = vpop.eup %13314  ;;  %v5053_v60 = vcombine.low %v4574_v41, %v4578_v8  ;;  %v5054_v40 = vcombine.high %v4574_v41, %v4578_v8  ;;  %v9450_v41 = vsel %vm1066_vm1, %v17038_v12, 0.0 }
 0x5c9   : > { %v4385_v14 = vpop.xlane.xlu0 %4384  ;;  %v17063_v36 = vmul.f32 %v13315_v26, %v19903_v3 }
 0x5ca   : > { %5833 = vrot.lane.b32.xlu0 %v19896_v33, %s13674_s25  ;;  %13328 = vrcp.f32 %v4385_v14  ;;  %v9396_v33 = vsel %vm1066_vm1, %v17033_v46, 0.0 }
 0x5cb   : > { %9439 = vadd.xlane.f32.xlu1 %v9438_v45  ;;  %v13317_v44 = vpop.eup %13316  ;;  %13330 = vpow2.f32 %v9277_v43  ;;  %v4576_v45 = vmul.f32 %v13313_v47, %v19900_v56  ;;  %v19902_v43 = vcombine.high %v16495_v9, %v16500_v28  ;;  %v19906_v28 = vld [vmem:[#allocation113_spill] sm:$0xff]  ;;  %v19914_v9 = vld [vmem:[#allocation128_spill] sm:$0xff] }
 0x5cc   : > { %v17048_v49 = vpop.xlane.xlu1 %4399  ;;  %v13319_v59 = vpop.eup %13318  ;;  %v4580_v14 = vmul.f32 %v13317_v44, %v19901_v37  ;;  %13332 = vpow2.f32 %v9249_v61  ;;  %v9285_v44 = vmul.f32 1.442695, %v9160_v0  ;;  %v9146_v26 = vsub.f32 %v19906_v28, %v17016_v17  ;;  %v19909_v17 = vld [vmem:[#allocation11_spill] sm:$0xff] }
 0x5cd   : > { %v17052_v15 = vpop.xlane.xlu0 %9046  ;;  %v17066_v51 = vmul.f32 %v13319_v59, %v19904_v52  ;;  %v13321_v46 = vpop.eup %13320  ;;  %v5061_v37 = vrot.slane %v5053_v60, %v16164_v50  ;;  %v5068_v61 = vrot.slane %v5054_v40, %v16164_v50  ;;  %v19910_v52 = vcombine.low %v16795_v16, %v16798_v22 }
 0x5ce   : > { %19899 = vst [vmem:[#allocation110_spill] sm:$0xff] %v17052_v15  ;;  %5849 = vrot.lane.b32.xlu0 %v19902_v43, %s13675_s26  ;;  %v5069_v15 = vcombine.low %v4576_v45, %v4580_v14  ;;  %v5070_v56 = vcombine.high %v4576_v45, %v4580_v14  ;;  %v13323_v8 = vpop.eup %13322  ;;  %v19908_v45 = vcombine.low %v16513_v38, %v16503_v32  ;;  %13334 = vpow2.f32 %v9285_v44 }
 0x5cf   : > { %9397 = vadd.xlane.f32.xlu1 %v9396_v33  ;;  %v17078_v33 = vpop.eup %13324  ;;  %v17089_v3 = vmul.f32 %v13321_v46, %v19909_v17  ;;  %v17095_v28 = vrot.slane %v19910_v52, %v16430_v55  ;;  %v19912_v60 = vcombine.high %v16795_v16, %v16798_v22  ;;  %v19913_v46 = vcombine.low %v16801_v62, %v16804_v7 }
 0x5d0   : > { %v17068_v47 = vpop.xlane.xlu1 %9061  ;;  %19907 = vst [vmem:[#allocation17_spill] sm:$0xff] %v17078_v33  ;;  %v5077_v0 = vrot.slane %v5069_v15, %v16164_v50  ;;  %v5084_v14 = vrot.slane %v5070_v56, %v16164_v50  ;;  %v13327_v43 = vpop.eup %13326  ;;  %v17112_v52 = vmul.f32 %v13323_v8, %v19914_v9  ;;  %v9257_v12 = vmul.f32 1.442695, %v9146_v26  ;;  %v19919_v26 = vld [vmem:[#allocation13_spill] sm:$0xff] }
 0x5d1   : > { %19905 = vst [vmem:[#allocation108_spill] sm:$0xff] %v17068_v47  ;;  %v17076_v59 = vpop.xlane.xlu0 %4438  ;;  %19911 = vst [vmem:[#allocation68_spill] sm:$0xff] %v17095_v28  ;;  %v17101_v15 = vrot.slane %v19912_v60, %v16430_v55  ;;  %v19915_v60 = vld [vmem:[#allocation9_spill] sm:$0xff]  ;;  %v19939_v47 = vld [vmem:[#allocation47_spill] sm:$0xff] }
 0x5d2   : > { %5865 = vrot.lane.b32.xlu0 %v19908_v45, %s13676_s28  ;;  %v5117_v56 = vcombine.low %v5061_v37, %v5077_v0  ;;  %v5118_v45 = vcombine.high %v5061_v37, %v5077_v0  ;;  %v5133_v17 = vcombine.low %v5068_v61, %v5084_v14  ;;  %v5134_v16 = vcombine.high %v5068_v61, %v5084_v14 }
 0x5d3   : > { %9451 = vadd.xlane.f32.xlu1 %v9450_v41  ;;  %v17109_v41 = vrot.slane %v19913_v46, %v16430_v55  ;;  %v17115_v18 = vmul.f32 %v13327_v43, %v19915_v60  ;;  %v19916_v37 = vcombine.high %v16513_v38, %v16503_v32  ;;  %v9408_v0 = vsel %vm1066_vm1, %v17078_v33, 0.0 }
 0x5d4   : > { %v17103_v40 = vpop.xlane.xlu1 %4453  ;;  %v13329_v22 = vpop.eup %13328  ;;  %v17124_v46 = vrot.slane %v5117_v56, %v16430_v55  ;;  %v17127_v8 = vrot.slane %v5118_v45, %v16430_v55  ;;  %v4917_v9 = vcombine.low %v17112_v52, %v17089_v3  ;;  %v17137_v32 = vrot.slane %v5133_v17, %v16430_v55 }
 0x5d5   : > { %v4397_v57 = vpop.xlane.xlu0 %4396  ;;  %v17129_v44 = vpop.eup %13330  ;;  %v17134_v61 = vmul.f32 %v13329_v22, %v19919_v26  ;;  %v17140_v38 = vrot.slane %v5134_v16, %v16430_v55  ;;  %v19920_v22 = vcombine.high %v16801_v62, %v16804_v7  ;;  %13336 = vpow2.f32 %v9257_v12  ;;  %v19923_v26 = vld [vmem:[#allocation73_spill] sm:$0xff] }
 0x5d6   : > { %5881 = vrot.lane.b32.xlu0 %v19916_v37, %s13670_s13  ;;  %19917 = vst [vmem:[#allocation116_spill] sm:$0xff] %v17124_v46  ;;  %19918 = vst [vmem:[#allocation14_spill] sm:$0xff] %v17129_v44  ;;  %v9462_v45 = vsel %vm1066_vm1, %v17129_v44, 0.0  ;;  %v17175_v37 = vrot.slane %v4917_v9, %v16164_v50  ;;  %13338 = vrcp.f32 %v4397_v57 }
 0x5d7   : > { %9409 = vadd.xlane.f32.xlu1 %v9408_v0  ;;  %v17152_v60 = vrot.slane %v19920_v22, %v16430_v55  ;;  %v4933_v17 = vcombine.low %v17115_v18, %v17134_v61  ;;  %v19922_v0 = vld [vmem:[#allocation89_spill] sm:$0xff]  ;;  %v17172_v22 = vpop.eup %13332 }
 0x5d8   : > { %v4412_v14 = vpop.xlane.xlu1 %4411  ;;  %v19924_v56 = vcombine.low %v19922_v0, %v19923_v26  ;;  %19925 = vst [vmem:[#allocation10_spill] sm:$0xff] %v17172_v22  ;;  %v9420_v9 = vsel %vm1066_vm1, %v17172_v22, 0.0 }
 0x5d9   : > { %v17156_v16 = vpop.xlane.xlu0 %9058 }
 0x5da   : > { %19921 = vst [vmem:[#allocation16_spill] sm:$0xff] %v17156_v16  ;;  %5897 = vrot.lane.b32.xlu0 %v19924_v56, %s13669_s11  ;;  %v17178_v56 = vrot.slane %v4933_v17, %v16164_v50  ;;  %v17194_v17 = vpop.eup %13334 }
 0x5db   : > { %9463 = vadd.xlane.f32.xlu1 %v9462_v45  ;;  %v19927_v45 = vcombine.high %v19922_v0, %v19923_v26  ;;  %19928 = vst [vmem:[#allocation113_spill] sm:$0xff] %v17194_v17  ;;  %v9474_v16 = vsel %vm1066_vm1, %v17194_v17, 0.0  ;;  %v19930_v0 = vcombine.low %v16865_v54, %v16868_v25 }
 0x5dc   : > { %v17180_v43 = vpop.xlane.xlu1 %9073  ;;  %v4981_v7 = vcombine.low %v17175_v37, %v17178_v56 }
 0x5dd   : > { %19926 = vst [vmem:[#allocation50_spill] sm:$0xff] %v17180_v43  ;;  %v17184_v44 = vpop.xlane.xlu0 %4450  ;;  %v17207_v26 = vrot.slane %v19930_v0, %v16430_v55 }
 0x5de   : > { %5913 = vrot.lane.b32.xlu0 %v19927_v45, %s13668_s10  ;;  %v17199_v62 = vrot.slane %v4981_v7, %v16430_v55 }
 0x5df   : > { %9421 = vadd.xlane.f32.xlu1 %v9420_v9  ;;  %19931 = vst [vmem:[#allocation128_spill] sm:$0xff] %v17207_v26  ;;  %v17209_v45 = vpop.eup %13336 }
 0x5e0   : > { %v17196_v12 = vpop.xlane.xlu1 %4465  ;;  %19929 = vst [vmem:[#allocation11_spill] sm:$0xff] %v17199_v62  ;;  %19932 = vst [vmem:[#allocation9_spill] sm:$0xff] %v17209_v45  ;;  %v9432_v57 = vsel %vm1066_vm1, %v17209_v45, 0.0  ;;  %v13339_v7 = vpop.eup %13338 }
 0x5e1   : > { %v4409_v33 = vpop.xlane.xlu0 %4408 }
 0x5e2   : > { %13340 = vrcp.f32 %v4409_v33  ;;  %v19936_v33 = vld [vmem:[#allocation69_spill] sm:$0xff] }
 0x5e3   : > { %9475 = vadd.xlane.f32.xlu1 %v9474_v16  ;;  %13342 = vrcp.f32 %v4412_v14  ;;  %v19937_v16 = vsub.f32 %v19935_v48, %v19936_v33 }
 0x5e4   : > { %v4424_v9 = vpop.xlane.xlu1 %4423  ;;  %13344 = vrcp.f32 %v17048_v49  ;;  %v19938_v49 = vld [vmem:[#allocation44_spill] sm:$0xff] }
 0x5e5   : > { %v17213_v22 = vpop.xlane.xlu0 %9070  ;;  %v9227_v43 = vmul.f32 1.442695, %v19937_v16  ;;  %13346 = vrcp.f32 %v16994_v2 }
 0x5e6   : > { %19933 = vst [vmem:[#allocation13_spill] sm:$0xff] %v17213_v22  ;;  %13348 = vrcp.f32 %v16940_v6 }
 0x5e7   : > { %9433 = vadd.xlane.f32.xlu1 %v9432_v57  ;;  %13350 = vpow2.f32 %v9227_v43  ;;  %v5157_v57 = vcombine.low %v16965_v23, %v16968_v29 }
 0x5e8   : > { %v17217_v17 = vpop.xlane.xlu1 %9085  ;;  %13352 = vrcp.f32 %v4424_v9 }
 0x5e9   : > { %19934 = vst [vmem:[#allocation89_spill] sm:$0xff] %v17217_v17  ;;  %v17220_v0 = vpop.xlane.xlu0 %4462  ;;  %v4583_v17 = vmul.f32 %v13339_v7, %v19938_v49  ;;  %v17236_v6 = vrot.slane %v5157_v57, %v16164_v50  ;;  %v19941_v7 = vcombine.high %v16965_v23, %v16968_v29  ;;  %v19947_v57 = vcombine.high %v17095_v28, %v17124_v46 }
 0x5ea   : > { %v19951_v46 = vcombine.low %v17101_v15, %v17127_v8 }
 0x5eb   : > { %v17245_v49 = vrot.slane %v19941_v7, %v16164_v50 }
 0x5ec   : > { %v17227_v22 = vpop.xlane.xlu1 %4477  ;;  %v13341_v45 = vpop.eup %13340 }
 0x5ed   : > { %v4421_v14 = vpop.xlane.xlu0 %4420  ;;  %v4587_v35 = vmul.f32 %v13341_v45, %v19939_v47  ;;  %v13343_v2 = vpop.eup %13342  ;;  %v19942_v45 = vld [vmem:[#allocation22_spill] sm:$0xff] }
 0x5ee   : > { %v4588_v9 = vmul.f32 %v13343_v2, %v19942_v45 }
 0x5ef   : > { %v5173_v48 = vcombine.low %v4583_v17, %v4587_v35  ;;  %v5174_v33 = vcombine.high %v4583_v17, %v4587_v35  ;;  %v13345_v35 = vpop.eup %13344 }
 0x5f0   : > { %v4436_v16 = vpop.xlane.xlu1 %4435  ;;  %v13347_v17 = vpop.eup %13346 }
 0x5f1   : > { %13354 = vrcp.f32 %v4436_v16  ;;  %v17233_v4 = vpop.xlane.xlu0 %9082  ;;  %v17239_v43 = vrot.slane %v5173_v48, %v16164_v50  ;;  %v17248_v47 = vrot.slane %v5174_v33, %v16164_v50  ;;  %v13349_v23 = vpop.eup %13348  ;;  %v19944_v33 = vld [vmem:[#allocation15_spill] sm:$0xff]  ;;  %v4594_v34 = vmul.f32 %v13347_v17, %v19945_v30  ;;  %v19949_v30 = vld [vmem:[#allocation21_spill] sm:$0xff] }
 0x5f2   : > { %19940 = vst [vmem:[#allocation73_spill] sm:$0xff] %v17233_v4  ;;  %v4584_v7 = vmul.f32 %v13345_v35, %v19944_v33  ;;  %v17263_v31 = vpop.eup %13350  ;;  %13356 = vrcp.f32 %v4421_v14  ;;  %v19950_v33 = vld [vmem:[#allocation66_spill] sm:$0xff] }
 0x5f3   : > { %19946 = vst [vmem:[#allocation69_spill] sm:$0xff] %v17263_v31  ;;  %v13353_v48 = vpop.eup %13352 }
 0x5f4   : > { %v17251_v16 = vpop.xlane.xlu1 %9097  ;;  %v5309_v2 = vcombine.low %v4584_v7, %v4588_v9  ;;  %v5310_v1 = vcombine.high %v4584_v7, %v4588_v9  ;;  %v4592_v17 = vmul.f32 %v13353_v48, %v19949_v30  ;;  %v19954_v30 = vcombine.high %v16925_v39, %v16928_v19 }
 0x5f5   : > { %19943 = vst [vmem:[#allocation77_spill] sm:$0xff] %v17251_v16  ;;  %v17257_v4 = vpop.xlane.xlu0 %4474  ;;  %v19948_v16 = vld [vmem:[#allocation37_spill] sm:$0xff] }
 0x5f6   : > { %v4590_v24 = vmul.f32 %v13349_v23, %v19948_v16  ;;  %v9387_v16 = vsel %vm1066_vm1, %v17263_v31, 0.0  ;;  %v5317_v14 = vrot.slane %v5309_v2, %v16164_v50  ;;  %v5324_v48 = vrot.slane %v5310_v1, %v16164_v50 }
 0x5f7   : > { %v19953_v23 = vcombine.low %v16925_v39, %v16928_v19  ;;  %v5308_v2 = vrot.slane %v19954_v30, %v16164_v50  ;;  %v19955_v1 = vcombine.high %v17101_v15, %v17127_v8  ;;  %v19957_v15 = vcombine.low %v17109_v41, %v17137_v32 }
 0x5f8   : > { %v17265_v45 = vpop.xlane.xlu1 %9295  ;;  %5819 = vrot.lane.b32.xlu1 %v19947_v57, %s13673_s17  ;;  %v5325_v35 = vcombine.low %v4590_v24, %v4594_v34  ;;  %v5326_v9 = vcombine.high %v4590_v24, %v4594_v34 }
 0x5f9   : > { %v4433_v29 = vpop.xlane.xlu0 %4432  ;;  %v5301_v7 = vrot.slane %v19953_v23, %v16164_v50  ;;  %v5373_v23 = vcombine.low %v5308_v2, %v5324_v48 }
 0x5fa   : > { %13358 = vrcp.f32 %v4433_v29 }
 0x5fb   : > { %v13355_v58 = vpop.eup %13354  ;;  %v5357_v34 = vcombine.low %v5301_v7, %v5317_v14  ;;  %13360 = vrcp.f32 %v17031_v53 }
 0x5fc   : > { %v4596_v5 = vmul.f32 %v13355_v58, %v19950_v33  ;;  %v17274_v27 = vpop.xlane.xlu1 %4447  ;;  %5835 = vrot.lane.b32.xlu1 %v19951_v46, %s13674_s25  ;;  %v5333_v46 = vrot.slane %v5325_v35, %v16164_v50  ;;  %v5340_v35 = vrot.slane %v5326_v9, %v16164_v50  ;;  %v13357_v30 = vpop.eup %13356  ;;  %v5374_v9 = vcombine.high %v5308_v2, %v5324_v48 }
 0x5fd   : > { %9388 = vadd.xlane.f32.xlu0 %v9387_v16  ;;  %v17283_v57 = vpop.xlane.xlu0 %9094  ;;  %v17311_v8 = vrot.slane %v5357_v34, %v16430_v55  ;;  %13362 = vrcp.f32 %v17103_v40 }
 0x5fe   : > { %19952 = vst [vmem:[#allocation44_spill] sm:$0xff] %v17283_v57  ;;  %v5341_v29 = vcombine.low %v4592_v17, %v4596_v5  ;;  %v5342_v58 = vcombine.high %v4592_v17, %v4596_v5  ;;  %v5358_v17 = vcombine.high %v5301_v7, %v5317_v14  ;;  %v19965_v57 = vld [vmem:[#allocation81_spill] sm:$0xff]  ;;  %13364 = vrcp.f32 %v17227_v22 }
 0x5ff   : > { %19958 = vst [vmem:[#allocation22_spill] sm:$0xff] %v17311_v8  ;;  %v19976_v22 = vcombine.high %v17152_v60, %v17140_v38 }
 0x600   : > { %v17295_v24 = vpop.xlane.xlu1 %9307  ;;  %5851 = vrot.lane.b32.xlu1 %v19955_v1, %s13675_s26  ;;  %v5349_v5 = vrot.slane %v5341_v29, %v16164_v50  ;;  %v5356_v33 = vrot.slane %v5342_v58, %v16164_v50  ;;  %v17317_v29 = vrot.slane %v5358_v17, %v16430_v55  ;;  %v17325_v1 = vrot.slane %v5373_v23, %v16430_v55 }
 0x601   : > { %v17303_v16 = vpop.xlane.xlu0 %9292 }
 0x602   : > { %19956 = vst [vmem:[#allocation47_spill] sm:$0xff] %v17303_v16  ;;  %v5389_v39 = vcombine.low %v5333_v46, %v5349_v5  ;;  %v5390_v19 = vcombine.high %v5333_v46, %v5349_v5  ;;  %v5405_v31 = vcombine.low %v5340_v35, %v5356_v33  ;;  %19960 = vst [vmem:[#allocation26_spill] sm:$0xff] %v17317_v29 }
 0x603   : > { %19962 = vst [vmem:[#allocation21_spill] sm:$0xff] %v17325_v1  ;;  %v5406_v34 = vcombine.high %v5340_v35, %v5356_v33 }
 0x604   : > { %v4460_v28 = vpop.xlane.xlu1 %4459  ;;  %5867 = vrot.lane.b32.xlu1 %v19957_v15, %s13676_s28  ;;  %v17314_v14 = vrot.slane %v5389_v39, %v16430_v55  ;;  %v13359_v58 = vpop.eup %13358  ;;  %v17322_v46 = vrot.slane %v5390_v19, %v16430_v55  ;;  %v17328_v5 = vrot.slane %v5405_v31, %v16430_v55  ;;  %v5189_v39 = vcombine.low %v17063_v36, %v17066_v51  ;;  %v19964_v15 = vld [vmem:[#allocation56_spill] sm:$0xff] }
 0x605   : > { %v17319_v7 = vpop.xlane.xlu0 %4444  ;;  %v4591_v17 = vmul.f32 %v13357_v30, %v19964_v15  ;;  %v4595_v48 = vmul.f32 %v13359_v58, %v19965_v57  ;;  %v19966_v57 = vcombine.high %v17109_v41, %v17137_v32  ;;  %v17353_v15 = vrot.slane %v5374_v9, %v16430_v55 }
 0x606   : > { %19959 = vst [vmem:[#allocation15_spill] sm:$0xff] %v17314_v14  ;;  %19961 = vst [vmem:[#allocation37_spill] sm:$0xff] %v17322_v46  ;;  %v17356_v23 = vrot.slane %v5406_v34, %v16430_v55  ;;  %v19969_v41 = vcombine.high %v17063_v36, %v17066_v51  ;;  %v4934_v9 = vcombine.high %v17115_v18, %v17134_v61  ;;  %13366 = vrcp.f32 %v4460_v28  ;;  %v20036_v46 = vld [vmem:[#allocation123_spill] sm:$0xff] }
 0x607   : > { %19963 = vst [vmem:[#allocation66_spill] sm:$0xff] %v17328_v5  ;;  %v5205_v33 = vcombine.low %v4591_v17, %v4595_v48  ;;  %v5206_v35 = vcombine.high %v4591_v17, %v4595_v48  ;;  %19967 = vst [vmem:[#allocation56_spill] sm:$0xff] %v17353_v15  ;;  %v5197_v48 = vrot.slane %v5189_v39, %v16164_v50  ;;  %13368 = vrcp.f32 %v17196_v12  ;;  %v20031_v5 = vld [vmem:[#allocation119_spill] sm:$0xff] }
 0x608   : > { %v17342_v16 = vpop.xlane.xlu1 %9319  ;;  %5883 = vrot.lane.b32.xlu1 %v19966_v57, %s13670_s13  ;;  %19968 = vst [vmem:[#allocation81_spill] sm:$0xff] %v17356_v23  ;;  %v5204_v32 = vrot.slane %v19969_v41, %v16164_v50  ;;  %v4982_v36 = vcombine.high %v17175_v37, %v17178_v56  ;;  %v4918_v41 = vcombine.high %v17112_v52, %v17089_v3  ;;  %13370 = vrcp.f32 %v17274_v27  ;;  %v20037_v14 = vld [vmem:[#allocation107_spill] sm:$0xff] }
 0x609   : > { %v17350_v58 = vpop.xlane.xlu0 %9304  ;;  %v5213_v31 = vrot.slane %v5205_v33, %v16164_v50  ;;  %v5220_v57 = vrot.slane %v5206_v35, %v16164_v50  ;;  %v19970_v33 = vcombine.low %v17152_v60, %v17140_v38  ;;  %v5221_v39 = vcombine.low %v17236_v6, %v17239_v43 }
 0x60a   : > { %v4996_v28 = vrot.slane %v4982_v36, %v16430_v55  ;;  %v19977_v38 = vcombine.low %v17245_v49, %v17248_v47  ;;  %v5014_v27 = vcombine.high %v17207_v26, %v17199_v62  ;;  %v19981_v36 = vcombine.high %v16588_v63, %v16591_v20  ;;  %v20041_v26 = vld [vmem:[#allocation55_spill] sm:$0xff]  ;;  %v20048_v63 = vld [vmem:[#allocation34_spill] sm:$0xff] }
 0x60b   : > { %v5253_v51 = vcombine.low %v5197_v48, %v5213_v31  ;;  %v5254_v53 = vcombine.high %v5197_v48, %v5213_v31  ;;  %v5269_v35 = vcombine.low %v5204_v32, %v5220_v57  ;;  %v5270_v61 = vcombine.high %v5204_v32, %v5220_v57 }
 0x60c   : > { %v4472_v17 = vpop.xlane.xlu1 %4471  ;;  %5899 = vrot.lane.b32.xlu1 %v19970_v33, %s13669_s11  ;;  %v19971_v33 = vcombine.high %v17236_v6, %v17239_v43  ;;  %v17410_v6 = vrot.slane %v4934_v9, %v16164_v50  ;;  %v17424_v60 = vrot.slane %v19977_v38, %v16430_v55  ;;  %v19979_v48 = vcombine.high %v17245_v49, %v17248_v47 }
 0x60d   : > { %v4457_v18 = vpop.xlane.xlu0 %4456  ;;  %v17393_v56 = vrot.slane %v5254_v53, %v16430_v55  ;;  %v17396_v40 = vrot.slane %v5269_v35, %v16430_v55  ;;  %v17399_v3 = vrot.slane %v5270_v61, %v16430_v55  ;;  %v17413_v43 = vrot.slane %v5253_v51, %v16430_v55 }
 0x60e   : > { %v17390_v37 = vrot.slane %v19971_v33, %v16430_v55  ;;  %19978 = vst [vmem:[#allocation135_spill] sm:$0xff] %v17424_v60  ;;  %v17430_v32 = vrot.slane %v19979_v48, %v16430_v55  ;;  %13372 = vrcp.f32 %v4472_v17  ;;  %v17435_v57 = vrot.slane %v5221_v39, %v16430_v55 }
 0x60f   : > { %19973 = vst [vmem:[#allocation132_spill] sm:$0xff] %v17393_v56  ;;  %19974 = vst [vmem:[#allocation133_spill] sm:$0xff] %v17396_v40  ;;  %v19982_v53 = vcombine.high %v16865_v54, %v16868_v25  ;;  %v4932_v61 = vrot.slane %v4918_v41, %v16164_v50  ;;  %v19983_v54 = vcombine.low %v16602_v11, %v16594_v21  ;;  %v20008_v40 = vld [vmem:[#allocation42_spill] sm:$0xff] }
 0x610   : > { %19972 = vst [vmem:[#allocation131_spill] sm:$0xff] %v17390_v37  ;;  %19975 = vst [vmem:[#allocation134_spill] sm:$0xff] %v17399_v3  ;;  %v17402_v52 = vpop.xlane.xlu1 %9331  ;;  %5915 = vrot.lane.b32.xlu1 %v19976_v22, %s13668_s10  ;;  %v13361_v22 = vpop.eup %13360  ;;  %v20004_v3 = vld [vmem:[#allocation18_spill] sm:$0xff] }
 0x611   : > { %v17416_v31 = vpop.xlane.xlu0 %9316  ;;  %19980 = vst [vmem:[#allocation136_spill] sm:$0xff] %v17430_v32  ;;  %v4964_v35 = vrot.slane %v19982_v53, %v16430_v55  ;;  %v13363_v39 = vpop.eup %13362 }
 0x612   : > { %v13365_v25 = vpop.eup %13364 }
 0x613   : > { %5705 = vrot.lane.b32.xlu0 %v19981_v36, %s13673_s17  ;;  %v5015_v48 = vcombine.low %v4964_v35, %v4996_v28  ;;  %v4997_v36 = vcombine.low %v4932_v61, %v17410_v6  ;;  %v5016_v53 = vcombine.high %v4964_v35, %v4996_v28  ;;  %v19987_v35 = vld [vmem:[#allocation58_spill] sm:$0xff] }
 0x614   : > { %v4484_v51 = vpop.xlane.xlu1 %4483  ;;  %5707 = vrot.lane.b32.xlu1 %v5014_v27, %s13673_s17  ;;  %v13367_v27 = vpop.eup %13366 }
 0x615   : > { %13374 = vrcp.f32 %v4484_v51  ;;  %v4469_v38 = vpop.xlane.xlu0 %4468  ;;  %v13369_v51 = vpop.eup %13368 }
 0x616   : > { %13376 = vrcp.f32 %v17184_v44  ;;  %v13371_v33 = vpop.eup %13370 }
 0x617   : > { %13378 = vrcp.f32 %v17257_v4  ;;  %5721 = vrot.lane.b32.xlu0 %v19983_v54, %s13674_s25  ;;  %v5005_v4 = vrot.slane %v4997_v36, %v16430_v55  ;;  %v19985_v54 = vld [vmem:[#allocation61_spill] sm:$0xff]  ;;  %v4998_v36 = vcombine.high %v4932_v61, %v17410_v6 }
 0x618   : > { %13380 = vrcp.f32 %v4457_v18  ;;  %v9344_v41 = vpop.xlane.xlu1 %9343  ;;  %5723 = vrot.lane.b32.xlu1 %v5015_v48, %s13674_s25  ;;  %v19984_v18 = vcombine.high %v16602_v11, %v16594_v21  ;;  %v13373_v48 = vpop.eup %13372  ;;  %v17478_v17 = vmul.f32 %v13365_v25, %v19985_v54  ;;  %v17491_v21 = vmul.f32 %v13363_v39, %v19987_v35  ;;  %v19988_v25 = vld [vmem:[#allocation29_spill] sm:$0xff]  ;;  %v19992_v39 = vld [vmem:[#allocation94_spill] sm:$0xff] }
 0x619   : > { %13382 = vrcp.f32 %v17220_v0  ;;  %v17468_v44 = vpop.xlane.xlu0 %9328  ;;  %v17481_v0 = vmul.f32 %v13367_v27, %v16635_v42  ;;  %v19989_v42 = vld [vmem:[#allocation24_spill] sm:$0xff]  ;;  %v19990_v54 = vld [vmem:[#allocation101_spill] sm:$0xff] }
 0x61a   : > { %13384 = vrcp.f32 %v17319_v7  ;;  %v17501_v47 = vmul.f32 %v13361_v22, %v19990_v54 }
 0x61b   : > { %13386 = vrcp.f32 %v17076_v59  ;;  %5737 = vrot.lane.b32.xlu0 %v19984_v18, %s13675_s26  ;;  %v19986_v59 = vcombine.low %v16871_v10, %v16874_v13  ;;  %v17495_v18 = vmul.f32 %v13369_v51, %v19988_v25 }
 0x61c   : > { %13388 = vrcp.f32 %v4469_v38  ;;  %v17483_v7 = vpop.xlane.xlu1 %9301  ;;  %5739 = vrot.lane.b32.xlu1 %v5016_v53, %s13675_s26  ;;  %v17498_v38 = vmul.f32 %v13371_v33, %v19989_v42  ;;  %v19994_v33 = vld [vmem:[#allocation27_spill] sm:$0xff] }
 0x61d   : > { %v4973_v28 = vrot.slane %v19986_v59, %v16430_v55  ;;  %v4481_v11 = vpop.xlane.xlu0 %4480  ;;  %v19991_v59 = vld [vmem:[#allocation36_spill] sm:$0xff]  ;;  %v5597_v6 = vcombine.low %v17495_v18, %v17478_v17  ;;  %v17512_v51 = vmul.f32 %v13373_v48, %v19994_v33  ;;  %v5012_v48 = vrot.slane %v4998_v36, %v16430_v55 }
 0x61e   : > { %13390 = vrcp.f32 %v4481_v11  ;;  %v19993_v35 = vcombine.low %v19991_v59, %v19992_v39  ;;  %v5581_v61 = vcombine.low %v17498_v38, %v17481_v0  ;;  %v19995_v11 = vld [vmem:[#allocation33_spill] sm:$0xff] }
 0x61f   : > { %v5017_v27 = vcombine.low %v4973_v28, %v5005_v4  ;;  %v13375_v53 = vpop.eup %13374  ;;  %13392 = vrcp.f32 %v9344_v41  ;;  %v5018_v12 = vcombine.high %v4973_v28, %v5005_v4  ;;  %v17538_v4 = vrot.slane %v5597_v6, %v16164_v50 }
 0x620   : > { %5753 = vrot.lane.b32.xlu0 %v19993_v35, %s13676_s28  ;;  %v13377_v49 = vpop.eup %13376  ;;  %v17515_v25 = vmul.f32 %v13375_v53, %v19995_v11  ;;  %v9356_v22 = vpop.xlane.xlu1 %9355  ;;  %v5565_v35 = vcombine.low %v17501_v47, %v17491_v21  ;;  %v19997_v53 = vcombine.high %v19991_v59, %v19992_v39  ;;  %v17535_v30 = vrot.slane %v5581_v61, %v16164_v50  ;;  %v19999_v59 = vld [vmem:[#allocation71_spill] sm:$0xff] }
 0x621   : > { %5755 = vrot.lane.b32.xlu1 %v5017_v27, %s13676_s28  ;;  %v13379_v41 = vpop.eup %13378  ;;  %13394 = vrcp.f32 %v9356_v22  ;;  %v17518_v42 = vpop.xlane.xlu0 %9340  ;;  %v19998_v22 = vcombine.high %v16871_v10, %v16874_v13  ;;  %v20001_v13 = vld [vmem:[#allocation75_spill] sm:$0xff] }
 0x622   : > { %19996 = vst [vmem:[#allocation61_spill] sm:$0xff] %v17518_v42  ;;  %v13381_v54 = vpop.eup %13380  ;;  %v5613_v9 = vcombine.low %v17512_v51, %v17515_v25  ;;  %v17544_v39 = vmul.f32 %v13379_v41, %v19999_v59  ;;  %v17555_v6 = vrot.slane %v5565_v35, %v16164_v50  ;;  %v17560_v41 = vmul.f32 %v13377_v49, %v20004_v3  ;;  %v20006_v59 = vld [vmem:[#allocation64_spill] sm:$0xff]  ;;  %v20011_v35 = vld [vmem:[#allocation41_spill] sm:$0xff] }
 0x623   : > { %v13383_v33 = vpop.eup %13382  ;;  %v4980_v34 = vrot.slane %v19998_v22, %v16430_v55  ;;  %v20002_v22 = vld [vmem:[#allocation40_spill] sm:$0xff] }
 0x624   : > { %5769 = vrot.lane.b32.xlu0 %v19997_v53, %s13670_s13  ;;  %v13385_v27 = vpop.eup %13384  ;;  %v9314_v11 = vpop.xlane.xlu1 %9313  ;;  %v17541_v28 = vrot.slane %v5613_v9, %v16164_v50  ;;  %v20000_v53 = vld [vmem:[#allocation46_spill] sm:$0xff]  ;;  %v20003_v61 = vsub.f32 %v20001_v13, %v20002_v22  ;;  %20005 = vst [vmem:[#allocation58_spill] sm:$0xff] %v17560_v41  ;;  %v20009_v13 = vld [vmem:[#allocation12_spill] sm:$0xff]  ;;  %v5629_v3 = vcombine.low %v17555_v6, %v17535_v30 }
 0x625   : > { %5771 = vrot.lane.b32.xlu1 %v5018_v12, %s13670_s13  ;;  %v13387_v36 = vpop.eup %13386  ;;  %v17547_v12 = vmul.f32 %v13381_v54, %v20000_v53  ;;  %v17549_v19 = vpop.xlane.xlu0 %9298  ;;  %v5019_v42 = vcombine.low %v4980_v34, %v5012_v48  ;;  %v17563_v54 = vmul.f32 %v13383_v33, %v20006_v59  ;;  %v20007_v53 = vld [vmem:[#allocation20_spill] sm:$0xff]  ;;  %v20010_v22 = vcombine.low %v20008_v40, %v20009_v13  ;;  %v20013_v59 = vld [vmem:[#allocation53_spill] sm:$0xff] }
 0x626   : > { %v13389_v10 = vpop.eup %13388  ;;  %v9199_v2 = vmul.f32 1.442695, %v20003_v61  ;;  %v5661_v9 = vcombine.low %v17538_v4, %v17541_v28  ;;  %v17566_v32 = vmul.f32 %v13385_v27, %v20007_v53  ;;  %v17573_v60 = vmul.f32 %v13387_v36, %v20011_v35 }
 0x627   : > { %v5461_v33 = vcombine.low %v17563_v54, %v17544_v39  ;;  %v17583_v53 = vmul.f32 %v13389_v10, %v20013_v59 }
 0x628   : > { %5785 = vrot.lane.b32.xlu0 %v20010_v22, %s13669_s11  ;;  %v13391_v61 = vpop.eup %13390  ;;  %20012 = vst [vmem:[#allocation29_spill] sm:$0xff] %v17573_v60  ;;  %v9368_v56 = vpop.xlane.xlu1 %9367  ;;  %v5445_v27 = vcombine.low %v17566_v32, %v17547_v12  ;;  %v20014_v22 = vld [vmem:[#allocation97_spill] sm:$0xff]  ;;  %13396 = vpow2.f32 %v9199_v2  ;;  %v17591_v35 = vrot.slane %v5661_v9, %v16430_v55  ;;  %v5429_v15 = vcombine.low %v17573_v60, %v17560_v41  ;;  %v20017_v2 = vld [vmem:[#allocation43_spill] sm:$0xff]  ;;  %v20078_v60 = vld [vmem:[#allocation70_spill] sm:$0xff] }
 0x629   : > { %5787 = vrot.lane.b32.xlu1 %v5019_v42, %s13669_s11  ;;  %v13393_v49 = vpop.eup %13392  ;;  %v17586_v37 = vmul.f32 %v13391_v61, %v20014_v22  ;;  %v17588_v36 = vpop.xlane.xlu0 %9352  ;;  %v5020_v42 = vcombine.high %v4980_v34, %v5012_v48  ;;  %13398 = vrcp.f32 %v17295_v24  ;;  %v20016_v61 = vcombine.high %v20008_v40, %v20009_v13  ;;  %v20018_v48 = vld [vmem:[#allocation105_spill] sm:$0xff] }
 0x62a   : > { %20015 = vst [vmem:[#allocation24_spill] sm:$0xff] %v17588_v36  ;;  %13400 = vrcp.f32 %v17342_v16  ;;  %v17604_v34 = vmul.f32 %v13393_v49, %v20017_v2  ;;  %v17611_v24 = vrot.slane %v5629_v3, %v16430_v55  ;;  %v17615_v40 = vrot.slane %v5445_v27, %v16164_v50  ;;  %v20030_v36 = vld [vmem:[#allocation108_spill] sm:$0xff] }
 0x62b   : > { %v13395_v23 = vpop.eup %13394  ;;  %v5477_v10 = vcombine.low %v17583_v53, %v17586_v37  ;;  %13402 = vrcp.f32 %v17402_v52  ;;  %v17618_v16 = vrot.slane %v5461_v33, %v16164_v50  ;;  %v17628_v52 = vrot.slane %v5429_v15, %v16164_v50 }
 0x62c   : > { %5801 = vrot.lane.b32.xlu0 %v20016_v61, %s13668_s10  ;;  %v17607_v9 = vmul.f32 %v13395_v23, %v20018_v48  ;;  %v9326_v59 = vpop.xlane.xlu1 %9325  ;;  %20019 = vst [vmem:[#allocation101_spill] sm:$0xff] %v17615_v40  ;;  %13404 = vrcp.f32 %v9314_v11 }
 0x62d   : > { %5803 = vrot.lane.b32.xlu1 %v5020_v42, %s13668_s10  ;;  %v9311_v22 = vpop.xlane.xlu0 %9310  ;;  %v17621_v13 = vrot.slane %v5477_v10, %v16164_v50  ;;  %13406 = vrcp.f32 %v9368_v56  ;;  %20020 = vst [vmem:[#allocation36_spill] sm:$0xff] %v17628_v52  ;;  %v5493_v42 = vcombine.low %v17628_v52, %v17615_v40 }
 0x62e   : > { %13408 = vrcp.f32 %v17483_v7 }
 0x62f   : > { %v5525_v49 = vcombine.low %v17618_v16, %v17621_v13  ;;  %v17645_v61 = vrot.slane %v5493_v42, %v16430_v55  ;;  %v20028_v42 = vld [vmem:[#allocation47_spill] sm:$0xff] }
 0x630   : > { %v9380_v33 = vpop.xlane.xlu1 %9379 }
 0x631   : > { %13410 = vrcp.f32 %v9380_v33  ;;  %v17633_v27 = vpop.xlane.xlu0 %9364  ;;  %v17639_v56 = vrot.slane %v5525_v49, %v16430_v55  ;;  %20024 = vst [vmem:[#allocation71_spill] sm:$0xff] %v17645_v61  ;;  %v20025_v33 = vld [vmem:[#allocation83_spill] sm:$0xff] }
 0x632   : > { %20021 = vst [vmem:[#allocation94_spill] sm:$0xff] %v17633_v27  ;;  %13412 = vrcp.f32 %v17265_v45  ;;  %v17641_v15 = vpop.eup %13396  ;;  %v20026_v45 = vld [vmem:[#allocation25_spill] sm:$0xff] }
 0x633   : > { %13414 = vrcp.f32 %v9326_v59  ;;  %20022 = vst [vmem:[#allocation27_spill] sm:$0xff] %v17639_v56  ;;  %20023 = vst [vmem:[#allocation33_spill] sm:$0xff] %v17641_v15  ;;  %v13399_v10 = vpop.eup %13398  ;;  %v20027_v59 = vsub.f32 %v20025_v33, %v20026_v45  ;;  %v9150_v33 = vsub.f32 %v20031_v5, %v20030_v36  ;;  %v20032_v45 = vld [vmem:[#allocation80_spill] sm:$0xff]  ;;  %v20060_v56 = vld [vmem:[#allocation89_spill] sm:$0xff] }
 0x634   : > { %13416 = vrcp.f32 %v17350_v58  ;;  %v9338_v11 = vpop.xlane.xlu1 %9337  ;;  %v13401_v2 = vpop.eup %13400  ;;  %v17685_v61 = vmul.f32 %v13399_v10, %v20048_v63 }
 0x635   : > { %13418 = vrcp.f32 %v9338_v11  ;;  %v9323_v7 = vpop.xlane.xlu0 %9322  ;;  %v13403_v48 = vpop.eup %13402  ;;  %v9235_v3 = vmul.f32 1.442695, %v20027_v59  ;;  %v20033_v59 = vld [vmem:[#allocation54_spill] sm:$0xff] }
 0x636   : > { %13420 = vrcp.f32 %v9311_v22  ;;  %v13405_v58 = vpop.eup %13404  ;;  %v20034_v49 = vsub.f32 %v20032_v45, %v20033_v59  ;;  %v20044_v59 = vld [vmem:[#allocation129_spill] sm:$0xff]  ;;  %20049 = vst [vmem:[#allocation18_spill] sm:$0xff] %v17685_v61 }
 0x637   : > { %13422 = vrcp.f32 %v17468_v44  ;;  %v13407_v23 = vpop.eup %13406  ;;  %v17668_v8 = vmul.f32 %v13405_v58, %v20037_v14  ;;  %v20047_v14 = vld [vmem:[#allocation85_spill] sm:$0xff] }
 0x638   : > { %13424 = vrcp.f32 %v17549_v19  ;;  %v17654_v11 = vpop.xlane.xlu1 %9391  ;;  %v13409_v22 = vpop.eup %13408  ;;  %v9207_v1 = vmul.f32 1.442695, %v20034_v49  ;;  %v20035_v19 = vld [vmem:[#allocation50_spill] sm:$0xff]  ;;  %v17674_v5 = vmul.f32 %v13407_v23, %v20041_v26  ;;  %v20043_v49 = vld [vmem:[#allocation88_spill] sm:$0xff] }
 0x639   : > { %13426 = vrcp.f32 %v20028_v42  ;;  %v17657_v27 = vpop.xlane.xlu0 %9376  ;;  %v9154_v29 = vsub.f32 %v20036_v46, %v20035_v19  ;;  %20038 = vst [vmem:[#allocation75_spill] sm:$0xff] %v17668_v8  ;;  %v20045_v20 = vsub.f32 %v20043_v49, %v20044_v59  ;;  %v20046_v19 = vld [vmem:[#allocation51_spill] sm:$0xff] }
 0x63a   : > { %20029 = vst [vmem:[#allocation46_spill] sm:$0xff] %v17657_v27  ;;  %13428 = vrcp.f32 %v17416_v31  ;;  %v20039_v27 = vld [vmem:[#allocation23_spill] sm:$0xff]  ;;  %v20042_v31 = vld [vmem:[#allocation112_spill] sm:$0xff]  ;;  %v9125_v58 = vsub.f32 %v20047_v14, %v20046_v19 }
 0x63b   : > { %v13411_v44 = vpop.eup %13410  ;;  %13430 = vpow2.f32 %v9235_v3  ;;  %v17671_v62 = vmul.f32 %v13403_v48, %v20039_v27  ;;  %v9243_v46 = vmul.f32 1.442695, %v20045_v20  ;;  %v20050_v27 = vld [vmem:[#allocation115_spill] sm:$0xff]  ;;  %v20058_v14 = vld [vmem:[#allocation76_spill] sm:$0xff] }
 0x63c   : > { %v13413_v42 = vpop.eup %13412  ;;  %v17677_v36 = vmul.f32 %v13411_v44, %v20042_v31  ;;  %13432 = vrcp.f32 %v9323_v7  ;;  %v9350_v3 = vpop.xlane.xlu1 %9349  ;;  %v17688_v48 = vmul.f32 %v13409_v22, %v20050_v27  ;;  %v9265_v44 = vmul.f32 1.442695, %v9150_v33  ;;  %v20052_v31 = vld [vmem:[#allocation49_spill] sm:$0xff]  ;;  %v20054_v49 = vld [vmem:[#allocation67_spill] sm:$0xff] }
 0x63d   : > { %20040 = vst [vmem:[#allocation40_spill] sm:$0xff] %v17671_v62  ;;  %v13415_v45 = vpop.eup %13414  ;;  %v9335_v26 = vpop.xlane.xlu0 %9334  ;;  %v17691_v7 = vmul.f32 %v13401_v2, %v20052_v31  ;;  %v17696_v59 = vmul.f32 %v13413_v42, %v20054_v49  ;;  %v9273_v22 = vmul.f32 1.442695, %v9154_v29  ;;  %v20056_v19 = vld [vmem:[#allocation103_spill] sm:$0xff]  ;;  %v9215_v29 = vmul.f32 1.442695, %v9125_v58 }
 0x63e   : > { %20051 = vst [vmem:[#allocation64_spill] sm:$0xff] %v17688_v48  ;;  %v13417_v23 = vpop.eup %13416  ;;  %13434 = vrcp.f32 %v9335_v26  ;;  %v9763_v63 = vcombine.low %v17688_v48, %v17668_v8  ;;  %v17703_v2 = vmul.f32 %v13415_v45, %v20056_v19  ;;  %v20061_v48 = vld [vmem:[#allocation127_spill] sm:$0xff]  ;;  %v20062_v19 = vld [vmem:[#allocation130_spill] sm:$0xff]  ;;  %v20067_v58 = vld [vmem:[#allocation28_spill] sm:$0xff] }
 0x63f   : > { %20053 = vst [vmem:[#allocation20_spill] sm:$0xff] %v17691_v7  ;;  %v13419_v20 = vpop.eup %13418  ;;  %13436 = vpow2.f32 %v9207_v1  ;;  %20055 = vst [vmem:[#allocation42_spill] sm:$0xff] %v17696_v59  ;;  %v9779_v33 = vcombine.low %v17691_v7, %v17671_v62  ;;  %v9747_v42 = vcombine.low %v17696_v59, %v17685_v61  ;;  %v9158_v8 = vsub.f32 %v20061_v48, %v20060_v56  ;;  %v20064_v62 = vld [vmem:[#allocation63_spill] sm:$0xff] }
 0x640   : > { %v13421_v10 = vpop.eup %13420  ;;  %20057 = vst [vmem:[#allocation12_spill] sm:$0xff] %v17703_v2  ;;  %v17706_v27 = vmul.f32 %v13419_v20, %v20058_v14  ;;  %v17708_v26 = vpop.xlane.xlu1 %9403  ;;  %13438 = vpow2.f32 %v9243_v46  ;;  %v20063_v14 = vld [vmem:[#allocation93_spill] sm:$0xff]  ;;  %v17724_v59 = vrot.slane %v9763_v63, %v16164_v50 }
 0x641   : > { %v13423_v1 = vpop.eup %13422  ;;  %v17712_v31 = vpop.permute.xlu0 %5817  ;;  %13440 = vpow2.f32 %v9265_v44  ;;  %v9143_v7 = vsub.f32 %v20063_v14, %v20062_v19  ;;  %v17721_v46 = vmul.f32 %v13421_v10, %v20064_v62  ;;  %v17727_v44 = vmul.f32 %v13417_v23, %v20067_v58  ;;  %v20071_v62 = vld [vmem:[#allocation45_spill] sm:$0xff] }
 0x642   : > { %20059 = vst [vmem:[#allocation41_spill] sm:$0xff] %v17706_v27  ;;  %v13425_v49 = vpop.eup %13424  ;;  %v9795_v45 = vcombine.low %v17703_v2, %v17706_v27  ;;  %13442 = vrcp.f32 %v9350_v3  ;;  %20066 = vst [vmem:[#allocation97_spill] sm:$0xff] %v17724_v59  ;;  %v17730_v48 = vrot.slane %v9779_v33, %v16164_v50  ;;  %v17738_v10 = vmul.f32 %v13423_v1, %v20071_v62  ;;  %v20073_v3 = vld [vmem:[#allocation57_spill] sm:$0xff]  ;;  %v20077_v27 = vld [vmem:[#allocation32_spill] sm:$0xff] }
 0x643   : > { %v13427_v20 = vpop.eup %13426  ;;  %20065 = vst [vmem:[#allocation53_spill] sm:$0xff] %v17721_v46  ;;  %13444 = vpow2.f32 %v9273_v22  ;;  %20068 = vst [vmem:[#allocation43_spill] sm:$0xff] %v17727_v44  ;;  %v17741_v63 = vmul.f32 %v13425_v49, %v20073_v3  ;;  %v17746_v23 = vrot.slane %v9747_v42, %v16164_v50  ;;  %v9281_v33 = vmul.f32 1.442695, %v9158_v8  ;;  %v20076_v58 = vld [vmem:[#allocation77_spill] sm:$0xff]  ;;  %v20080_v62 = vld [vmem:[#allocation52_spill] sm:$0xff] }
 0x644   : > { %v13429_v61 = vpop.eup %13428  ;;  %v9362_v56 = vpop.xlane.xlu1 %9361  ;;  %20069 = vst [vmem:[#allocation105_spill] sm:$0xff] %v17730_v48  ;;  %v17733_v2 = vrot.slane %v9795_v45, %v16164_v50  ;;  %20072 = vst [vmem:[#allocation25_spill] sm:$0xff] %v17738_v10  ;;  %v9162_v45 = vsub.f32 %v20077_v27, %v20076_v58  ;;  %v17751_v41 = vmul.f32 %v13427_v20, %v20078_v60  ;;  %v20081_v49 = vld [vmem:[#allocation91_spill] sm:$0xff]  ;;  %v9251_v27 = vmul.f32 1.442695, %v9143_v7 }
 0x645   : > { %v17735_v19 = vpop.eup %13430  ;;  %20074 = vst [vmem:[#allocation47_spill] sm:$0xff] %v17741_v63  ;;  %13446 = vrcp.f32 %v9362_v56  ;;  %v17743_v22 = vpop.permute.xlu0 %5833  ;;  %20075 = vst [vmem:[#allocation108_spill] sm:$0xff] %v17746_v23  ;;  %v9129_v3 = vsub.f32 %v20081_v49, %v20080_v62  ;;  %v20082_v56 = vld [vmem:[#allocation30_spill] sm:$0xff]  ;;  %v9627_v42 = vcombine.low %v17741_v63, %v17721_v46  ;;  %v9811_v8 = vcombine.low %v17746_v23, %v17724_v59  ;;  %v20085_v49 = vld [vmem:[#allocation117_spill] sm:$0xff] }
 0x646   : > { %20070 = vst [vmem:[#allocation83_spill] sm:$0xff] %v17735_v19  ;;  %v13433_v14 = vpop.eup %13432  ;;  %20079 = vst [vmem:[#allocation119_spill] sm:$0xff] %v17751_v41  ;;  %v9843_v1 = vcombine.low %v17730_v48, %v17733_v2  ;;  %v17758_v52 = vmul.f32 %v13429_v61, %v20082_v56  ;;  %13448 = vpow2.f32 %v9215_v29  ;;  %v9611_v60 = vcombine.low %v17751_v41, %v17727_v44  ;;  %v20087_v63 = vld [vmem:[#allocation65_spill] sm:$0xff]  ;;  %v20103_v59 = vld [vmem:[#allocation74_spill] sm:$0xff] }
 0x647   : > { %v9345_v58 = vsel %vm1066_vm1, %v17641_v15, 0.0  ;;  %v17775_v56 = vmul.f32 %v13433_v14, %v20085_v49  ;;  %13450 = vpow2.f32 %v9281_v33  ;;  %v9289_v41 = vmul.f32 1.442695, %v9162_v45  ;;  %v20095_v49 = vld [vmem:[#allocation99_spill] sm:$0xff]  ;;  %v20096_v45 = vld [vmem:[#allocation48_spill] sm:$0xff] }
 0x648   : > { %20083 = vst [vmem:[#allocation80_spill] sm:$0xff] %v17758_v52  ;;  %v13435_v40 = vpop.eup %13434  ;;  %v17766_v20 = vpop.xlane.xlu1 %9415  ;;  %v9643_v61 = vcombine.low %v17758_v52, %v17738_v10  ;;  %v17783_v29 = vrot.slane %v9843_v1, %v16430_v55  ;;  %v9223_v44 = vmul.f32 1.442695, %v9129_v3  ;;  %v17790_v14 = vrot.slane %v9811_v8, %v16430_v55  ;;  %v20094_v1 = vld [vmem:[#allocation121_spill] sm:$0xff] }
 0x649   : > { %v17770_v62 = vpop.eup %13436  ;;  %20086 = vst [vmem:[#allocation50_spill] sm:$0xff] %v17775_v56  ;;  %v17778_v46 = vmul.f32 %v13435_v40, %v20087_v63  ;;  %v17780_v7 = vpop.permute.xlu0 %5849  ;;  %v17793_v40 = vrot.slane %v9627_v42, %v16164_v50  ;;  %13452 = vpow2.f32 %v9251_v27  ;;  %v9147_v33 = vsub.f32 %v20095_v49, %v20094_v1 }
 0x64a   : > { %20084 = vst [vmem:[#allocation54_spill] sm:$0xff] %v17770_v62  ;;  %20089 = vst [vmem:[#allocation107_spill] sm:$0xff] %v17783_v29  ;;  %v17785_v15 = vpop.eup %13438  ;;  %v9399_v3 = vsel %vm1066_vm1, %v17735_v19, 0.0  ;;  %v17804_v8 = vrot.slane %v9611_v60, %v16164_v50  ;;  %v17807_v42 = vrot.slane %v9643_v61, %v16164_v50  ;;  %13454 = vpow2.f32 %v9289_v41 }
 0x64b   : > { %20088 = vst [vmem:[#allocation123_spill] sm:$0xff] %v17778_v46  ;;  %9346 = vadd.xlane.f32.xlu0 %v9345_v58  ;;  %20090 = vst [vmem:[#allocation23_spill] sm:$0xff] %v17785_v15  ;;  %v9659_v52 = vcombine.low %v17775_v56, %v17778_v46  ;;  %v17795_v63 = vpop.eup %13440  ;;  %v20097_v58 = vld [vmem:[#allocation96_spill] sm:$0xff]  ;;  %v9411_v60 = vsel %vm1066_vm1, %v17785_v15, 0.0  ;;  %13456 = vpow2.f32 %v9223_v44  ;;  %v9259_v19 = vmul.f32 1.442695, %v9147_v33 }
 0x64c   : > { %20091 = vst [vmem:[#allocation55_spill] sm:$0xff] %v17790_v14  ;;  %20092 = vst [vmem:[#allocation112_spill] sm:$0xff] %v17793_v40  ;;  %v9133_v10 = vsub.f32 %v20097_v58, %v20096_v45  ;;  %v9374_v23 = vpop.xlane.xlu1 %9373  ;;  %v13443_v56 = vpop.eup %13442  ;;  %v9357_v45 = vsel %vm1066_vm1, %v17770_v62, 0.0  ;;  %v9444_v61 = vsel %vm1066_vm1, %v17795_v63, 0.0  ;;  %v10020_v41 = vcombine.high %v17604_v34, %v17607_v9  ;;  %v20102_v14 = vld [vmem:[#allocation125_spill] sm:$0xff] }
 0x64d   : > { %20093 = vst [vmem:[#allocation88_spill] sm:$0xff] %v17795_v63  ;;  %v5866_v46 = vpop.permute.xlu0 %5865  ;;  %20098 = vst [vmem:[#allocation129_spill] sm:$0xff] %v17804_v8  ;;  %v17810_v27 = vrot.slane %v9659_v52, %v16164_v50  ;;  %v17814_v49 = vpop.eup %13444  ;;  %v9675_v52 = vcombine.low %v17804_v8, %v17793_v40  ;;  %v20104_v63 = vld [vmem:[#allocation106_spill] sm:$0xff]  ;;  %13458 = vrcp.f32 %v9374_v23 }
 0x64e   : > { %20099 = vst [vmem:[#allocation51_spill] sm:$0xff] %v17807_v42  ;;  %v9231_v44 = vmul.f32 1.442695, %v9133_v10  ;;  %v9151_v48 = vsub.f32 %v20104_v63, %v20103_v59  ;;  %v9456_v10 = vsel %vm1066_vm1, %v17814_v49, 0.0  ;;  %v20110_v63 = vld [vmem:[#allocation19_spill] sm:$0xff] }
 0x64f   : > { %20100 = vst [vmem:[#allocation85_spill] sm:$0xff] %v17810_v27  ;;  %9400 = vadd.xlane.f32.xlu0 %v9399_v3  ;;  %v13447_v58 = vpop.eup %13446  ;;  %v9707_v1 = vcombine.low %v17807_v42, %v17810_v27  ;;  %v20101_v3 = vld [vmem:[#allocation82_spill] sm:$0xff]  ;;  %v17842_v59 = vrot.slane %v9675_v52, %v16430_v55 }
 0x650   : > { %v9566_v62 = vmul.f32 %v13443_v56, %v20101_v3  ;;  %v9570_v29 = vmul.f32 %v13447_v58, %v20102_v14  ;;  %v17830_v15 = vpop.xlane.xlu1 %9427  ;;  %v17837_v33 = vpop.eup %13448  ;;  %v20109_v14 = vld [vmem:[#allocation86_spill] sm:$0xff]  ;;  %v20112_v58 = vcombine.low %v17604_v34, %v17607_v9 }
 0x651   : > { %9445 = vadd.xlane.f32.xlu1 %v9444_v61  ;;  %v5882_v8 = vpop.permute.xlu0 %5881  ;;  %v17835_v40 = vrot.slane %v9707_v1, %v16430_v55  ;;  %20106 = vst [vmem:[#allocation115_spill] sm:$0xff] %v17837_v33  ;;  %20107 = vst [vmem:[#allocation49_spill] sm:$0xff] %v17842_v59  ;;  %v17844_v56 = vpop.eup %13450  ;;  %v20111_v1 = vcombine.low %v20109_v14, %v20110_v63 }
 0x652   : > { %v10035_v42 = vcombine.low %v9566_v62, %v9570_v29  ;;  %v10036_v27 = vcombine.high %v9566_v62, %v9570_v29  ;;  %20108 = vst [vmem:[#allocation67_spill] sm:$0xff] %v17844_v56  ;;  %v17861_v61 = vrot.slane %v20112_v58, %v16164_v50 }
 0x653   : > { %20105 = vst [vmem:[#allocation34_spill] sm:$0xff] %v17835_v40  ;;  %9358 = vadd.xlane.f32.xlu0 %v9357_v45  ;;  %v5959_v62 = vsel %vm1066_vm1, %v20111_v1, %v17712_v31  ;;  %v17852_v45 = vrot.slane %v10020_v41, %v16164_v50 }
 0x654   : > { %v9386_v29 = vpop.xlane.xlu1 %9385  ;;  %v17855_v23 = vrot.slane %v10036_v27, %v16164_v50  ;;  %v5963_v52 = vsel %vm5929_vm3, %v5959_v62, %v17743_v22  ;;  %v17867_v31 = vrot.slane %v10035_v42, %v16164_v50  ;;  %v17871_v27 = vpop.eup %13452  ;;  %v9468_v22 = vsel %vm1066_vm1, %v17844_v56, 0.0 }
 0x655   : > { %9457 = vadd.xlane.f32.xlu1 %v9456_v10  ;;  %13460 = vrcp.f32 %v9386_v29  ;;  %v5898_v3 = vpop.permute.xlu0 %5897  ;;  %20113 = vst [vmem:[#allocation103_spill] sm:$0xff] %v17871_v27  ;;  %v5967_v10 = vsel %vm5934_vm4, %v5963_v52, %v17780_v7  ;;  %v17884_v63 = vpop.eup %13454  ;;  %v9369_v29 = vsel %vm1066_vm1, %v17837_v33, 0.0  ;;  %v20115_v52 = vld [vmem:[#allocation79_spill] sm:$0xff] }
 0x656   : > { %v5971_v9 = vsel %vm5939_vm5, %v5967_v10, %v5866_v46  ;;  %v10083_v42 = vcombine.low %v17861_v61, %v17867_v31  ;;  %v10084_v14 = vcombine.high %v17861_v61, %v17867_v31  ;;  %20114 = vst [vmem:[#allocation76_spill] sm:$0xff] %v17884_v63  ;;  %13462 = vpow2.f32 %v9259_v19  ;;  %v17889_v1 = vpop.eup %13456  ;;  %v20116_v19 = vld [vmem:[#allocation102_spill] sm:$0xff] }
 0x657   : > { %9412 = vadd.xlane.f32.xlu0 %v9411_v60  ;;  %v5975_v7 = vsel %vm5944_vm6, %v5971_v9, %v5882_v8  ;;  %13464 = vpow2.f32 %v9231_v44  ;;  %v9267_v61 = vmul.f32 1.442695, %v9151_v48  ;;  %v9137_v31 = vsub.f32 %v20116_v19, %v20115_v52  ;;  %v13459_v10 = vpop.eup %13458  ;;  %v20117_v9 = vld [vmem:[#allocation35_spill] sm:$0xff]  ;;  %v20121_v19 = vld [vmem:[#allocation92_spill] sm:$0xff] }
 0x658   : > { %v17887_v60 = vpop.xlane.xlu1 %9439  ;;  %v5979_v46 = vsel %vm5949_vm7, %v5975_v7, %v5898_v3  ;;  %v9480_v8 = vsel %vm1066_vm1, %v17884_v63, 0.0  ;;  %v9423_v44 = vsel %vm1066_vm1, %v17871_v27, 0.0  ;;  %v10052_v52 = vcombine.high %v17674_v5, %v17677_v36  ;;  %v20123_v27 = vld [vmem:[#allocation98_spill] sm:$0xff] }
 0x659   : > { %9469 = vadd.xlane.f32.xlu1 %v9468_v22  ;;  %v5914_v62 = vpop.permute.xlu0 %5913  ;;  %v20118_v22 = vld [vmem:[#allocation111_spill] sm:$0xff]  ;;  %13466 = vpow2.f32 %v9267_v61  ;;  %v9574_v41 = vmul.f32 %v13459_v10, %v20121_v19  ;;  %v20124_v63 = vld [vmem:[#allocation118_spill] sm:$0xff] }
 0x65a   : > { %v5983_v58 = vsel %vm5954_vm8, %v5979_v46, %v5914_v62  ;;  %v9155_v48 = vsub.f32 %v20118_v22, %v20117_v9  ;;  %v9239_v46 = vmul.f32 1.442695, %v9137_v31  ;;  %v20119_v62 = vld [vmem:[#allocation8_spill] sm:$0xff]  ;;  %v9159_v56 = vsub.f32 %v20124_v63, %v20123_v27 }
 0x65b   : > { %9370 = vadd.xlane.f32.xlu0 %v9369_v29  ;;  %5988 = vst [vmem:[%s17897_s14 + $0x8] sm:$0xff] %v5983_v58  ;;  %v20120_v29 = vld [vmem:[#allocation109_spill] sm:$0xff]  ;;  %v20127_v27 = vcombine.low %v17674_v5, %v17677_v36  ;;  %v17944_v5 = vrot.slane %v10083_v42, %v16430_v55  ;;  %v20130_v42 = vcombine.low %v17852_v45, %v17855_v23 }
 0x65c   : > { %v17902_v3 = vpop.xlane.xlu1 %9397  ;;  %v9141_v58 = vsub.f32 %v20120_v29, %v20119_v62  ;;  %v9275_v31 = vmul.f32 1.442695, %v9155_v48  ;;  %13468 = vpow2.f32 %v9239_v46 }
 0x65d   : > { %9481 = vadd.xlane.f32.xlu1 %v9480_v8  ;;  %v20122_v8 = vld [vmem:[#allocation90_spill] sm:$0xff]  ;;  %v10059_v63 = vrot.slane %v20127_v27, %v16164_v50 }
 0x65e   : > { %v9247_v62 = vmul.f32 1.442695, %v9141_v58  ;;  %13470 = vpow2.f32 %v9275_v31 }
 0x65f   : > { %9424 = vadd.xlane.f32.xlu0 %v9423_v44  ;;  %v13461_v7 = vpop.eup %13460  ;;  %v9381_v44 = vsel %vm1066_vm1, %v17889_v1, 0.0 }
 0x660   : > { %v9578_v34 = vmul.f32 %v13461_v7, %v20122_v8  ;;  %v17914_v33 = vpop.xlane.xlu1 %9451  ;;  %v17920_v61 = vpop.eup %13462  ;;  %v17925_v7 = vrot.slane %v10052_v52, %v16164_v50  ;;  %13472 = vpow2.f32 %v9247_v62  ;;  %v17963_v62 = vrot.slane %v20130_v42, %v16430_v55 }
 0x661   : > { %20125 = vst [vmem:[#allocation89_spill] sm:$0xff] %v17920_v61  ;;  %v17922_v29 = vpop.eup %13464 }
 0x662   : > { %v10067_v9 = vcombine.low %v9574_v41, %v9578_v34  ;;  %v10068_v22 = vcombine.high %v9574_v41, %v9578_v34  ;;  %20126 = vst [vmem:[#allocation127_spill] sm:$0xff] %v17922_v29  ;;  %v9283_v41 = vmul.f32 1.442695, %v9159_v56  ;;  %v9435_v34 = vsel %vm1066_vm1, %v17920_v61, 0.0  ;;  %20131 = vst [vmem:[#allocation63_spill] sm:$0xff] %v17963_v62  ;;  %v20153_v62 = vld [vmem:[#allocation10_spill] sm:$0xff] }
 0x663   : > { %9382 = vadd.xlane.f32.xlu0 %v9381_v44  ;;  %v9393_v8 = vsel %vm1066_vm1, %v17922_v29, 0.0  ;;  %v17950_v56 = vrot.slane %v10084_v14, %v16430_v55  ;;  %v5614_v14 = vcombine.high %v17512_v51, %v17515_v25  ;;  %v20133_v25 = vld [vmem:[#allocation110_spill] sm:$0xff] }
 0x664   : > { %v9410_v10 = vpop.xlane.xlu1 %9409  ;;  %v17928_v19 = vrot.slane %v10068_v22, %v16164_v50  ;;  %v10075_v48 = vrot.slane %v10067_v9, %v16164_v50  ;;  %v17955_v9 = vpop.eup %13466  ;;  %13474 = vpow2.f32 %v9283_v41  ;;  %v5286_v22 = vcombine.high %v17435_v57, %v17413_v43  ;;  %v20145_v41 = vld [vmem:[#allocation17_spill] sm:$0xff] }
 0x665   : > { %20129 = vst [vmem:[#allocation93_spill] sm:$0xff] %v17955_v9  ;;  %13476 = vrcp.f32 %v9410_v10  ;;  %v5566_v10 = vcombine.high %v17501_v47, %v17491_v21 }
 0x666   : > { %v10115_v46 = vcombine.low %v10059_v63, %v10075_v48  ;;  %v10116_v58 = vcombine.high %v10059_v63, %v10075_v48  ;;  %v10131_v52 = vcombine.low %v17925_v7, %v17928_v19  ;;  %v5662_v63 = vcombine.high %v17538_v4, %v17541_v28  ;;  %v20134_v4 = vld [vmem:[#allocation114_spill] sm:$0xff]  ;;  %v17988_v42 = vpop.eup %13468 }
 0x667   : > { %9436 = vadd.xlane.f32.xlu0 %v9435_v34  ;;  %v9145_v28 = vsub.f32 %v20134_v4, %v20133_v25  ;;  %20135 = vst [vmem:[#allocation45_spill] sm:$0xff] %v17988_v42  ;;  %v5598_v34 = vcombine.high %v17495_v18, %v17478_v17  ;;  %13478 = vrcp.f32 %v17708_v26  ;;  %v5630_v25 = vcombine.high %v17555_v6, %v17535_v30  ;;  %v20137_v30 = vld [vmem:[#allocation16_spill] sm:$0xff]  ;;  %v20140_v4 = vld [vmem:[#allocation13_spill] sm:$0xff] }
 0x668   : > { %v17941_v44 = vpop.xlane.xlu1 %9463  ;;  %v17947_v36 = vrot.slane %v10115_v46, %v16430_v55  ;;  %v17953_v31 = vrot.slane %v10116_v58, %v16430_v55  ;;  %v17966_v27 = vrot.slane %v10131_v52, %v16430_v55  ;;  %v5582_v46 = vcombine.high %v17498_v38, %v17481_v0  ;;  %v18008_v38 = vpop.eup %13470  ;;  %v20138_v6 = vld [vmem:[#allocation120_spill] sm:$0xff] }
 0x669   : > { %13480 = vrcp.f32 %v17902_v3  ;;  %v5694_v17 = vcombine.high %v17611_v24, %v17591_v35  ;;  %v5676_v0 = vrot.slane %v5662_v63, %v16430_v55  ;;  %v18006_v18 = vrot.slane %v5614_v14, %v16164_v50  ;;  %20136 = vst [vmem:[#allocation57_spill] sm:$0xff] %v18008_v38 }
 0x66a   : > { %20128 = vst [vmem:[#allocation130_spill] sm:$0xff] %v17953_v31  ;;  %20132 = vst [vmem:[#allocation28_spill] sm:$0xff] %v17966_v27  ;;  %13482 = vrcp.f32 %v17830_v15  ;;  %v9255_v26 = vmul.f32 1.442695, %v9145_v28  ;;  %v9405_v21 = vsel %vm1066_vm1, %v17988_v42, 0.0  ;;  %v18017_v15 = vpop.eup %13472  ;;  %v5644_v3 = vrot.slane %v5630_v25, %v16430_v55  ;;  %v20151_v27 = vld [vmem:[#allocation72_spill] sm:$0xff] }
 0x66b   : > { %9394 = vadd.xlane.f32.xlu0 %v9393_v8  ;;  %v9447_v8 = vsel %vm1066_vm1, %v17955_v9, 0.0  ;;  %13484 = vrcp.f32 %v17654_v11  ;;  %20139 = vst [vmem:[#allocation77_spill] sm:$0xff] %v18017_v15  ;;  %v18023_v14 = vrot.slane %v5582_v46, %v16164_v50  ;;  %v5612_v63 = vrot.slane %v5598_v34, %v16164_v50  ;;  %v20141_v11 = vld [vmem:[#allocation124_spill] sm:$0xff]  ;;  %v20154_v31 = vld [vmem:[#allocation9_spill] sm:$0xff] }
 0x66c   : > { %v9422_v52 = vpop.xlane.xlu1 %9421  ;;  %13486 = vrcp.f32 %v17766_v20  ;;  %v9153_v28 = vsub.f32 %v20141_v11, %v20140_v4  ;;  %v9459_v34 = vsel %vm1066_vm1, %v18008_v38, 0.0  ;;  %v20143_v11 = vld [vmem:[#allocation73_spill] sm:$0xff]  ;;  %v5696_v58 = vcombine.high %v5644_v3, %v5676_v0  ;;  %v20149_v9 = vld [vmem:[#allocation104_spill] sm:$0xff] }
 0x66d   : > { %13488 = vrcp.f32 %v9422_v52  ;;  %v5677_v20 = vcombine.low %v5612_v63, %v18006_v18  ;;  %v20144_v52 = vld [vmem:[#allocation39_spill] sm:$0xff] }
 0x66e   : > { %5709 = vrot.lane.b32.xlu1 %v5286_v22, %s13673_s17  ;;  %v9149_v22 = vsub.f32 %v20138_v6, %v20137_v30  ;;  %v5695_v30 = vcombine.low %v5644_v3, %v5676_v0  ;;  %v5580_v6 = vrot.slane %v5566_v10, %v16164_v50  ;;  %13490 = vpow2.f32 %v9255_v26  ;;  %v20146_v0 = vld [vmem:[#allocation44_spill] sm:$0xff]  ;;  %v20147_v3 = vld [vmem:[#allocation59_spill] sm:$0xff] }
 0x66f   : > { %9448 = vadd.xlane.f32.xlu0 %v9447_v8  ;;  %v18028_v8 = vpop.eup %13474  ;;  %v9271_v4 = vmul.f32 1.442695, %v9153_v28  ;;  %v9157_v51 = vsub.f32 %v20144_v52, %v20143_v11  ;;  %v5685_v26 = vrot.slane %v5677_v20, %v16430_v55  ;;  %v9417_v28 = vsel %vm1066_vm1, %v18017_v15, 0.0  ;;  %v20148_v52 = vld [vmem:[#allocation87_spill] sm:$0xff] }
 0x670   : > { %v18013_v47 = vpop.xlane.xlu1 %9475  ;;  %20142 = vst [vmem:[#allocation32_spill] sm:$0xff] %v18028_v8  ;;  %v5645_v46 = vcombine.low %v5580_v6, %v18023_v14  ;;  %v9161_v20 = vsub.f32 %v20147_v3, %v20146_v0 }
 0x672   : > { %5823 = vrot.lane.b32.xlu1 %v5694_v17, %s13673_s17  ;;  %v9263_v17 = vmul.f32 1.442695, %v9149_v22  ;;  %v5653_v38 = vrot.slane %v5645_v46, %v16430_v55 }
 0x673   : > { %9406 = vadd.xlane.f32.xlu0 %v9405_v21  ;;  %v13477_v21 = vpop.eup %13476 }
 0x674   : > { %v9434_v25 = vpop.xlane.xlu1 %9433  ;;  %v13479_v10 = vpop.eup %13478  ;;  %v9586_v48 = vmul.f32 %v13477_v21, %v20145_v41  ;;  %v5697_v41 = vcombine.low %v5653_v38, %v5685_v26  ;;  %v20150_v21 = vld [vmem:[#allocation62_spill] sm:$0xff] }
 0x675   : > { %13492 = vrcp.f32 %v9434_v25  ;;  %v13481_v22 = vpop.eup %13480  ;;  %v9584_v61 = vmul.f32 %v13479_v10, %v20148_v52  ;;  %v5646_v10 = vcombine.high %v5580_v6, %v18023_v14 }
 0x676   : > { %5839 = vrot.lane.b32.xlu1 %v5695_v30, %s13674_s25  ;;  %13494 = vpow2.f32 %v9263_v17  ;;  %v13483_v30 = vpop.eup %13482  ;;  %v9582_v29 = vmul.f32 %v13481_v22, %v20149_v9  ;;  %v9287_v9 = vmul.f32 1.442695, %v9161_v20 }
 0x677   : > { %9460 = vadd.xlane.f32.xlu0 %v9459_v34  ;;  %v13485_v11 = vpop.eup %13484  ;;  %13496 = vpow2.f32 %v9271_v4  ;;  %v9279_v34 = vmul.f32 1.442695, %v9157_v51  ;;  %v9592_v42 = vmul.f32 %v13483_v30, %v20150_v21 }
 0x678   : > { %v18039_v25 = vpop.permute.xlu1 %5819  ;;  %v13487_v17 = vpop.eup %13486  ;;  %v9580_v4 = vmul.f32 %v13485_v11, %v20151_v27  ;;  %v10308_v51 = vcombine.high %v9582_v29, %v9586_v48  ;;  %v10307_v22 = vcombine.low %v9582_v29, %v9586_v48  ;;  %v5698_v27 = vcombine.high %v5653_v38, %v5685_v26 }
 0x679   : > { %v13489_v46 = vpop.eup %13488  ;;  %13498 = vpow2.f32 %v9279_v34  ;;  %v5660_v29 = vrot.slane %v5646_v10, %v16430_v55 }
 0x67a   : > { %5855 = vrot.lane.b32.xlu1 %v5696_v58, %s13675_s26  ;;  %v5678_v58 = vcombine.high %v5612_v63, %v18006_v18  ;;  %v18059_v0 = vpop.eup %13490  ;;  %v20152_v18 = vld [vmem:[#allocation84_spill] sm:$0xff]  ;;  %v10291_v3 = vcombine.low %v9580_v4, %v9584_v61  ;;  %v10292_v52 = vcombine.high %v9580_v4, %v9584_v61  ;;  %v18070_v48 = vrot.slane %v10308_v51, %v16164_v50 }
 0x67b   : > { %9418 = vadd.xlane.f32.xlu0 %v9417_v28  ;;  %v9471_v28 = vsel %vm1066_vm1, %v18028_v8, 0.0  ;;  %v9588_v63 = vmul.f32 %v13487_v17, %v20152_v18  ;;  %v9590_v8 = vmul.f32 %v13489_v46, %v20153_v62  ;;  %v9429_v34 = vsel %vm1066_vm1, %v18059_v0, 0.0 }
 0x67c   : > { %v18052_v15 = vpop.permute.xlu1 %5835  ;;  %v5692_v11 = vrot.slane %v5678_v58, %v16430_v55  ;;  %v18075_v62 = vrot.slane %v10307_v22, %v16164_v50  ;;  %13500 = vpow2.f32 %v9287_v9  ;;  %v18081_v20 = vrot.slane %v10291_v3, %v16164_v50 }
 0x67d   : > { %v10324_v21 = vcombine.high %v9588_v63, %v9592_v42  ;;  %v5478_v9 = vcombine.high %v17583_v53, %v17586_v37  ;;  %v5526_v3 = vcombine.high %v17618_v16, %v17621_v13  ;;  %v20160_v16 = vld [vmem:[#allocation101_spill] sm:$0xff]  ;;  %v20161_v13 = vld [vmem:[#allocation36_spill] sm:$0xff] }
 0x67e   : > { %5871 = vrot.lane.b32.xlu1 %v5697_v41, %s13676_s28  ;;  %v10323_v41 = vcombine.low %v9588_v63, %v9592_v42  ;;  %v18078_v42 = vrot.slane %v10292_v52, %v16164_v50  ;;  %v10355_v63 = vcombine.low %v18081_v20, %v18075_v62 }
 0x67f   : > { %9472 = vadd.xlane.f32.xlu0 %v9471_v28  ;;  %v13493_v30 = vpop.eup %13492  ;;  %v18086_v46 = vrot.slane %v10324_v21, %v16164_v50  ;;  %v5462_v21 = vcombine.high %v17563_v54, %v17544_v39 }
 0x680   : > { %v9594_v14 = vmul.f32 %v13493_v30, %v20154_v31  ;;  %v5852_v6 = vpop.permute.xlu1 %5851  ;;  %v18072_v61 = vpop.eup %13494  ;;  %v5699_v31 = vcombine.low %v5660_v29, %v5692_v11  ;;  %v18092_v4 = vrot.slane %v10323_v41, %v16164_v50  ;;  %v10372_v10 = vcombine.high %v18078_v42, %v18070_v48 }
 0x681   : > { %20155 = vst [vmem:[#allocation70_spill] sm:$0xff] %v18072_v61  ;;  %v18083_v17 = vpop.eup %13496  ;;  %20157 = vst [vmem:[#allocation91_spill] sm:$0xff] %v18086_v46  ;;  %v9441_v28 = vsel %vm1066_vm1, %v18072_v61, 0.0  ;;  %v5700_v30 = vcombine.high %v5660_v29, %v5692_v11  ;;  %v5446_v11 = vcombine.high %v17566_v32, %v17547_v12  ;;  %v20162_v29 = vld [vmem:[#allocation58_spill] sm:$0xff]  ;;  %v18138_v39 = vrot.slane %v10355_v63, %v16430_v55  ;;  %v20164_v32 = vld [vmem:[#allocation68_spill] sm:$0xff] }
 0x682   : > { %5887 = vrot.lane.b32.xlu1 %v5698_v27, %s13670_s13  ;;  %v10339_v38 = vcombine.low %v9590_v8, %v9594_v14  ;;  %v10340_v26 = vcombine.high %v9590_v8, %v9594_v14  ;;  %20156 = vst [vmem:[#allocation52_spill] sm:$0xff] %v18083_v17  ;;  %v9453_v37 = vsel %vm1066_vm1, %v18083_v17, 0.0  ;;  %v5494_v14 = vcombine.high %v20161_v13, %v20160_v16  ;;  %v20165_v12 = vld [vmem:[#allocation116_spill] sm:$0xff] }
 0x683   : > { %9430 = vadd.xlane.f32.xlu0 %v9429_v34  ;;  %v18112_v52 = vpop.eup %13498  ;;  %v18130_v34 = vrot.slane %v10372_v10, %v16430_v55  ;;  %v20166_v54 = vcombine.low %v20164_v32, %v20165_v12  ;;  %v20168_v10 = vld [vmem:[#allocation71_spill] sm:$0xff]  ;;  %v5540_v16 = vrot.slane %v5526_v3, %v16430_v55  ;;  %v5460_v32 = vrot.slane %v5446_v11, %v16164_v50 }
 0x684   : > { %v5868_v58 = vpop.permute.xlu1 %5867  ;;  %v18089_v8 = vrot.slane %v10340_v26, %v16164_v50  ;;  %v18095_v51 = vrot.slane %v10339_v38, %v16164_v50  ;;  %20159 = vst [vmem:[#allocation117_spill] sm:$0xff] %v18112_v52  ;;  %v20163_v38 = vld [vmem:[#allocation29_spill] sm:$0xff]  ;;  %v9465_v63 = vsel %vm1066_vm1, %v18112_v52, 0.0  ;;  %v5508_v3 = vrot.slane %v5494_v14, %v16430_v55 }
 0x685   : > { %v5430_v26 = vcombine.high %v20163_v38, %v20162_v29 }
 0x686   : > { %20158 = vst [vmem:[#allocation30_spill] sm:$0xff] %v18089_v8  ;;  %5903 = vrot.lane.b32.xlu1 %v5699_v31, %s13669_s11  ;;  %v10404_v18 = vcombine.high %v18086_v46, %v18089_v8  ;;  %v10387_v22 = vcombine.low %v18092_v4, %v18095_v51  ;;  %v18156_v38 = vpop.eup %13500  ;;  %v5559_v29 = vcombine.low %v5508_v3, %v5540_v16  ;;  %v20179_v46 = vld [vmem:[#allocation64_spill] sm:$0xff] }
 0x687   : > { %9442 = vadd.xlane.f32.xlu0 %v9441_v28  ;;  %v5492_v28 = vrot.slane %v5478_v9, %v16164_v50  ;;  %20169 = vst [vmem:[#allocation65_spill] sm:$0xff] %v18156_v38 }
 0x688   : > { %v5884_v27 = vpop.permute.xlu1 %5883  ;;  %v18117_v53 = vrot.slane %v10404_v18, %v16430_v55  ;;  %v18120_v41 = vrot.slane %v10387_v22, %v16430_v55  ;;  %v5960_v18 = vsel %vm1066_vm1, %v20166_v54, %v18039_v25  ;;  %v20167_v22 = vld [vmem:[#allocation27_spill] sm:$0xff] }
 0x689   : > { %v5964_v9 = vsel %vm5929_vm3, %v5960_v18, %v18052_v15  ;;  %v5476_v15 = vrot.slane %v5462_v21, %v16164_v50  ;;  %v9477_v21 = vsel %vm1066_vm1, %v18156_v38, 0.0  ;;  %v20171_v38 = vld [vmem:[#allocation78_spill] sm:$0xff] }
 0x68a   : > { %5919 = vrot.lane.b32.xlu1 %v5700_v30, %s13668_s10  ;;  %v18134_v31 = vpop.xlane.xlu0 %9388  ;;  %v5558_v30 = vcombine.high %v20168_v10, %v20167_v22  ;;  %v5968_v25 = vsel %vm5934_vm4, %v5964_v9, %v5852_v6  ;;  %v5560_v9 = vcombine.high %v5508_v3, %v5540_v16 }
 0x68b   : > { %9454 = vadd.xlane.f32.xlu0 %v9453_v37  ;;  %v5972_v12 = vsel %vm5939_vm5, %v5968_v25, %v5868_v58  ;;  %v5444_v37 = vrot.slane %v5430_v26, %v16164_v50  ;;  %v5541_v52 = vcombine.low %v5476_v15, %v5492_v28 }
 0x68c   : > { %v5900_v13 = vpop.permute.xlu1 %5899  ;;  %v5976_v18 = vsel %vm5944_vm6, %v5972_v12, %v5884_v27  ;;  %v5542_v12 = vcombine.high %v5476_v15, %v5492_v28 }
 0x68d   : > { %v5980_v6 = vsel %vm5949_vm7, %v5976_v18, %v5900_v13  ;;  %v5509_v11 = vcombine.low %v5444_v37, %v5460_v32  ;;  %v5549_v27 = vrot.slane %v5541_v52, %v16430_v55 }
 0x68e   : > { %5711 = vrot.lane.b32.xlu1 %v5558_v30, %s13673_s17  ;;  %v5706_v54 = vpop.permute.xlu0 %5705 }
 0x68f   : > { %9466 = vadd.xlane.f32.xlu0 %v9465_v63  ;;  %v5517_v26 = vrot.slane %v5509_v11, %v16430_v55  ;;  %v20170_v11 = vld [vmem:[#allocation38_spill] sm:$0xff] }
 0x690   : > { %v5916_v30 = vpop.permute.xlu1 %5915  ;;  %v20172_v61 = vcombine.low %v20170_v11, %v20171_v38  ;;  %v20176_v11 = vld [vmem:[#allocation40_spill] sm:$0xff] }
 0x691   : > { %v5984_v14 = vsel %vm5954_vm8, %v5980_v6, %v5916_v30  ;;  %v5561_v25 = vcombine.low %v5517_v26, %v5549_v27  ;;  %v5562_v30 = vcombine.high %v5517_v26, %v5549_v27 }
 0x692   : > { %5727 = vrot.lane.b32.xlu1 %v5559_v29, %s13674_s25  ;;  %5990 = vst [vmem:[%s17897_s14 + $0x28] sm:$0xff] %v5984_v14  ;;  %v5722_v58 = vpop.permute.xlu0 %5721  ;;  %v5510_v29 = vcombine.high %v5444_v37, %v5460_v32  ;;  %v5556_v14 = vrot.slane %v5542_v12, %v16430_v55  ;;  %v5925_v28 = vsel %vm1066_vm1, %v20172_v61, %v5706_v54  ;;  %v20173_v37 = vld [vmem:[#allocation41_spill] sm:$0xff]  ;;  %v20174_v32 = vld [vmem:[#allocation12_spill] sm:$0xff] }
 0x693   : > { %9478 = vadd.xlane.f32.xlu0 %v9477_v21  ;;  %v9796_v15 = vcombine.high %v20174_v32, %v20173_v37  ;;  %v5930_v27 = vsel %vm5929_vm3, %v5925_v28, %v5722_v58  ;;  %v20177_v61 = vld [vmem:[#allocation20_spill] sm:$0xff]  ;;  %v20180_v58 = vld [vmem:[#allocation97_spill] sm:$0xff]  ;;  %v20183_v28 = vld [vmem:[#allocation42_spill] sm:$0xff] }
 0x694   : > { %v5708_v63 = vpop.permute.xlu1 %5707  ;;  %v5524_v52 = vrot.slane %v5510_v29, %v16430_v55  ;;  %v20175_v29 = vld [vmem:[#allocation105_spill] sm:$0xff]  ;;  %v9780_v54 = vcombine.high %v20177_v61, %v20176_v11 }
 0x696   : > { %5743 = vrot.lane.b32.xlu1 %v5560_v9, %s13675_s26  ;;  %v5738_v13 = vpop.permute.xlu0 %5737  ;;  %v5563_v3 = vcombine.low %v5524_v52, %v5556_v14  ;;  %v5564_v12 = vcombine.high %v5524_v52, %v5556_v14  ;;  %v20182_v52 = vld [vmem:[#allocation18_spill] sm:$0xff] }
 0x698   : > { %v5724_v18 = vpop.permute.xlu1 %5723 }
 0x69a   : > { %5759 = vrot.lane.b32.xlu1 %v5561_v25, %s13676_s28  ;;  %v5754_v6 = vpop.permute.xlu0 %5753  ;;  %v5935_v25 = vsel %vm5934_vm4, %v5930_v27, %v5738_v13  ;;  %v20181_v13 = vld [vmem:[#allocation108_spill] sm:$0xff]  ;;  %v9810_v27 = vrot.slane %v9796_v15, %v16164_v50 }
 0x69b   : > { %v5940_v17 = vsel %vm5939_vm5, %v5935_v25, %v5754_v6  ;;  %v9812_v14 = vcombine.high %v20181_v13, %v20180_v58  ;;  %v20184_v25 = vld [vmem:[#allocation128_spill] sm:$0xff] }
 0x69c   : > { %v5740_v21 = vpop.permute.xlu1 %5739 }
 0x69e   : > { %5775 = vrot.lane.b32.xlu1 %v5562_v30, %s13670_s13  ;;  %v5770_v16 = vpop.permute.xlu0 %5769  ;;  %v9844_v30 = vcombine.high %v20175_v29, %v17733_v2  ;;  %v9748_v2 = vcombine.high %v20183_v28, %v20182_v52  ;;  %v20185_v29 = vld [vmem:[#allocation11_spill] sm:$0xff] }
 0x69f   : > { %v5945_v37 = vsel %vm5944_vm6, %v5940_v17, %v5770_v16  ;;  %v20186_v11 = vcombine.low %v20184_v25, %v20185_v29  ;;  %v20187_v16 = vld [vmem:[#allocation107_spill] sm:$0xff] }
 0x6a0   : > { %v5756_v9 = vpop.permute.xlu1 %5755  ;;  %v9762_v25 = vrot.slane %v9748_v2, %v16164_v50 }
 0x6a2   : > { %5791 = vrot.lane.b32.xlu1 %v5563_v3, %s13669_s11  ;;  %v5786_v26 = vpop.permute.xlu0 %5785  ;;  %v20178_v3 = vld [vmem:[#allocation75_spill] sm:$0xff] }
 0x6a3   : > { %v9764_v8 = vcombine.high %v20179_v46, %v20178_v3  ;;  %v5950_v6 = vsel %vm5949_vm7, %v5945_v37, %v5786_v26  ;;  %v5926_v46 = vsel %vm1066_vm1, %v20186_v11, %v5708_v63  ;;  %v9858_v3 = vrot.slane %v9844_v30, %v16430_v55  ;;  %v20189_v26 = vld [vmem:[#allocation22_spill] sm:$0xff]  ;;  %v20190_v37 = vld [vmem:[#allocation15_spill] sm:$0xff] }
 0x6a4   : > { %v5772_v38 = vpop.permute.xlu1 %5771  ;;  %v5931_v58 = vsel %vm5929_vm3, %v5926_v46, %v5724_v18  ;;  %v20191_v15 = vcombine.high %v20189_v26, %v20190_v37  ;;  %v9826_v63 = vrot.slane %v9812_v14, %v16430_v55  ;;  %v9794_v30 = vrot.slane %v9780_v54, %v16164_v50  ;;  %v20192_v46 = vld [vmem:[#allocation26_spill] sm:$0xff]  ;;  %v20252_v37 = vld [vmem:[#allocation115_spill] sm:$0xff] }
 0x6a5   : > { %v5936_v52 = vsel %vm5934_vm4, %v5931_v58, %v5740_v21  ;;  %v9778_v28 = vrot.slane %v9764_v8, %v16164_v50 }
 0x6a6   : > { %5807 = vrot.lane.b32.xlu1 %v5564_v12, %s13668_s10  ;;  %v5802_v32 = vpop.permute.xlu0 %5801  ;;  %v20188_v12 = vld [vmem:[#allocation55_spill] sm:$0xff]  ;;  %v5941_v18 = vsel %vm5939_vm5, %v5936_v52, %v5756_v9  ;;  %v9859_v29 = vcombine.low %v9794_v30, %v9810_v27  ;;  %v9878_v9 = vcombine.high %v9826_v63, %v9858_v3  ;;  %v20197_v52 = vld [vmem:[#allocation66_spill] sm:$0xff] }
 0x6a7   : > { %v5955_v17 = vsel %vm5954_vm8, %v5950_v6, %v5802_v32  ;;  %v9876_v61 = vcombine.high %v20188_v12, %v20187_v16  ;;  %v5946_v6 = vsel %vm5944_vm6, %v5941_v18, %v5772_v38  ;;  %v9877_v32 = vcombine.low %v9826_v63, %v9858_v3 }
 0x6a8   : > { %5987 = vst [vmem:[%s17897_s14] sm:$0xff] %v5955_v17  ;;  %v5788_v13 = vpop.permute.xlu1 %5787  ;;  %v20193_v17 = vld [vmem:[#allocation37_spill] sm:$0xff]  ;;  %v9827_v54 = vcombine.low %v9762_v25, %v9778_v28  ;;  %v9867_v38 = vrot.slane %v9859_v29, %v16430_v55  ;;  %v10100_v3 = vcombine.high %v17852_v45, %v17855_v23  ;;  %v20200_v29 = vld [vmem:[#allocation56_spill] sm:$0xff] }
 0x6a9   : > { %5821 = vrot.lane.b32.xlu0 %v20191_v15, %s13673_s17  ;;  %v5951_v11 = vsel %vm5949_vm7, %v5946_v6, %v5788_v13  ;;  %v20195_v14 = vcombine.high %v20192_v46, %v20193_v17  ;;  %v10132_v13 = vcombine.high %v17925_v7, %v17928_v19  ;;  %v20196_v15 = vld [vmem:[#allocation21_spill] sm:$0xff] }
 0x6aa   : > { %10815 = vrot.lane.b32.xlu1 %v9876_v61, %s13673_s17  ;;  %v20194_v61 = vcombine.low %v20192_v46, %v20193_v17  ;;  %v9835_v2 = vrot.slane %v9827_v54, %v16430_v55  ;;  %v20198_v18 = vcombine.low %v20196_v15, %v20197_v52  ;;  %v10114_v7 = vrot.slane %v10100_v3, %v16430_v55  ;;  %v20204_v46 = vld [vmem:[#allocation131_spill] sm:$0xff]  ;;  %v20205_v17 = vld [vmem:[#allocation132_spill] sm:$0xff] }
 0x6ab   : > { %v10146_v6 = vrot.slane %v10132_v13, %v16430_v55  ;;  %v20208_v54 = vld [vmem:[#allocation135_spill] sm:$0xff]  ;;  %v20213_v13 = vld [vmem:[#allocation134_spill] sm:$0xff] }
 0x6ac   : > { %v5804_v21 = vpop.permute.xlu1 %5803  ;;  %v9879_v58 = vcombine.low %v9835_v2, %v9867_v38  ;;  %v9880_v63 = vcombine.high %v9835_v2, %v9867_v38  ;;  %v9860_v2 = vcombine.high %v9794_v30, %v9810_v27  ;;  %v20216_v30 = vld [vmem:[#allocation61_spill] sm:$0xff] }
 0x6ad   : > { %5837 = vrot.lane.b32.xlu0 %v20194_v61, %s13674_s25  ;;  %v5956_v8 = vsel %vm5954_vm8, %v5951_v11, %v5804_v21  ;;  %v10153_v19 = vcombine.low %v10114_v7, %v10146_v6  ;;  %v20201_v11 = vld [vmem:[#allocation81_spill] sm:$0xff]  ;;  %v10154_v45 = vcombine.high %v10114_v7, %v10146_v6  ;;  %v20206_v61 = vcombine.low %v20204_v46, %v20205_v17 }
 0x6ae   : > { %10831 = vrot.lane.b32.xlu1 %v9877_v32, %s13674_s25  ;;  %5989 = vst [vmem:[%s17897_s14 + $0x20] sm:$0xff] %v5956_v8  ;;  %v20199_v32 = vcombine.high %v20196_v15, %v20197_v52  ;;  %v20202_v21 = vcombine.low %v20200_v29, %v20201_v11  ;;  %v20203_v23 = vcombine.high %v20200_v29, %v20201_v11  ;;  %13502 = vrcp.f32 %v20216_v30  ;;  %v20219_v11 = vld [vmem:[#allocation85_spill] sm:$0xff] }
 0x6af   : > { %v20207_v8 = vcombine.high %v20204_v46, %v20205_v17  ;;  %v9828_v52 = vcombine.high %v9762_v25, %v9778_v28  ;;  %v20218_v28 = vld [vmem:[#allocation50_spill] sm:$0xff]  ;;  %v20222_v17 = vld [vmem:[#allocation25_spill] sm:$0xff] }
 0x6b1   : > { %5853 = vrot.lane.b32.xlu0 %v20195_v14, %s13675_s26  ;;  %v9842_v6 = vrot.slane %v9828_v52, %v16430_v55 }
 0x6b2   : > { %10847 = vrot.lane.b32.xlu1 %v9878_v9, %s13675_s26  ;;  %v20209_v9 = vld [vmem:[#allocation133_spill] sm:$0xff] }
 0x6b3   : > { %v20210_v38 = vcombine.low %v20208_v54, %v20209_v9  ;;  %v20211_v14 = vcombine.high %v20208_v54, %v20209_v9  ;;  %v20224_v54 = vld [vmem:[#allocation53_spill] sm:$0xff]  ;;  %v20225_v9 = vld [vmem:[#allocation47_spill] sm:$0xff] }
 0x6b5   : > { %5869 = vrot.lane.b32.xlu0 %v20198_v18, %s13676_s28  ;;  %v9874_v18 = vrot.slane %v9860_v2, %v16430_v55  ;;  %v20227_v2 = vld [vmem:[#allocation129_spill] sm:$0xff] }
 0x6b6   : > { %10863 = vrot.lane.b32.xlu1 %v9879_v58, %s13676_s28  ;;  %v20212_v58 = vld [vmem:[#allocation136_spill] sm:$0xff] }
 0x6b7   : > { %v20214_v15 = vcombine.low %v20212_v58, %v20213_v13  ;;  %v9882_v29 = vcombine.high %v9842_v6, %v9874_v18 }
 0x6b9   : > { %5885 = vrot.lane.b32.xlu0 %v20199_v32, %s13670_s13  ;;  %v9881_v32 = vcombine.low %v9842_v6, %v9874_v18  ;;  %v20230_v18 = vld [vmem:[#allocation46_spill] sm:$0xff]  ;;  %v9740_v6 = vcombine.high %v17842_v59, %v17835_v40 }
 0x6ba   : > { %10879 = vrot.lane.b32.xlu1 %v9880_v63, %s13670_s13  ;;  %v20215_v63 = vcombine.high %v20212_v58, %v20213_v13  ;;  %v20228_v13 = vld [vmem:[#allocation43_spill] sm:$0xff] }
 0x6bd   : > { %5901 = vrot.lane.b32.xlu0 %v20202_v21, %s13669_s11  ;;  %v20220_v21 = vld [vmem:[#allocation51_spill] sm:$0xff] }
 0x6be   : > { %10897 = vrot.lane.b32.xlu1 %v10153_v19, %s13669_s11  ;;  %v20217_v19 = vld [vmem:[#allocation123_spill] sm:$0xff] }
 0x6bf   : > { %v9660_v25 = vcombine.high %v20218_v28, %v20217_v19 }
 0x6c1   : > { %5917 = vrot.lane.b32.xlu0 %v20203_v23, %s13668_s10  ;;  %v20221_v23 = vld [vmem:[#allocation24_spill] sm:$0xff]  ;;  %v9674_v30 = vrot.slane %v9660_v25, %v16164_v50 }
 0x6c2   : > { %10913 = vrot.lane.b32.xlu1 %v10154_v45, %s13668_s10  ;;  %v9708_v45 = vcombine.high %v20220_v21, %v20219_v11  ;;  %13504 = vrcp.f32 %v20221_v23  ;;  %v13503_v23 = vpop.eup %13502 }
 0x6c5   : > { %5725 = vrot.lane.b32.xlu0 %v20206_v61, %s13674_s25  ;;  %v20223_v61 = vld [vmem:[#allocation80_spill] sm:$0xff] }
 0x6c9   : > { %5741 = vrot.lane.b32.xlu0 %v20207_v8, %s13675_s26  ;;  %v9644_v8 = vcombine.high %v20223_v61, %v20222_v17 }
 0x6cc   : > { %v13505_v17 = vpop.eup %13504 }
 0x6cd   : > { %5757 = vrot.lane.b32.xlu0 %v20210_v38, %s13676_s28  ;;  %v9628_v38 = vcombine.high %v20225_v9, %v20224_v54 }
 0x6cf   : > { %v9642_v28 = vrot.slane %v9628_v38, %v16164_v50 }
 0x6d1   : > { %5773 = vrot.lane.b32.xlu0 %v20211_v14, %s13670_s13  ;;  %v20226_v14 = vld [vmem:[#allocation112_spill] sm:$0xff] }
 0x6d2   : > { %v9676_v58 = vcombine.high %v20227_v2, %v20226_v14 }
 0x6d4   : > { %v9690_v19 = vrot.slane %v9676_v58, %v16430_v55  ;;  %v20232_v58 = vld [vmem:[#allocation88_spill] sm:$0xff] }
 0x6d5   : > { %5789 = vrot.lane.b32.xlu0 %v20214_v15, %s13669_s11  ;;  %v20229_v15 = vld [vmem:[#allocation119_spill] sm:$0xff] }
 0x6d6   : > { %v9612_v52 = vcombine.high %v20229_v15, %v20228_v13 }
 0x6d8   : > { %v9347_v3 = vpop.xlane.xlu0 %9346  ;;  %v9626_v25 = vrot.slane %v9612_v52, %v16164_v50 }
 0x6d9   : > { %5805 = vrot.lane.b32.xlu0 %v20215_v63, %s13668_s10 }
 0x6dc   : > { %v18292_v7 = vpop.xlane.xlu0 %9400 }
 0x6dd   : > { %10895 = vrot.lane.b32.xlu0 %v9881_v32, %s13669_s11  ;;  %v9722_v32 = vrot.slane %v9708_v45, %v16430_v55 }
 0x6de   : > { %v9446_v27 = vpop.xlane.xlu1 %9445 }
 0x6df   : > { %13506 = vrcp.f32 %v9446_v27  ;;  %v9741_v21 = vcombine.low %v9690_v19, %v9722_v32 }
 0x6e0   : > { %v9359_v46 = vpop.xlane.xlu0 %9358  ;;  %13508 = vrcp.f32 %v20230_v18  ;;  %v20235_v18 = vcombine.low %v17435_v57, %v17413_v43 }
 0x6e1   : > { %10911 = vrot.lane.b32.xlu0 %v9882_v29, %s13668_s10  ;;  %v9658_v29 = vrot.slane %v9644_v8, %v16164_v50 }
 0x6e2   : > { %v9458_v63 = vpop.xlane.xlu1 %9457 }
 0x6e3   : > { %13510 = vrcp.f32 %v9458_v63 }
 0x6e4   : > { %13512 = vrcp.f32 %v17914_v33  ;;  %v18316_v27 = vpop.xlane.xlu0 %9412  ;;  %v9723_v33 = vcombine.low %v9658_v29, %v9674_v30 }
 0x6e5   : > { %13514 = vrcp.f32 %v17941_v44  ;;  %10703 = vrot.lane.b32.xlu0 %v9740_v6, %s13673_s17  ;;  %v9691_v44 = vcombine.low %v9626_v25, %v9642_v28 }
 0x6e6   : > { %13516 = vrcp.f32 %v18013_v47  ;;  %v9470_v11 = vpop.xlane.xlu1 %9469  ;;  %v9742_v47 = vcombine.high %v9690_v19, %v9722_v32  ;;  %v9724_v32 = vcombine.high %v9658_v29, %v9674_v30 }
 0x6e7   : > { %13518 = vrcp.f32 %v9359_v46  ;;  %v9731_v46 = vrot.slane %v9723_v33, %v16430_v55  ;;  %v9699_v14 = vrot.slane %v9691_v44, %v16430_v55 }
 0x6e8   : > { %13520 = vrcp.f32 %v9347_v3  ;;  %v9371_v45 = vpop.xlane.xlu0 %9370  ;;  %v20231_v3 = vld [vmem:[#allocation94_spill] sm:$0xff]  ;;  %v9738_v29 = vrot.slane %v9724_v32, %v16430_v55  ;;  %v20242_v32 = vld [vmem:[#allocation33_spill] sm:$0xff] }
 0x6e9   : > { %13522 = vrcp.f32 %v9470_v11  ;;  %10719 = vrot.lane.b32.xlu0 %v9741_v21, %s13674_s25  ;;  %v13507_v8 = vpop.eup %13506  ;;  %v9743_v6 = vcombine.low %v9699_v14, %v9731_v46  ;;  %v9744_v30 = vcombine.high %v9699_v14, %v9731_v46  ;;  %v20241_v46 = vld [vmem:[#allocation122_spill] sm:$0xff] }
 0x6ea   : > { %13524 = vrcp.f32 %v17887_v60  ;;  %v9482_v61 = vpop.xlane.xlu1 %9481  ;;  %v13509_v54 = vpop.eup %13508  ;;  %v18334_v13 = vmul.f32 %v13507_v8, %v20232_v58  ;;  %v18370_v14 = vmul.f32 %v13505_v17, %v20241_v46  ;;  %v20246_v17 = vld [vmem:[#allocation31_spill] sm:$0xff] }
 0x6eb   : > { %13526 = vrcp.f32 %v9482_v61  ;;  %v20237_v61 = vld [vmem:[#allocation113_spill] sm:$0xff]  ;;  %v18387_v46 = vmul.f32 %v13503_v23, %v20246_v17  ;;  %v20248_v23 = vld [vmem:[#allocation126_spill] sm:$0xff] }
 0x6ec   : > { %v18328_v9 = vpop.xlane.xlu0 %9424  ;;  %13528 = vrcp.f32 %v20231_v3  ;;  %20233 = vst [vmem:[#allocation121_spill] sm:$0xff] %v18334_v13 }
 0x6ed   : > { %v13511_v38 = vpop.eup %13510  ;;  %10735 = vrot.lane.b32.xlu0 %v9742_v47, %s13675_s26  ;;  %13530 = vrcp.f32 %v9371_v45  ;;  %v9692_v45 = vcombine.high %v9626_v25, %v9642_v28  ;;  %v20240_v28 = vld [vmem:[#allocation14_spill] sm:$0xff] }
 0x6ee   : > { %v13513_v2 = vpop.eup %13512  ;;  %v18337_v60 = vmul.f32 %v13511_v38, %v17814_v49  ;;  %v5710_v15 = vpop.permute.xlu1 %5709  ;;  %v20238_v38 = vld [vmem:[#allocation54_spill] sm:$0xff] }
 0x6ef   : > { %v13515_v52 = vpop.eup %13514  ;;  %v18343_v63 = vsel %vm1066_vm1, %v20235_v18, %v5710_v15  ;;  %v20239_v18 = vld [vmem:[#allocation100_spill] sm:$0xff] }
 0x6f0   : > { %20234 = vst [vmem:[#allocation99_spill] sm:$0xff] %v18337_v60  ;;  %20236 = vst [vmem:[#allocation48_spill] sm:$0xff] %v18343_v63  ;;  %v13517_v19 = vpop.eup %13516  ;;  %v10579_v11 = vcombine.low %v18334_v13, %v18337_v60  ;;  %v9383_v49 = vpop.xlane.xlu0 %9382  ;;  %v18365_v25 = vmul.f32 %v13515_v52, %v20240_v28  ;;  %v20245_v52 = vld [vmem:[#allocation95_spill] sm:$0xff] }
 0x6f1   : > { %v13519_v33 = vpop.eup %13518  ;;  %13532 = vrcp.f32 %v9383_v49  ;;  %10751 = vrot.lane.b32.xlu0 %v9743_v6, %s13676_s28  ;;  %v18353_v8 = vmul.f32 %v13517_v19, %v20237_v61  ;;  %v18362_v6 = vmul.f32 %v13513_v2, %v20239_v18  ;;  %v9706_v19 = vrot.slane %v9692_v45, %v16430_v55 }
 0x6f2   : > { %v13521_v44 = vpop.eup %13520  ;;  %v18350_v43 = vpop.permute.xlu1 %5823  ;;  %v18357_v3 = vmul.f32 %v13519_v33, %v20238_v38  ;;  %v20243_v33 = vld [vmem:[#allocation67_spill] sm:$0xff]  ;;  %v20244_v38 = vld [vmem:[#allocation76_spill] sm:$0xff]  ;;  %v18404_v16 = vrot.slane %v10579_v11, %v16164_v50  ;;  %13534 = vrcp.f32 %v18292_v7 }
 0x6f3   : > { %v13523_v57 = vpop.eup %13522  ;;  %v18373_v49 = vmul.f32 %v13521_v44, %v20242_v32  ;;  %v10595_v45 = vcombine.low %v18365_v25, %v18353_v8  ;;  %v20247_v44 = vld [vmem:[#allocation60_spill] sm:$0xff]  ;;  %v9746_v59 = vcombine.high %v9706_v19, %v9738_v29 }
 0x6f4   : > { %v13525_v47 = vpop.eup %13524  ;;  %v18359_v58 = vpop.xlane.xlu0 %9436  ;;  %v18376_v61 = vmul.f32 %v13523_v57, %v20243_v33  ;;  %v9575_v32 = vmul.f32 %v13509_v54, %v20247_v44  ;;  %20250 = vst [vmem:[#allocation82_spill] sm:$0xff] %v18404_v16 }
 0x6f5   : > { %v13527_v15 = vpop.eup %13526  ;;  %10767 = vrot.lane.b32.xlu0 %v9744_v30, %s13670_s13  ;;  %v18382_v28 = vmul.f32 %v13525_v47, %v20245_v52  ;;  %v9745_v30 = vcombine.low %v9706_v19, %v9738_v29  ;;  %v9899_v57 = vcombine.low %v18373_v49, %v18357_v3  ;;  %v9883_v52 = vcombine.low %v18387_v46, %v18370_v14 }
 0x6f6   : > { %v18379_v21 = vmul.f32 %v13527_v15, %v20244_v38  ;;  %v5840_v2 = vpop.permute.xlu1 %5839  ;;  %v13529_v18 = vpop.eup %13528  ;;  %v18407_v12 = vrot.slane %v10595_v45, %v16164_v50 }
 0x6f7   : > { %v13531_v38 = vpop.eup %13530  ;;  %v10563_v47 = vcombine.low %v18382_v28, %v18362_v6  ;;  %v9571_v17 = vmul.f32 %v13529_v18, %v20248_v23  ;;  %v9907_v18 = vrot.slane %v9899_v57, %v16164_v50  ;;  %v9891_v45 = vrot.slane %v9883_v52, %v16164_v50 }
 0x6f8   : > { %v10611_v15 = vcombine.low %v18376_v61, %v18379_v21  ;;  %v9395_v33 = vpop.xlane.xlu0 %9394  ;;  %20251 = vst [vmem:[#allocation125_spill] sm:$0xff] %v18407_v12 }
 0x6f9   : > { %10783 = vrot.lane.b32.xlu0 %v9745_v30, %s13669_s11  ;;  %v9915_v63 = vcombine.low %v9571_v17, %v9575_v32  ;;  %v9573_v30 = vmul.f32 %v13531_v38, %v20252_v37  ;;  %v9947_v23 = vcombine.low %v9891_v45, %v9907_v18  ;;  %v9916_v13 = vcombine.high %v9571_v17, %v9575_v32 }
 0x6fa   : > { %v5856_v40 = vpop.permute.xlu1 %5855  ;;  %v18401_v54 = vrot.slane %v10611_v15, %v16164_v50  ;;  %v18416_v15 = vrot.slane %v10563_v47, %v16164_v50  ;;  %v20255_v32 = vcombine.low %v17611_v24, %v17591_v35 }
 0x6fb   : > { %v13533_v44 = vpop.eup %13532  ;;  %v9923_v38 = vrot.slane %v9915_v63, %v16164_v50  ;;  %v9900_v63 = vcombine.high %v18373_v49, %v18357_v3  ;;  %v20256_v49 = vld [vmem:[#allocation130_spill] sm:$0xff] }
 0x6fc   : > { %20249 = vst [vmem:[#allocation96_spill] sm:$0xff] %v18401_v54  ;;  %v9577_v26 = vmul.f32 %v13533_v44, %v17889_v1  ;;  %v18411_v60 = vpop.xlane.xlu0 %9448  ;;  %20253 = vst [vmem:[#allocation74_spill] sm:$0xff] %v18416_v15  ;;  %v10659_v11 = vcombine.low %v18407_v12, %v18401_v54  ;;  %v10627_v37 = vcombine.low %v18416_v15, %v18404_v16 }
 0x6fd   : > { %10799 = vrot.lane.b32.xlu0 %v9746_v59, %s13668_s10  ;;  %v20254_v59 = vcombine.high %v17944_v5, %v17947_v36  ;;  %v18440_v16 = vrot.slane %v9947_v23, %v16430_v55  ;;  %v5962_v3 = vsel %vm1066_vm1, %v20255_v32, %v18350_v43  ;;  %v20257_v17 = vcombine.low %v17950_v56, %v20256_v49 }
 0x6fe   : > { %v9931_v29 = vcombine.low %v9573_v30, %v9577_v26  ;;  %v5872_v19 = vpop.permute.xlu1 %5871  ;;  %v18430_v47 = vrot.slane %v10659_v11, %v16430_v55  ;;  %v9932_v44 = vcombine.high %v9573_v30, %v9577_v26  ;;  %v18433_v15 = vrot.slane %v10627_v37, %v16430_v55 }
 0x6ff   : > { %v9948_v11 = vcombine.high %v9891_v45, %v9907_v18  ;;  %v9884_v26 = vcombine.high %v18387_v46, %v18370_v14  ;;  %v5966_v18 = vsel %vm5929_vm3, %v5962_v3, %v5840_v2  ;;  %v9930_v43 = vrot.slane %v9916_v13, %v16164_v50 }
 0x700   : > { %v9407_v1 = vpop.xlane.xlu0 %9406  ;;  %v9939_v57 = vrot.slane %v9931_v29, %v16164_v50  ;;  %v10691_v30 = vcombine.low %v18433_v15, %v18430_v47  ;;  %v9946_v35 = vrot.slane %v9932_v44, %v16164_v50  ;;  %v5970_v24 = vsel %vm5934_vm4, %v5966_v18, %v5856_v40 }
 0x701   : > { %10817 = vrot.lane.b32.xlu0 %v20254_v59, %s13673_s17  ;;  %13536 = vrcp.f32 %v9407_v1  ;;  %v5974_v46 = vsel %vm5939_vm5, %v5970_v24, %v5872_v19  ;;  %v9962_v2 = vrot.slane %v9948_v11, %v16430_v55  ;;  %v20258_v40 = vcombine.high %v17950_v56, %v20256_v49  ;;  %v20259_v56 = vld [vmem:[#allocation63_spill] sm:$0xff] }
 0x702   : > { %v5888_v12 = vpop.permute.xlu1 %5887  ;;  %v9979_v52 = vcombine.low %v9923_v38, %v9939_v57  ;;  %v9980_v54 = vcombine.high %v9923_v38, %v9939_v57  ;;  %v9914_v38 = vrot.slane %v9900_v63, %v16164_v50  ;;  %13538 = vrcp.f32 %v9395_v33  ;;  %v20260_v63 = vld [vmem:[#allocation28_spill] sm:$0xff] }
 0x703   : > { %v5978_v57 = vsel %vm5944_vm6, %v5974_v46, %v5888_v12  ;;  %v9898_v13 = vrot.slane %v9884_v26, %v16164_v50  ;;  %13540 = vrcp.f32 %v18134_v31  ;;  %v9995_v44 = vcombine.low %v9930_v43, %v9946_v35 }
 0x704   : > { %v18437_v29 = vpop.xlane.xlu0 %9460  ;;  %v18443_v59 = vrot.slane %v9979_v52, %v16430_v55  ;;  %v9994_v14 = vrot.slane %v9980_v54, %v16430_v55  ;;  %13542 = vrcp.f32 %v18328_v9  ;;  %v20261_v31 = vcombine.low %v20259_v56, %v20260_v63  ;;  %v13535_v9 = vpop.eup %13534 }
 0x705   : > { %10833 = vrot.lane.b32.xlu0 %v20257_v17, %s13674_s25  ;;  %v9963_v52 = vcombine.low %v9898_v13, %v9914_v38  ;;  %13544 = vrcp.f32 %v18316_v27  ;;  %v10003_v32 = vrot.slane %v9995_v44, %v16430_v55  ;;  %v20262_v27 = vcombine.high %v20259_v56, %v20260_v63  ;;  %v20265_v44 = vld [vmem:[#allocation127_spill] sm:$0xff]  ;;  %v20266_v63 = vld [vmem:[#allocation69_spill] sm:$0xff] }
 0x706   : > { %v5904_v45 = vpop.permute.xlu1 %5903  ;;  %v10012_v7 = vcombine.high %v18440_v16, %v18443_v59  ;;  %v10011_v54 = vcombine.low %v18440_v16, %v18443_v59  ;;  %v10013_v23 = vcombine.low %v9962_v2, %v9994_v14  ;;  %v10014_v26 = vcombine.high %v9962_v2, %v9994_v14 }
 0x707   : > { %v5982_v19 = vsel %vm5949_vm7, %v5978_v57, %v5904_v45  ;;  %v9971_v49 = vrot.slane %v9963_v52, %v16430_v55  ;;  %v10425_v24 = vcombine.low %v18130_v34, %v18117_v53 }
 0x708   : > { %10705 = vrot.lane.b32.xlu1 %v10012_v7, %s13673_s17  ;;  %v9419_v37 = vpop.xlane.xlu0 %9418  ;;  %v9996_v7 = vcombine.high %v9930_v43, %v9946_v35 }
 0x709   : > { %10849 = vrot.lane.b32.xlu0 %v20258_v40, %s13675_s26  ;;  %13546 = vrcp.f32 %v9419_v37  ;;  %v10015_v45 = vcombine.low %v9971_v49, %v10003_v32  ;;  %v20263_v37 = vld [vmem:[#allocation45_spill] sm:$0xff]  ;;  %v9964_v40 = vcombine.high %v9898_v13, %v9914_v38 }
 0x70a   : > { %v5920_v1 = vpop.permute.xlu1 %5919  ;;  %v10010_v52 = vrot.slane %v9996_v7, %v16430_v55 }
 0x70b   : > { %v5986_v33 = vsel %vm5954_vm8, %v5982_v19, %v5920_v1  ;;  %v13537_v17 = vpop.eup %13536  ;;  %v20264_v1 = vld [vmem:[#allocation83_spill] sm:$0xff] }
 0x70c   : > { %5994 = vst [vmem:[%s17897_s14 + $0x68] sm:$0xff] %v5986_v33  ;;  %10721 = vrot.lane.b32.xlu1 %v10013_v23, %s13674_s25  ;;  %v9473_v12 = vpop.xlane.xlu0 %9472  ;;  %v13539_v14 = vpop.eup %13538  ;;  %v18503_v2 = vmul.f32 %v13537_v17, %v20263_v37  ;;  %v18508_v23 = vmul.f32 %v13535_v9, %v20264_v1  ;;  %v10016_v33 = vcombine.high %v9971_v49, %v10003_v32  ;;  %v20268_v17 = vld [vmem:[#allocation23_spill] sm:$0xff] }
 0x70d   : > { %10865 = vrot.lane.b32.xlu0 %v20261_v31, %s13676_s28  ;;  %v13541_v46 = vpop.eup %13540  ;;  %v9581_v35 = vmul.f32 %v13539_v14, %v20265_v44  ;;  %v9978_v32 = vrot.slane %v9964_v40, %v16430_v55  ;;  %v10388_v14 = vcombine.high %v18092_v4, %v18095_v51 }
 0x70e   : > { %v18489_v11 = vpop.permute.xlu1 %5711  ;;  %v13543_v19 = vpop.eup %13542  ;;  %v18513_v31 = vmul.f32 %v13541_v46, %v20266_v63  ;;  %v20269_v46 = vld [vmem:[#allocation77_spill] sm:$0xff] }
 0x70f   : > { %v13545_v56 = vpop.eup %13544  ;;  %v10171_v13 = vcombine.low %v9581_v35, %v18503_v2  ;;  %v10018_v4 = vcombine.high %v9978_v32, %v10010_v52  ;;  %v10172_v44 = vcombine.high %v9581_v35, %v18503_v2  ;;  %v20270_v35 = vcombine.low %v20168_v10, %v20167_v22  ;;  %v20271_v22 = vld [vmem:[#allocation30_spill] sm:$0xff]  ;;  %v20272_v10 = vld [vmem:[#allocation91_spill] sm:$0xff] }
 0x710   : > { %10737 = vrot.lane.b32.xlu1 %v10014_v26, %s13675_s26  ;;  %v9431_v3 = vpop.xlane.xlu0 %9430  ;;  %v20267_v26 = vld [vmem:[#allocation103_spill] sm:$0xff]  ;;  %v10155_v49 = vcombine.low %v18513_v31, %v18508_v23  ;;  %v10156_v2 = vcombine.high %v18513_v31, %v18508_v23 }
 0x711   : > { %13548 = vrcp.f32 %v9431_v3  ;;  %10881 = vrot.lane.b32.xlu0 %v20262_v27, %s13670_s13  ;;  %v18517_v38 = vmul.f32 %v13543_v19, %v20267_v26  ;;  %v9587_v27 = vmul.f32 %v13545_v56, %v20268_v17 }
 0x712   : > { %v18498_v18 = vpop.permute.xlu1 %5727  ;;  %13550 = vrcp.f32 %v18359_v58  ;;  %v10163_v51 = vrot.slane %v10155_v49, %v16164_v50 }
 0x713   : > { %13552 = vrcp.f32 %v18411_v60  ;;  %v13547_v3 = vpop.eup %13546  ;;  %v10356_v60 = vcombine.high %v18081_v20, %v18075_v62 }
 0x714   : > { %10753 = vrot.lane.b32.xlu1 %v10015_v45, %s13676_s28  ;;  %v9443_v57 = vpop.xlane.xlu0 %9442  ;;  %v10017_v45 = vcombine.low %v9978_v32, %v10010_v52  ;;  %v9589_v37 = vmul.f32 %v13547_v3, %v20269_v46 }
 0x715   : > { %10899 = vrot.lane.b32.xlu0 %v10425_v24, %s13669_s11  ;;  %v10187_v24 = vcombine.low %v9587_v27, %v18517_v38 }
 0x716   : > { %v5744_v43 = vpop.permute.xlu1 %5743 }
 0x717   : > { %v10195_v63 = vrot.slane %v10187_v24, %v16164_v50 }
 0x718   : > { %10769 = vrot.lane.b32.xlu1 %v10016_v33, %s13670_s13  ;;  %v9455_v9 = vpop.xlane.xlu0 %9454  ;;  %v18544_v33 = vrot.slane %v10388_v14, %v16430_v55 }
 0x719   : > { %13554 = vrcp.f32 %v9455_v9  ;;  %v5928_v9 = vsel %vm1066_vm1, %v20270_v35, %v18489_v11  ;;  %v10403_v11 = vcombine.low %v20272_v10, %v20271_v22 }
 0x71a   : > { %13556 = vrcp.f32 %v9473_v12  ;;  %v5760_v58 = vpop.permute.xlu1 %5759  ;;  %v10179_v12 = vrot.slane %v10171_v13, %v16164_v50  ;;  %v5933_v3 = vsel %vm5929_vm3, %v5928_v9, %v18498_v18  ;;  %v20275_v9 = vld [vmem:[#allocation32_spill] sm:$0xff] }
 0x71b   : > { %v13549_v7 = vpop.eup %13548  ;;  %13558 = vrcp.f32 %v9443_v57  ;;  %v10371_v57 = vcombine.low %v18078_v42, %v18070_v48  ;;  %v10564_v48 = vcombine.high %v18382_v28, %v18362_v6 }
 0x71c   : > { %v9593_v40 = vmul.f32 %v13549_v7, %v18059_v0  ;;  %10785 = vrot.lane.b32.xlu1 %v10017_v45, %s13669_s11  ;;  %v9467_v19 = vpop.xlane.xlu0 %9466  ;;  %13560 = vrcp.f32 %v18437_v29  ;;  %v18541_v0 = vrot.slane %v10356_v60, %v16430_v55  ;;  %v10188_v29 = vcombine.high %v9587_v27, %v18517_v38  ;;  %v13551_v13 = vpop.eup %13550 }
 0x71d   : > { %13562 = vrcp.f32 %v9467_v19  ;;  %v10220_v26 = vcombine.high %v10163_v51, %v10179_v12  ;;  %v10420_v38 = vcombine.high %v18138_v39, %v18120_v41  ;;  %v13553_v32 = vpop.eup %13552  ;;  %v5938_v45 = vsel %vm5934_vm4, %v5933_v3, %v5744_v43  ;;  %v20276_v3 = vld [vmem:[#allocation70_spill] sm:$0xff] }
 0x71e   : > { %v10203_v62 = vcombine.low %v9589_v37, %v9593_v40  ;;  %v10204_v20 = vcombine.high %v9589_v37, %v9593_v40  ;;  %v5776_v1 = vpop.permute.xlu1 %5775  ;;  %v18568_v7 = vrot.slane %v10172_v44, %v16164_v50  ;;  %v10219_v60 = vcombine.low %v10163_v51, %v10179_v12 }
 0x71f   : > { %v5943_v24 = vsel %vm5939_vm5, %v5938_v45, %v5760_v58  ;;  %v10234_v46 = vrot.slane %v10220_v26, %v16430_v55  ;;  %v18577_v43 = vrot.slane %v10188_v29, %v16164_v50  ;;  %v10421_v12 = vcombine.low %v18541_v0, %v18544_v33  ;;  %v20277_v45 = vld [vmem:[#allocation89_spill] sm:$0xff] }
 0x720   : > { %10801 = vrot.lane.b32.xlu1 %v10018_v4, %s13668_s10  ;;  %v9479_v56 = vpop.xlane.xlu0 %9478  ;;  %v10211_v52 = vrot.slane %v10203_v62, %v16164_v50  ;;  %v18562_v27 = vrot.slane %v10204_v20, %v16164_v50  ;;  %v5948_v19 = vsel %vm5944_vm6, %v5943_v24, %v5776_v1  ;;  %v18583_v58 = vrot.slane %v10156_v2, %v16164_v50  ;;  %v20273_v20 = vld [vmem:[#allocation52_spill] sm:$0xff] }
 0x721   : > { %13564 = vrcp.f32 %v9479_v56  ;;  %v18601_v35 = vrot.slane %v10219_v60, %v16430_v55  ;;  %v18616_v22 = vmul.f32 %v13551_v13, %v20277_v45  ;;  %v10422_v10 = vcombine.high %v18541_v0, %v18544_v33 }
 0x722   : > { %v5792_v49 = vpop.permute.xlu1 %5791  ;;  %v10252_v17 = vcombine.high %v10195_v63, %v10211_v52  ;;  %v10251_v23 = vcombine.low %v10195_v63, %v10211_v52  ;;  %v10267_v1 = vcombine.low %v18577_v43, %v18562_v27  ;;  %v20274_v63 = vld [vmem:[#allocation93_spill] sm:$0xff]  ;;  %v10235_v2 = vcombine.low %v18583_v58, %v18568_v7 }
 0x723   : > { %v13555_v31 = vpop.eup %13554  ;;  %v5953_v51 = vsel %vm5949_vm7, %v5948_v19, %v5792_v49  ;;  %v18595_v52 = vmul.f32 %v13553_v32, %v20274_v63  ;;  %v10379_v0 = vrot.slane %v10371_v57, %v16430_v55  ;;  %v20282_v63 = vld [vmem:[#allocation99_spill] sm:$0xff] }
 0x724   : > { %v13557_v14 = vpop.eup %13556  ;;  %10819 = vrot.lane.b32.xlu1 %v10420_v38, %s13673_s17  ;;  %v18572_v18 = vpop.permute.xlu0 %5821  ;;  %v10266_v37 = vrot.slane %v10252_v17, %v16430_v55  ;;  %v18586_v62 = vrot.slane %v10251_v23, %v16430_v55  ;;  %v18589_v4 = vmul.f32 %v13555_v31, %v20273_v20  ;;  %v10411_v17 = vrot.slane %v10403_v11, %v16430_v55  ;;  %v20280_v20 = vld [vmem:[#allocation65_spill] sm:$0xff] }
 0x725   : > { %v13559_v40 = vpop.eup %13558  ;;  %v18604_v38 = vmul.f32 %v13557_v14, %v20275_v9  ;;  %v10612_v31 = vcombine.high %v18376_v61, %v18379_v21  ;;  %v20278_v14 = vld [vmem:[#allocation57_spill] sm:$0xff]  ;;  %v10275_v19 = vrot.slane %v10267_v1, %v16430_v55  ;;  %v10596_v21 = vcombine.high %v18365_v25, %v18353_v8 }
 0x726   : > { %v5808_v44 = vpop.permute.xlu1 %5807  ;;  %v10285_v29 = vcombine.low %v10234_v46, %v10266_v37  ;;  %v13561_v56 = vpop.eup %13560  ;;  %v18607_v49 = vmul.f32 %v13559_v40, %v20276_v3  ;;  %v10283_v60 = vcombine.low %v18601_v35, %v18586_v62  ;;  %v10286_v11 = vcombine.high %v10234_v46, %v10266_v37  ;;  %v20279_v46 = vld [vmem:[#allocation117_spill] sm:$0xff] }
 0x727   : > { %v5958_v26 = vsel %vm5954_vm8, %v5953_v51, %v5808_v44  ;;  %v13563_v23 = vpop.eup %13562  ;;  %v18623_v24 = vmul.f32 %v13561_v56, %v20278_v14  ;;  %v10427_v61 = vcombine.low %v18616_v22, %v18595_v52  ;;  %v10243_v33 = vrot.slane %v10235_v2, %v16430_v55  ;;  %v20281_v56 = vld [vmem:[#allocation121_spill] sm:$0xff] }
 0x728   : > { %5993 = vst [vmem:[%s17897_s14 + $0x60] sm:$0xff] %v5958_v26  ;;  %10835 = vrot.lane.b32.xlu1 %v10421_v12, %s13674_s25  ;;  %10723 = vrot.lane.b32.xlu0 %v10285_v29, %s13674_s25  ;;  %v5838_v32 = vpop.permute.xlu0 %5837  ;;  %v10443_v40 = vcombine.low %v18607_v49, %v18589_v4  ;;  %v18640_v37 = vmul.f32 %v13563_v23, %v20279_v46 }
 0x729   : > { %v10459_v13 = vcombine.low %v18623_v24, %v18604_v38  ;;  %v10423_v42 = vcombine.low %v10379_v0, %v10411_v17  ;;  %v18650_v25 = vrot.slane %v10612_v31, %v16164_v50  ;;  %v10287_v44 = vcombine.low %v10243_v33, %v10275_v19 }
 0x72a   : > { %v10268_v29 = vcombine.high %v18577_v43, %v18562_v27  ;;  %v18657_v1 = vrot.slane %v10443_v40, %v16164_v50  ;;  %v20283_v26 = vcombine.high %v20281_v56, %v20282_v63  ;;  %v18666_v6 = vrot.slane %v10596_v21, %v16164_v50  ;;  %v20287_v63 = vld [vmem:[#allocation96_spill] sm:$0xff] }
 0x72b   : > { %v13565_v12 = vpop.eup %13564  ;;  %v10435_v28 = vrot.slane %v10427_v61, %v16164_v50  ;;  %v10236_v27 = vcombine.high %v18583_v58, %v18568_v7  ;;  %v10467_v43 = vrot.slane %v10459_v13, %v16164_v50  ;;  %v10424_v23 = vcombine.high %v10379_v0, %v10411_v17  ;;  %v20285_v13 = vld [vmem:[#allocation15_spill] sm:$0xff] }
 0x72c   : > { %v18643_v51 = vmul.f32 %v13565_v12, %v20280_v20  ;;  %10851 = vrot.lane.b32.xlu1 %v10422_v10, %s13675_s26  ;;  %10739 = vrot.lane.b32.xlu0 %v10286_v11, %s13675_s26  ;;  %v5854_v8 = vpop.permute.xlu0 %5853  ;;  %v18663_v2 = vrot.slane %v20283_v26, %v16164_v50  ;;  %v18676_v31 = vrot.slane %v10564_v48, %v16164_v50 }
 0x72d   : > { %v10676_v45 = vcombine.high %v18666_v6, %v18650_v25  ;;  %v10288_v10 = vcombine.high %v10243_v33, %v10275_v19  ;;  %v10282_v14 = vrot.slane %v10268_v29, %v16430_v55  ;;  %v10491_v40 = vcombine.low %v10435_v28, %v18657_v1  ;;  %v20284_v33 = vld [vmem:[#allocation22_spill] sm:$0xff] }
 0x72e   : > { %v10475_v57 = vcombine.low %v18640_v37, %v18643_v51  ;;  %v10644_v7 = vcombine.high %v18676_v31, %v18663_v2  ;;  %v10250_v17 = vrot.slane %v10236_v27, %v16430_v55  ;;  %v10284_v61 = vcombine.high %v18601_v35, %v18586_v62 }
 0x72f   : > { %v18691_v19 = vrot.slane %v10676_v45, %v16430_v55  ;;  %v18696_v0 = vrot.slane %v10491_v40, %v16430_v55  ;;  %v20286_v46 = vcombine.low %v20284_v33, %v20285_v13  ;;  %v10476_v27 = vcombine.high %v18640_v37, %v18643_v51 }
 0x730   : > { %10867 = vrot.lane.b32.xlu1 %v10423_v42, %s13676_s28  ;;  %10755 = vrot.lane.b32.xlu0 %v10287_v44, %s13676_s28  ;;  %v5870_v9 = vpop.permute.xlu0 %5869  ;;  %v10483_v3 = vrot.slane %v10475_v57, %v16164_v50  ;;  %v10289_v21 = vcombine.low %v10250_v17, %v10282_v14  ;;  %v18704_v48 = vrot.slane %v10644_v7, %v16430_v55 }
 0x731   : > { %v5961_v20 = vsel %vm1066_vm1, %v20286_v46, %v18572_v18  ;;  %v20288_v18 = vld [vmem:[#allocation125_spill] sm:$0xff]  ;;  %v10492_v51 = vcombine.high %v10435_v28, %v18657_v1  ;;  %v10816_v28 = vpop.permute.xlu1 %10815 }
 0x732   : > { %v10523_v11 = vcombine.low %v10467_v43, %v10483_v3  ;;  %v5965_v42 = vsel %vm5929_vm3, %v5961_v20, %v5838_v32  ;;  %v10697_v56 = vcombine.low %v18704_v48, %v18691_v19  ;;  %v10660_v26 = vcombine.high %v20288_v18, %v20287_v63 }
 0x733   : > { %v5969_v29 = vsel %vm5934_vm4, %v5965_v42, %v5854_v8  ;;  %v10524_v45 = vcombine.high %v10467_v43, %v10483_v3  ;;  %v20289_v8 = vld [vmem:[#allocation82_spill] sm:$0xff]  ;;  %v10428_v43 = vcombine.high %v18616_v22, %v18595_v52  ;;  %v10490_v3 = vrot.slane %v10476_v27, %v16164_v50 }
 0x734   : > { %10883 = vrot.lane.b32.xlu1 %v10424_v23, %s13670_s13  ;;  %10771 = vrot.lane.b32.xlu0 %v10288_v10, %s13670_s13  ;;  %v5886_v58 = vpop.permute.xlu0 %5885  ;;  %v18688_v12 = vrot.slane %v10523_v11, %v16430_v55  ;;  %v5973_v32 = vsel %vm5939_vm5, %v5969_v29, %v5870_v9  ;;  %v10290_v23 = vcombine.high %v10250_v17, %v10282_v14  ;;  %v20290_v11 = vld [vmem:[#allocation74_spill] sm:$0xff] }
 0x735   : > { %v10460_v10 = vcombine.high %v18623_v24, %v18604_v38  ;;  %v5977_v40 = vsel %vm5944_vm6, %v5973_v32, %v5886_v58  ;;  %v10628_v7 = vcombine.high %v20290_v11, %v20289_v8  ;;  %v10692_v38 = vcombine.high %v18433_v15, %v18430_v47 }
 0x736   : > { %v10555_v44 = vcombine.low %v18696_v0, %v18688_v12  ;;  %v10674_v24 = vrot.slane %v10660_v26, %v16430_v55  ;;  %v10506_v58 = vrot.slane %v10492_v51, %v16430_v55  ;;  %v10675_v17 = vcombine.low %v18666_v6, %v18650_v25 }
 0x737   : > { %v10642_v1 = vrot.slane %v10628_v7, %v16430_v55  ;;  %v10474_v22 = vrot.slane %v10460_v10, %v16164_v50  ;;  %v10442_v46 = vrot.slane %v10428_v43, %v16164_v50  ;;  %v20291_v7 = vld [vmem:[#allocation48_spill] sm:$0xff] }
 0x738   : > { %10787 = vrot.lane.b32.xlu0 %v10289_v21, %s13669_s11  ;;  %10707 = vrot.lane.b32.xlu1 %v10284_v61, %s13673_s17  ;;  %v5902_v57 = vpop.permute.xlu0 %5901  ;;  %v10444_v21 = vcombine.high %v18607_v49, %v18589_v4  ;;  %v10556_v4 = vcombine.high %v18696_v0, %v18688_v12  ;;  %v10538_v49 = vrot.slane %v10524_v45, %v16430_v55 }
 0x739   : > { %v5981_v61 = vsel %vm5949_vm7, %v5977_v40, %v5902_v57  ;;  %v10693_v33 = vcombine.low %v10642_v1, %v10674_v24  ;;  %v10539_v20 = vcombine.low %v10474_v22, %v10490_v3  ;;  %v10643_v57 = vcombine.low %v18676_v31, %v18663_v2 }
 0x73a   : > { %v10458_v52 = vrot.slane %v10444_v21, %v16164_v50  ;;  %v10557_v13 = vcombine.low %v10506_v58, %v10538_v49  ;;  %v10694_v63 = vcombine.high %v10642_v1, %v10674_v24  ;;  %v10558_v18 = vcombine.high %v10506_v58, %v10538_v49  ;;  %v20294_v58 = vld [vmem:[#allocation107_spill] sm:$0xff] }
 0x73b   : > { %v10683_v26 = vrot.slane %v10675_v17, %v16430_v55  ;;  %v10547_v25 = vrot.slane %v10539_v20, %v16430_v55  ;;  %v10651_v6 = vrot.slane %v10643_v57, %v16430_v55  ;;  %v10540_v2 = vcombine.high %v10474_v22, %v10490_v3 }
 0x73c   : > { %10803 = vrot.lane.b32.xlu0 %v10290_v23, %s13668_s10  ;;  %10901 = vrot.lane.b32.xlu1 %v10697_v56, %s13669_s11  ;;  %v5918_v37 = vpop.permute.xlu0 %5917  ;;  %v10507_v29 = vcombine.low %v10442_v46, %v10458_v52  ;;  %v10832_v56 = vpop.permute.xlu1 %10831  ;;  %v10508_v10 = vcombine.high %v10442_v46, %v10458_v52  ;;  %v20292_v49 = vcombine.high %v18130_v34, %v18117_v53 }
 0x73d   : > { %v5985_v9 = vsel %vm5954_vm8, %v5981_v61, %v5918_v37  ;;  %v10695_v32 = vcombine.low %v10651_v6, %v10683_v26  ;;  %v10696_v40 = vcombine.high %v10651_v6, %v10683_v26  ;;  %v10554_v11 = vrot.slane %v10540_v2, %v16430_v55  ;;  %v20297_v6 = vld [vmem:[#allocation34_spill] sm:$0xff] }
 0x73e   : > { %5992 = vst [vmem:[%s17897_s14 + $0x48] sm:$0xff] %v5985_v9  ;;  %v10515_v27 = vrot.slane %v10507_v29, %v16430_v55  ;;  %v10522_v37 = vrot.slane %v10508_v10, %v16430_v55  ;;  %v10698_v46 = vcombine.high %v18704_v48, %v18691_v19 }
 0x740   : > { %10821 = vrot.lane.b32.xlu0 %v10692_v38, %s13673_s17  ;;  %10709 = vrot.lane.b32.xlu1 %v10556_v4, %s13673_s17  ;;  %v5726_v14 = vpop.permute.xlu0 %5725  ;;  %v10559_v23 = vcombine.low %v10515_v27, %v10547_v25  ;;  %v10848_v31 = vpop.permute.xlu1 %10847  ;;  %v10560_v8 = vcombine.high %v10515_v27, %v10547_v25  ;;  %v10561_v24 = vcombine.low %v10522_v37, %v10554_v11 }
 0x741   : > { %v5932_v21 = vsel %vm5929_vm3, %v20291_v7, %v5726_v14  ;;  %v10562_v1 = vcombine.high %v10522_v37, %v10554_v11  ;;  %v20293_v14 = vld [vmem:[#allocation55_spill] sm:$0xff] }
 0x742   : > { %v20295_v52 = vcombine.low %v20293_v14, %v20294_v58 }
 0x744   : > { %10837 = vrot.lane.b32.xlu0 %v10693_v33, %s13674_s25  ;;  %10725 = vrot.lane.b32.xlu1 %v10557_v13, %s13674_s25  ;;  %v5742_v42 = vpop.permute.xlu0 %5741  ;;  %v10864_v9 = vpop.permute.xlu1 %10863  ;;  %v10951_v22 = vsel %vm1066_vm1, %v20295_v52, %v10816_v28 }
 0x745   : > { %v5937_v51 = vsel %vm5934_vm4, %v5932_v21, %v5742_v42  ;;  %v10955_v17 = vsel %vm5929_vm3, %v10951_v22, %v10832_v56 }
 0x746   : > { %v10959_v34 = vsel %vm5934_vm4, %v10955_v17, %v10848_v31 }
 0x747   : > { %v10963_v13 = vsel %vm5939_vm5, %v10959_v34, %v10864_v9 }
 0x748   : > { %10853 = vrot.lane.b32.xlu0 %v10694_v63, %s13675_s26  ;;  %10741 = vrot.lane.b32.xlu1 %v10558_v18, %s13675_s26  ;;  %v5758_v50 = vpop.permute.xlu0 %5757  ;;  %v10880_v33 = vpop.permute.xlu1 %10879 }
 0x749   : > { %v5942_v38 = vsel %vm5939_vm5, %v5937_v51, %v5758_v50  ;;  %v10967_v20 = vsel %vm5944_vm6, %v10963_v13, %v10880_v33  ;;  %v20296_v50 = vld [vmem:[#allocation49_spill] sm:$0xff] }
 0x74a   : > { %v20298_v19 = vcombine.low %v20296_v50, %v20297_v6 }
 0x74c   : > { %10869 = vrot.lane.b32.xlu0 %v10695_v32, %s13676_s28  ;;  %10757 = vrot.lane.b32.xlu1 %v10559_v23, %s13676_s28  ;;  %v5774_v45 = vpop.permute.xlu0 %5773  ;;  %v10898_v26 = vpop.permute.xlu1 %10897 }
 0x74d   : > { %v5947_v43 = vsel %vm5944_vm6, %v5942_v38, %v5774_v45 }
 0x750   : > { %10885 = vrot.lane.b32.xlu0 %v10696_v40, %s13670_s13  ;;  %10773 = vrot.lane.b32.xlu1 %v10560_v8, %s13670_s13  ;;  %v5790_v61 = vpop.permute.xlu0 %5789  ;;  %v10914_v2 = vpop.permute.xlu1 %10913 }
 0x751   : > { %v5952_v4 = vsel %vm5949_vm7, %v5947_v43, %v5790_v61 }
 0x754   : > { %10915 = vrot.lane.b32.xlu0 %v20292_v49, %s13668_s10  ;;  %10789 = vrot.lane.b32.xlu1 %v10561_v24, %s13669_s11  ;;  %v5806_v3 = vpop.permute.xlu0 %5805  ;;  %v20299_v24 = vcombine.low %v17944_v5, %v17947_v36 }
 0x755   : > { %v5957_v55 = vsel %vm5954_vm8, %v5952_v4, %v5806_v3 }
 0x756   : > { %5991 = vst [vmem:[%s17897_s14 + $0x40] sm:$0xff] %v5957_v55 }
 0x758   : > { %10805 = vrot.lane.b32.xlu1 %v10562_v1, %s13668_s10  ;;  %v10896_v53 = vpop.permute.xlu0 %10895 }
 0x759   : > { %v10971_v42 = vsel %vm5949_vm7, %v10967_v20, %v10896_v53 }
 0x75c   : > { %10917 = vrot.lane.b32.xlu1 %v10698_v46, %s13668_s10  ;;  %v10912_v28 = vpop.permute.xlu0 %10911  ;;  %s13677_s10 = smov [#allocation5]  }
 0x75d   : > { %v10975_v57 = vsel %vm5954_vm8, %v10971_v42, %v10912_v28  ;;  %s13600_s11 = sshll.u32 %s13677_s10, 4  ;;  %s13601_s11 = int_to_ptr.vmem [resolvable:$false] %s13600_s11 }
 0x75e   : > { %10980 = vst [vmem:[%s17897_s14 + $0x18] sm:$0xff] %v10975_v57  ;;  %s13602_s13 = scalar_lea.vmem %s13601_s11, 4096  ;;  %p13603_p8 = scmp.lt.s32.totalorder %s18876_s16, %s13601_s11 }
 0x75f   : > { %p13604_p10 = scmp.lt.s32.totalorder %s13602_s13, %s13596_s9 }
 0x760   : > { %v10704_v29 = vpop.permute.xlu0 %10703 }
 0x761   : > { %v10923_v48 = vsel %vm1066_vm1, %v20298_v19, %v10704_v29  ;;  %p13605_p0 = por %p13604_p10, %p13603_p8 }
 0x763   : > { %p13606_p2 = pnand %p13605_p0, %p13599_p13 }
 0x764   : > { %v10720_v56 = vpop.permute.xlu0 %10719 }
 0x765   : > { %v10927_v27 = vsel %vm5929_vm3, %v10923_v48, %v10720_v56 }
 0x768   : > { %v10736_v63 = vpop.permute.xlu0 %10735 }
 0x769   : > { %v10931_v23 = vsel %vm5934_vm4, %v10927_v27, %v10736_v63 }
 0x76c   : > { %v10752_v18 = vpop.permute.xlu0 %10751 }
 0x76d   : > { %v10935_v31 = vsel %vm5939_vm5, %v10931_v23, %v10752_v18 }
 0x770   : > { %v10768_v25 = vpop.permute.xlu0 %10767 }
 0x771   : > { %v10939_v45 = vsel %vm5944_vm6, %v10935_v31, %v10768_v25 }
 0x774   : > { %v10784_v32 = vpop.permute.xlu0 %10783 }
 0x775   : > { %v10943_v10 = vsel %vm5949_vm7, %v10939_v45, %v10784_v32 }
 0x778   : > { %v10800_v40 = vpop.permute.xlu0 %10799 }
 0x779   : > { %v10947_v8 = vsel %vm5954_vm8, %v10943_v10, %v10800_v40 }
 0x77a   : > { %10979 = vst [vmem:[%s17897_s14 + $0x10] sm:$0xff] %v10947_v8  ;;  %v10706_v11 = vpop.permute.xlu1 %10705 }
 0x77b   : > { %v10924_v14 = vsel %vm1066_vm1, %v10011_v54, %v10706_v11  ;;  %v20300_v11 = vcombine.low %v18138_v39, %v18120_v41 }
 0x77c   : > { %v10818_v7 = vpop.permute.xlu0 %10817 }
 0x77d   : > { %v10952_v43 = vsel %vm1066_vm1, %v20299_v24, %v10818_v7 }
 0x77e   : > { %v10722_v21 = vpop.permute.xlu1 %10721 }
 0x77f   : > { %v10928_v5 = vsel %vm5929_vm3, %v10924_v14, %v10722_v21 }
 0x780   : > { %v10834_v61 = vpop.permute.xlu0 %10833 }
 0x781   : > { %v10956_v4 = vsel %vm5929_vm3, %v10952_v43, %v10834_v61 }
 0x782   : > { %v10738_v37 = vpop.permute.xlu1 %10737 }
 0x783   : > { %v10932_v22 = vsel %vm5934_vm4, %v10928_v5, %v10738_v37 }
 0x784   : > { %v10850_v51 = vpop.permute.xlu0 %10849 }
 0x785   : > { %v10960_v3 = vsel %vm5934_vm4, %v10956_v4, %v10850_v51 }
 0x786   : > { %v10754_v9 = vpop.permute.xlu1 %10753 }
 0x787   : > { %v10936_v33 = vsel %vm5939_vm5, %v10932_v22, %v10754_v9 }
 0x788   : > { %v10866_v38 = vpop.permute.xlu0 %10865 }
 0x789   : > { %v10964_v55 = vsel %vm5939_vm5, %v10960_v3, %v10866_v38 }
 0x78a   : > { %v10770_v49 = vpop.permute.xlu1 %10769 }
 0x78b   : > { %v10940_v53 = vsel %vm5944_vm6, %v10936_v33, %v10770_v49 }
 0x78c   : > { %v10882_v1 = vpop.permute.xlu0 %10881 }
 0x78d   : > { %v10968_v58 = vsel %vm5944_vm6, %v10964_v55, %v10882_v1 }
 0x78e   : > { %v10972_v36 = vsel %vm5949_vm7, %v10968_v58, %v10898_v26  ;;  %v10786_v52 = vpop.permute.xlu1 %10785 }
 0x78f   : > { %v10976_v17 = vsel %vm5954_vm8, %v10972_v36, %v10914_v2  ;;  %v10944_v16 = vsel %vm5949_vm7, %v10940_v53, %v10786_v52 }
 0x790   : > { %10982 = vst [vmem:[%s17897_s14 + $0x38] sm:$0xff] %v10976_v17  ;;  %v10900_v34 = vpop.permute.xlu0 %10899 }
 0x792   : > { %v10802_v59 = vpop.permute.xlu1 %10801 }
 0x793   : > { %v10948_v54 = vsel %vm5954_vm8, %v10944_v16, %v10802_v59 }
 0x794   : > { %10981 = vst [vmem:[%s17897_s14 + $0x30] sm:$0xff] %v10948_v54 }
 0x796   : > { %v10820_v13 = vpop.permute.xlu1 %10819 }
 0x797   : > { %v10953_v7 = vsel %vm1066_vm1, %v20300_v11, %v10820_v13 }
 0x79a   : > { %v10836_v46 = vpop.permute.xlu1 %10835  ;;  %v10724_v20 = vpop.permute.xlu0 %10723 }
 0x79b   : > { %v10957_v21 = vsel %vm5929_vm3, %v10953_v7, %v10836_v46 }
 0x79e   : > { %v10852_v42 = vpop.permute.xlu1 %10851  ;;  %v10740_v28 = vpop.permute.xlu0 %10739 }
 0x79f   : > { %v10961_v61 = vsel %vm5934_vm4, %v10957_v21, %v10852_v42 }
 0x7a2   : > { %v10868_v57 = vpop.permute.xlu1 %10867  ;;  %v10756_v29 = vpop.permute.xlu0 %10755 }
 0x7a3   : > { %v10965_v37 = vsel %vm5939_vm5, %v10961_v61, %v10868_v57 }
 0x7a6   : > { %v10884_v56 = vpop.permute.xlu1 %10883  ;;  %v10772_v63 = vpop.permute.xlu0 %10771 }
 0x7a7   : > { %v10969_v38 = vsel %vm5944_vm6, %v10965_v37, %v10884_v56 }
 0x7a8   : > { %v10973_v43 = vsel %vm5949_vm7, %v10969_v38, %v10900_v34 }
 0x7aa   : > { %v10708_v18 = vpop.permute.xlu1 %10707  ;;  %v10788_v26 = vpop.permute.xlu0 %10787 }
 0x7ab   : > { %v10925_v25 = vsel %vm1066_vm1, %v10283_v60, %v10708_v18 }
 0x7ac   : > { %v10929_v50 = vsel %vm5929_vm3, %v10925_v25, %v10724_v20 }
 0x7ad   : > { %v10933_v6 = vsel %vm5934_vm4, %v10929_v50, %v10740_v28 }
 0x7ae   : > { %v10937_v19 = vsel %vm5939_vm5, %v10933_v6, %v10756_v29  ;;  %v10902_v48 = vpop.permute.xlu1 %10901  ;;  %v10804_v27 = vpop.permute.xlu0 %10803 }
 0x7af   : > { %v10941_v32 = vsel %vm5944_vm6, %v10937_v19, %v10772_v63 }
 0x7b0   : > { %v10945_v23 = vsel %vm5949_vm7, %v10941_v32, %v10788_v26 }
 0x7b1   : > { %v10949_v2 = vsel %vm5954_vm8, %v10945_v23, %v10804_v27 }
 0x7b2   : > { %10983 = vst [vmem:[%s17897_s14 + $0x50] sm:$0xff] %v10949_v2  ;;  %v10710_v31 = vpop.permute.xlu1 %10709  ;;  %v10822_v45 = vpop.permute.xlu0 %10821 }
 0x7b3   : > { %v10926_v24 = vsel %vm1066_vm1, %v10555_v44, %v10710_v31  ;;  %v10954_v49 = vsel %vm1066_vm1, %v10691_v30, %v10822_v45 }
 0x7b6   : > { %v10726_v62 = vpop.permute.xlu1 %10725  ;;  %v10838_v35 = vpop.permute.xlu0 %10837 }
 0x7b7   : > { %v10930_v41 = vsel %vm5929_vm3, %v10926_v24, %v10726_v62  ;;  %v10958_v0 = vsel %vm5929_vm3, %v10954_v49, %v10838_v35 }
 0x7ba   : > { %v10742_v60 = vpop.permute.xlu1 %10741  ;;  %v10854_v10 = vpop.permute.xlu0 %10853 }
 0x7bb   : > { %v10934_v3 = vsel %vm5934_vm4, %v10930_v41, %v10742_v60  ;;  %v10962_v55 = vsel %vm5934_vm4, %v10958_v0, %v10854_v10 }
 0x7be   : > { %v10758_v40 = vpop.permute.xlu1 %10757  ;;  %v10870_v8 = vpop.permute.xlu0 %10869 }
 0x7bf   : > { %v10938_v44 = vsel %vm5939_vm5, %v10934_v3, %v10758_v40  ;;  %v10966_v15 = vsel %vm5939_vm5, %v10962_v55, %v10870_v8 }
 0x7c2   : > { %v10774_v51 = vpop.permute.xlu1 %10773  ;;  %v10886_v9 = vpop.permute.xlu0 %10885 }
 0x7c3   : > { %v10942_v1 = vsel %vm5944_vm6, %v10938_v44, %v10774_v51  ;;  %v10970_v14 = vsel %vm5944_vm6, %v10966_v15, %v10886_v9 }
 0x7c4   : > { %v10974_v36 = vsel %vm5949_vm7, %v10970_v14, %v10902_v48 }
 0x7c6   : > { %v10790_v39 = vpop.permute.xlu1 %10789  ;;  %v10916_v4 = vpop.permute.xlu0 %10915 }
 0x7c7   : > { %v10977_v12 = vsel %vm5954_vm8, %v10973_v43, %v10916_v4  ;;  %v10946_v47 = vsel %vm5949_vm7, %v10942_v1, %v10790_v39 }
 0x7c8   : > { %10984 = vst [vmem:[%s17897_s14 + $0x58] sm:$0xff] %v10977_v12 }
 0x7ca   : > { %v10806_v30 = vpop.permute.xlu1 %10805 }
 0x7cb   : > { %v10950_v58 = vsel %vm5954_vm8, %v10946_v47, %v10806_v30 }
 0x7cc   : > { %10985 = vst [vmem:[%s17897_s14 + $0x70] sm:$0xff] %v10950_v58 }
 0x7ce   : > { %v10918_v5 = vpop.permute.xlu1 %10917 }
 0x7cf   : > { %v10978_v52 = vsel %vm5954_vm8, %v10974_v36, %v10918_v5 }
 0x7d0   : > { %10986 = vst [vmem:[%s17897_s14 + $0x78] sm:$0xff] %v10978_v52 }
 0x7d1   : > { %13609 = shalt.err (!%p13606_p2)
}
 0x7d2   : > { %s13610_s17 = scalar_lea.hbm %s18873_s7, 2048  ;;  %s13614_s12 = scalar_lea.hbm %s18928_s5, 4096 }
 0x7d3   : > { %p13611_p4 = scmp.ne.s32.totalorder %s18873_s7, %s13610_s17  ;;  %p13615_p9 = scmp.lt.u32.totalorder %s18873_s7, %s18928_s5 }
 0x7d4   : > { %p13616_p1 = scmp.lt.u32.totalorder %s13614_s12, %s13610_s17  ;;  %p13618_p6 = scmp.lt.u32.totalorder %s13610_s17, %s18873_s7 }
 0x7d5   : > { %p13612_p5 = pnand %p13611_p4, %p20301_p11 }
 0x7d6   : > { %p13617_p3 = por %p13616_p1, %p13615_p9 }
 0x7d7   : > { %p13613_p7 = pneg %p13612_p5 }
 0x7d8   : > { %p13619_p12 = por %p13618_p6, %p13617_p3 }
 0x7da   : > { %p13620_p13 = pnand %p13619_p12, %p13613_p7 }
 0x7dc   : > { %13623 = shalt.err (!%p13620_p13)
}
 0x7dd   : > { %s13678_s29 = smov 512  }
 0x7de   : > { %12667 = dma.vmem_to_hbm [thread:$0]  (%p20301_p11), %s18876_s16, 2048, %s18873_s7, %s10988_s22, %s13678_s29, %s13678_s29, %s13674_s25  }
 0x7df PF: > { %s11017_s8 = sand.u32 1, %s13650_s18   ;;  %p20302_p8 = scmp.ne.s32.totalorder %s19335_s6, 0 }
 0x7e0   : > { %p20303_p10 = scmp.ge.s32.totalorder %s13662_s21, 2  ;;  %s11018_s9 = scalar_lea.sflag [#allocation4], %s11017_s8 }
 0x7e2   : > { %p12674_p0 = pnand %p20303_p10, %p20302_p8 }
 0x7e4   : > { %13645 = dma.done.wait (!%p12674_p0), %s11018_s9, 2048  }
 0x7e5   : > { %13647 = vsyncadd (!%p12674_p0), %s11018_s9, 4294965248  ;;  %p18_p2 = scmp.ge.s32.totalorder %s13734_s24, 4   ;;  %s20304_s18 = smov %s13654_s19 }
 0x7e6   : > { %s20305_s19 = smov %s13658_s20  ;;  %s20306_s20 = smov %s13746_s27 }
 0x7e7   : > { %s20307_s21 = smov %s13734_s24  ;;  %20 = sbr.rel (!%p18_p2) target bundleno = 5 (0x5), region = 85 }
 0x7ee   :  { %11023 = vsyncpa [#allocation3], 1 }
 0x7ef   :  { %11025 = vsyncpa [#allocation3 + $0x1], 1 }
 0x7f0   :  { %11026 = vsyncpa [#allocation4], 1 }
 0x7f1   :  { %11028 = vsyncpa [#allocation4 + $0x1], 1 }

</bundles_post_ra>
